<compile_context>
chip_gen: v5e
topology: v5e:2x2
jax: 0.10.0
libtpu: 0.0.40
codegen_flags: <defaults>
</compile_context>

<pallas_src>
import jax
import jax.numpy as jnp
from jax.experimental import pallas as pl
from jax.experimental.pallas import tpu as pltpu

# Problem sizes (fixed by the module).
K_IN = 4096 * 3      # 12288 input features
HID = 400            # hidden size (true, unpadded)
OUT = 20             # per-head output size

# Tiling.
N_SPLIT = 2          # K-split across (up to) 2 TensorCores (leading parallel axis)
K_HALF = K_IN // N_SPLIT
TK = 6144            # K tile per grid step (== K_HALF -> 1 inner step per core)

assert K_IN % N_SPLIT == 0
assert K_HALF % TK == 0 and TK % 128 == 0


def _tail_partial_kernel(x_ref, w1_ref, out_ref):
    """Accumulate this core's K-half of x @ W1 into its partial output slab."""
    @pl.when(pl.program_id(1) == 0)
    def _():
        out_ref[...] = jnp.zeros_like(out_ref)

    out_ref[...] += jnp.dot(x_ref[...], w1_ref[...],
                            preferred_element_type=jnp.float32)


def prepare_params(params):
    """One-time parameter prep (kept trivial; nothing to repack anymore).

    NOTE: w1/w2/w3 are expected in (in_features, out_features) layout; a real
    PyTorch nn.Linear.weight is (out_features, in_features) and must be
    transposed here when porting checkpoint weights.
    """
    return dict(params)


@jax.jit
def encoder_forward(x, params):
    """x: (B, 3, 64, 64) float32 (NCHW). Returns (mu, logvar), each (B, 20)."""
    B = x.shape[0]
    x2 = x.reshape(B, K_IN)       # row-major flatten == torch .view(-1, 12288)
    n_k = K_HALF // TK            # inner (reduction) grid steps per core half

    partials = pl.pallas_call(
        _tail_partial_kernel,
        out_shape=jax.ShapeDtypeStruct((N_SPLIT, B, HID), jnp.float32),
        grid_spec=pltpu.PrefetchScalarGridSpec(
            num_scalar_prefetch=0,
            grid=(N_SPLIT, n_k),
            in_specs=[
                # x: (B, TK) tile; B == full array dim so the (8,128) rule holds.
                pl.BlockSpec((B, TK), lambda c, k: (0, c * n_k + k)),
                # W1 streamed at its TRUE (12288, 400) shape, contiguous per core.
                pl.BlockSpec((TK, HID), lambda c, k: (c * n_k + k, 0)),
            ],
            # One partial (B, HID) slab per core; constant across the k axis
            # (accumulator pattern), distinct per c (no cross-core conflict).
            out_specs=pl.BlockSpec((None, B, HID), lambda c, k: (c, 0, 0)),
        ),
        compiler_params=pltpu.CompilerParams(
            dimension_semantics=("parallel", "arbitrary"),
            vmem_limit_bytes=40 << 20),
    )(x2, params["w1"])

    # Tiny epilogue (<1 us of XLA work): combine per-core partials, bias+ReLU,
    # then the two 400->20 heads.
    h = jnp.maximum(partials.sum(axis=0) + params["b1"], 0.0)
    mu = h @ params["w2"] + params["b2"]
    logvar = h @ params["w3"] + params["b3"]
    return mu, logvar


def init_params(key):
    """Deterministic parameter init (shapes match the PyTorch module)."""
    k1, k2, k3, k4, k5, k6 = jax.random.split(key, 6)
    scale1 = 1.0 / jnp.sqrt(K_IN)
    scale2 = 1.0 / jnp.sqrt(HID)
    return {
        "w1": jax.random.normal(k1, (K_IN, HID), jnp.float32) * scale1,
        "b1": jax.random.normal(k4, (1, HID), jnp.float32) * 0.01,
        "w2": jax.random.normal(k2, (HID, OUT), jnp.float32) * scale2,
        "b2": jax.random.normal(k5, (1, OUT), jnp.float32) * 0.01,
        "w3": jax.random.normal(k3, (HID, OUT), jnp.float32) * scale2,
        "b3": jax.random.normal(k6, (1, OUT), jnp.float32) * 0.01,
    }


if __name__ == "__main__":
    key = jax.random.PRNGKey(0)
    pkey, xkey = jax.random.split(key)
    params = init_params(pkey)
    prep = prepare_params(params)   # one-time, outside the hot path

    # Batch of 2 NCHW images, 3x64x64 -> flattens to 4096*3 = 12288 features.
    x = jax.random.normal(xkey, (2, 3, 64, 64), jnp.float32)

    mu, logvar = encoder_forward(x, prep)
    jax.block_until_ready((mu, logvar))

    # Correctness check against plain-JAX reference (raw params).
    x2 = x.reshape(2, K_IN)
    h_ref = jnp.maximum(x2 @ params["w1"] + params["b1"], 0.0)
    mu_ref = h_ref @ params["w2"] + params["b2"]
    lv_ref = h_ref @ params["w3"] + params["b3"]
    assert mu.shape == (2, OUT) and logvar.shape == (2, OUT)
    assert jnp.allclose(mu, mu_ref, atol=1e-3, rtol=1e-3)
    assert jnp.allclose(logvar, lv_ref, atol=1e-3, rtol=1e-3)

    print("KERNEL_OK")
</pallas_src>

<mosaic_0001>
module attributes {stable_mosaic.version = 11 : i64} {
  func.func @_tail_partial_kernel(%arg0: i32, %arg1: i32, %arg2: memref<2x6144xf32, #tpu.memory_space<vmem>>, %arg3: memref<6144x400xf32, #tpu.memory_space<vmem>>, %arg4: memref<1x2x400xf32, #tpu.memory_space<vmem>>) attributes {dimension_semantics = [#tpu.dimension_semantics<parallel>, #tpu.dimension_semantics<arbitrary>], iteration_bounds = array<i64: 2, 1>, scalar_prefetch = 0 : i64, scratch_operands = 0 : i64, tpu.core_type = #tpu.core_type<tc>, window_params = [{transform_indices = @transform_0, window_bounds = array<i64: 2, 6144>}, {transform_indices = @transform_1, window_bounds = array<i64: 6144, 400>}, {transform_indices = @transform_2, window_bounds = array<i64: 1, 2, 400>}]} {
    %c0_i32 = arith.constant 0 : i32
    %0 = arith.cmpi eq, %arg1, %c0_i32 : i32
    %1 = arith.extui %0 : i1 to i32
    %c0_i32_0 = arith.constant 0 : i32
    %2 = arith.cmpi ne, %1, %c0_i32_0 : i32
    scf.if %2 {
      %cst_10 = arith.constant 0.000000e+00 : f32
      %12 = vector.broadcast %cst_10 : f32 to vector<2x400xf32>
      %c0_11 = arith.constant 0 : index
      %c0_12 = arith.constant 0 : index
      %c0_13 = arith.constant 0 : index
      %13 = vector.load %arg4[%c0_11, %c0_12, %c0_13] : memref<1x2x400xf32, #tpu.memory_space<vmem>>, vector<1x2x400xf32>
      %14 = vector.shape_cast %13 : vector<1x2x400xf32> to vector<2x400xf32>
      %15 = vector.shape_cast %12 : vector<2x400xf32> to vector<1x2x400xf32>
      tpu.vector_store %arg4[%c0_11, %c0_12, %c0_13], %15 {strides = array<i32>} : memref<1x2x400xf32, #tpu.memory_space<vmem>>, vector<1x2x400xf32>,
    } else {
    }
    %c0 = arith.constant 0 : index
    %c0_1 = arith.constant 0 : index
    %c0_2 = arith.constant 0 : index
    %3 = vector.load %arg4[%c0, %c0_1, %c0_2] : memref<1x2x400xf32, #tpu.memory_space<vmem>>, vector<1x2x400xf32>
    %4 = vector.shape_cast %3 : vector<1x2x400xf32> to vector<2x400xf32>
    %c0_3 = arith.constant 0 : index
    %c0_4 = arith.constant 0 : index
    %5 = vector.load %arg2[%c0_3, %c0_4] : memref<2x6144xf32, #tpu.memory_space<vmem>>, vector<2x6144xf32>
    %c0_5 = arith.constant 0 : index
    %c0_6 = arith.constant 0 : index
    %6 = vector.load %arg3[%c0_5, %c0_6] : memref<6144x400xf32, #tpu.memory_space<vmem>>, vector<6144x400xf32>
    %cst = arith.constant dense<0.000000e+00> : vector<2x400xf32>
    %7 = tpu.matmul %5, %6, %cst {dimension_numbers = #tpu.dot_dimension_numbers<[1], [0], [0], [1], [0, 0, 1, 1], [], []>} : vector<2x6144xf32>, vector<6144x400xf32>, vector<2x400xf32> -> vector<2x400xf32>
    %8 = arith.addf %4, %7 : vector<2x400xf32>
    %c0_7 = arith.constant 0 : index
    %c0_8 = arith.constant 0 : index
    %c0_9 = arith.constant 0 : index
    %9 = vector.load %arg4[%c0_7, %c0_8, %c0_9] : memref<1x2x400xf32, #tpu.memory_space<vmem>>, vector<1x2x400xf32>
    %10 = vector.shape_cast %9 : vector<1x2x400xf32> to vector<2x400xf32>
    %11 = vector.shape_cast %8 : vector<2x400xf32> to vector<1x2x400xf32>
    tpu.vector_store %arg4[%c0_7, %c0_8, %c0_9], %11 {strides = array<i32>} : memref<1x2x400xf32, #tpu.memory_space<vmem>>, vector<1x2x400xf32>,
    return
  }
  func.func @transform_0(%arg0: i32, %arg1: i32) -> (i32, i32) {
    %c1_i32 = arith.constant 1 : i32
    %0 = arith.muli %arg0, %c1_i32 : i32
    %1 = arith.addi %0, %arg1 : i32
    %c0_i32 = arith.constant 0 : i32
    %c0_i32_0 = arith.constant 0 : i32
    return %c0_i32, %1 : i32, i32
  }
  func.func @transform_1(%arg0: i32, %arg1: i32) -> (i32, i32) {
    %c1_i32 = arith.constant 1 : i32
    %0 = arith.muli %arg0, %c1_i32 : i32
    %1 = arith.addi %0, %arg1 : i32
    %c0_i32 = arith.constant 0 : i32
    %c0_i32_0 = arith.constant 0 : i32
    return %1, %c0_i32 : i32, i32
  }
  func.func @transform_2(%arg0: i32, %arg1: i32) -> (i32, i32, i32) {
    %c0_i32 = arith.constant 0 : i32
    %c0_i32_0 = arith.constant 0 : i32
    %c0_i32_1 = arith.constant 0 : i32
    return %arg0, %c0_i32, %c0_i32_0 : i32, i32, i32
  }
}

</mosaic_0001>

<bundles_post_ra>
// kernel: encoder_forward.1
= control target key start
LH: loop header
LB: loop body
LE: loop exit
PB: predicated region body
PF: predicated region fallthrough
CT: control target
= control target key end

     0   :  { %s7454_s9 = smov 0   ;;  %s7456_s10 = smov 0   ;;  %s11175_s0 = inlined_call_operand.vmem [shape: f32[2,12288], index: 0, kind: input, shape index: {}]   ;;  %s11176_s1 = inlined_call_operand.vmem [shape: f32[12288,400], index: 1, kind: input, shape index: {}]   ;;  %s11177_s2 = inlined_call_operand.vmem [shape: f32[2,2,400], index: 2, kind: output, shape index: {}]  }
   0x1   :  { %s7458_s11 = smov 0  }
   0x2 LB: > { %s24_s12 = sadd.s32 1, %s7432_s10  ;;  %p7355_p0 = scmp.ge.s32.totalorder %s7436_s11, 1  ;;  %s7436_s11 = sphi %s7458_s11, %s12_s11   ;;  %s7432_s10 = sphi %s7456_s10, %s11360_s10   ;;  %s7428_s9 = sphi %s7454_s9, %s11359_s9  }
   0x3   : > { %p26_p1 = scmp.ge.s32.totalorder %s24_s12, 2  ;;  %p145_p2 = scmp.lt.s32.totalorder %s7436_s11, 3 }
   0x5   : > { %s11362_s12 = smov (%p26_p1, %s24_s12), 0  ;;  %p146_p3 = pnand %p7355_p0, %p145_p2 }
   0x7   : > { %149 = sbr.rel (%p146_p3) target bundleno = 3205 (0xc85), region = 28 }
   0xc   : > { %s184_s13 = smul.u32 768, %s7428_s9  ;;  %p192_p6 = scmp.lt.s32.totalorder %s7428_s9, 1  ;;  %vm201_vm0 = vcmask 1041408   ;;  %vm202_vm1 = vcmask 1043458   ;;  %vm204_vm3 = vcmask 1045508   ;;  %vm206_vm5 = vcmask 130054  }
   0xd   : > { %s176_s18 = smul.u32 48, %s7428_s9  ;;  %vm203_vm2 = vmor %vm202_vm1, %vm201_vm0  ;;  %vm7266_vm7 = vcmask 1043456  }
   0xe   : > { %p185_p4 = scmp.lt.s32.totalorder %s184_s13, 1535  ;;  %s11368_s9 = smov (!%p192_p6, %s7428_s9), 1  ;;  %vm205_vm4 = vmor %vm204_vm3, %vm203_vm2 }
   0xf   : > { %p7541_p5 = scmp.lt.s32.totalorder %s176_s18, 95  ;;  %s7364_s24 = sshll.u32 %s11368_s9, 3  ;;  %vm11128_vm6 = vmor %vm206_vm5, %vm205_vm4 }
  0x10   : > { %s11364_s13 = smov (!%p185_p4, %s184_s13), 1535  ;;  %s11124_s27 = scalar_lea.vmem %s11177_s2, %s7364_s24 }
  0x11   : > { %s7363_s14 = sshll.u32 %s11364_s13, 5  ;;  %s11366_s18 = smov (!%p7541_p5, %s176_s18), 95 }
  0x12   : > { %s7478_s17 = scalar_lea.vmem %s11176_s1, %s7363_s14  ;;  %s7356_s20 = sshll.u32 %s11366_s18, 1 }
  0x13   : > { %v282_v0 = vld [vmem:[%s7478_s17 + $0x1e0] sm:$0xff]  ;;  %s7577_s23 = scalar_lea.vmem %s11175_s0, %s7356_s20 }
  0x14   : > { %v410_v1 = vld [vmem:[%s7478_s17 + $0x5e0] sm:$0xff]  ;;  %3415 = vmatpush.msra.mxu0 %v282_v0 }
  0x15   : > { %v278_v2 = vld [vmem:[%s7478_s17 + $0x1c0] sm:$0xff]  ;;  %3455 = vmatpush.msra.mxu2 %v410_v1 }
  0x16   : > { %v346_v3 = vld [vmem:[%s7478_s17 + $0x3e0] sm:$0xff]  ;;  %3416 = vmatpush.msra.mxu0 %v278_v2 }
  0x17   : > { %v406_v4 = vld [vmem:[%s7478_s17 + $0x5c0] sm:$0xff]  ;;  %3435 = vmatpush.msra.mxu1 %v346_v3 }
  0x18   : > { %v474_v5 = vld [vmem:[%s7478_s17 + $0x7e0] sm:$0xff]  ;;  %3456 = vmatpush.msra.mxu2 %v406_v4 }
  0x19   : > { %3475 = vmatpush.msra.mxu3 %v474_v5  ;;  %v274_v6 = vld [vmem:[%s7478_s17 + $0x1a0] sm:$0xff] }
  0x1a   : > { %v342_v7 = vld [vmem:[%s7478_s17 + $0x3c0] sm:$0xff]  ;;  %3417 = vmatpush.msra.mxu0 %v274_v6 }
  0x1b   : > { %v402_v8 = vld [vmem:[%s7478_s17 + $0x5a0] sm:$0xff]  ;;  %3436 = vmatpush.msra.mxu1 %v342_v7 }
  0x1c   : > { %v470_v9 = vld [vmem:[%s7478_s17 + $0x7c0] sm:$0xff]  ;;  %3457 = vmatpush.msra.mxu2 %v402_v8 }
  0x1d   : > { %v338_v10 = vld [vmem:[%s7478_s17 + $0x3a0] sm:$0xff]  ;;  %3476 = vmatpush.msra.mxu3 %v470_v9 }
  0x1e   : > { %v270_v11 = vld [vmem:[%s7478_s17 + $0x180] sm:$0xff]  ;;  %3437 = vmatpush.msra.mxu1 %v338_v10 }
  0x1f   : > { %v398_v12 = vld [vmem:[%s7478_s17 + $0x580] sm:$0xff]  ;;  %3418 = vmatpush.msra.mxu0 %v270_v11 }
  0x20   : > { %v466_v13 = vld [vmem:[%s7478_s17 + $0x7a0] sm:$0xff]  ;;  %3458 = vmatpush.msra.mxu2 %v398_v12 }
  0x21   : > { %v334_v14 = vld [vmem:[%s7478_s17 + $0x380] sm:$0xff]  ;;  %3477 = vmatpush.msra.mxu3 %v466_v13 }
  0x22   : > { %v462_v15 = vld [vmem:[%s7478_s17 + $0x780] sm:$0xff]  ;;  %3438 = vmatpush.msra.mxu1 %v334_v14 }
  0x23   : > { %v266_v16 = vld [vmem:[%s7478_s17 + $0x160] sm:$0xff]  ;;  %3478 = vmatpush.msra.mxu3 %v462_v15 }
  0x24   : > { %v394_v17 = vld [vmem:[%s7478_s17 + $0x560] sm:$0xff]  ;;  %3419 = vmatpush.msra.mxu0 %v266_v16 }
  0x25   : > { %v330_v18 = vld [vmem:[%s7478_s17 + $0x360] sm:$0xff]  ;;  %3459 = vmatpush.msra.mxu2 %v394_v17 }
  0x26   : > { %v458_v19 = vld [vmem:[%s7478_s17 + $0x760] sm:$0xff]  ;;  %3439 = vmatpush.msra.mxu1 %v330_v18 }
  0x27   : > { %v262_v20 = vld [vmem:[%s7478_s17 + $0x140] sm:$0xff]  ;;  %3479 = vmatpush.msra.mxu3 %v458_v19 }
  0x28   : > { %v390_v21 = vld [vmem:[%s7478_s17 + $0x540] sm:$0xff]  ;;  %3420 = vmatpush.msra.mxu0 %v262_v20 }
  0x29   : > { %v326_v22 = vld [vmem:[%s7478_s17 + $0x340] sm:$0xff]  ;;  %3460 = vmatpush.msra.mxu2 %v390_v21 }
  0x2a   : > { %v454_v23 = vld [vmem:[%s7478_s17 + $0x740] sm:$0xff]  ;;  %3440 = vmatpush.msra.mxu1 %v326_v22 }
  0x2b   : > { %v258_v24 = vld [vmem:[%s7478_s17 + $0x120] sm:$0xff]  ;;  %3480 = vmatpush.msra.mxu3 %v454_v23 }
  0x2c   : > { %v386_v25 = vld [vmem:[%s7478_s17 + $0x520] sm:$0xff]  ;;  %3421 = vmatpush.msra.mxu0 %v258_v24 }
  0x2d   : > { %v322_v26 = vld [vmem:[%s7478_s17 + $0x320] sm:$0xff]  ;;  %3461 = vmatpush.msra.mxu2 %v386_v25 }
  0x2e   : > { %v450_v27 = vld [vmem:[%s7478_s17 + $0x720] sm:$0xff]  ;;  %3441 = vmatpush.msra.mxu1 %v322_v26 }
  0x2f   : > { %v254_v28 = vld [vmem:[%s7478_s17 + $0x100] sm:$0xff]  ;;  %3481 = vmatpush.msra.mxu3 %v450_v27 }
  0x30   : > { %v382_v29 = vld [vmem:[%s7478_s17 + $0x500] sm:$0xff]  ;;  %3422 = vmatpush.msra.mxu0 %v254_v28 }
  0x31   : > { %v318_v30 = vld [vmem:[%s7478_s17 + $0x300] sm:$0xff]  ;;  %3462 = vmatpush.msra.mxu2 %v382_v29 }
  0x32   : > { %v446_v31 = vld [vmem:[%s7478_s17 + $0x700] sm:$0xff]  ;;  %3442 = vmatpush.msra.mxu1 %v318_v30 }
  0x33   : > { %v250_v32 = vld [vmem:[%s7478_s17 + $0xe0] sm:$0xff]  ;;  %3482 = vmatpush.msra.mxu3 %v446_v31 }
  0x34   : > { %v378_v33 = vld [vmem:[%s7478_s17 + $0x4e0] sm:$0xff]  ;;  %3423 = vmatpush.msra.mxu0 %v250_v32 }
  0x35   : > { %v314_v34 = vld [vmem:[%s7478_s17 + $0x2e0] sm:$0xff]  ;;  %3463 = vmatpush.msra.mxu2 %v378_v33 }
  0x36   : > { %v442_v35 = vld [vmem:[%s7478_s17 + $0x6e0] sm:$0xff]  ;;  %3443 = vmatpush.msra.mxu1 %v314_v34 }
  0x37   : > { %v246_v36 = vld [vmem:[%s7478_s17 + $0xc0] sm:$0xff]  ;;  %3483 = vmatpush.msra.mxu3 %v442_v35 }
  0x38   : > { %v374_v37 = vld [vmem:[%s7478_s17 + $0x4c0] sm:$0xff]  ;;  %3424 = vmatpush.msra.mxu0 %v246_v36 }
  0x39   : > { %v310_v38 = vld [vmem:[%s7478_s17 + $0x2c0] sm:$0xff]  ;;  %3464 = vmatpush.msra.mxu2 %v374_v37 }
  0x3a   : > { %v438_v39 = vld [vmem:[%s7478_s17 + $0x6c0] sm:$0xff]  ;;  %3444 = vmatpush.msra.mxu1 %v310_v38 }
  0x3b   : > { %v242_v40 = vld [vmem:[%s7478_s17 + $0xa0] sm:$0xff]  ;;  %3484 = vmatpush.msra.mxu3 %v438_v39 }
  0x3c   : > { %v370_v41 = vld [vmem:[%s7478_s17 + $0x4a0] sm:$0xff]  ;;  %3425 = vmatpush.msra.mxu0 %v242_v40 }
  0x3d   : > { %v306_v42 = vld [vmem:[%s7478_s17 + $0x2a0] sm:$0xff]  ;;  %3465 = vmatpush.msra.mxu2 %v370_v41  ;;  %v212_v41 = vld [vmem:[%s7577_s23 + $0x10] sm:$0xff] }
  0x3e   : > { %v434_v43 = vld [vmem:[%s7478_s17 + $0x6a0] sm:$0xff]  ;;  %3445 = vmatpush.msra.mxu1 %v306_v42  ;;  %v211_v42 = vld [vmem:[%s7577_s23 + $0x8] sm:$0xff] }
  0x3f   : > { %v238_v44 = vld [vmem:[%s7478_s17 + $0x80] sm:$0xff]  ;;  %3485 = vmatpush.msra.mxu3 %v434_v43  ;;  %3308 = vst [vmem:[#allocation1 + $0x20] ss:$4 sm:$0xff] %v211_v42 }
  0x40   : > { %v366_v45 = vld [vmem:[%s7478_s17 + $0x480] sm:$0xff]  ;;  %3426 = vmatpush.msra.mxu0 %v238_v44 }
  0x41   : > { %v302_v46 = vld [vmem:[%s7478_s17 + $0x280] sm:$0xff]  ;;  %3466 = vmatpush.msra.mxu2 %v366_v45 }
  0x42   : > { %v430_v47 = vld [vmem:[%s7478_s17 + $0x680] sm:$0xff]  ;;  %3446 = vmatpush.msra.mxu1 %v302_v46 }
  0x43   : > { %v234_v48 = vld [vmem:[%s7478_s17 + $0x60] sm:$0xff]  ;;  %3486 = vmatpush.msra.mxu3 %v430_v47 }
  0x44   : > { %v362_v49 = vld [vmem:[%s7478_s17 + $0x460] sm:$0xff]  ;;  %3427 = vmatpush.msra.mxu0 %v234_v48 }
  0x45   : > { %v298_v50 = vld [vmem:[%s7478_s17 + $0x260] sm:$0xff]  ;;  %3467 = vmatpush.msra.mxu2 %v362_v49 }
  0x46   : > { %v426_v51 = vld [vmem:[%s7478_s17 + $0x660] sm:$0xff]  ;;  %3447 = vmatpush.msra.mxu1 %v298_v50 }
  0x47   : > { %v230_v52 = vld [vmem:[%s7478_s17 + $0x40] sm:$0xff]  ;;  %3487 = vmatpush.msra.mxu3 %v426_v51 }
  0x48   : > { %v358_v53 = vld [vmem:[%s7478_s17 + $0x440] sm:$0xff]  ;;  %3428 = vmatpush.msra.mxu0 %v230_v52 }
  0x49   : > { %v294_v54 = vld [vmem:[%s7478_s17 + $0x240] sm:$0xff]  ;;  %3468 = vmatpush.msra.mxu2 %v358_v53 }
  0x4a   : > { %v422_v55 = vld [vmem:[%s7478_s17 + $0x640] sm:$0xff]  ;;  %3448 = vmatpush.msra.mxu1 %v294_v54 }
  0x4b   : > { %v226_v56 = vld [vmem:[%s7478_s17 + $0x20] sm:$0xff]  ;;  %3488 = vmatpush.msra.mxu3 %v422_v55 }
  0x4c   : > { %v354_v57 = vld [vmem:[%s7478_s17 + $0x420] sm:$0xff]  ;;  %3429 = vmatpush.msra.mxu0 %v226_v56 }
  0x4d   : > { %v290_v58 = vld [vmem:[%s7478_s17 + $0x220] sm:$0xff]  ;;  %3469 = vmatpush.msra.mxu2 %v354_v57 }
  0x4e   : > { %v418_v59 = vld [vmem:[%s7478_s17 + $0x620] sm:$0xff]  ;;  %3449 = vmatpush.msra.mxu1 %v290_v58 }
  0x4f   : > { %v222_v60 = vld [vmem:[%s7478_s17] sm:$0xff]  ;;  %3489 = vmatpush.msra.mxu3 %v418_v59 }
  0x50   : > { %v350_v61 = vld [vmem:[%s7478_s17 + $0x400] sm:$0xff]  ;;  %3430 = vmatpush.msra.mxu0 %v222_v60 }
  0x51   : > { %v538_v62 = vld [vmem:[%s7478_s17 + $0x9e0] sm:$0xff]  ;;  %3470 = vmatpush.msra.mxu2 %v350_v61 }
  0x52   : > { %v666_v63 = vld [vmem:[%s7478_s17 + $0xde0] sm:$0xff]  ;;  %3495 = vmatpush.msrb.mxu0 %v538_v62 }
  0x53   : > { %v286_v0 = vld [vmem:[%s7478_s17 + $0x200] sm:$0xff]  ;;  %3535 = vmatpush.msrb.mxu2 %v666_v63 }
  0x54   : > { %v414_v1 = vld [vmem:[%s7478_s17 + $0x600] sm:$0xff]  ;;  %3450 = vmatpush.msra.mxu1 %v286_v0 }
  0x55   : > { %v534_v2 = vld [vmem:[%s7478_s17 + $0x9c0] sm:$0xff]  ;;  %3490 = vmatpush.msra.mxu3 %v414_v1 }
  0x56   : > { %v602_v3 = vld [vmem:[%s7478_s17 + $0xbe0] sm:$0xff]  ;;  %3496 = vmatpush.msrb.mxu0 %v534_v2  ;;  %v213_v2 = vld [vmem:[%s7577_s23 + $0x18] sm:$0xff] }
  0x57   : > { %v662_v4 = vld [vmem:[%s7478_s17 + $0xdc0] sm:$0xff]  ;;  %3515 = vmatpush.msrb.mxu1 %v602_v3  ;;  %v7634_v3 = vld.sshfl [vmem:[#allocation1 + $0x30] sm:$0xff pattern:$0x73625140] }
  0x58   : > { %v730_v5 = vld [vmem:[%s7478_s17 + $0xfe0] sm:$0xff]  ;;  %3536 = vmatpush.msrb.mxu2 %v662_v4 }
  0x59   : > { %v530_v6 = vld [vmem:[%s7478_s17 + $0x9a0] sm:$0xff]  ;;  %3555 = vmatpush.msrb.mxu3 %v730_v5  ;;  %v7638_v5 = vld.sshfl [vmem:[#allocation1 + $0x38] sm:$0xff pattern:$0x73625140] }
  0x5a   : > { %v598_v7 = vld [vmem:[%s7478_s17 + $0xbc0] sm:$0xff]  ;;  %3497 = vmatpush.msrb.mxu0 %v530_v6  ;;  %v7640_v6 = vld.sshfl [vmem:[#allocation1 + $0x28] sm:$0xff pattern:$0x73625140] }
  0x5b   : > { %v658_v8 = vld [vmem:[%s7478_s17 + $0xda0] sm:$0xff]  ;;  %3516 = vmatpush.msrb.mxu1 %v598_v7 }
  0x5c   : > { %v726_v9 = vld [vmem:[%s7478_s17 + $0xfc0] sm:$0xff]  ;;  %3537 = vmatpush.msrb.mxu2 %v658_v8 }
  0x5d   : > { %v526_v10 = vld [vmem:[%s7478_s17 + $0x980] sm:$0xff]  ;;  %3556 = vmatpush.msrb.mxu3 %v726_v9 }
  0x5e   : > { %v594_v11 = vld [vmem:[%s7478_s17 + $0xba0] sm:$0xff]  ;;  %3498 = vmatpush.msrb.mxu0 %v526_v10 }
  0x5f   : > { %v654_v12 = vld [vmem:[%s7478_s17 + $0xd80] sm:$0xff]  ;;  %3517 = vmatpush.msrb.mxu1 %v594_v11 }
  0x60   : > { %v722_v13 = vld [vmem:[%s7478_s17 + $0xfa0] sm:$0xff]  ;;  %3538 = vmatpush.msrb.mxu2 %v654_v12 }
  0x61   : > { %v522_v14 = vld [vmem:[%s7478_s17 + $0x960] sm:$0xff]  ;;  %3557 = vmatpush.msrb.mxu3 %v722_v13 }
  0x62   : > { %v590_v15 = vld [vmem:[%s7478_s17 + $0xb80] sm:$0xff]  ;;  %3499 = vmatpush.msrb.mxu0 %v522_v14 }
  0x63   : > { %v650_v16 = vld [vmem:[%s7478_s17 + $0xd60] sm:$0xff]  ;;  %3518 = vmatpush.msrb.mxu1 %v590_v15 }
  0x64   : > { %v718_v17 = vld [vmem:[%s7478_s17 + $0xf80] sm:$0xff]  ;;  %3539 = vmatpush.msrb.mxu2 %v650_v16 }
  0x65   : > { %v518_v18 = vld [vmem:[%s7478_s17 + $0x940] sm:$0xff]  ;;  %3558 = vmatpush.msrb.mxu3 %v718_v17 }
  0x66   : > { %v586_v19 = vld [vmem:[%s7478_s17 + $0xb60] sm:$0xff]  ;;  %3500 = vmatpush.msrb.mxu0 %v518_v18 }
  0x67   : > { %v646_v20 = vld [vmem:[%s7478_s17 + $0xd40] sm:$0xff]  ;;  %3519 = vmatpush.msrb.mxu1 %v586_v19 }
  0x68   : > { %v714_v21 = vld [vmem:[%s7478_s17 + $0xf60] sm:$0xff]  ;;  %3540 = vmatpush.msrb.mxu2 %v646_v20 }
  0x69   : > { %v210_v22 = vld [vmem:[%s7577_s23] sm:$0xff]  ;;  %3559 = vmatpush.msrb.mxu3 %v714_v21 }
  0x6a   : > { %v514_v23 = vld [vmem:[%s7478_s17 + $0x920] sm:$0xff]  ;;  %3306 = vst [vmem:[#allocation1] ss:$4 sm:$0xff] %v210_v22 }
  0x6b   : > { %v582_v24 = vld [vmem:[%s7478_s17 + $0xb40] sm:$0xff]  ;;  %3501 = vmatpush.msrb.mxu0 %v514_v23 }
  0x6c   : > { %v642_v25 = vld [vmem:[%s7478_s17 + $0xd20] sm:$0xff]  ;;  %3520 = vmatpush.msrb.mxu1 %v582_v24 }
  0x6d   : > { %v710_v26 = vld [vmem:[%s7478_s17 + $0xf40] sm:$0xff]  ;;  %3541 = vmatpush.msrb.mxu2 %v642_v25 }
  0x6e   : > { %v510_v27 = vld [vmem:[%s7478_s17 + $0x900] sm:$0xff]  ;;  %3560 = vmatpush.msrb.mxu3 %v710_v26 }
  0x6f   : > { %v578_v28 = vld [vmem:[%s7478_s17 + $0xb20] sm:$0xff]  ;;  %3502 = vmatpush.msrb.mxu0 %v510_v27 }
  0x70   : > { %v638_v29 = vld [vmem:[%s7478_s17 + $0xd00] sm:$0xff]  ;;  %3521 = vmatpush.msrb.mxu1 %v578_v28 }
  0x71   : > { %v706_v30 = vld [vmem:[%s7478_s17 + $0xf20] sm:$0xff]  ;;  %3542 = vmatpush.msrb.mxu2 %v638_v29  ;;  %v7606_v43 = vld.sshfl [vmem:[#allocation1 + $0x10] sm:$0xff pattern:$0x73625140] }
  0x72   : > { %v506_v31 = vld [vmem:[%s7478_s17 + $0x8e0] sm:$0xff]  ;;  %3561 = vmatpush.msrb.mxu3 %v706_v30  ;;  %v7610_v45 = vld.sshfl [vmem:[#allocation1 + $0x18] sm:$0xff pattern:$0x73625140]  ;;  %3471 = vmatmul.f32.vlgmr.msra.gmra.mxu2 %v7606_v43 }
  0x73   : > { %v574_v32 = vld [vmem:[%s7478_s17 + $0xb00] sm:$0xff]  ;;  %3503 = vmatpush.msrb.mxu0 %v506_v31  ;;  %v7612_v46 = vld.sshfl [vmem:[#allocation1 + $0x8] sm:$0xff pattern:$0x73625140]  ;;  %3491 = vmatmul.f32.vlgmr.msra.gmra.mxu3 %v7610_v45 }
  0x74   : > { %v634_v33 = vld [vmem:[%s7478_s17 + $0xce0] sm:$0xff]  ;;  %3522 = vmatpush.msrb.mxu1 %v574_v32 }
  0x75   : > { %v702_v34 = vld [vmem:[%s7478_s17 + $0xf00] sm:$0xff]  ;;  %3543 = vmatpush.msrb.mxu2 %v634_v33  ;;  %3451 = vmatmul.f32.vlgmr.msra.gmra.mxu1 %v7612_v46 }
  0x76   : > { %v502_v35 = vld [vmem:[%s7478_s17 + $0x8c0] sm:$0xff]  ;;  %3562 = vmatpush.msrb.mxu3 %v702_v34 }
  0x77   : > { %v570_v36 = vld [vmem:[%s7478_s17 + $0xae0] sm:$0xff]  ;;  %3504 = vmatpush.msrb.mxu0 %v502_v35 }
  0x78   : > { %v630_v37 = vld [vmem:[%s7478_s17 + $0xcc0] sm:$0xff]  ;;  %3523 = vmatpush.msrb.mxu1 %v570_v36 }
  0x79   : > { %v698_v38 = vld [vmem:[%s7478_s17 + $0xee0] sm:$0xff]  ;;  %3544 = vmatpush.msrb.mxu2 %v630_v37 }
  0x7a   : > { %v498_v39 = vld [vmem:[%s7478_s17 + $0x8a0] sm:$0xff]  ;;  %3563 = vmatpush.msrb.mxu3 %v698_v38 }
  0x7b   : > { %v566_v40 = vld [vmem:[%s7478_s17 + $0xac0] sm:$0xff]  ;;  %3505 = vmatpush.msrb.mxu0 %v498_v39 }
  0x7c   : > { %v7608_v44 = vld.sshfl [vmem:[#allocation1] sm:$0xff pattern:$0x73625140]  ;;  %3524 = vmatpush.msrb.mxu1 %v566_v40 }
  0x7d   : > { %v626_v47 = vld [vmem:[%s7478_s17 + $0xca0] sm:$0xff]  ;;  %3317 = vst [vmem:[#allocation1] ss:$4 sm:$0xff] %v212_v41  ;;  %3431 = vmatmul.f32.vlgmr.msra.gmra.mxu0 %v7608_v44 }
  0x7e   : > { %v694_v48 = vld [vmem:[%s7478_s17 + $0xec0] sm:$0xff]  ;;  %3545 = vmatpush.msrb.mxu2 %v626_v47 }
  0x7f   : > { %v494_v49 = vld [vmem:[%s7478_s17 + $0x880] sm:$0xff]  ;;  %3564 = vmatpush.msrb.mxu3 %v694_v48 }
  0x80   : > { %v562_v50 = vld [vmem:[%s7478_s17 + $0xaa0] sm:$0xff]  ;;  %3506 = vmatpush.msrb.mxu0 %v494_v49 }
  0x81   : > { %v622_v51 = vld [vmem:[%s7478_s17 + $0xc80] sm:$0xff]  ;;  %3525 = vmatpush.msrb.mxu1 %v562_v50 }
  0x82   : > { %v690_v52 = vld [vmem:[%s7478_s17 + $0xea0] sm:$0xff]  ;;  %3546 = vmatpush.msrb.mxu2 %v622_v51 }
  0x83   : > { %v490_v53 = vld [vmem:[%s7478_s17 + $0x860] sm:$0xff]  ;;  %3565 = vmatpush.msrb.mxu3 %v690_v52 }
  0x84   : > { %v558_v54 = vld [vmem:[%s7478_s17 + $0xa80] sm:$0xff]  ;;  %3507 = vmatpush.msrb.mxu0 %v490_v53  ;;  %v7668_v28 = vld.sshfl [vmem:[#allocation1 + $0x10] sm:$0xff pattern:$0x73625140] }
  0x85   : > { %v618_v55 = vld [vmem:[%s7478_s17 + $0xc60] sm:$0xff]  ;;  %3526 = vmatpush.msrb.mxu1 %v558_v54  ;;  %v7672_v30 = vld.sshfl [vmem:[#allocation1 + $0x8] sm:$0xff pattern:$0x73625140] }
  0x86   : > { %v686_v56 = vld [vmem:[%s7478_s17 + $0xe80] sm:$0xff]  ;;  %3547 = vmatpush.msrb.mxu2 %v618_v55  ;;  %v7674_v31 = vld.sshfl [vmem:[#allocation1 + $0x18] sm:$0xff pattern:$0x73625140] }
  0x87   : > { %v486_v57 = vld [vmem:[%s7478_s17 + $0x840] sm:$0xff]  ;;  %3566 = vmatpush.msrb.mxu3 %v686_v56 }
  0x88   : > { %v554_v58 = vld [vmem:[%s7478_s17 + $0xa60] sm:$0xff]  ;;  %3508 = vmatpush.msrb.mxu0 %v486_v57 }
  0x89   : > { %v614_v59 = vld [vmem:[%s7478_s17 + $0xc40] sm:$0xff]  ;;  %3527 = vmatpush.msrb.mxu1 %v554_v58 }
  0x8a   : > { %v682_v60 = vld [vmem:[%s7478_s17 + $0xe60] sm:$0xff]  ;;  %3548 = vmatpush.msrb.mxu2 %v614_v59 }
  0x8b   : > { %v482_v61 = vld [vmem:[%s7478_s17 + $0x820] sm:$0xff]  ;;  %3567 = vmatpush.msrb.mxu3 %v682_v60 }
  0x8c   : > { %v550_v62 = vld [vmem:[%s7478_s17 + $0xa40] sm:$0xff]  ;;  %3509 = vmatpush.msrb.mxu0 %v482_v61 }
  0x8d   : > { %v610_v63 = vld [vmem:[%s7478_s17 + $0xc20] sm:$0xff]  ;;  %3528 = vmatpush.msrb.mxu1 %v550_v62 }
  0x8e   : > { %v678_v0 = vld [vmem:[%s7478_s17 + $0xe40] sm:$0xff]  ;;  %3549 = vmatpush.msrb.mxu2 %v610_v63 }
  0x8f   : > { %v478_v1 = vld [vmem:[%s7478_s17 + $0x800] sm:$0xff]  ;;  %3568 = vmatpush.msrb.mxu3 %v678_v0 }
  0x90   : > { %v7636_v4 = vld.sshfl [vmem:[#allocation1 + $0x20] sm:$0xff pattern:$0x73625140]  ;;  %3510 = vmatpush.msrb.mxu0 %v478_v1 }
  0x91   : > { %v546_v7 = vld [vmem:[%s7478_s17 + $0xa20] sm:$0xff]  ;;  %3318 = vst [vmem:[#allocation1 + $0x20] ss:$4 sm:$0xff] %v213_v2  ;;  %3511 = vmatmul.f32.vlgmr.msrb.gmra.mxu0 %v7636_v4 }
  0x92   : > { %v606_v8 = vld [vmem:[%s7478_s17 + $0xc00] sm:$0xff]  ;;  %3529 = vmatpush.msrb.mxu1 %v546_v7 }
  0x93   : > { %v674_v9 = vld [vmem:[%s7478_s17 + $0xe20] sm:$0xff]  ;;  %3550 = vmatpush.msrb.mxu2 %v606_v8 }
  0x94   : > { %v794_v10 = vld [vmem:[%s7478_s17 + $0x11e0] sm:$0xff]  ;;  %3569 = vmatpush.msrb.mxu3 %v674_v9  ;;  %3551 = vmatmul.f32.vlgmr.msrb.gmra.mxu2 %v7634_v3 }
  0x95   : > { %v922_v11 = vld [vmem:[%s7478_s17 + $0x15e0] sm:$0xff]  ;;  %3575 = vmatpush.msra.mxu0 %v794_v10 }
  0x96   : > { %v542_v12 = vld [vmem:[%s7478_s17 + $0xa00] sm:$0xff]  ;;  %3615 = vmatpush.msra.mxu2 %v922_v11 }
  0x97   : > { %v670_v13 = vld [vmem:[%s7478_s17 + $0xe00] sm:$0xff]  ;;  %3530 = vmatpush.msrb.mxu1 %v542_v12 }
  0x98   : > { %v790_v14 = vld [vmem:[%s7478_s17 + $0x11c0] sm:$0xff]  ;;  %3570 = vmatpush.msrb.mxu3 %v670_v13  ;;  %3531 = vmatmul.f32.vlgmr.msrb.gmra.mxu1 %v7640_v6 }
  0x99   : > { %v858_v15 = vld [vmem:[%s7478_s17 + $0x13e0] sm:$0xff]  ;;  %3576 = vmatpush.msra.mxu0 %v790_v14  ;;  %3571 = vmatmul.f32.vlgmr.msrb.gmra.mxu3 %v7638_v5 }
  0x9a   : > { %v918_v16 = vld [vmem:[%s7478_s17 + $0x15c0] sm:$0xff]  ;;  %3595 = vmatpush.msra.mxu1 %v858_v15 }
  0x9b   : > { %v986_v17 = vld [vmem:[%s7478_s17 + $0x17e0] sm:$0xff]  ;;  %3616 = vmatpush.msra.mxu2 %v918_v16 }
  0x9c   : > { %v786_v18 = vld [vmem:[%s7478_s17 + $0x11a0] sm:$0xff]  ;;  %3635 = vmatpush.msra.mxu3 %v986_v17 }
  0x9d   : > { %v854_v19 = vld [vmem:[%s7478_s17 + $0x13c0] sm:$0xff]  ;;  %3577 = vmatpush.msra.mxu0 %v786_v18 }
  0x9e   : > { %v914_v20 = vld [vmem:[%s7478_s17 + $0x15a0] sm:$0xff]  ;;  %3596 = vmatpush.msra.mxu1 %v854_v19 }
  0x9f   : > { %v982_v21 = vld [vmem:[%s7478_s17 + $0x17c0] sm:$0xff]  ;;  %3617 = vmatpush.msra.mxu2 %v914_v20 }
  0xa0   : > { %v782_v22 = vld [vmem:[%s7478_s17 + $0x1180] sm:$0xff]  ;;  %3636 = vmatpush.msra.mxu3 %v982_v21 }
  0xa1   : > { %v850_v23 = vld [vmem:[%s7478_s17 + $0x13a0] sm:$0xff]  ;;  %3578 = vmatpush.msra.mxu0 %v782_v22 }
  0xa2   : > { %v910_v24 = vld [vmem:[%s7478_s17 + $0x1580] sm:$0xff]  ;;  %3597 = vmatpush.msra.mxu1 %v850_v23 }
  0xa3   : > { %v978_v25 = vld [vmem:[%s7478_s17 + $0x17a0] sm:$0xff]  ;;  %3618 = vmatpush.msra.mxu2 %v910_v24 }
  0xa4   : > { %v7665_v26 = vld.sshfl [vmem:[#allocation1] sm:$0xff pattern:$0x73625140]  ;;  %3637 = vmatpush.msra.mxu3 %v978_v25 }
  0xa5   : > { %v778_v27 = vld [vmem:[%s7478_s17 + $0x1160] sm:$0xff] }
  0xa6   : > { %v214_v29 = vld [vmem:[%s7577_s23 + $0x20] sm:$0xff]  ;;  %3579 = vmatpush.msra.mxu0 %v778_v27 }
  0xa7   : > { %v846_v32 = vld [vmem:[%s7478_s17 + $0x1380] sm:$0xff]  ;;  %3327 = vst [vmem:[#allocation1] ss:$4 sm:$0xff] %v214_v29 }
  0xa8   : > { %v906_v33 = vld [vmem:[%s7478_s17 + $0x1560] sm:$0xff]  ;;  %3598 = vmatpush.msra.mxu1 %v846_v32 }
  0xa9   : > { %v974_v34 = vld [vmem:[%s7478_s17 + $0x1780] sm:$0xff]  ;;  %3619 = vmatpush.msra.mxu2 %v906_v33 }
  0xaa   : > { %v774_v35 = vld [vmem:[%s7478_s17 + $0x1140] sm:$0xff]  ;;  %3638 = vmatpush.msra.mxu3 %v974_v34 }
  0xab   : > { %v842_v36 = vld [vmem:[%s7478_s17 + $0x1360] sm:$0xff]  ;;  %3580 = vmatpush.msra.mxu0 %v774_v35 }
  0xac   : > { %v902_v37 = vld [vmem:[%s7478_s17 + $0x1540] sm:$0xff]  ;;  %3599 = vmatpush.msra.mxu1 %v842_v36 }
  0xad   : > { %v970_v38 = vld [vmem:[%s7478_s17 + $0x1760] sm:$0xff]  ;;  %3620 = vmatpush.msra.mxu2 %v902_v37 }
  0xae   : > { %v770_v39 = vld [vmem:[%s7478_s17 + $0x1120] sm:$0xff]  ;;  %3639 = vmatpush.msra.mxu3 %v970_v38 }
  0xaf   : > { %v838_v40 = vld [vmem:[%s7478_s17 + $0x1340] sm:$0xff]  ;;  %3581 = vmatpush.msra.mxu0 %v770_v39 }
  0xb0   : > { %v898_v41 = vld [vmem:[%s7478_s17 + $0x1520] sm:$0xff]  ;;  %3600 = vmatpush.msra.mxu1 %v838_v40 }
  0xb1   : > { %v966_v42 = vld [vmem:[%s7478_s17 + $0x1740] sm:$0xff]  ;;  %3621 = vmatpush.msra.mxu2 %v898_v41  ;;  %v7745_v41 = vld.sshfl [vmem:[#allocation1 + $0x30] sm:$0xff pattern:$0x73625140] }
  0xb2   : > { %v766_v47 = vld [vmem:[%s7478_s17 + $0x1100] sm:$0xff]  ;;  %3640 = vmatpush.msra.mxu3 %v966_v42  ;;  %v7747_v42 = vld.sshfl [vmem:[#allocation1 + $0x28] sm:$0xff pattern:$0x73625140] }
  0xb3   : > { %v834_v48 = vld [vmem:[%s7478_s17 + $0x1320] sm:$0xff]  ;;  %3582 = vmatpush.msra.mxu0 %v766_v47 }
  0xb4   : > { %v894_v49 = vld [vmem:[%s7478_s17 + $0x1500] sm:$0xff]  ;;  %3601 = vmatpush.msra.mxu1 %v834_v48  ;;  %v215_v48 = vld [vmem:[%s7577_s23 + $0x28] sm:$0xff] }
  0xb5   : > { %v962_v50 = vld [vmem:[%s7478_s17 + $0x1720] sm:$0xff]  ;;  %3622 = vmatpush.msra.mxu2 %v894_v49  ;;  %v7751_v49 = vld.sshfl [vmem:[#allocation1 + $0x38] sm:$0xff pattern:$0x73625140] }
  0xb6   : > { %v762_v51 = vld [vmem:[%s7478_s17 + $0x10e0] sm:$0xff]  ;;  %3641 = vmatpush.msra.mxu3 %v962_v50 }
  0xb7   : > { %v830_v52 = vld [vmem:[%s7478_s17 + $0x1300] sm:$0xff]  ;;  %3583 = vmatpush.msra.mxu0 %v762_v51 }
  0xb8   : > { %v890_v53 = vld [vmem:[%s7478_s17 + $0x14e0] sm:$0xff]  ;;  %3602 = vmatpush.msra.mxu1 %v830_v52 }
  0xb9   : > { %v958_v54 = vld [vmem:[%s7478_s17 + $0x1700] sm:$0xff]  ;;  %3623 = vmatpush.msra.mxu2 %v890_v53 }
  0xba   : > { %v758_v55 = vld [vmem:[%s7478_s17 + $0x10c0] sm:$0xff]  ;;  %3642 = vmatpush.msra.mxu3 %v958_v54 }
  0xbb   : > { %v826_v56 = vld [vmem:[%s7478_s17 + $0x12e0] sm:$0xff]  ;;  %3584 = vmatpush.msra.mxu0 %v758_v55 }
  0xbc   : > { %v886_v57 = vld [vmem:[%s7478_s17 + $0x14c0] sm:$0xff]  ;;  %3603 = vmatpush.msra.mxu1 %v826_v56 }
  0xbd   : > { %v954_v58 = vld [vmem:[%s7478_s17 + $0x16e0] sm:$0xff]  ;;  %3624 = vmatpush.msra.mxu2 %v886_v57 }
  0xbe   : > { %v754_v59 = vld [vmem:[%s7478_s17 + $0x10a0] sm:$0xff]  ;;  %3643 = vmatpush.msra.mxu3 %v954_v58 }
  0xbf   : > { %v822_v60 = vld [vmem:[%s7478_s17 + $0x12c0] sm:$0xff]  ;;  %3585 = vmatpush.msra.mxu0 %v754_v59 }
  0xc0   : > { %v882_v61 = vld [vmem:[%s7478_s17 + $0x14a0] sm:$0xff]  ;;  %3604 = vmatpush.msra.mxu1 %v822_v60 }
  0xc1   : > { %v950_v62 = vld [vmem:[%s7478_s17 + $0x16c0] sm:$0xff]  ;;  %3625 = vmatpush.msra.mxu2 %v882_v61 }
  0xc2   : > { %v750_v63 = vld [vmem:[%s7478_s17 + $0x1080] sm:$0xff]  ;;  %3644 = vmatpush.msra.mxu3 %v950_v62 }
  0xc3   : > { %v818_v0 = vld [vmem:[%s7478_s17 + $0x12a0] sm:$0xff]  ;;  %3586 = vmatpush.msra.mxu0 %v750_v63 }
  0xc4   : > { %v878_v1 = vld [vmem:[%s7478_s17 + $0x1480] sm:$0xff]  ;;  %3605 = vmatpush.msra.mxu1 %v818_v0 }
  0xc5   : > { %v946_v2 = vld [vmem:[%s7478_s17 + $0x16a0] sm:$0xff]  ;;  %3626 = vmatpush.msra.mxu2 %v878_v1 }
  0xc6   : > { %v746_v7 = vld [vmem:[%s7478_s17 + $0x1060] sm:$0xff]  ;;  %3645 = vmatpush.msra.mxu3 %v946_v2 }
  0xc7   : > { %v814_v8 = vld [vmem:[%s7478_s17 + $0x1280] sm:$0xff]  ;;  %3587 = vmatpush.msra.mxu0 %v746_v7 }
  0xc8   : > { %v874_v9 = vld [vmem:[%s7478_s17 + $0x1460] sm:$0xff]  ;;  %3606 = vmatpush.msra.mxu1 %v814_v8 }
  0xc9   : > { %v942_v10 = vld [vmem:[%s7478_s17 + $0x1680] sm:$0xff]  ;;  %3627 = vmatpush.msra.mxu2 %v874_v9 }
  0xca   : > { %v742_v11 = vld [vmem:[%s7478_s17 + $0x1040] sm:$0xff]  ;;  %3646 = vmatpush.msra.mxu3 %v942_v10 }
  0xcb   : > { %v810_v12 = vld [vmem:[%s7478_s17 + $0x1260] sm:$0xff]  ;;  %3588 = vmatpush.msra.mxu0 %v742_v11 }
  0xcc   : > { %v870_v13 = vld [vmem:[%s7478_s17 + $0x1440] sm:$0xff]  ;;  %3607 = vmatpush.msra.mxu1 %v810_v12 }
  0xcd   : > { %v938_v14 = vld [vmem:[%s7478_s17 + $0x1660] sm:$0xff]  ;;  %3628 = vmatpush.msra.mxu2 %v870_v13 }
  0xce   : > { %v738_v15 = vld [vmem:[%s7478_s17 + $0x1020] sm:$0xff]  ;;  %3647 = vmatpush.msra.mxu3 %v938_v14 }
  0xcf   : > { %v806_v16 = vld [vmem:[%s7478_s17 + $0x1240] sm:$0xff]  ;;  %3589 = vmatpush.msra.mxu0 %v738_v15 }
  0xd0   : > { %v866_v17 = vld [vmem:[%s7478_s17 + $0x1420] sm:$0xff]  ;;  %3608 = vmatpush.msra.mxu1 %v806_v16 }
  0xd1   : > { %v934_v18 = vld [vmem:[%s7478_s17 + $0x1640] sm:$0xff]  ;;  %3629 = vmatpush.msra.mxu2 %v866_v17 }
  0xd2   : > { %v734_v19 = vld [vmem:[%s7478_s17 + $0x1000] sm:$0xff]  ;;  %3648 = vmatpush.msra.mxu3 %v934_v18 }
  0xd3   : > { %v802_v20 = vld [vmem:[%s7478_s17 + $0x1220] sm:$0xff]  ;;  %3590 = vmatpush.msra.mxu0 %v734_v19 }
  0xd4   : > { %v862_v21 = vld [vmem:[%s7478_s17 + $0x1400] sm:$0xff]  ;;  %3609 = vmatpush.msra.mxu1 %v802_v20  ;;  %3591 = vmatmul.f32.vlgmr.msra.gmra.mxu0 %v7665_v26 }
  0xd5   : > { %v930_v22 = vld [vmem:[%s7478_s17 + $0x1620] sm:$0xff]  ;;  %3630 = vmatpush.msra.mxu2 %v862_v21 }
  0xd6   : > { %v1050_v23 = vld [vmem:[%s7478_s17 + $0x19e0] sm:$0xff]  ;;  %3649 = vmatpush.msra.mxu3 %v930_v22  ;;  %3631 = vmatmul.f32.vlgmr.msra.gmra.mxu2 %v7668_v28 }
  0xd7   : > { %v1178_v24 = vld [vmem:[%s7478_s17 + $0x1de0] sm:$0xff]  ;;  %3655 = vmatpush.msrb.mxu0 %v1050_v23 }
  0xd8   : > { %v798_v25 = vld [vmem:[%s7478_s17 + $0x1200] sm:$0xff]  ;;  %3695 = vmatpush.msrb.mxu2 %v1178_v24 }
  0xd9   : > { %v926_v27 = vld [vmem:[%s7478_s17 + $0x1600] sm:$0xff]  ;;  %3610 = vmatpush.msra.mxu1 %v798_v25 }
  0xda   : > { %v1046_v29 = vld [vmem:[%s7478_s17 + $0x19c0] sm:$0xff]  ;;  %3650 = vmatpush.msra.mxu3 %v926_v27  ;;  %3611 = vmatmul.f32.vlgmr.msra.gmra.mxu1 %v7672_v30 }
  0xdb   : > { %v1114_v32 = vld [vmem:[%s7478_s17 + $0x1be0] sm:$0xff]  ;;  %3651 = vmatmul.f32.vlgmr.msra.gmra.mxu3 %v7674_v31  ;;  %3656 = vmatpush.msrb.mxu0 %v1046_v29 }
  0xdc   : > { %v1174_v33 = vld [vmem:[%s7478_s17 + $0x1dc0] sm:$0xff]  ;;  %3675 = vmatpush.msrb.mxu1 %v1114_v32 }
  0xdd   : > { %v1242_v34 = vld [vmem:[%s7478_s17 + $0x1fe0] sm:$0xff]  ;;  %3696 = vmatpush.msrb.mxu2 %v1174_v33 }
  0xde   : > { %v1042_v35 = vld [vmem:[%s7478_s17 + $0x19a0] sm:$0xff]  ;;  %3715 = vmatpush.msrb.mxu3 %v1242_v34 }
  0xdf   : > { %v1110_v36 = vld [vmem:[%s7478_s17 + $0x1bc0] sm:$0xff]  ;;  %3657 = vmatpush.msrb.mxu0 %v1042_v35 }
  0xe0   : > { %v1170_v37 = vld [vmem:[%s7478_s17 + $0x1da0] sm:$0xff]  ;;  %3676 = vmatpush.msrb.mxu1 %v1110_v36 }
  0xe1   : > { %v1238_v38 = vld [vmem:[%s7478_s17 + $0x1fc0] sm:$0xff]  ;;  %3697 = vmatpush.msrb.mxu2 %v1170_v37 }
  0xe2   : > { %v1038_v39 = vld [vmem:[%s7478_s17 + $0x1980] sm:$0xff]  ;;  %3716 = vmatpush.msrb.mxu3 %v1238_v38 }
  0xe3   : > { %v7743_v40 = vld.sshfl [vmem:[#allocation1 + $0x20] sm:$0xff pattern:$0x73625140]  ;;  %3658 = vmatpush.msrb.mxu0 %v1038_v39 }
  0xe4   : > { %v1106_v47 = vld [vmem:[%s7478_s17 + $0x1ba0] sm:$0xff]  ;;  %3328 = vst [vmem:[#allocation1 + $0x20] ss:$4 sm:$0xff] %v215_v48 }
  0xe5   : > { %v1166_v50 = vld [vmem:[%s7478_s17 + $0x1d80] sm:$0xff]  ;;  %3677 = vmatpush.msrb.mxu1 %v1106_v47 }
  0xe6   : > { %v1234_v51 = vld [vmem:[%s7478_s17 + $0x1fa0] sm:$0xff]  ;;  %3698 = vmatpush.msrb.mxu2 %v1166_v50 }
  0xe7   : > { %v1034_v52 = vld [vmem:[%s7478_s17 + $0x1960] sm:$0xff]  ;;  %3717 = vmatpush.msrb.mxu3 %v1234_v51 }
  0xe8   : > { %v1102_v53 = vld [vmem:[%s7478_s17 + $0x1b80] sm:$0xff]  ;;  %3659 = vmatpush.msrb.mxu0 %v1034_v52 }
  0xe9   : > { %v1162_v54 = vld [vmem:[%s7478_s17 + $0x1d60] sm:$0xff]  ;;  %3678 = vmatpush.msrb.mxu1 %v1102_v53 }
  0xea   : > { %v1230_v55 = vld [vmem:[%s7478_s17 + $0x1f80] sm:$0xff]  ;;  %3699 = vmatpush.msrb.mxu2 %v1162_v54 }
  0xeb   : > { %v1030_v56 = vld [vmem:[%s7478_s17 + $0x1940] sm:$0xff]  ;;  %3718 = vmatpush.msrb.mxu3 %v1230_v55 }
  0xec   : > { %v1098_v57 = vld [vmem:[%s7478_s17 + $0x1b60] sm:$0xff]  ;;  %3660 = vmatpush.msrb.mxu0 %v1030_v56 }
  0xed   : > { %v1158_v58 = vld [vmem:[%s7478_s17 + $0x1d40] sm:$0xff]  ;;  %3679 = vmatpush.msrb.mxu1 %v1098_v57 }
  0xee   : > { %v1226_v59 = vld [vmem:[%s7478_s17 + $0x1f60] sm:$0xff]  ;;  %3700 = vmatpush.msrb.mxu2 %v1158_v58 }
  0xef   : > { %v1026_v60 = vld [vmem:[%s7478_s17 + $0x1920] sm:$0xff]  ;;  %3719 = vmatpush.msrb.mxu3 %v1226_v59 }
  0xf0   : > { %v1094_v61 = vld [vmem:[%s7478_s17 + $0x1b40] sm:$0xff]  ;;  %3661 = vmatpush.msrb.mxu0 %v1026_v60 }
  0xf1   : > { %v1154_v62 = vld [vmem:[%s7478_s17 + $0x1d20] sm:$0xff]  ;;  %3680 = vmatpush.msrb.mxu1 %v1094_v61 }
  0xf2   : > { %v1222_v63 = vld [vmem:[%s7478_s17 + $0x1f40] sm:$0xff]  ;;  %3701 = vmatpush.msrb.mxu2 %v1154_v62 }
  0xf3   : > { %v1022_v0 = vld [vmem:[%s7478_s17 + $0x1900] sm:$0xff]  ;;  %3720 = vmatpush.msrb.mxu3 %v1222_v63 }
  0xf4   : > { %v1090_v1 = vld [vmem:[%s7478_s17 + $0x1b20] sm:$0xff]  ;;  %3662 = vmatpush.msrb.mxu0 %v1022_v0 }
  0xf5   : > { %v1150_v2 = vld [vmem:[%s7478_s17 + $0x1d00] sm:$0xff]  ;;  %3681 = vmatpush.msrb.mxu1 %v1090_v1 }
  0xf6   : > { %v1218_v7 = vld [vmem:[%s7478_s17 + $0x1f20] sm:$0xff]  ;;  %3702 = vmatpush.msrb.mxu2 %v1150_v2 }
  0xf7   : > { %v1018_v8 = vld [vmem:[%s7478_s17 + $0x18e0] sm:$0xff]  ;;  %3721 = vmatpush.msrb.mxu3 %v1218_v7 }
  0xf8   : > { %v1086_v9 = vld [vmem:[%s7478_s17 + $0x1b00] sm:$0xff]  ;;  %3663 = vmatpush.msrb.mxu0 %v1018_v8 }
  0xf9   : > { %v1146_v10 = vld [vmem:[%s7478_s17 + $0x1ce0] sm:$0xff]  ;;  %3682 = vmatpush.msrb.mxu1 %v1086_v9 }
  0xfa   : > { %v1214_v11 = vld [vmem:[%s7478_s17 + $0x1f00] sm:$0xff]  ;;  %3703 = vmatpush.msrb.mxu2 %v1146_v10 }
  0xfb   : > { %v1014_v12 = vld [vmem:[%s7478_s17 + $0x18c0] sm:$0xff]  ;;  %3722 = vmatpush.msrb.mxu3 %v1214_v11 }
  0xfc   : > { %v1082_v13 = vld [vmem:[%s7478_s17 + $0x1ae0] sm:$0xff]  ;;  %3664 = vmatpush.msrb.mxu0 %v1014_v12 }
  0xfd   : > { %v1142_v14 = vld [vmem:[%s7478_s17 + $0x1cc0] sm:$0xff]  ;;  %3683 = vmatpush.msrb.mxu1 %v1082_v13 }
  0xfe   : > { %v1210_v15 = vld [vmem:[%s7478_s17 + $0x1ee0] sm:$0xff]  ;;  %3704 = vmatpush.msrb.mxu2 %v1142_v14 }
  0xff   : > { %v1010_v16 = vld [vmem:[%s7478_s17 + $0x18a0] sm:$0xff]  ;;  %3723 = vmatpush.msrb.mxu3 %v1210_v15 }
 0x100   : > { %v1078_v17 = vld [vmem:[%s7478_s17 + $0x1ac0] sm:$0xff]  ;;  %3665 = vmatpush.msrb.mxu0 %v1010_v16 }
 0x101   : > { %v1138_v18 = vld [vmem:[%s7478_s17 + $0x1ca0] sm:$0xff]  ;;  %3684 = vmatpush.msrb.mxu1 %v1078_v17 }
 0x102   : > { %v1206_v19 = vld [vmem:[%s7478_s17 + $0x1ec0] sm:$0xff]  ;;  %3705 = vmatpush.msrb.mxu2 %v1138_v18 }
 0x103   : > { %v1006_v20 = vld [vmem:[%s7478_s17 + $0x1880] sm:$0xff]  ;;  %3724 = vmatpush.msrb.mxu3 %v1206_v19 }
 0x104   : > { %v1074_v21 = vld [vmem:[%s7478_s17 + $0x1aa0] sm:$0xff]  ;;  %3666 = vmatpush.msrb.mxu0 %v1006_v20 }
 0x105   : > { %v1134_v22 = vld [vmem:[%s7478_s17 + $0x1c80] sm:$0xff]  ;;  %3685 = vmatpush.msrb.mxu1 %v1074_v21 }
 0x106   : > { %v1202_v23 = vld [vmem:[%s7478_s17 + $0x1ea0] sm:$0xff]  ;;  %3706 = vmatpush.msrb.mxu2 %v1134_v22 }
 0x107   : > { %v1002_v24 = vld [vmem:[%s7478_s17 + $0x1860] sm:$0xff]  ;;  %3725 = vmatpush.msrb.mxu3 %v1202_v23 }
 0x108   : > { %v1070_v25 = vld [vmem:[%s7478_s17 + $0x1a80] sm:$0xff]  ;;  %3667 = vmatpush.msrb.mxu0 %v1002_v24 }
 0x109   : > { %v1130_v27 = vld [vmem:[%s7478_s17 + $0x1c60] sm:$0xff]  ;;  %3686 = vmatpush.msrb.mxu1 %v1070_v25 }
 0x10a   : > { %v1198_v29 = vld [vmem:[%s7478_s17 + $0x1e80] sm:$0xff]  ;;  %3707 = vmatpush.msrb.mxu2 %v1130_v27 }
 0x10b   : > { %v998_v32 = vld [vmem:[%s7478_s17 + $0x1840] sm:$0xff]  ;;  %3726 = vmatpush.msrb.mxu3 %v1198_v29 }
 0x10c   : > { %v1066_v33 = vld [vmem:[%s7478_s17 + $0x1a60] sm:$0xff]  ;;  %3668 = vmatpush.msrb.mxu0 %v998_v32 }
 0x10d   : > { %v1126_v34 = vld [vmem:[%s7478_s17 + $0x1c40] sm:$0xff]  ;;  %3687 = vmatpush.msrb.mxu1 %v1066_v33 }
 0x10e   : > { %v1194_v35 = vld [vmem:[%s7478_s17 + $0x1e60] sm:$0xff]  ;;  %3708 = vmatpush.msrb.mxu2 %v1126_v34 }
 0x10f   : > { %v994_v36 = vld [vmem:[%s7478_s17 + $0x1820] sm:$0xff]  ;;  %3727 = vmatpush.msrb.mxu3 %v1194_v35 }
 0x110   : > { %v1062_v37 = vld [vmem:[%s7478_s17 + $0x1a40] sm:$0xff]  ;;  %3669 = vmatpush.msrb.mxu0 %v994_v36 }
 0x111   : > { %v1122_v38 = vld [vmem:[%s7478_s17 + $0x1c20] sm:$0xff]  ;;  %3688 = vmatpush.msrb.mxu1 %v1062_v37 }
 0x112   : > { %v1190_v39 = vld [vmem:[%s7478_s17 + $0x1e40] sm:$0xff]  ;;  %3709 = vmatpush.msrb.mxu2 %v1122_v38 }
 0x113   : > { %v990_v47 = vld [vmem:[%s7478_s17 + $0x1800] sm:$0xff]  ;;  %3728 = vmatpush.msrb.mxu3 %v1190_v39 }
 0x114   : > { %v1058_v48 = vld [vmem:[%s7478_s17 + $0x1a20] sm:$0xff]  ;;  %3670 = vmatpush.msrb.mxu0 %v990_v47 }
 0x115   : > { %v1118_v50 = vld [vmem:[%s7478_s17 + $0x1c00] sm:$0xff]  ;;  %3689 = vmatpush.msrb.mxu1 %v1058_v48  ;;  %3671 = vmatmul.f32.vlgmr.msrb.gmra.mxu0 %v7743_v40 }
 0x116   : > { %v1186_v51 = vld [vmem:[%s7478_s17 + $0x1e20] sm:$0xff]  ;;  %3710 = vmatpush.msrb.mxu2 %v1118_v50 }
 0x117   : > { %v1306_v52 = vld [vmem:[%s7478_s17 + $0x21e0] sm:$0xff]  ;;  %3729 = vmatpush.msrb.mxu3 %v1186_v51  ;;  %3711 = vmatmul.f32.vlgmr.msrb.gmra.mxu2 %v7745_v41 }
 0x118   : > { %v1434_v53 = vld [vmem:[%s7478_s17 + $0x25e0] sm:$0xff]  ;;  %3735 = vmatpush.msra.mxu0 %v1306_v52 }
 0x119   : > { %v1054_v54 = vld [vmem:[%s7478_s17 + $0x1a00] sm:$0xff]  ;;  %3775 = vmatpush.msra.mxu2 %v1434_v53 }
 0x11a   : > { %v1182_v55 = vld [vmem:[%s7478_s17 + $0x1e00] sm:$0xff]  ;;  %3690 = vmatpush.msrb.mxu1 %v1054_v54 }
 0x11b   : > { %v1302_v56 = vld [vmem:[%s7478_s17 + $0x21c0] sm:$0xff]  ;;  %3730 = vmatpush.msrb.mxu3 %v1182_v55  ;;  %3691 = vmatmul.f32.vlgmr.msrb.gmra.mxu1 %v7747_v42 }
 0x11c   : > { %v1370_v57 = vld [vmem:[%s7478_s17 + $0x23e0] sm:$0xff]  ;;  %3731 = vmatmul.f32.vlgmr.msrb.gmra.mxu3 %v7751_v49  ;;  %3736 = vmatpush.msra.mxu0 %v1302_v56 }
 0x11d   : > { %v1430_v58 = vld [vmem:[%s7478_s17 + $0x25c0] sm:$0xff]  ;;  %3755 = vmatpush.msra.mxu1 %v1370_v57 }
 0x11e   : > { %v1498_v59 = vld [vmem:[%s7478_s17 + $0x27e0] sm:$0xff]  ;;  %3776 = vmatpush.msra.mxu2 %v1430_v58 }
 0x11f   : > { %v1298_v60 = vld [vmem:[%s7478_s17 + $0x21a0] sm:$0xff]  ;;  %3795 = vmatpush.msra.mxu3 %v1498_v59 }
 0x120   : > { %v1366_v61 = vld [vmem:[%s7478_s17 + $0x23c0] sm:$0xff]  ;;  %3737 = vmatpush.msra.mxu0 %v1298_v60 }
 0x121   : > { %v1426_v62 = vld [vmem:[%s7478_s17 + $0x25a0] sm:$0xff]  ;;  %3756 = vmatpush.msra.mxu1 %v1366_v61 }
 0x122   : > { %v1494_v63 = vld [vmem:[%s7478_s17 + $0x27c0] sm:$0xff]  ;;  %3777 = vmatpush.msra.mxu2 %v1426_v62 }
 0x123   : > { %v1294_v0 = vld [vmem:[%s7478_s17 + $0x2180] sm:$0xff]  ;;  %3796 = vmatpush.msra.mxu3 %v1494_v63 }
 0x124   : > { %v1362_v1 = vld [vmem:[%s7478_s17 + $0x23a0] sm:$0xff]  ;;  %3738 = vmatpush.msra.mxu0 %v1294_v0 }
 0x125   : > { %v1422_v2 = vld [vmem:[%s7478_s17 + $0x2580] sm:$0xff]  ;;  %3757 = vmatpush.msra.mxu1 %v1362_v1 }
 0x126   : > { %v1490_v7 = vld [vmem:[%s7478_s17 + $0x27a0] sm:$0xff]  ;;  %3778 = vmatpush.msra.mxu2 %v1422_v2 }
 0x127   : > { %v1290_v8 = vld [vmem:[%s7478_s17 + $0x2160] sm:$0xff]  ;;  %3797 = vmatpush.msra.mxu3 %v1490_v7 }
 0x128   : > { %v1358_v9 = vld [vmem:[%s7478_s17 + $0x2380] sm:$0xff]  ;;  %3739 = vmatpush.msra.mxu0 %v1290_v8 }
 0x129   : > { %v1418_v10 = vld [vmem:[%s7478_s17 + $0x2560] sm:$0xff]  ;;  %3758 = vmatpush.msra.mxu1 %v1358_v9  ;;  %v7873_v9 = vld.sshfl [vmem:[#allocation1 + $0x10] sm:$0xff pattern:$0x73625140] }
 0x12a   : > { %v1486_v11 = vld [vmem:[%s7478_s17 + $0x2780] sm:$0xff]  ;;  %3779 = vmatpush.msra.mxu2 %v1418_v10 }
 0x12b   : > { %v1286_v12 = vld [vmem:[%s7478_s17 + $0x2140] sm:$0xff]  ;;  %3798 = vmatpush.msra.mxu3 %v1486_v11 }
 0x12c   : > { %v1354_v13 = vld [vmem:[%s7478_s17 + $0x2360] sm:$0xff]  ;;  %3740 = vmatpush.msra.mxu0 %v1286_v12 }
 0x12d   : > { %v1414_v14 = vld [vmem:[%s7478_s17 + $0x2540] sm:$0xff]  ;;  %3759 = vmatpush.msra.mxu1 %v1354_v13 }
 0x12e   : > { %v1482_v15 = vld [vmem:[%s7478_s17 + $0x2760] sm:$0xff]  ;;  %3780 = vmatpush.msra.mxu2 %v1414_v14  ;;  %v7881_v14 = vld.sshfl [vmem:[#allocation1 + $0x8] sm:$0xff pattern:$0x73625140] }
 0x12f   : > { %v1282_v16 = vld [vmem:[%s7478_s17 + $0x2120] sm:$0xff]  ;;  %3799 = vmatpush.msra.mxu3 %v1482_v15  ;;  %v7883_v15 = vld.sshfl [vmem:[#allocation1 + $0x18] sm:$0xff pattern:$0x73625140] }
 0x130   : > { %v1350_v17 = vld [vmem:[%s7478_s17 + $0x2340] sm:$0xff]  ;;  %3741 = vmatpush.msra.mxu0 %v1282_v16 }
 0x131   : > { %v1410_v18 = vld [vmem:[%s7478_s17 + $0x2520] sm:$0xff]  ;;  %3760 = vmatpush.msra.mxu1 %v1350_v17 }
 0x132   : > { %v1478_v19 = vld [vmem:[%s7478_s17 + $0x2740] sm:$0xff]  ;;  %3781 = vmatpush.msra.mxu2 %v1410_v18 }
 0x133   : > { %v1278_v20 = vld [vmem:[%s7478_s17 + $0x2100] sm:$0xff]  ;;  %3800 = vmatpush.msra.mxu3 %v1478_v19 }
 0x134   : > { %v1346_v21 = vld [vmem:[%s7478_s17 + $0x2320] sm:$0xff]  ;;  %3742 = vmatpush.msra.mxu0 %v1278_v20 }
 0x135   : > { %v1406_v22 = vld [vmem:[%s7478_s17 + $0x2500] sm:$0xff]  ;;  %3761 = vmatpush.msra.mxu1 %v1346_v21 }
 0x136   : > { %v1474_v23 = vld [vmem:[%s7478_s17 + $0x2720] sm:$0xff]  ;;  %3782 = vmatpush.msra.mxu2 %v1406_v22 }
 0x137   : > { %v1274_v24 = vld [vmem:[%s7478_s17 + $0x20e0] sm:$0xff]  ;;  %3801 = vmatpush.msra.mxu3 %v1474_v23 }
 0x138   : > { %v1342_v25 = vld [vmem:[%s7478_s17 + $0x2300] sm:$0xff]  ;;  %3743 = vmatpush.msra.mxu0 %v1274_v24 }
 0x139   : > { %v1402_v27 = vld [vmem:[%s7478_s17 + $0x24e0] sm:$0xff]  ;;  %3762 = vmatpush.msra.mxu1 %v1342_v25 }
 0x13a   : > { %v1470_v29 = vld [vmem:[%s7478_s17 + $0x2700] sm:$0xff]  ;;  %3783 = vmatpush.msra.mxu2 %v1402_v27 }
 0x13b   : > { %v1270_v32 = vld [vmem:[%s7478_s17 + $0x20c0] sm:$0xff]  ;;  %3802 = vmatpush.msra.mxu3 %v1470_v29 }
 0x13c   : > { %v1338_v33 = vld [vmem:[%s7478_s17 + $0x22e0] sm:$0xff]  ;;  %3744 = vmatpush.msra.mxu0 %v1270_v32 }
 0x13d   : > { %v1398_v34 = vld [vmem:[%s7478_s17 + $0x24c0] sm:$0xff]  ;;  %3763 = vmatpush.msra.mxu1 %v1338_v33 }
 0x13e   : > { %v1466_v35 = vld [vmem:[%s7478_s17 + $0x26e0] sm:$0xff]  ;;  %3784 = vmatpush.msra.mxu2 %v1398_v34 }
 0x13f   : > { %v1266_v36 = vld [vmem:[%s7478_s17 + $0x20a0] sm:$0xff]  ;;  %3803 = vmatpush.msra.mxu3 %v1466_v35 }
 0x140   : > { %v1334_v37 = vld [vmem:[%s7478_s17 + $0x22c0] sm:$0xff]  ;;  %3745 = vmatpush.msra.mxu0 %v1266_v36 }
 0x141   : > { %v1394_v38 = vld [vmem:[%s7478_s17 + $0x24a0] sm:$0xff]  ;;  %3764 = vmatpush.msra.mxu1 %v1334_v37 }
 0x142   : > { %v1462_v39 = vld [vmem:[%s7478_s17 + $0x26c0] sm:$0xff]  ;;  %3785 = vmatpush.msra.mxu2 %v1394_v38 }
 0x143   : > { %v1262_v47 = vld [vmem:[%s7478_s17 + $0x2080] sm:$0xff]  ;;  %3804 = vmatpush.msra.mxu3 %v1462_v39 }
 0x144   : > { %v1330_v48 = vld [vmem:[%s7478_s17 + $0x22a0] sm:$0xff]  ;;  %3746 = vmatpush.msra.mxu0 %v1262_v47 }
 0x145   : > { %v1390_v50 = vld [vmem:[%s7478_s17 + $0x2480] sm:$0xff]  ;;  %3765 = vmatpush.msra.mxu1 %v1330_v48 }
 0x146   : > { %v1458_v51 = vld [vmem:[%s7478_s17 + $0x26a0] sm:$0xff]  ;;  %3786 = vmatpush.msra.mxu2 %v1390_v50 }
 0x147   : > { %v1258_v52 = vld [vmem:[%s7478_s17 + $0x2060] sm:$0xff]  ;;  %3805 = vmatpush.msra.mxu3 %v1458_v51 }
 0x148   : > { %v1326_v53 = vld [vmem:[%s7478_s17 + $0x2280] sm:$0xff]  ;;  %3747 = vmatpush.msra.mxu0 %v1258_v52 }
 0x149   : > { %v1386_v54 = vld [vmem:[%s7478_s17 + $0x2460] sm:$0xff]  ;;  %3766 = vmatpush.msra.mxu1 %v1326_v53 }
 0x14a   : > { %v1454_v55 = vld [vmem:[%s7478_s17 + $0x2680] sm:$0xff]  ;;  %3787 = vmatpush.msra.mxu2 %v1386_v54 }
 0x14b   : > { %v1254_v56 = vld [vmem:[%s7478_s17 + $0x2040] sm:$0xff]  ;;  %3806 = vmatpush.msra.mxu3 %v1454_v55 }
 0x14c   : > { %v1322_v57 = vld [vmem:[%s7478_s17 + $0x2260] sm:$0xff]  ;;  %3748 = vmatpush.msra.mxu0 %v1254_v56 }
 0x14d   : > { %v1382_v58 = vld [vmem:[%s7478_s17 + $0x2440] sm:$0xff]  ;;  %3767 = vmatpush.msra.mxu1 %v1322_v57 }
 0x14e   : > { %v1450_v59 = vld [vmem:[%s7478_s17 + $0x2660] sm:$0xff]  ;;  %3788 = vmatpush.msra.mxu2 %v1382_v58 }
 0x14f   : > { %v1250_v60 = vld [vmem:[%s7478_s17 + $0x2020] sm:$0xff]  ;;  %3807 = vmatpush.msra.mxu3 %v1450_v59 }
 0x150   : > { %v1318_v61 = vld [vmem:[%s7478_s17 + $0x2240] sm:$0xff]  ;;  %3749 = vmatpush.msra.mxu0 %v1250_v60 }
 0x151   : > { %v1378_v62 = vld [vmem:[%s7478_s17 + $0x2420] sm:$0xff]  ;;  %3768 = vmatpush.msra.mxu1 %v1318_v61 }
 0x152   : > { %v1446_v63 = vld [vmem:[%s7478_s17 + $0x2640] sm:$0xff]  ;;  %3789 = vmatpush.msra.mxu2 %v1378_v62 }
 0x153   : > { %v1246_v0 = vld [vmem:[%s7478_s17 + $0x2000] sm:$0xff]  ;;  %3808 = vmatpush.msra.mxu3 %v1446_v63 }
 0x154   : > { %v1314_v1 = vld [vmem:[%s7478_s17 + $0x2220] sm:$0xff]  ;;  %3750 = vmatpush.msra.mxu0 %v1246_v0 }
 0x155   : > { %v1374_v2 = vld [vmem:[%s7478_s17 + $0x2400] sm:$0xff]  ;;  %3769 = vmatpush.msra.mxu1 %v1314_v1 }
 0x156   : > { %v1442_v7 = vld [vmem:[%s7478_s17 + $0x2620] sm:$0xff]  ;;  %3790 = vmatpush.msra.mxu2 %v1374_v2 }
 0x157   : > { %v7871_v8 = vld.sshfl [vmem:[#allocation1] sm:$0xff pattern:$0x73625140]  ;;  %3809 = vmatpush.msra.mxu3 %v1442_v7  ;;  %3791 = vmatmul.f32.vlgmr.msra.gmra.mxu2 %v7873_v9 }
 0x158   : > { %v1562_v10 = vld [vmem:[%s7478_s17 + $0x29e0] sm:$0xff]  ;;  %3751 = vmatmul.f32.vlgmr.msra.gmra.mxu0 %v7871_v8 }
 0x159   : > { %v1690_v11 = vld [vmem:[%s7478_s17 + $0x2de0] sm:$0xff]  ;;  %3815 = vmatpush.msrb.mxu0 %v1562_v10 }
 0x15a   : > { %v1310_v12 = vld [vmem:[%s7478_s17 + $0x2200] sm:$0xff]  ;;  %3855 = vmatpush.msrb.mxu2 %v1690_v11 }
 0x15b   : > { %v1438_v13 = vld [vmem:[%s7478_s17 + $0x2600] sm:$0xff]  ;;  %3770 = vmatpush.msra.mxu1 %v1310_v12 }
 0x15c   : > { %v1558_v16 = vld [vmem:[%s7478_s17 + $0x29c0] sm:$0xff]  ;;  %3810 = vmatpush.msra.mxu3 %v1438_v13  ;;  %3771 = vmatmul.f32.vlgmr.msra.gmra.mxu1 %v7881_v14 }
 0x15d   : > { %v1626_v17 = vld [vmem:[%s7478_s17 + $0x2be0] sm:$0xff]  ;;  %3811 = vmatmul.f32.vlgmr.msra.gmra.mxu3 %v7883_v15  ;;  %3816 = vmatpush.msrb.mxu0 %v1558_v16 }
 0x15e   : > { %v1686_v18 = vld [vmem:[%s7478_s17 + $0x2dc0] sm:$0xff]  ;;  %3835 = vmatpush.msrb.mxu1 %v1626_v17 }
 0x15f   : > { %v1754_v19 = vld [vmem:[%s7478_s17 + $0x2fe0] sm:$0xff]  ;;  %3856 = vmatpush.msrb.mxu2 %v1686_v18 }
 0x160   : > { %v1554_v20 = vld [vmem:[%s7478_s17 + $0x29a0] sm:$0xff]  ;;  %3875 = vmatpush.msrb.mxu3 %v1754_v19 }
 0x161   : > { %v1622_v21 = vld [vmem:[%s7478_s17 + $0x2bc0] sm:$0xff]  ;;  %3817 = vmatpush.msrb.mxu0 %v1554_v20 }
 0x162   : > { %v1682_v22 = vld [vmem:[%s7478_s17 + $0x2da0] sm:$0xff]  ;;  %3836 = vmatpush.msrb.mxu1 %v1622_v21 }
 0x163   : > { %v1750_v23 = vld [vmem:[%s7478_s17 + $0x2fc0] sm:$0xff]  ;;  %3857 = vmatpush.msrb.mxu2 %v1682_v22 }
 0x164   : > { %v1550_v24 = vld [vmem:[%s7478_s17 + $0x2980] sm:$0xff]  ;;  %3876 = vmatpush.msrb.mxu3 %v1750_v23 }
 0x165   : > { %v1618_v25 = vld [vmem:[%s7478_s17 + $0x2ba0] sm:$0xff]  ;;  %3818 = vmatpush.msrb.mxu0 %v1550_v24 }
 0x166   : > { %v1678_v27 = vld [vmem:[%s7478_s17 + $0x2d80] sm:$0xff]  ;;  %3837 = vmatpush.msrb.mxu1 %v1618_v25 }
 0x167   : > { %v1746_v29 = vld [vmem:[%s7478_s17 + $0x2fa0] sm:$0xff]  ;;  %3858 = vmatpush.msrb.mxu2 %v1678_v27  ;;  %v216_v27 = vld [vmem:[%s7577_s23 + $0x30] sm:$0xff] }
 0x168   : > { %v1546_v32 = vld [vmem:[%s7478_s17 + $0x2960] sm:$0xff]  ;;  %3877 = vmatpush.msrb.mxu3 %v1746_v29  ;;  %3337 = vst [vmem:[#allocation1] ss:$4 sm:$0xff] %v216_v27 }
 0x169   : > { %v1614_v33 = vld [vmem:[%s7478_s17 + $0x2b80] sm:$0xff]  ;;  %3819 = vmatpush.msrb.mxu0 %v1546_v32 }
 0x16a   : > { %v1674_v34 = vld [vmem:[%s7478_s17 + $0x2d60] sm:$0xff]  ;;  %3838 = vmatpush.msrb.mxu1 %v1614_v33 }
 0x16b   : > { %v1742_v35 = vld [vmem:[%s7478_s17 + $0x2f80] sm:$0xff]  ;;  %3859 = vmatpush.msrb.mxu2 %v1674_v34 }
 0x16c   : > { %v1542_v36 = vld [vmem:[%s7478_s17 + $0x2940] sm:$0xff]  ;;  %3878 = vmatpush.msrb.mxu3 %v1742_v35 }
 0x16d   : > { %v1610_v37 = vld [vmem:[%s7478_s17 + $0x2b60] sm:$0xff]  ;;  %3820 = vmatpush.msrb.mxu0 %v1542_v36 }
 0x16e   : > { %v1670_v38 = vld [vmem:[%s7478_s17 + $0x2d40] sm:$0xff]  ;;  %3839 = vmatpush.msrb.mxu1 %v1610_v37 }
 0x16f   : > { %v1738_v39 = vld [vmem:[%s7478_s17 + $0x2f60] sm:$0xff]  ;;  %3860 = vmatpush.msrb.mxu2 %v1670_v38  ;;  %v7950_v38 = vld.sshfl [vmem:[#allocation1 + $0x30] sm:$0xff pattern:$0x73625140] }
 0x170   : > { %v1538_v47 = vld [vmem:[%s7478_s17 + $0x2920] sm:$0xff]  ;;  %3879 = vmatpush.msrb.mxu3 %v1738_v39 }
 0x171   : > { %v1606_v48 = vld [vmem:[%s7478_s17 + $0x2b40] sm:$0xff]  ;;  %3821 = vmatpush.msrb.mxu0 %v1538_v47 }
 0x172   : > { %v1666_v50 = vld [vmem:[%s7478_s17 + $0x2d20] sm:$0xff]  ;;  %3840 = vmatpush.msrb.mxu1 %v1606_v48 }
 0x173   : > { %v1734_v51 = vld [vmem:[%s7478_s17 + $0x2f40] sm:$0xff]  ;;  %3861 = vmatpush.msrb.mxu2 %v1666_v50 }
 0x174   : > { %v1534_v52 = vld [vmem:[%s7478_s17 + $0x2900] sm:$0xff]  ;;  %3880 = vmatpush.msrb.mxu3 %v1734_v51  ;;  %v7958_v51 = vld.sshfl [vmem:[#allocation1 + $0x28] sm:$0xff pattern:$0x73625140] }
 0x175   : > { %v1602_v53 = vld [vmem:[%s7478_s17 + $0x2b20] sm:$0xff]  ;;  %3822 = vmatpush.msrb.mxu0 %v1534_v52  ;;  %v7960_v52 = vld.sshfl [vmem:[#allocation1 + $0x38] sm:$0xff pattern:$0x73625140] }
 0x176   : > { %v1662_v54 = vld [vmem:[%s7478_s17 + $0x2d00] sm:$0xff]  ;;  %3841 = vmatpush.msrb.mxu1 %v1602_v53 }
 0x177   : > { %v1730_v55 = vld [vmem:[%s7478_s17 + $0x2f20] sm:$0xff]  ;;  %3862 = vmatpush.msrb.mxu2 %v1662_v54 }
 0x178   : > { %v1530_v56 = vld [vmem:[%s7478_s17 + $0x28e0] sm:$0xff]  ;;  %3881 = vmatpush.msrb.mxu3 %v1730_v55 }
 0x179   : > { %v1598_v57 = vld [vmem:[%s7478_s17 + $0x2b00] sm:$0xff]  ;;  %3823 = vmatpush.msrb.mxu0 %v1530_v56 }
 0x17a   : > { %v1658_v58 = vld [vmem:[%s7478_s17 + $0x2ce0] sm:$0xff]  ;;  %3842 = vmatpush.msrb.mxu1 %v1598_v57 }
 0x17b   : > { %v1726_v59 = vld [vmem:[%s7478_s17 + $0x2f00] sm:$0xff]  ;;  %3863 = vmatpush.msrb.mxu2 %v1658_v58 }
 0x17c   : > { %v1526_v60 = vld [vmem:[%s7478_s17 + $0x28c0] sm:$0xff]  ;;  %3882 = vmatpush.msrb.mxu3 %v1726_v59 }
 0x17d   : > { %v1594_v61 = vld [vmem:[%s7478_s17 + $0x2ae0] sm:$0xff]  ;;  %3824 = vmatpush.msrb.mxu0 %v1526_v60 }
 0x17e   : > { %v1654_v62 = vld [vmem:[%s7478_s17 + $0x2cc0] sm:$0xff]  ;;  %3843 = vmatpush.msrb.mxu1 %v1594_v61 }
 0x17f   : > { %v1722_v63 = vld [vmem:[%s7478_s17 + $0x2ee0] sm:$0xff]  ;;  %3864 = vmatpush.msrb.mxu2 %v1654_v62 }
 0x180   : > { %v1522_v0 = vld [vmem:[%s7478_s17 + $0x28a0] sm:$0xff]  ;;  %3883 = vmatpush.msrb.mxu3 %v1722_v63 }
 0x181   : > { %v1590_v1 = vld [vmem:[%s7478_s17 + $0x2ac0] sm:$0xff]  ;;  %3825 = vmatpush.msrb.mxu0 %v1522_v0 }
 0x182   : > { %v1650_v2 = vld [vmem:[%s7478_s17 + $0x2ca0] sm:$0xff]  ;;  %3844 = vmatpush.msrb.mxu1 %v1590_v1 }
 0x183   : > { %v1718_v7 = vld [vmem:[%s7478_s17 + $0x2ec0] sm:$0xff]  ;;  %3865 = vmatpush.msrb.mxu2 %v1650_v2 }
 0x184   : > { %v1518_v10 = vld [vmem:[%s7478_s17 + $0x2880] sm:$0xff]  ;;  %3884 = vmatpush.msrb.mxu3 %v1718_v7 }
 0x185   : > { %v1586_v11 = vld [vmem:[%s7478_s17 + $0x2aa0] sm:$0xff]  ;;  %3826 = vmatpush.msrb.mxu0 %v1518_v10 }
 0x186   : > { %v1646_v12 = vld [vmem:[%s7478_s17 + $0x2c80] sm:$0xff]  ;;  %3845 = vmatpush.msrb.mxu1 %v1586_v11 }
 0x187   : > { %v1714_v13 = vld [vmem:[%s7478_s17 + $0x2ea0] sm:$0xff]  ;;  %3866 = vmatpush.msrb.mxu2 %v1646_v12 }
 0x188   : > { %v1514_v16 = vld [vmem:[%s7478_s17 + $0x2860] sm:$0xff]  ;;  %3885 = vmatpush.msrb.mxu3 %v1714_v13 }
 0x189   : > { %v1582_v17 = vld [vmem:[%s7478_s17 + $0x2a80] sm:$0xff]  ;;  %3827 = vmatpush.msrb.mxu0 %v1514_v16 }
 0x18a   : > { %v1642_v18 = vld [vmem:[%s7478_s17 + $0x2c60] sm:$0xff]  ;;  %3846 = vmatpush.msrb.mxu1 %v1582_v17 }
 0x18b   : > { %v1710_v19 = vld [vmem:[%s7478_s17 + $0x2e80] sm:$0xff]  ;;  %3867 = vmatpush.msrb.mxu2 %v1642_v18 }
 0x18c   : > { %v1510_v20 = vld [vmem:[%s7478_s17 + $0x2840] sm:$0xff]  ;;  %3886 = vmatpush.msrb.mxu3 %v1710_v19 }
 0x18d   : > { %v1578_v21 = vld [vmem:[%s7478_s17 + $0x2a60] sm:$0xff]  ;;  %3828 = vmatpush.msrb.mxu0 %v1510_v20 }
 0x18e   : > { %v1638_v22 = vld [vmem:[%s7478_s17 + $0x2c40] sm:$0xff]  ;;  %3847 = vmatpush.msrb.mxu1 %v1578_v21 }
 0x18f   : > { %v1706_v23 = vld [vmem:[%s7478_s17 + $0x2e60] sm:$0xff]  ;;  %3868 = vmatpush.msrb.mxu2 %v1638_v22 }
 0x190   : > { %v1506_v24 = vld [vmem:[%s7478_s17 + $0x2820] sm:$0xff]  ;;  %3887 = vmatpush.msrb.mxu3 %v1706_v23 }
 0x191   : > { %v1574_v25 = vld [vmem:[%s7478_s17 + $0x2a40] sm:$0xff]  ;;  %3829 = vmatpush.msrb.mxu0 %v1506_v24 }
 0x192   : > { %v1634_v29 = vld [vmem:[%s7478_s17 + $0x2c20] sm:$0xff]  ;;  %3848 = vmatpush.msrb.mxu1 %v1574_v25 }
 0x193   : > { %v1702_v32 = vld [vmem:[%s7478_s17 + $0x2e40] sm:$0xff]  ;;  %3869 = vmatpush.msrb.mxu2 %v1634_v29 }
 0x194   : > { %v1502_v33 = vld [vmem:[%s7478_s17 + $0x2800] sm:$0xff]  ;;  %3888 = vmatpush.msrb.mxu3 %v1702_v32 }
 0x195   : > { %v1570_v34 = vld [vmem:[%s7478_s17 + $0x2a20] sm:$0xff]  ;;  %3830 = vmatpush.msrb.mxu0 %v1502_v33 }
 0x196   : > { %v1630_v35 = vld [vmem:[%s7478_s17 + $0x2c00] sm:$0xff]  ;;  %3849 = vmatpush.msrb.mxu1 %v1570_v34 }
 0x197   : > { %v1698_v36 = vld [vmem:[%s7478_s17 + $0x2e20] sm:$0xff]  ;;  %3870 = vmatpush.msrb.mxu2 %v1630_v35 }
 0x198   : > { %v7948_v37 = vld.sshfl [vmem:[#allocation1 + $0x20] sm:$0xff pattern:$0x73625140]  ;;  %3889 = vmatpush.msrb.mxu3 %v1698_v36  ;;  %3871 = vmatmul.f32.vlgmr.msrb.gmra.mxu2 %v7950_v38 }
 0x199   : > { %v1818_v39 = vld [vmem:[%s7478_s17 + $0x31e0] sm:$0xff]  ;;  %3831 = vmatmul.f32.vlgmr.msrb.gmra.mxu0 %v7948_v37 }
 0x19a   : > { %v1946_v47 = vld [vmem:[%s7478_s17 + $0x35e0] sm:$0xff]  ;;  %3895 = vmatpush.msra.mxu0 %v1818_v39 }
 0x19b   : > { %v1566_v48 = vld [vmem:[%s7478_s17 + $0x2a00] sm:$0xff]  ;;  %3935 = vmatpush.msra.mxu2 %v1946_v47 }
 0x19c   : > { %v1694_v50 = vld [vmem:[%s7478_s17 + $0x2e00] sm:$0xff]  ;;  %3850 = vmatpush.msrb.mxu1 %v1566_v48 }
 0x19d   : > { %v1814_v53 = vld [vmem:[%s7478_s17 + $0x31c0] sm:$0xff]  ;;  %3890 = vmatpush.msrb.mxu3 %v1694_v50  ;;  %3851 = vmatmul.f32.vlgmr.msrb.gmra.mxu1 %v7958_v51 }
 0x19e   : > { %v1882_v54 = vld [vmem:[%s7478_s17 + $0x33e0] sm:$0xff]  ;;  %3891 = vmatmul.f32.vlgmr.msrb.gmra.mxu3 %v7960_v52  ;;  %3896 = vmatpush.msra.mxu0 %v1814_v53 }
 0x19f   : > { %v1942_v55 = vld [vmem:[%s7478_s17 + $0x35c0] sm:$0xff]  ;;  %3915 = vmatpush.msra.mxu1 %v1882_v54 }
 0x1a0   : > { %v2010_v56 = vld [vmem:[%s7478_s17 + $0x37e0] sm:$0xff]  ;;  %3936 = vmatpush.msra.mxu2 %v1942_v55 }
 0x1a1   : > { %v1810_v57 = vld [vmem:[%s7478_s17 + $0x31a0] sm:$0xff]  ;;  %3955 = vmatpush.msra.mxu3 %v2010_v56 }
 0x1a2   : > { %v1878_v58 = vld [vmem:[%s7478_s17 + $0x33c0] sm:$0xff]  ;;  %3897 = vmatpush.msra.mxu0 %v1810_v57 }
 0x1a3   : > { %v1938_v59 = vld [vmem:[%s7478_s17 + $0x35a0] sm:$0xff]  ;;  %3916 = vmatpush.msra.mxu1 %v1878_v58 }
 0x1a4   : > { %v2006_v60 = vld [vmem:[%s7478_s17 + $0x37c0] sm:$0xff]  ;;  %3937 = vmatpush.msra.mxu2 %v1938_v59 }
 0x1a5   : > { %v1806_v61 = vld [vmem:[%s7478_s17 + $0x3180] sm:$0xff]  ;;  %3956 = vmatpush.msra.mxu3 %v2006_v60 }
 0x1a6   : > { %v1874_v62 = vld [vmem:[%s7478_s17 + $0x33a0] sm:$0xff]  ;;  %3898 = vmatpush.msra.mxu0 %v1806_v61 }
 0x1a7   : > { %v1934_v63 = vld [vmem:[%s7478_s17 + $0x3580] sm:$0xff]  ;;  %3917 = vmatpush.msra.mxu1 %v1874_v62 }
 0x1a8   : > { %v2002_v0 = vld [vmem:[%s7478_s17 + $0x37a0] sm:$0xff]  ;;  %3938 = vmatpush.msra.mxu2 %v1934_v63 }
 0x1a9   : > { %v1802_v1 = vld [vmem:[%s7478_s17 + $0x3160] sm:$0xff]  ;;  %3957 = vmatpush.msra.mxu3 %v2002_v0 }
 0x1aa   : > { %v1870_v2 = vld [vmem:[%s7478_s17 + $0x3380] sm:$0xff]  ;;  %3899 = vmatpush.msra.mxu0 %v1802_v1 }
 0x1ab   : > { %v1930_v7 = vld [vmem:[%s7478_s17 + $0x3560] sm:$0xff]  ;;  %3918 = vmatpush.msra.mxu1 %v1870_v2 }
 0x1ac   : > { %v1998_v10 = vld [vmem:[%s7478_s17 + $0x3780] sm:$0xff]  ;;  %3939 = vmatpush.msra.mxu2 %v1930_v7  ;;  %v217_v7 = vld [vmem:[%s7577_s23 + $0x38] sm:$0xff] }
 0x1ad   : > { %v1798_v11 = vld [vmem:[%s7478_s17 + $0x3140] sm:$0xff]  ;;  %3958 = vmatpush.msra.mxu3 %v1998_v10  ;;  %3338 = vst [vmem:[#allocation1 + $0x20] ss:$4 sm:$0xff] %v217_v7 }
 0x1ae   : > { %v1866_v12 = vld [vmem:[%s7478_s17 + $0x3360] sm:$0xff]  ;;  %3900 = vmatpush.msra.mxu0 %v1798_v11 }
 0x1af   : > { %v1926_v13 = vld [vmem:[%s7478_s17 + $0x3540] sm:$0xff]  ;;  %3919 = vmatpush.msra.mxu1 %v1866_v12 }
 0x1b0   : > { %v1994_v16 = vld [vmem:[%s7478_s17 + $0x3760] sm:$0xff]  ;;  %3940 = vmatpush.msra.mxu2 %v1926_v13 }
 0x1b1   : > { %v1794_v17 = vld [vmem:[%s7478_s17 + $0x3120] sm:$0xff]  ;;  %3959 = vmatpush.msra.mxu3 %v1994_v16 }
 0x1b2   : > { %v1862_v18 = vld [vmem:[%s7478_s17 + $0x3340] sm:$0xff]  ;;  %3901 = vmatpush.msra.mxu0 %v1794_v17 }
 0x1b3   : > { %v1922_v19 = vld [vmem:[%s7478_s17 + $0x3520] sm:$0xff]  ;;  %3920 = vmatpush.msra.mxu1 %v1862_v18 }
 0x1b4   : > { %v1990_v20 = vld [vmem:[%s7478_s17 + $0x3740] sm:$0xff]  ;;  %3941 = vmatpush.msra.mxu2 %v1922_v19  ;;  %v8027_v19 = vld.sshfl [vmem:[#allocation1 + $0x10] sm:$0xff pattern:$0x73625140] }
 0x1b5   : > { %v1790_v21 = vld [vmem:[%s7478_s17 + $0x3100] sm:$0xff]  ;;  %3960 = vmatpush.msra.mxu3 %v1990_v20 }
 0x1b6   : > { %v1858_v22 = vld [vmem:[%s7478_s17 + $0x3320] sm:$0xff]  ;;  %3902 = vmatpush.msra.mxu0 %v1790_v21 }
 0x1b7   : > { %v1918_v23 = vld [vmem:[%s7478_s17 + $0x3500] sm:$0xff]  ;;  %3921 = vmatpush.msra.mxu1 %v1858_v22 }
 0x1b8   : > { %v1986_v24 = vld [vmem:[%s7478_s17 + $0x3720] sm:$0xff]  ;;  %3942 = vmatpush.msra.mxu2 %v1918_v23 }
 0x1b9   : > { %v1786_v25 = vld [vmem:[%s7478_s17 + $0x30e0] sm:$0xff]  ;;  %3961 = vmatpush.msra.mxu3 %v1986_v24  ;;  %v8035_v24 = vld.sshfl [vmem:[#allocation1 + $0x8] sm:$0xff pattern:$0x73625140] }
 0x1ba   : > { %v1854_v27 = vld [vmem:[%s7478_s17 + $0x3300] sm:$0xff]  ;;  %3903 = vmatpush.msra.mxu0 %v1786_v25  ;;  %v8037_v25 = vld.sshfl [vmem:[#allocation1 + $0x18] sm:$0xff pattern:$0x73625140] }
 0x1bb   : > { %v1914_v29 = vld [vmem:[%s7478_s17 + $0x34e0] sm:$0xff]  ;;  %3922 = vmatpush.msra.mxu1 %v1854_v27 }
 0x1bc   : > { %v1982_v32 = vld [vmem:[%s7478_s17 + $0x3700] sm:$0xff]  ;;  %3943 = vmatpush.msra.mxu2 %v1914_v29 }
 0x1bd   : > { %v1782_v33 = vld [vmem:[%s7478_s17 + $0x30c0] sm:$0xff]  ;;  %3962 = vmatpush.msra.mxu3 %v1982_v32 }
 0x1be   : > { %v1850_v34 = vld [vmem:[%s7478_s17 + $0x32e0] sm:$0xff]  ;;  %3904 = vmatpush.msra.mxu0 %v1782_v33 }
 0x1bf   : > { %v1910_v35 = vld [vmem:[%s7478_s17 + $0x34c0] sm:$0xff]  ;;  %3923 = vmatpush.msra.mxu1 %v1850_v34 }
 0x1c0   : > { %v1978_v36 = vld [vmem:[%s7478_s17 + $0x36e0] sm:$0xff]  ;;  %3944 = vmatpush.msra.mxu2 %v1910_v35 }
 0x1c1   : > { %v1778_v39 = vld [vmem:[%s7478_s17 + $0x30a0] sm:$0xff]  ;;  %3963 = vmatpush.msra.mxu3 %v1978_v36 }
 0x1c2   : > { %v1846_v47 = vld [vmem:[%s7478_s17 + $0x32c0] sm:$0xff]  ;;  %3905 = vmatpush.msra.mxu0 %v1778_v39 }
 0x1c3   : > { %v1906_v48 = vld [vmem:[%s7478_s17 + $0x34a0] sm:$0xff]  ;;  %3924 = vmatpush.msra.mxu1 %v1846_v47 }
 0x1c4   : > { %v1974_v50 = vld [vmem:[%s7478_s17 + $0x36c0] sm:$0xff]  ;;  %3945 = vmatpush.msra.mxu2 %v1906_v48 }
 0x1c5   : > { %v1774_v53 = vld [vmem:[%s7478_s17 + $0x3080] sm:$0xff]  ;;  %3964 = vmatpush.msra.mxu3 %v1974_v50 }
 0x1c6   : > { %v1842_v54 = vld [vmem:[%s7478_s17 + $0x32a0] sm:$0xff]  ;;  %3906 = vmatpush.msra.mxu0 %v1774_v53 }
 0x1c7   : > { %v1902_v55 = vld [vmem:[%s7478_s17 + $0x3480] sm:$0xff]  ;;  %3925 = vmatpush.msra.mxu1 %v1842_v54 }
 0x1c8   : > { %v1970_v56 = vld [vmem:[%s7478_s17 + $0x36a0] sm:$0xff]  ;;  %3946 = vmatpush.msra.mxu2 %v1902_v55 }
 0x1c9   : > { %v1770_v57 = vld [vmem:[%s7478_s17 + $0x3060] sm:$0xff]  ;;  %3965 = vmatpush.msra.mxu3 %v1970_v56 }
 0x1ca   : > { %v1838_v58 = vld [vmem:[%s7478_s17 + $0x3280] sm:$0xff]  ;;  %3907 = vmatpush.msra.mxu0 %v1770_v57 }
 0x1cb   : > { %v1898_v59 = vld [vmem:[%s7478_s17 + $0x3460] sm:$0xff]  ;;  %3926 = vmatpush.msra.mxu1 %v1838_v58 }
 0x1cc   : > { %v1966_v60 = vld [vmem:[%s7478_s17 + $0x3680] sm:$0xff]  ;;  %3947 = vmatpush.msra.mxu2 %v1898_v59 }
 0x1cd   : > { %v1766_v61 = vld [vmem:[%s7478_s17 + $0x3040] sm:$0xff]  ;;  %3966 = vmatpush.msra.mxu3 %v1966_v60 }
 0x1ce   : > { %v1834_v62 = vld [vmem:[%s7478_s17 + $0x3260] sm:$0xff]  ;;  %3908 = vmatpush.msra.mxu0 %v1766_v61 }
 0x1cf   : > { %v1894_v63 = vld [vmem:[%s7478_s17 + $0x3440] sm:$0xff]  ;;  %3927 = vmatpush.msra.mxu1 %v1834_v62 }
 0x1d0   : > { %v1962_v0 = vld [vmem:[%s7478_s17 + $0x3660] sm:$0xff]  ;;  %3948 = vmatpush.msra.mxu2 %v1894_v63 }
 0x1d1   : > { %v1762_v1 = vld [vmem:[%s7478_s17 + $0x3020] sm:$0xff]  ;;  %3967 = vmatpush.msra.mxu3 %v1962_v0 }
 0x1d2   : > { %v1830_v2 = vld [vmem:[%s7478_s17 + $0x3240] sm:$0xff]  ;;  %3909 = vmatpush.msra.mxu0 %v1762_v1 }
 0x1d3   : > { %v1890_v10 = vld [vmem:[%s7478_s17 + $0x3420] sm:$0xff]  ;;  %3928 = vmatpush.msra.mxu1 %v1830_v2 }
 0x1d4   : > { %v1958_v11 = vld [vmem:[%s7478_s17 + $0x3640] sm:$0xff]  ;;  %3949 = vmatpush.msra.mxu2 %v1890_v10 }
 0x1d5   : > { %v1758_v12 = vld [vmem:[%s7478_s17 + $0x3000] sm:$0xff]  ;;  %3968 = vmatpush.msra.mxu3 %v1958_v11 }
 0x1d6   : > { %v1826_v13 = vld [vmem:[%s7478_s17 + $0x3220] sm:$0xff]  ;;  %3910 = vmatpush.msra.mxu0 %v1758_v12 }
 0x1d7   : > { %v1886_v16 = vld [vmem:[%s7478_s17 + $0x3400] sm:$0xff]  ;;  %3929 = vmatpush.msra.mxu1 %v1826_v13 }
 0x1d8   : > { %v1954_v17 = vld [vmem:[%s7478_s17 + $0x3620] sm:$0xff]  ;;  %3950 = vmatpush.msra.mxu2 %v1886_v16 }
 0x1d9   : > { %v8025_v18 = vld.sshfl [vmem:[#allocation1] sm:$0xff pattern:$0x73625140]  ;;  %3969 = vmatpush.msra.mxu3 %v1954_v17  ;;  %3951 = vmatmul.f32.vlgmr.msra.gmra.mxu2 %v8027_v19 }
 0x1da   : > { %v2074_v20 = vld [vmem:[%s7478_s17 + $0x39e0] sm:$0xff]  ;;  %3911 = vmatmul.f32.vlgmr.msra.gmra.mxu0 %v8025_v18 }
 0x1db   : > { %v2202_v21 = vld [vmem:[%s7478_s17 + $0x3de0] sm:$0xff]  ;;  %3975 = vmatpush.msrb.mxu0 %v2074_v20 }
 0x1dc   : > { %v1822_v22 = vld [vmem:[%s7478_s17 + $0x3200] sm:$0xff]  ;;  %4015 = vmatpush.msrb.mxu2 %v2202_v21 }
 0x1dd   : > { %v1950_v23 = vld [vmem:[%s7478_s17 + $0x3600] sm:$0xff]  ;;  %3930 = vmatpush.msra.mxu1 %v1822_v22 }
 0x1de   : > { %v2070_v27 = vld [vmem:[%s7478_s17 + $0x39c0] sm:$0xff]  ;;  %3970 = vmatpush.msra.mxu3 %v1950_v23  ;;  %3931 = vmatmul.f32.vlgmr.msra.gmra.mxu1 %v8035_v24 }
 0x1df   : > { %v2138_v29 = vld [vmem:[%s7478_s17 + $0x3be0] sm:$0xff]  ;;  %3971 = vmatmul.f32.vlgmr.msra.gmra.mxu3 %v8037_v25  ;;  %3976 = vmatpush.msrb.mxu0 %v2070_v27 }
 0x1e0   : > { %v2198_v32 = vld [vmem:[%s7478_s17 + $0x3dc0] sm:$0xff]  ;;  %3995 = vmatpush.msrb.mxu1 %v2138_v29 }
 0x1e1   : > { %v2266_v33 = vld [vmem:[%s7478_s17 + $0x3fe0] sm:$0xff]  ;;  %4016 = vmatpush.msrb.mxu2 %v2198_v32 }
 0x1e2   : > { %v2066_v34 = vld [vmem:[%s7478_s17 + $0x39a0] sm:$0xff]  ;;  %4035 = vmatpush.msrb.mxu3 %v2266_v33 }
 0x1e3   : > { %v2134_v35 = vld [vmem:[%s7478_s17 + $0x3bc0] sm:$0xff]  ;;  %3977 = vmatpush.msrb.mxu0 %v2066_v34 }
 0x1e4   : > { %v2194_v36 = vld [vmem:[%s7478_s17 + $0x3da0] sm:$0xff]  ;;  %3996 = vmatpush.msrb.mxu1 %v2134_v35 }
 0x1e5   : > { %v2262_v39 = vld [vmem:[%s7478_s17 + $0x3fc0] sm:$0xff]  ;;  %4017 = vmatpush.msrb.mxu2 %v2194_v36 }
 0x1e6   : > { %v2062_v47 = vld [vmem:[%s7478_s17 + $0x3980] sm:$0xff]  ;;  %4036 = vmatpush.msrb.mxu3 %v2262_v39 }
 0x1e7   : > { %v2130_v48 = vld [vmem:[%s7478_s17 + $0x3ba0] sm:$0xff]  ;;  %3978 = vmatpush.msrb.mxu0 %v2062_v47 }
 0x1e8   : > { %v2190_v50 = vld [vmem:[%s7478_s17 + $0x3d80] sm:$0xff]  ;;  %3997 = vmatpush.msrb.mxu1 %v2130_v48 }
 0x1e9   : > { %v2258_v53 = vld [vmem:[%s7478_s17 + $0x3fa0] sm:$0xff]  ;;  %4018 = vmatpush.msrb.mxu2 %v2190_v50 }
 0x1ea   : > { %v2058_v54 = vld [vmem:[%s7478_s17 + $0x3960] sm:$0xff]  ;;  %4037 = vmatpush.msrb.mxu3 %v2258_v53 }
 0x1eb   : > { %v2126_v55 = vld [vmem:[%s7478_s17 + $0x3b80] sm:$0xff]  ;;  %3979 = vmatpush.msrb.mxu0 %v2058_v54 }
 0x1ec   : > { %v2186_v56 = vld [vmem:[%s7478_s17 + $0x3d60] sm:$0xff]  ;;  %3998 = vmatpush.msrb.mxu1 %v2126_v55 }
 0x1ed   : > { %v2254_v57 = vld [vmem:[%s7478_s17 + $0x3f80] sm:$0xff]  ;;  %4019 = vmatpush.msrb.mxu2 %v2186_v56 }
 0x1ee   : > { %v2054_v58 = vld [vmem:[%s7478_s17 + $0x3940] sm:$0xff]  ;;  %4038 = vmatpush.msrb.mxu3 %v2254_v57 }
 0x1ef   : > { %v2122_v59 = vld [vmem:[%s7478_s17 + $0x3b60] sm:$0xff]  ;;  %3980 = vmatpush.msrb.mxu0 %v2054_v58 }
 0x1f0   : > { %v2182_v60 = vld [vmem:[%s7478_s17 + $0x3d40] sm:$0xff]  ;;  %3999 = vmatpush.msrb.mxu1 %v2122_v59 }
 0x1f1   : > { %v2250_v61 = vld [vmem:[%s7478_s17 + $0x3f60] sm:$0xff]  ;;  %4020 = vmatpush.msrb.mxu2 %v2182_v60 }
 0x1f2   : > { %v2050_v62 = vld [vmem:[%s7478_s17 + $0x3920] sm:$0xff]  ;;  %4039 = vmatpush.msrb.mxu3 %v2250_v61 }
 0x1f3   : > { %v2118_v63 = vld [vmem:[%s7478_s17 + $0x3b40] sm:$0xff]  ;;  %3981 = vmatpush.msrb.mxu0 %v2050_v62 }
 0x1f4   : > { %v2178_v0 = vld [vmem:[%s7478_s17 + $0x3d20] sm:$0xff]  ;;  %4000 = vmatpush.msrb.mxu1 %v2118_v63 }
 0x1f5   : > { %v2246_v1 = vld [vmem:[%s7478_s17 + $0x3f40] sm:$0xff]  ;;  %4021 = vmatpush.msrb.mxu2 %v2178_v0 }
 0x1f6   : > { %v2046_v2 = vld [vmem:[%s7478_s17 + $0x3900] sm:$0xff]  ;;  %4040 = vmatpush.msrb.mxu3 %v2246_v1 }
 0x1f7   : > { %v2114_v7 = vld [vmem:[%s7478_s17 + $0x3b20] sm:$0xff]  ;;  %3982 = vmatpush.msrb.mxu0 %v2046_v2 }
 0x1f8   : > { %v2174_v10 = vld [vmem:[%s7478_s17 + $0x3d00] sm:$0xff]  ;;  %4001 = vmatpush.msrb.mxu1 %v2114_v7 }
 0x1f9   : > { %v2242_v11 = vld [vmem:[%s7478_s17 + $0x3f20] sm:$0xff]  ;;  %4022 = vmatpush.msrb.mxu2 %v2174_v10  ;;  %v8104_v10 = vld.sshfl [vmem:[#allocation1 + $0x30] sm:$0xff pattern:$0x73625140] }
 0x1fa   : > { %v2042_v12 = vld [vmem:[%s7478_s17 + $0x38e0] sm:$0xff]  ;;  %4041 = vmatpush.msrb.mxu3 %v2242_v11 }
 0x1fb   : > { %v2110_v13 = vld [vmem:[%s7478_s17 + $0x3b00] sm:$0xff]  ;;  %3983 = vmatpush.msrb.mxu0 %v2042_v12 }
 0x1fc   : > { %v2170_v16 = vld [vmem:[%s7478_s17 + $0x3ce0] sm:$0xff]  ;;  %4002 = vmatpush.msrb.mxu1 %v2110_v13 }
 0x1fd   : > { %v2238_v17 = vld [vmem:[%s7478_s17 + $0x3f00] sm:$0xff]  ;;  %4023 = vmatpush.msrb.mxu2 %v2170_v16 }
 0x1fe   : > { %v2038_v20 = vld [vmem:[%s7478_s17 + $0x38c0] sm:$0xff]  ;;  %4042 = vmatpush.msrb.mxu3 %v2238_v17  ;;  %v8110_v17 = vld.sshfl [vmem:[#allocation1 + $0x28] sm:$0xff pattern:$0x73625140] }
 0x1ff   : > { %v2106_v21 = vld [vmem:[%s7478_s17 + $0x3ae0] sm:$0xff]  ;;  %3984 = vmatpush.msrb.mxu0 %v2038_v20  ;;  %v220_v20 = vld [vmem:[%s7577_s23 + $0x50] sm:$0xff] }
 0x200   : > { %v2166_v22 = vld [vmem:[%s7478_s17 + $0x3cc0] sm:$0xff]  ;;  %4003 = vmatpush.msrb.mxu1 %v2106_v21  ;;  %v8115_v21 = vld.sshfl [vmem:[#allocation1 + $0x38] sm:$0xff pattern:$0x73625140] }
 0x201   : > { %v2234_v23 = vld [vmem:[%s7478_s17 + $0x3ee0] sm:$0xff]  ;;  %4024 = vmatpush.msrb.mxu2 %v2166_v22 }
 0x202   : > { %v2034_v27 = vld [vmem:[%s7478_s17 + $0x38a0] sm:$0xff]  ;;  %4043 = vmatpush.msrb.mxu3 %v2234_v23 }
 0x203   : > { %v2102_v29 = vld [vmem:[%s7478_s17 + $0x3ac0] sm:$0xff]  ;;  %3985 = vmatpush.msrb.mxu0 %v2034_v27 }
 0x204   : > { %v2162_v32 = vld [vmem:[%s7478_s17 + $0x3ca0] sm:$0xff]  ;;  %4004 = vmatpush.msrb.mxu1 %v2102_v29 }
 0x205   : > { %v2230_v33 = vld [vmem:[%s7478_s17 + $0x3ec0] sm:$0xff]  ;;  %4025 = vmatpush.msrb.mxu2 %v2162_v32 }
 0x206   : > { %v2030_v34 = vld [vmem:[%s7478_s17 + $0x3880] sm:$0xff]  ;;  %4044 = vmatpush.msrb.mxu3 %v2230_v33 }
 0x207   : > { %v2098_v35 = vld [vmem:[%s7478_s17 + $0x3aa0] sm:$0xff]  ;;  %3986 = vmatpush.msrb.mxu0 %v2030_v34 }
 0x208   : > { %v2158_v36 = vld [vmem:[%s7478_s17 + $0x3c80] sm:$0xff]  ;;  %4005 = vmatpush.msrb.mxu1 %v2098_v35 }
 0x209   : > { %v2226_v39 = vld [vmem:[%s7478_s17 + $0x3ea0] sm:$0xff]  ;;  %4026 = vmatpush.msrb.mxu2 %v2158_v36 }
 0x20a   : > { %v2026_v47 = vld [vmem:[%s7478_s17 + $0x3860] sm:$0xff]  ;;  %4045 = vmatpush.msrb.mxu3 %v2226_v39 }
 0x20b   : > { %v2094_v48 = vld [vmem:[%s7478_s17 + $0x3a80] sm:$0xff]  ;;  %3987 = vmatpush.msrb.mxu0 %v2026_v47 }
 0x20c   : > { %v2154_v50 = vld [vmem:[%s7478_s17 + $0x3c60] sm:$0xff]  ;;  %4006 = vmatpush.msrb.mxu1 %v2094_v48 }
 0x20d   : > { %v2222_v53 = vld [vmem:[%s7478_s17 + $0x3e80] sm:$0xff]  ;;  %4027 = vmatpush.msrb.mxu2 %v2154_v50 }
 0x20e   : > { %v2022_v54 = vld [vmem:[%s7478_s17 + $0x3840] sm:$0xff]  ;;  %4046 = vmatpush.msrb.mxu3 %v2222_v53 }
 0x20f   : > { %v2090_v55 = vld [vmem:[%s7478_s17 + $0x3a60] sm:$0xff]  ;;  %3988 = vmatpush.msrb.mxu0 %v2022_v54 }
 0x210   : > { %v2150_v56 = vld [vmem:[%s7478_s17 + $0x3c40] sm:$0xff]  ;;  %4007 = vmatpush.msrb.mxu1 %v2090_v55 }
 0x211   : > { %v2218_v57 = vld [vmem:[%s7478_s17 + $0x3e60] sm:$0xff]  ;;  %4028 = vmatpush.msrb.mxu2 %v2150_v56 }
 0x212   : > { %v2018_v58 = vld [vmem:[%s7478_s17 + $0x3820] sm:$0xff]  ;;  %4047 = vmatpush.msrb.mxu3 %v2218_v57 }
 0x213   : > { %v2086_v59 = vld [vmem:[%s7478_s17 + $0x3a40] sm:$0xff]  ;;  %3989 = vmatpush.msrb.mxu0 %v2018_v58 }
 0x214   : > { %v218_v60 = vld [vmem:[%s7577_s23 + $0x40] sm:$0xff]  ;;  %4008 = vmatpush.msrb.mxu1 %v2086_v59 }
 0x215   : > { %v2146_v61 = vld [vmem:[%s7478_s17 + $0x3c20] sm:$0xff]  ;;  %3347 = vst [vmem:[#allocation1] ss:$4 sm:$0xff] %v218_v60 }
 0x216   : > { %v2214_v62 = vld [vmem:[%s7478_s17 + $0x3e40] sm:$0xff]  ;;  %4029 = vmatpush.msrb.mxu2 %v2146_v61 }
 0x217   : > { %v2014_v63 = vld [vmem:[%s7478_s17 + $0x3800] sm:$0xff]  ;;  %4048 = vmatpush.msrb.mxu3 %v2214_v62 }
 0x218   : > { %v2082_v0 = vld [vmem:[%s7478_s17 + $0x3a20] sm:$0xff]  ;;  %3990 = vmatpush.msrb.mxu0 %v2014_v63 }
 0x219   : > { %v2142_v1 = vld [vmem:[%s7478_s17 + $0x3c00] sm:$0xff]  ;;  %4009 = vmatpush.msrb.mxu1 %v2082_v0 }
 0x21a   : > { %v2210_v2 = vld [vmem:[%s7478_s17 + $0x3e20] sm:$0xff]  ;;  %4030 = vmatpush.msrb.mxu2 %v2142_v1 }
 0x21b   : > { %v8102_v7 = vld.sshfl [vmem:[#allocation1 + $0x20] sm:$0xff pattern:$0x73625140]  ;;  %4049 = vmatpush.msrb.mxu3 %v2210_v2  ;;  %4031 = vmatmul.f32.vlgmr.msrb.gmra.mxu2 %v8104_v10 }
 0x21c   : > { %v2330_v11 = vld [vmem:[%s7478_s17 + $0x41e0] sm:$0xff]  ;;  %3991 = vmatmul.f32.vlgmr.msrb.gmra.mxu0 %v8102_v7  ;;  %v8129_v39 = vld.sshfl [vmem:[#allocation1 + $0x10] sm:$0xff pattern:$0x73625140] }
 0x21d   : > { %v2458_v12 = vld [vmem:[%s7478_s17 + $0x45e0] sm:$0xff]  ;;  %4055 = vmatpush.msra.mxu0 %v2330_v11  ;;  %v8131_v47 = vld.sshfl [vmem:[#allocation1 + $0x8] sm:$0xff pattern:$0x73625140] }
 0x21e   : > { %v2078_v13 = vld [vmem:[%s7478_s17 + $0x3a00] sm:$0xff]  ;;  %4095 = vmatpush.msra.mxu2 %v2458_v12  ;;  %v8133_v48 = vld.sshfl [vmem:[#allocation1 + $0x18] sm:$0xff pattern:$0x73625140] }
 0x21f   : > { %v2206_v16 = vld [vmem:[%s7478_s17 + $0x3e00] sm:$0xff]  ;;  %4010 = vmatpush.msrb.mxu1 %v2078_v13 }
 0x220   : > { %v2326_v22 = vld [vmem:[%s7478_s17 + $0x41c0] sm:$0xff]  ;;  %4050 = vmatpush.msrb.mxu3 %v2206_v16  ;;  %4011 = vmatmul.f32.vlgmr.msrb.gmra.mxu1 %v8110_v17 }
 0x221   : > { %v2394_v23 = vld [vmem:[%s7478_s17 + $0x43e0] sm:$0xff]  ;;  %4051 = vmatmul.f32.vlgmr.msrb.gmra.mxu3 %v8115_v21  ;;  %4056 = vmatpush.msra.mxu0 %v2326_v22 }
 0x222   : > { %v2454_v27 = vld [vmem:[%s7478_s17 + $0x45c0] sm:$0xff]  ;;  %4075 = vmatpush.msra.mxu1 %v2394_v23 }
 0x223   : > { %v2522_v29 = vld [vmem:[%s7478_s17 + $0x47e0] sm:$0xff]  ;;  %4096 = vmatpush.msra.mxu2 %v2454_v27 }
 0x224   : > { %v2322_v32 = vld [vmem:[%s7478_s17 + $0x41a0] sm:$0xff]  ;;  %4115 = vmatpush.msra.mxu3 %v2522_v29 }
 0x225   : > { %v2390_v33 = vld [vmem:[%s7478_s17 + $0x43c0] sm:$0xff]  ;;  %4057 = vmatpush.msra.mxu0 %v2322_v32 }
 0x226   : > { %v2450_v34 = vld [vmem:[%s7478_s17 + $0x45a0] sm:$0xff]  ;;  %4076 = vmatpush.msra.mxu1 %v2390_v33 }
 0x227   : > { %v2518_v35 = vld [vmem:[%s7478_s17 + $0x47c0] sm:$0xff]  ;;  %4097 = vmatpush.msra.mxu2 %v2450_v34 }
 0x228   : > { %v8127_v36 = vld.sshfl [vmem:[#allocation1] sm:$0xff pattern:$0x73625140]  ;;  %4116 = vmatpush.msra.mxu3 %v2518_v35 }
 0x229   : > { %v2318_v50 = vld [vmem:[%s7478_s17 + $0x4180] sm:$0xff]  ;;  %3357 = vst [vmem:[#allocation1] ss:$4 sm:$0xff] %v220_v20 }
 0x22a   : > { %v2386_v53 = vld [vmem:[%s7478_s17 + $0x43a0] sm:$0xff]  ;;  %4058 = vmatpush.msra.mxu0 %v2318_v50 }
 0x22b   : > { %v2446_v54 = vld [vmem:[%s7478_s17 + $0x4580] sm:$0xff]  ;;  %4077 = vmatpush.msra.mxu1 %v2386_v53 }
 0x22c   : > { %v2514_v55 = vld [vmem:[%s7478_s17 + $0x47a0] sm:$0xff]  ;;  %4098 = vmatpush.msra.mxu2 %v2446_v54 }
 0x22d   : > { %v2314_v56 = vld [vmem:[%s7478_s17 + $0x4160] sm:$0xff]  ;;  %4117 = vmatpush.msra.mxu3 %v2514_v55 }
 0x22e   : > { %v2382_v57 = vld [vmem:[%s7478_s17 + $0x4380] sm:$0xff]  ;;  %4059 = vmatpush.msra.mxu0 %v2314_v56 }
 0x22f   : > { %v2442_v58 = vld [vmem:[%s7478_s17 + $0x4560] sm:$0xff]  ;;  %4078 = vmatpush.msra.mxu1 %v2382_v57 }
 0x230   : > { %v2510_v59 = vld [vmem:[%s7478_s17 + $0x4780] sm:$0xff]  ;;  %4099 = vmatpush.msra.mxu2 %v2442_v58 }
 0x231   : > { %v2310_v60 = vld [vmem:[%s7478_s17 + $0x4140] sm:$0xff]  ;;  %4118 = vmatpush.msra.mxu3 %v2510_v59 }
 0x232   : > { %v2378_v61 = vld [vmem:[%s7478_s17 + $0x4360] sm:$0xff]  ;;  %4060 = vmatpush.msra.mxu0 %v2310_v60 }
 0x233   : > { %v2438_v62 = vld [vmem:[%s7478_s17 + $0x4540] sm:$0xff]  ;;  %4079 = vmatpush.msra.mxu1 %v2378_v61 }
 0x234   : > { %v2506_v63 = vld [vmem:[%s7478_s17 + $0x4760] sm:$0xff]  ;;  %4100 = vmatpush.msra.mxu2 %v2438_v62 }
 0x235   : > { %v2306_v0 = vld [vmem:[%s7478_s17 + $0x4120] sm:$0xff]  ;;  %4119 = vmatpush.msra.mxu3 %v2506_v63 }
 0x236   : > { %v2374_v1 = vld [vmem:[%s7478_s17 + $0x4340] sm:$0xff]  ;;  %4061 = vmatpush.msra.mxu0 %v2306_v0 }
 0x237   : > { %v2434_v2 = vld [vmem:[%s7478_s17 + $0x4520] sm:$0xff]  ;;  %4080 = vmatpush.msra.mxu1 %v2374_v1 }
 0x238   : > { %v2502_v11 = vld [vmem:[%s7478_s17 + $0x4740] sm:$0xff]  ;;  %4101 = vmatpush.msra.mxu2 %v2434_v2 }
 0x239   : > { %v2302_v12 = vld [vmem:[%s7478_s17 + $0x4100] sm:$0xff]  ;;  %4120 = vmatpush.msra.mxu3 %v2502_v11 }
 0x23a   : > { %v2370_v13 = vld [vmem:[%s7478_s17 + $0x4320] sm:$0xff]  ;;  %4062 = vmatpush.msra.mxu0 %v2302_v12 }
 0x23b   : > { %v2430_v16 = vld [vmem:[%s7478_s17 + $0x4500] sm:$0xff]  ;;  %4081 = vmatpush.msra.mxu1 %v2370_v13 }
 0x23c   : > { %v2498_v20 = vld [vmem:[%s7478_s17 + $0x4720] sm:$0xff]  ;;  %4102 = vmatpush.msra.mxu2 %v2430_v16  ;;  %v219_v16 = vld [vmem:[%s7577_s23 + $0x48] sm:$0xff] }
 0x23d   : > { %v2298_v22 = vld [vmem:[%s7478_s17 + $0x40e0] sm:$0xff]  ;;  %4121 = vmatpush.msra.mxu3 %v2498_v20  ;;  %3348 = vst [vmem:[#allocation1 + $0x20] ss:$4 sm:$0xff] %v219_v16 }
 0x23e   : > { %v2366_v23 = vld [vmem:[%s7478_s17 + $0x4300] sm:$0xff]  ;;  %4063 = vmatpush.msra.mxu0 %v2298_v22 }
 0x23f   : > { %v2426_v27 = vld [vmem:[%s7478_s17 + $0x44e0] sm:$0xff]  ;;  %4082 = vmatpush.msra.mxu1 %v2366_v23 }
 0x240   : > { %v2494_v29 = vld [vmem:[%s7478_s17 + $0x4700] sm:$0xff]  ;;  %4103 = vmatpush.msra.mxu2 %v2426_v27 }
 0x241   : > { %v2294_v32 = vld [vmem:[%s7478_s17 + $0x40c0] sm:$0xff]  ;;  %4122 = vmatpush.msra.mxu3 %v2494_v29 }
 0x242   : > { %v2362_v33 = vld [vmem:[%s7478_s17 + $0x42e0] sm:$0xff]  ;;  %4064 = vmatpush.msra.mxu0 %v2294_v32 }
 0x243   : > { %v2422_v34 = vld [vmem:[%s7478_s17 + $0x44c0] sm:$0xff]  ;;  %4083 = vmatpush.msra.mxu1 %v2362_v33 }
 0x244   : > { %v2490_v35 = vld [vmem:[%s7478_s17 + $0x46e0] sm:$0xff]  ;;  %4104 = vmatpush.msra.mxu2 %v2422_v34 }
 0x245   : > { %v2290_v50 = vld [vmem:[%s7478_s17 + $0x40a0] sm:$0xff]  ;;  %4123 = vmatpush.msra.mxu3 %v2490_v35 }
 0x246   : > { %v2358_v53 = vld [vmem:[%s7478_s17 + $0x42c0] sm:$0xff]  ;;  %4065 = vmatpush.msra.mxu0 %v2290_v50 }
 0x247   : > { %v2418_v54 = vld [vmem:[%s7478_s17 + $0x44a0] sm:$0xff]  ;;  %4084 = vmatpush.msra.mxu1 %v2358_v53  ;;  %v221_v53 = vld [vmem:[%s7577_s23 + $0x58] sm:$0xff] }
 0x248   : > { %v2486_v55 = vld [vmem:[%s7478_s17 + $0x46c0] sm:$0xff]  ;;  %4105 = vmatpush.msra.mxu2 %v2418_v54 }
 0x249   : > { %v2286_v56 = vld [vmem:[%s7478_s17 + $0x4080] sm:$0xff]  ;;  %4124 = vmatpush.msra.mxu3 %v2486_v55 }
 0x24a   : > { %v2354_v57 = vld [vmem:[%s7478_s17 + $0x42a0] sm:$0xff]  ;;  %4066 = vmatpush.msra.mxu0 %v2286_v56 }
 0x24b   : > { %v2414_v58 = vld [vmem:[%s7478_s17 + $0x4480] sm:$0xff]  ;;  %4085 = vmatpush.msra.mxu1 %v2354_v57 }
 0x24c   : > { %v2482_v59 = vld [vmem:[%s7478_s17 + $0x46a0] sm:$0xff]  ;;  %4106 = vmatpush.msra.mxu2 %v2414_v58 }
 0x24d   : > { %v2282_v60 = vld [vmem:[%s7478_s17 + $0x4060] sm:$0xff]  ;;  %4125 = vmatpush.msra.mxu3 %v2482_v59 }
 0x24e   : > { %v2350_v61 = vld [vmem:[%s7478_s17 + $0x4280] sm:$0xff]  ;;  %4067 = vmatpush.msra.mxu0 %v2282_v60 }
 0x24f   : > { %v2410_v62 = vld [vmem:[%s7478_s17 + $0x4460] sm:$0xff]  ;;  %4086 = vmatpush.msra.mxu1 %v2350_v61 }
 0x250   : > { %v2478_v63 = vld [vmem:[%s7478_s17 + $0x4680] sm:$0xff]  ;;  %4107 = vmatpush.msra.mxu2 %v2410_v62 }
 0x251   : > { %v2278_v0 = vld [vmem:[%s7478_s17 + $0x4040] sm:$0xff]  ;;  %4126 = vmatpush.msra.mxu3 %v2478_v63  ;;  %v8207_v63 = vld.sshfl [vmem:[#allocation1 + $0x30] sm:$0xff pattern:$0x73625140] }
 0x252   : > { %v2346_v1 = vld [vmem:[%s7478_s17 + $0x4260] sm:$0xff]  ;;  %4068 = vmatpush.msra.mxu0 %v2278_v0  ;;  %v8209_v0 = vld.sshfl [vmem:[#allocation1 + $0x28] sm:$0xff pattern:$0x73625140] }
 0x253   : > { %v2406_v2 = vld [vmem:[%s7478_s17 + $0x4440] sm:$0xff]  ;;  %4087 = vmatpush.msra.mxu1 %v2346_v1  ;;  %v8211_v1 = vld.sshfl [vmem:[#allocation1 + $0x38] sm:$0xff pattern:$0x73625140] }
 0x254   : > { %v2474_v11 = vld [vmem:[%s7478_s17 + $0x4660] sm:$0xff]  ;;  %4108 = vmatpush.msra.mxu2 %v2406_v2 }
 0x255   : > { %v2274_v12 = vld [vmem:[%s7478_s17 + $0x4020] sm:$0xff]  ;;  %4127 = vmatpush.msra.mxu3 %v2474_v11 }
 0x256   : > { %v2342_v13 = vld [vmem:[%s7478_s17 + $0x4240] sm:$0xff]  ;;  %4069 = vmatpush.msra.mxu0 %v2274_v12 }
 0x257   : > { %v2402_v20 = vld [vmem:[%s7478_s17 + $0x4420] sm:$0xff]  ;;  %4088 = vmatpush.msra.mxu1 %v2342_v13 }
 0x258   : > { %v2470_v22 = vld [vmem:[%s7478_s17 + $0x4640] sm:$0xff]  ;;  %4109 = vmatpush.msra.mxu2 %v2402_v20 }
 0x259   : > { %v2270_v23 = vld [vmem:[%s7478_s17 + $0x4000] sm:$0xff]  ;;  %4128 = vmatpush.msra.mxu3 %v2470_v22 }
 0x25a   : > { %v2338_v27 = vld [vmem:[%s7478_s17 + $0x4220] sm:$0xff]  ;;  %4070 = vmatpush.msra.mxu0 %v2270_v23 }
 0x25b   : > { %v2398_v29 = vld [vmem:[%s7478_s17 + $0x4400] sm:$0xff]  ;;  %4089 = vmatpush.msra.mxu1 %v2338_v27  ;;  %4071 = vmatmul.f32.vlgmr.msra.gmra.mxu0 %v8127_v36 }
 0x25c   : > { %v2466_v32 = vld [vmem:[%s7478_s17 + $0x4620] sm:$0xff]  ;;  %4110 = vmatpush.msra.mxu2 %v2398_v29 }
 0x25d   : > { %v2586_v33 = vld [vmem:[%s7478_s17 + $0x49e0] sm:$0xff]  ;;  %4129 = vmatpush.msra.mxu3 %v2466_v32  ;;  %4111 = vmatmul.f32.vlgmr.msra.gmra.mxu2 %v8129_v39 }
 0x25e   : > { %v2714_v34 = vld [vmem:[%s7478_s17 + $0x4de0] sm:$0xff]  ;;  %4135 = vmatpush.msrb.mxu0 %v2586_v33 }
 0x25f   : > { %v2334_v35 = vld [vmem:[%s7478_s17 + $0x4200] sm:$0xff]  ;;  %4175 = vmatpush.msrb.mxu2 %v2714_v34 }
 0x260   : > { %v2462_v50 = vld [vmem:[%s7478_s17 + $0x4600] sm:$0xff]  ;;  %4090 = vmatpush.msra.mxu1 %v2334_v35 }
 0x261   : > { %v2582_v54 = vld [vmem:[%s7478_s17 + $0x49c0] sm:$0xff]  ;;  %4130 = vmatpush.msra.mxu3 %v2462_v50  ;;  %4091 = vmatmul.f32.vlgmr.msra.gmra.mxu1 %v8131_v47 }
 0x262   : > { %v2650_v55 = vld [vmem:[%s7478_s17 + $0x4be0] sm:$0xff]  ;;  %4131 = vmatmul.f32.vlgmr.msra.gmra.mxu3 %v8133_v48  ;;  %4136 = vmatpush.msrb.mxu0 %v2582_v54 }
 0x263   : > { %v2710_v56 = vld [vmem:[%s7478_s17 + $0x4dc0] sm:$0xff]  ;;  %4155 = vmatpush.msrb.mxu1 %v2650_v55 }
 0x264   : > { %v2778_v57 = vld [vmem:[%s7478_s17 + $0x4fe0] sm:$0xff]  ;;  %4176 = vmatpush.msrb.mxu2 %v2710_v56 }
 0x265   : > { %v2578_v58 = vld [vmem:[%s7478_s17 + $0x49a0] sm:$0xff]  ;;  %4195 = vmatpush.msrb.mxu3 %v2778_v57 }
 0x266   : > { %v2646_v59 = vld [vmem:[%s7478_s17 + $0x4bc0] sm:$0xff]  ;;  %4137 = vmatpush.msrb.mxu0 %v2578_v58 }
 0x267   : > { %v2706_v60 = vld [vmem:[%s7478_s17 + $0x4da0] sm:$0xff]  ;;  %4156 = vmatpush.msrb.mxu1 %v2646_v59 }
 0x268   : > { %v2774_v61 = vld [vmem:[%s7478_s17 + $0x4fc0] sm:$0xff]  ;;  %4177 = vmatpush.msrb.mxu2 %v2706_v60 }
 0x269   : > { %v8205_v62 = vld.sshfl [vmem:[#allocation1 + $0x20] sm:$0xff pattern:$0x73625140]  ;;  %4196 = vmatpush.msrb.mxu3 %v2774_v61 }
 0x26a   : > { %v2574_v2 = vld [vmem:[%s7478_s17 + $0x4980] sm:$0xff]  ;;  %3358 = vst [vmem:[#allocation1 + $0x20] ss:$4 sm:$0xff] %v221_v53 }
 0x26b   : > { %v2642_v11 = vld [vmem:[%s7478_s17 + $0x4ba0] sm:$0xff]  ;;  %4138 = vmatpush.msrb.mxu0 %v2574_v2 }
 0x26c   : > { %v2702_v12 = vld [vmem:[%s7478_s17 + $0x4d80] sm:$0xff]  ;;  %4157 = vmatpush.msrb.mxu1 %v2642_v11 }
 0x26d   : > { %v2770_v13 = vld [vmem:[%s7478_s17 + $0x4fa0] sm:$0xff]  ;;  %4178 = vmatpush.msrb.mxu2 %v2702_v12 }
 0x26e   : > { %v2570_v16 = vld [vmem:[%s7478_s17 + $0x4960] sm:$0xff]  ;;  %4197 = vmatpush.msrb.mxu3 %v2770_v13 }
 0x26f   : > { %v2638_v20 = vld [vmem:[%s7478_s17 + $0x4b80] sm:$0xff]  ;;  %4139 = vmatpush.msrb.mxu0 %v2570_v16 }
 0x270   : > { %v2698_v22 = vld [vmem:[%s7478_s17 + $0x4d60] sm:$0xff]  ;;  %4158 = vmatpush.msrb.mxu1 %v2638_v20 }
 0x271   : > { %v2766_v23 = vld [vmem:[%s7478_s17 + $0x4f80] sm:$0xff]  ;;  %4179 = vmatpush.msrb.mxu2 %v2698_v22 }
 0x272   : > { %v2566_v27 = vld [vmem:[%s7478_s17 + $0x4940] sm:$0xff]  ;;  %4198 = vmatpush.msrb.mxu3 %v2766_v23 }
 0x273   : > { %v2634_v29 = vld [vmem:[%s7478_s17 + $0x4b60] sm:$0xff]  ;;  %4140 = vmatpush.msrb.mxu0 %v2566_v27 }
 0x274   : > { %v2694_v32 = vld [vmem:[%s7478_s17 + $0x4d40] sm:$0xff]  ;;  %4159 = vmatpush.msrb.mxu1 %v2634_v29 }
 0x275   : > { %v2762_v33 = vld [vmem:[%s7478_s17 + $0x4f60] sm:$0xff]  ;;  %4180 = vmatpush.msrb.mxu2 %v2694_v32 }
 0x276   : > { %v2562_v34 = vld [vmem:[%s7478_s17 + $0x4920] sm:$0xff]  ;;  %4199 = vmatpush.msrb.mxu3 %v2762_v33 }
 0x277   : > { %v2630_v35 = vld [vmem:[%s7478_s17 + $0x4b40] sm:$0xff]  ;;  %4141 = vmatpush.msrb.mxu0 %v2562_v34 }
 0x278   : > { %v2690_v50 = vld [vmem:[%s7478_s17 + $0x4d20] sm:$0xff]  ;;  %4160 = vmatpush.msrb.mxu1 %v2630_v35 }
 0x279   : > { %v2758_v53 = vld [vmem:[%s7478_s17 + $0x4f40] sm:$0xff]  ;;  %4181 = vmatpush.msrb.mxu2 %v2690_v50 }
 0x27a   : > { %v2558_v54 = vld [vmem:[%s7478_s17 + $0x4900] sm:$0xff]  ;;  %4200 = vmatpush.msrb.mxu3 %v2758_v53 }
 0x27b   : > { %v2626_v55 = vld [vmem:[%s7478_s17 + $0x4b20] sm:$0xff]  ;;  %4142 = vmatpush.msrb.mxu0 %v2558_v54 }
 0x27c   : > { %v2686_v56 = vld [vmem:[%s7478_s17 + $0x4d00] sm:$0xff]  ;;  %4161 = vmatpush.msrb.mxu1 %v2626_v55 }
 0x27d   : > { %v2754_v57 = vld [vmem:[%s7478_s17 + $0x4f20] sm:$0xff]  ;;  %4182 = vmatpush.msrb.mxu2 %v2686_v56 }
 0x27e   : > { %v2554_v58 = vld [vmem:[%s7478_s17 + $0x48e0] sm:$0xff]  ;;  %4201 = vmatpush.msrb.mxu3 %v2754_v57 }
 0x27f   : > { %v2622_v59 = vld [vmem:[%s7478_s17 + $0x4b00] sm:$0xff]  ;;  %4143 = vmatpush.msrb.mxu0 %v2554_v58 }
 0x280   : > { %v2682_v60 = vld [vmem:[%s7478_s17 + $0x4ce0] sm:$0xff]  ;;  %4162 = vmatpush.msrb.mxu1 %v2622_v59 }
 0x281   : > { %v2750_v61 = vld [vmem:[%s7478_s17 + $0x4f00] sm:$0xff]  ;;  %4183 = vmatpush.msrb.mxu2 %v2682_v60 }
 0x282   : > { %v2550_v2 = vld [vmem:[%s7478_s17 + $0x48c0] sm:$0xff]  ;;  %4202 = vmatpush.msrb.mxu3 %v2750_v61 }
 0x283   : > { %v2618_v11 = vld [vmem:[%s7478_s17 + $0x4ae0] sm:$0xff]  ;;  %4144 = vmatpush.msrb.mxu0 %v2550_v2 }
 0x284   : > { %v2678_v12 = vld [vmem:[%s7478_s17 + $0x4cc0] sm:$0xff]  ;;  %4163 = vmatpush.msrb.mxu1 %v2618_v11 }
 0x285   : > { %v2746_v13 = vld [vmem:[%s7478_s17 + $0x4ee0] sm:$0xff]  ;;  %4184 = vmatpush.msrb.mxu2 %v2678_v12 }
 0x286   : > { %v2546_v16 = vld [vmem:[%s7478_s17 + $0x48a0] sm:$0xff]  ;;  %4203 = vmatpush.msrb.mxu3 %v2746_v13 }
 0x287   : > { %v2614_v20 = vld [vmem:[%s7478_s17 + $0x4ac0] sm:$0xff]  ;;  %4145 = vmatpush.msrb.mxu0 %v2546_v16 }
 0x288   : > { %v2674_v22 = vld [vmem:[%s7478_s17 + $0x4ca0] sm:$0xff]  ;;  %4164 = vmatpush.msrb.mxu1 %v2614_v20 }
 0x289   : > { %v2742_v23 = vld [vmem:[%s7478_s17 + $0x4ec0] sm:$0xff]  ;;  %4185 = vmatpush.msrb.mxu2 %v2674_v22 }
 0x28a   : > { %v2542_v27 = vld [vmem:[%s7478_s17 + $0x4880] sm:$0xff]  ;;  %4204 = vmatpush.msrb.mxu3 %v2742_v23 }
 0x28b   : > { %v2610_v29 = vld [vmem:[%s7478_s17 + $0x4aa0] sm:$0xff]  ;;  %4146 = vmatpush.msrb.mxu0 %v2542_v27 }
 0x28c   : > { %v2670_v32 = vld [vmem:[%s7478_s17 + $0x4c80] sm:$0xff]  ;;  %4165 = vmatpush.msrb.mxu1 %v2610_v29 }
 0x28d   : > { %v2738_v33 = vld [vmem:[%s7478_s17 + $0x4ea0] sm:$0xff]  ;;  %4186 = vmatpush.msrb.mxu2 %v2670_v32 }
 0x28e   : > { %v2538_v34 = vld [vmem:[%s7478_s17 + $0x4860] sm:$0xff]  ;;  %4205 = vmatpush.msrb.mxu3 %v2738_v33 }
 0x28f   : > { %v2606_v35 = vld [vmem:[%s7478_s17 + $0x4a80] sm:$0xff]  ;;  %4147 = vmatpush.msrb.mxu0 %v2538_v34 }
 0x290   : > { %v2666_v50 = vld [vmem:[%s7478_s17 + $0x4c60] sm:$0xff]  ;;  %4166 = vmatpush.msrb.mxu1 %v2606_v35 }
 0x291   : > { %v2734_v53 = vld [vmem:[%s7478_s17 + $0x4e80] sm:$0xff]  ;;  %4187 = vmatpush.msrb.mxu2 %v2666_v50 }
 0x292   : > { %v2534_v54 = vld [vmem:[%s7478_s17 + $0x4840] sm:$0xff]  ;;  %4206 = vmatpush.msrb.mxu3 %v2734_v53 }
 0x293   : > { %v2602_v55 = vld [vmem:[%s7478_s17 + $0x4a60] sm:$0xff]  ;;  %4148 = vmatpush.msrb.mxu0 %v2534_v54 }
 0x294   : > { %v2662_v56 = vld [vmem:[%s7478_s17 + $0x4c40] sm:$0xff]  ;;  %4167 = vmatpush.msrb.mxu1 %v2602_v55 }
 0x295   : > { %v2730_v57 = vld [vmem:[%s7478_s17 + $0x4e60] sm:$0xff]  ;;  %4188 = vmatpush.msrb.mxu2 %v2662_v56 }
 0x296   : > { %v2530_v58 = vld [vmem:[%s7478_s17 + $0x4820] sm:$0xff]  ;;  %4207 = vmatpush.msrb.mxu3 %v2730_v57 }
 0x297   : > { %v2598_v59 = vld [vmem:[%s7478_s17 + $0x4a40] sm:$0xff]  ;;  %4149 = vmatpush.msrb.mxu0 %v2530_v58 }
 0x298   : > { %v2658_v60 = vld [vmem:[%s7478_s17 + $0x4c20] sm:$0xff]  ;;  %4168 = vmatpush.msrb.mxu1 %v2598_v59 }
 0x299   : > { %v2726_v61 = vld [vmem:[%s7478_s17 + $0x4e40] sm:$0xff]  ;;  %4189 = vmatpush.msrb.mxu2 %v2658_v60 }
 0x29a   : > { %v2526_v2 = vld [vmem:[%s7478_s17 + $0x4800] sm:$0xff]  ;;  %4208 = vmatpush.msrb.mxu3 %v2726_v61 }
 0x29b   : > { %v2594_v11 = vld [vmem:[%s7478_s17 + $0x4a20] sm:$0xff]  ;;  %4150 = vmatpush.msrb.mxu0 %v2526_v2 }
 0x29c   : > { %v2654_v12 = vld [vmem:[%s7478_s17 + $0x4c00] sm:$0xff]  ;;  %4169 = vmatpush.msrb.mxu1 %v2594_v11  ;;  %4151 = vmatmul.f32.vlgmr.msrb.gmra.mxu0 %v8205_v62 }
 0x29d   : > { %v2722_v13 = vld [vmem:[%s7478_s17 + $0x4e20] sm:$0xff]  ;;  %4190 = vmatpush.msrb.mxu2 %v2654_v12 }
 0x29e   : > { %v2842_v16 = vld [vmem:[%s7478_s17 + $0x51e0] sm:$0xff]  ;;  %4209 = vmatpush.msrb.mxu3 %v2722_v13  ;;  %4191 = vmatmul.f32.vlgmr.msrb.gmra.mxu2 %v8207_v63 }
 0x29f   : > { %v2970_v20 = vld [vmem:[%s7478_s17 + $0x55e0] sm:$0xff]  ;;  %4215 = vmatpush.msra.mxu0 %v2842_v16 }
 0x2a0   : > { %v2590_v22 = vld [vmem:[%s7478_s17 + $0x4a00] sm:$0xff]  ;;  %4255 = vmatpush.msra.mxu2 %v2970_v20 }
 0x2a1   : > { %v2718_v23 = vld [vmem:[%s7478_s17 + $0x4e00] sm:$0xff]  ;;  %4170 = vmatpush.msrb.mxu1 %v2590_v22 }
 0x2a2   : > { %v2838_v27 = vld [vmem:[%s7478_s17 + $0x51c0] sm:$0xff]  ;;  %4210 = vmatpush.msrb.mxu3 %v2718_v23  ;;  %4171 = vmatmul.f32.vlgmr.msrb.gmra.mxu1 %v8209_v0 }
 0x2a3   : > { %v2906_v29 = vld [vmem:[%s7478_s17 + $0x53e0] sm:$0xff]  ;;  %4211 = vmatmul.f32.vlgmr.msrb.gmra.mxu3 %v8211_v1  ;;  %4216 = vmatpush.msra.mxu0 %v2838_v27 }
 0x2a4   : > { %v2966_v32 = vld [vmem:[%s7478_s17 + $0x55c0] sm:$0xff]  ;;  %4235 = vmatpush.msra.mxu1 %v2906_v29 }
 0x2a5   : > { %v3034_v33 = vld [vmem:[%s7478_s17 + $0x57e0] sm:$0xff]  ;;  %4256 = vmatpush.msra.mxu2 %v2966_v32 }
 0x2a6   : > { %v2834_v34 = vld [vmem:[%s7478_s17 + $0x51a0] sm:$0xff]  ;;  %4275 = vmatpush.msra.mxu3 %v3034_v33 }
 0x2a7   : > { %v2902_v35 = vld [vmem:[%s7478_s17 + $0x53c0] sm:$0xff]  ;;  %4217 = vmatpush.msra.mxu0 %v2834_v34 }
 0x2a8   : > { %v2962_v50 = vld [vmem:[%s7478_s17 + $0x55a0] sm:$0xff]  ;;  %4236 = vmatpush.msra.mxu1 %v2902_v35 }
 0x2a9   : > { %v3030_v53 = vld [vmem:[%s7478_s17 + $0x57c0] sm:$0xff]  ;;  %4257 = vmatpush.msra.mxu2 %v2962_v50 }
 0x2aa   : > { %v2830_v54 = vld [vmem:[%s7478_s17 + $0x5180] sm:$0xff]  ;;  %4276 = vmatpush.msra.mxu3 %v3030_v53 }
 0x2ab   : > { %v2898_v55 = vld [vmem:[%s7478_s17 + $0x53a0] sm:$0xff]  ;;  %4218 = vmatpush.msra.mxu0 %v2830_v54 }
 0x2ac   : > { %v2958_v56 = vld [vmem:[%s7478_s17 + $0x5580] sm:$0xff]  ;;  %4237 = vmatpush.msra.mxu1 %v2898_v55 }
 0x2ad   : > { %v3026_v57 = vld [vmem:[%s7478_s17 + $0x57a0] sm:$0xff]  ;;  %4258 = vmatpush.msra.mxu2 %v2958_v56 }
 0x2ae   : > { %v2826_v58 = vld [vmem:[%s7478_s17 + $0x5160] sm:$0xff]  ;;  %4277 = vmatpush.msra.mxu3 %v3026_v57 }
 0x2af   : > { %v2894_v59 = vld [vmem:[%s7478_s17 + $0x5380] sm:$0xff]  ;;  %4219 = vmatpush.msra.mxu0 %v2826_v58 }
 0x2b0   : > { %v2954_v60 = vld [vmem:[%s7478_s17 + $0x5560] sm:$0xff]  ;;  %4238 = vmatpush.msra.mxu1 %v2894_v59 }
 0x2b1   : > { %v3022_v61 = vld [vmem:[%s7478_s17 + $0x5780] sm:$0xff]  ;;  %4259 = vmatpush.msra.mxu2 %v2954_v60 }
 0x2b2   : > { %v2822_v2 = vld [vmem:[%s7478_s17 + $0x5140] sm:$0xff]  ;;  %4278 = vmatpush.msra.mxu3 %v3022_v61 }
 0x2b3   : > { %v2890_v11 = vld [vmem:[%s7478_s17 + $0x5360] sm:$0xff]  ;;  %4220 = vmatpush.msra.mxu0 %v2822_v2 }
 0x2b4   : > { %v2950_v12 = vld [vmem:[%s7478_s17 + $0x5540] sm:$0xff]  ;;  %4239 = vmatpush.msra.mxu1 %v2890_v11 }
 0x2b5   : > { %v3018_v13 = vld [vmem:[%s7478_s17 + $0x5760] sm:$0xff]  ;;  %4260 = vmatpush.msra.mxu2 %v2950_v12 }
 0x2b6   : > { %v2818_v16 = vld [vmem:[%s7478_s17 + $0x5120] sm:$0xff]  ;;  %4279 = vmatpush.msra.mxu3 %v3018_v13 }
 0x2b7   : > { %v2886_v20 = vld [vmem:[%s7478_s17 + $0x5340] sm:$0xff]  ;;  %4221 = vmatpush.msra.mxu0 %v2818_v16 }
 0x2b8   : > { %v2946_v22 = vld [vmem:[%s7478_s17 + $0x5520] sm:$0xff]  ;;  %4240 = vmatpush.msra.mxu1 %v2886_v20 }
 0x2b9   : > { %v3014_v23 = vld [vmem:[%s7478_s17 + $0x5740] sm:$0xff]  ;;  %4261 = vmatpush.msra.mxu2 %v2946_v22 }
 0x2ba   : > { %v2814_v27 = vld [vmem:[%s7478_s17 + $0x5100] sm:$0xff]  ;;  %4280 = vmatpush.msra.mxu3 %v3014_v23 }
 0x2bb   : > { %v2882_v29 = vld [vmem:[%s7478_s17 + $0x5320] sm:$0xff]  ;;  %4222 = vmatpush.msra.mxu0 %v2814_v27 }
 0x2bc   : > { %v2942_v32 = vld [vmem:[%s7478_s17 + $0x5500] sm:$0xff]  ;;  %4241 = vmatpush.msra.mxu1 %v2882_v29 }
 0x2bd   : > { %v3010_v33 = vld [vmem:[%s7478_s17 + $0x5720] sm:$0xff]  ;;  %4262 = vmatpush.msra.mxu2 %v2942_v32 }
 0x2be   : > { %v2810_v34 = vld [vmem:[%s7478_s17 + $0x50e0] sm:$0xff]  ;;  %4281 = vmatpush.msra.mxu3 %v3010_v33 }
 0x2bf   : > { %v2878_v35 = vld [vmem:[%s7478_s17 + $0x5300] sm:$0xff]  ;;  %4223 = vmatpush.msra.mxu0 %v2810_v34 }
 0x2c0   : > { %v2938_v50 = vld [vmem:[%s7478_s17 + $0x54e0] sm:$0xff]  ;;  %4242 = vmatpush.msra.mxu1 %v2878_v35 }
 0x2c1   : > { %v3006_v53 = vld [vmem:[%s7478_s17 + $0x5700] sm:$0xff]  ;;  %4263 = vmatpush.msra.mxu2 %v2938_v50 }
 0x2c2   : > { %v2806_v54 = vld [vmem:[%s7478_s17 + $0x50c0] sm:$0xff]  ;;  %4282 = vmatpush.msra.mxu3 %v3006_v53 }
 0x2c3   : > { %v2874_v55 = vld [vmem:[%s7478_s17 + $0x52e0] sm:$0xff]  ;;  %4224 = vmatpush.msra.mxu0 %v2806_v54 }
 0x2c4   : > { %v2934_v56 = vld [vmem:[%s7478_s17 + $0x54c0] sm:$0xff]  ;;  %4243 = vmatpush.msra.mxu1 %v2874_v55 }
 0x2c5   : > { %v3002_v57 = vld [vmem:[%s7478_s17 + $0x56e0] sm:$0xff]  ;;  %4264 = vmatpush.msra.mxu2 %v2934_v56 }
 0x2c6   : > { %v2802_v58 = vld [vmem:[%s7478_s17 + $0x50a0] sm:$0xff]  ;;  %4283 = vmatpush.msra.mxu3 %v3002_v57 }
 0x2c7   : > { %v2870_v59 = vld [vmem:[%s7478_s17 + $0x52c0] sm:$0xff]  ;;  %4225 = vmatpush.msra.mxu0 %v2802_v58 }
 0x2c8   : > { %v2930_v60 = vld [vmem:[%s7478_s17 + $0x54a0] sm:$0xff]  ;;  %4244 = vmatpush.msra.mxu1 %v2870_v59  ;;  %v3361_v59 = vld.sshfl [vmem:[#allocation1 + $0x10] sm:$0xff pattern:$0x73625140] }
 0x2c9   : > { %v2998_v61 = vld [vmem:[%s7478_s17 + $0x56c0] sm:$0xff]  ;;  %4265 = vmatpush.msra.mxu2 %v2930_v60 }
 0x2ca   : > { %v2798_v2 = vld [vmem:[%s7478_s17 + $0x5080] sm:$0xff]  ;;  %4284 = vmatpush.msra.mxu3 %v2998_v61 }
 0x2cb   : > { %v2866_v11 = vld [vmem:[%s7478_s17 + $0x52a0] sm:$0xff]  ;;  %4226 = vmatpush.msra.mxu0 %v2798_v2 }
 0x2cc   : > { %v2926_v12 = vld [vmem:[%s7478_s17 + $0x5480] sm:$0xff]  ;;  %4245 = vmatpush.msra.mxu1 %v2866_v11 }
 0x2cd   : > { %v2994_v13 = vld [vmem:[%s7478_s17 + $0x56a0] sm:$0xff]  ;;  %4266 = vmatpush.msra.mxu2 %v2926_v12  ;;  %v3360_v12 = vld.sshfl [vmem:[#allocation1 + $0x8] sm:$0xff pattern:$0x73625140] }
 0x2ce   : > { %v2794_v16 = vld [vmem:[%s7478_s17 + $0x5060] sm:$0xff]  ;;  %4285 = vmatpush.msra.mxu3 %v2994_v13  ;;  %v3362_v13 = vld.sshfl [vmem:[#allocation1 + $0x18] sm:$0xff pattern:$0x73625140] }
 0x2cf   : > { %v2862_v20 = vld [vmem:[%s7478_s17 + $0x5280] sm:$0xff]  ;;  %4227 = vmatpush.msra.mxu0 %v2794_v16 }
 0x2d0   : > { %v2922_v22 = vld [vmem:[%s7478_s17 + $0x5460] sm:$0xff]  ;;  %4246 = vmatpush.msra.mxu1 %v2862_v20 }
 0x2d1   : > { %v2990_v23 = vld [vmem:[%s7478_s17 + $0x5680] sm:$0xff]  ;;  %4267 = vmatpush.msra.mxu2 %v2922_v22 }
 0x2d2   : > { %v2790_v27 = vld [vmem:[%s7478_s17 + $0x5040] sm:$0xff]  ;;  %4286 = vmatpush.msra.mxu3 %v2990_v23 }
 0x2d3   : > { %v2858_v29 = vld [vmem:[%s7478_s17 + $0x5260] sm:$0xff]  ;;  %4228 = vmatpush.msra.mxu0 %v2790_v27 }
 0x2d4   : > { %v2918_v32 = vld [vmem:[%s7478_s17 + $0x5440] sm:$0xff]  ;;  %4247 = vmatpush.msra.mxu1 %v2858_v29 }
 0x2d5   : > { %v2986_v33 = vld [vmem:[%s7478_s17 + $0x5660] sm:$0xff]  ;;  %4268 = vmatpush.msra.mxu2 %v2918_v32 }
 0x2d6   : > { %v2786_v34 = vld [vmem:[%s7478_s17 + $0x5020] sm:$0xff]  ;;  %4287 = vmatpush.msra.mxu3 %v2986_v33 }
 0x2d7   : > { %v2854_v35 = vld [vmem:[%s7478_s17 + $0x5240] sm:$0xff]  ;;  %4229 = vmatpush.msra.mxu0 %v2786_v34 }
 0x2d8   : > { %v2914_v50 = vld [vmem:[%s7478_s17 + $0x5420] sm:$0xff]  ;;  %4248 = vmatpush.msra.mxu1 %v2854_v35 }
 0x2d9   : > { %v2982_v53 = vld [vmem:[%s7478_s17 + $0x5640] sm:$0xff]  ;;  %4269 = vmatpush.msra.mxu2 %v2914_v50 }
 0x2da   : > { %v2782_v54 = vld [vmem:[%s7478_s17 + $0x5000] sm:$0xff]  ;;  %4288 = vmatpush.msra.mxu3 %v2982_v53 }
 0x2db   : > { %v2850_v55 = vld [vmem:[%s7478_s17 + $0x5220] sm:$0xff]  ;;  %4230 = vmatpush.msra.mxu0 %v2782_v54 }
 0x2dc   : > { %v2910_v56 = vld [vmem:[%s7478_s17 + $0x5400] sm:$0xff]  ;;  %4249 = vmatpush.msra.mxu1 %v2850_v55 }
 0x2dd   : > { %v2978_v57 = vld [vmem:[%s7478_s17 + $0x5620] sm:$0xff]  ;;  %4270 = vmatpush.msra.mxu2 %v2910_v56 }
 0x2de   : > { %v3359_v58 = vld.sshfl [vmem:[#allocation1] sm:$0xff pattern:$0x73625140]  ;;  %4289 = vmatpush.msra.mxu3 %v2978_v57  ;;  %4271 = vmatmul.f32.vlgmr.msra.gmra.mxu2 %v3361_v59 }
 0x2df   : > { %v3098_v60 = vld [vmem:[%s7478_s17 + $0x59e0] sm:$0xff]  ;;  %4231 = vmatmul.f32.vlgmr.msra.gmra.mxu0 %v3359_v58 }
 0x2e0   : > { %v3226_v61 = vld [vmem:[%s7478_s17 + $0x5de0] sm:$0xff]  ;;  %4295 = vmatpush.msrb.mxu0 %v3098_v60 }
 0x2e1   : > { %v2846_v2 = vld [vmem:[%s7478_s17 + $0x5200] sm:$0xff]  ;;  %4335 = vmatpush.msrb.mxu2 %v3226_v61 }
 0x2e2   : > { %v2974_v11 = vld [vmem:[%s7478_s17 + $0x5600] sm:$0xff]  ;;  %4250 = vmatpush.msra.mxu1 %v2846_v2 }
 0x2e3   : > { %v3094_v16 = vld [vmem:[%s7478_s17 + $0x59c0] sm:$0xff]  ;;  %4290 = vmatpush.msra.mxu3 %v2974_v11  ;;  %4251 = vmatmul.f32.vlgmr.msra.gmra.mxu1 %v3360_v12 }
 0x2e4   : > { %v3162_v20 = vld [vmem:[%s7478_s17 + $0x5be0] sm:$0xff]  ;;  %4291 = vmatmul.f32.vlgmr.msra.gmra.mxu3 %v3362_v13  ;;  %4296 = vmatpush.msrb.mxu0 %v3094_v16 }
 0x2e5   : > { %v3222_v22 = vld [vmem:[%s7478_s17 + $0x5dc0] sm:$0xff]  ;;  %4315 = vmatpush.msrb.mxu1 %v3162_v20 }
 0x2e6   : > { %v3290_v23 = vld [vmem:[%s7478_s17 + $0x5fe0] sm:$0xff]  ;;  %4336 = vmatpush.msrb.mxu2 %v3222_v22 }
 0x2e7   : > { %v3090_v27 = vld [vmem:[%s7478_s17 + $0x59a0] sm:$0xff]  ;;  %4355 = vmatpush.msrb.mxu3 %v3290_v23 }
 0x2e8   : > { %v3158_v29 = vld [vmem:[%s7478_s17 + $0x5bc0] sm:$0xff]  ;;  %4297 = vmatpush.msrb.mxu0 %v3090_v27 }
 0x2e9   : > { %v3218_v32 = vld [vmem:[%s7478_s17 + $0x5da0] sm:$0xff]  ;;  %4316 = vmatpush.msrb.mxu1 %v3158_v29 }
 0x2ea   : > { %v3286_v33 = vld [vmem:[%s7478_s17 + $0x5fc0] sm:$0xff]  ;;  %4337 = vmatpush.msrb.mxu2 %v3218_v32 }
 0x2eb   : > { %v3086_v34 = vld [vmem:[%s7478_s17 + $0x5980] sm:$0xff]  ;;  %4356 = vmatpush.msrb.mxu3 %v3286_v33 }
 0x2ec   : > { %v3154_v35 = vld [vmem:[%s7478_s17 + $0x5ba0] sm:$0xff]  ;;  %4298 = vmatpush.msrb.mxu0 %v3086_v34 }
 0x2ed   : > { %v3214_v50 = vld [vmem:[%s7478_s17 + $0x5d80] sm:$0xff]  ;;  %4317 = vmatpush.msrb.mxu1 %v3154_v35 }
 0x2ee   : > { %v3282_v53 = vld [vmem:[%s7478_s17 + $0x5fa0] sm:$0xff]  ;;  %4338 = vmatpush.msrb.mxu2 %v3214_v50 }
 0x2ef   : > { %v3082_v54 = vld [vmem:[%s7478_s17 + $0x5960] sm:$0xff]  ;;  %4357 = vmatpush.msrb.mxu3 %v3282_v53 }
 0x2f0   : > { %v3150_v55 = vld [vmem:[%s7478_s17 + $0x5b80] sm:$0xff]  ;;  %4299 = vmatpush.msrb.mxu0 %v3082_v54 }
 0x2f1   : > { %v3210_v56 = vld [vmem:[%s7478_s17 + $0x5d60] sm:$0xff]  ;;  %4318 = vmatpush.msrb.mxu1 %v3150_v55 }
 0x2f2   : > { %v3278_v57 = vld [vmem:[%s7478_s17 + $0x5f80] sm:$0xff]  ;;  %4339 = vmatpush.msrb.mxu2 %v3210_v56 }
 0x2f3   : > { %v3078_v58 = vld [vmem:[%s7478_s17 + $0x5940] sm:$0xff]  ;;  %4358 = vmatpush.msrb.mxu3 %v3278_v57 }
 0x2f4   : > { %v3146_v59 = vld [vmem:[%s7478_s17 + $0x5b60] sm:$0xff]  ;;  %4300 = vmatpush.msrb.mxu0 %v3078_v58 }
 0x2f5   : > { %v3206_v60 = vld [vmem:[%s7478_s17 + $0x5d40] sm:$0xff]  ;;  %4319 = vmatpush.msrb.mxu1 %v3146_v59 }
 0x2f6   : > { %v3274_v61 = vld [vmem:[%s7478_s17 + $0x5f60] sm:$0xff]  ;;  %4340 = vmatpush.msrb.mxu2 %v3206_v60 }
 0x2f7   : > { %v3074_v2 = vld [vmem:[%s7478_s17 + $0x5920] sm:$0xff]  ;;  %4359 = vmatpush.msrb.mxu3 %v3274_v61 }
 0x2f8   : > { %v3142_v11 = vld [vmem:[%s7478_s17 + $0x5b40] sm:$0xff]  ;;  %4301 = vmatpush.msrb.mxu0 %v3074_v2 }
 0x2f9   : > { %v3202_v12 = vld [vmem:[%s7478_s17 + $0x5d20] sm:$0xff]  ;;  %4320 = vmatpush.msrb.mxu1 %v3142_v11 }
 0x2fa   : > { %v3270_v13 = vld [vmem:[%s7478_s17 + $0x5f40] sm:$0xff]  ;;  %4341 = vmatpush.msrb.mxu2 %v3202_v12 }
 0x2fb   : > { %v3070_v16 = vld [vmem:[%s7478_s17 + $0x5900] sm:$0xff]  ;;  %4360 = vmatpush.msrb.mxu3 %v3270_v13 }
 0x2fc   : > { %v3138_v20 = vld [vmem:[%s7478_s17 + $0x5b20] sm:$0xff]  ;;  %4302 = vmatpush.msrb.mxu0 %v3070_v16 }
 0x2fd   : > { %v3198_v22 = vld [vmem:[%s7478_s17 + $0x5d00] sm:$0xff]  ;;  %4321 = vmatpush.msrb.mxu1 %v3138_v20 }
 0x2fe   : > { %v3266_v23 = vld [vmem:[%s7478_s17 + $0x5f20] sm:$0xff]  ;;  %4342 = vmatpush.msrb.mxu2 %v3198_v22 }
 0x2ff   : > { %v3066_v27 = vld [vmem:[%s7478_s17 + $0x58e0] sm:$0xff]  ;;  %4361 = vmatpush.msrb.mxu3 %v3266_v23 }
 0x300   : > { %v3134_v29 = vld [vmem:[%s7478_s17 + $0x5b00] sm:$0xff]  ;;  %4303 = vmatpush.msrb.mxu0 %v3066_v27 }
 0x301   : > { %v3194_v32 = vld [vmem:[%s7478_s17 + $0x5ce0] sm:$0xff]  ;;  %4322 = vmatpush.msrb.mxu1 %v3134_v29 }
 0x302   : > { %v3262_v33 = vld [vmem:[%s7478_s17 + $0x5f00] sm:$0xff]  ;;  %4343 = vmatpush.msrb.mxu2 %v3194_v32 }
 0x303   : > { %v3062_v34 = vld [vmem:[%s7478_s17 + $0x58c0] sm:$0xff]  ;;  %4362 = vmatpush.msrb.mxu3 %v3262_v33 }
 0x304   : > { %v3130_v35 = vld [vmem:[%s7478_s17 + $0x5ae0] sm:$0xff]  ;;  %4304 = vmatpush.msrb.mxu0 %v3062_v34 }
 0x305   : > { %v3190_v50 = vld [vmem:[%s7478_s17 + $0x5cc0] sm:$0xff]  ;;  %4323 = vmatpush.msrb.mxu1 %v3130_v35 }
 0x306   : > { %v3258_v53 = vld [vmem:[%s7478_s17 + $0x5ee0] sm:$0xff]  ;;  %4344 = vmatpush.msrb.mxu2 %v3190_v50 }
 0x307   : > { %v3058_v54 = vld [vmem:[%s7478_s17 + $0x58a0] sm:$0xff]  ;;  %4363 = vmatpush.msrb.mxu3 %v3258_v53 }
 0x308   : > { %v3126_v55 = vld [vmem:[%s7478_s17 + $0x5ac0] sm:$0xff]  ;;  %4305 = vmatpush.msrb.mxu0 %v3058_v54 }
 0x309   : > { %v3186_v56 = vld [vmem:[%s7478_s17 + $0x5ca0] sm:$0xff]  ;;  %4324 = vmatpush.msrb.mxu1 %v3126_v55  ;;  %v3365_v55 = vld.sshfl [vmem:[#allocation1 + $0x30] sm:$0xff pattern:$0x73625140] }
 0x30a   : > { %v3254_v57 = vld [vmem:[%s7478_s17 + $0x5ec0] sm:$0xff]  ;;  %4345 = vmatpush.msrb.mxu2 %v3186_v56  ;;  %v283_v56 = vld [vmem:[%s7478_s17 + $0x1e8] sm:$0xff] }
 0x30b   : > { %v3054_v58 = vld [vmem:[%s7478_s17 + $0x5880] sm:$0xff]  ;;  %4364 = vmatpush.msrb.mxu3 %v3254_v57  ;;  %v411_v57 = vld [vmem:[%s7478_s17 + $0x5e8] sm:$0xff] }
 0x30c   : > { %v3122_v59 = vld [vmem:[%s7478_s17 + $0x5aa0] sm:$0xff]  ;;  %4306 = vmatpush.msrb.mxu0 %v3054_v58 }
 0x30d   : > { %v3182_v60 = vld [vmem:[%s7478_s17 + $0x5c80] sm:$0xff]  ;;  %4325 = vmatpush.msrb.mxu1 %v3122_v59 }
 0x30e   : > { %v3250_v61 = vld [vmem:[%s7478_s17 + $0x5ea0] sm:$0xff]  ;;  %4346 = vmatpush.msrb.mxu2 %v3182_v60  ;;  %v3364_v60 = vld.sshfl [vmem:[#allocation1 + $0x28] sm:$0xff pattern:$0x73625140] }
 0x30f   : > { %v3050_v2 = vld [vmem:[%s7478_s17 + $0x5860] sm:$0xff]  ;;  %4365 = vmatpush.msrb.mxu3 %v3250_v61  ;;  %v3366_v61 = vld.sshfl [vmem:[#allocation1 + $0x38] sm:$0xff pattern:$0x73625140] }
 0x310   : > { %v3118_v11 = vld [vmem:[%s7478_s17 + $0x5a80] sm:$0xff]  ;;  %4307 = vmatpush.msrb.mxu0 %v3050_v2  ;;  %v279_v2 = vld [vmem:[%s7478_s17 + $0x1c8] sm:$0xff] }
 0x311   : > { %v3178_v12 = vld [vmem:[%s7478_s17 + $0x5c60] sm:$0xff]  ;;  %4326 = vmatpush.msrb.mxu1 %v3118_v11  ;;  %v347_v11 = vld [vmem:[%s7478_s17 + $0x3e8] sm:$0xff] }
 0x312   : > { %v3246_v13 = vld [vmem:[%s7478_s17 + $0x5e80] sm:$0xff]  ;;  %4347 = vmatpush.msrb.mxu2 %v3178_v12  ;;  %v407_v12 = vld [vmem:[%s7478_s17 + $0x5c8] sm:$0xff] }
 0x313   : > { %v3046_v16 = vld [vmem:[%s7478_s17 + $0x5840] sm:$0xff]  ;;  %4366 = vmatpush.msrb.mxu3 %v3246_v13  ;;  %v475_v13 = vld [vmem:[%s7478_s17 + $0x7e8] sm:$0xff] }
 0x314   : > { %v3114_v20 = vld [vmem:[%s7478_s17 + $0x5a60] sm:$0xff]  ;;  %4308 = vmatpush.msrb.mxu0 %v3046_v16  ;;  %v275_v16 = vld [vmem:[%s7478_s17 + $0x1a8] sm:$0xff] }
 0x315   : > { %v3174_v22 = vld [vmem:[%s7478_s17 + $0x5c40] sm:$0xff]  ;;  %4327 = vmatpush.msrb.mxu1 %v3114_v20  ;;  %v343_v20 = vld [vmem:[%s7478_s17 + $0x3c8] sm:$0xff] }
 0x316   : > { %v3242_v23 = vld [vmem:[%s7478_s17 + $0x5e60] sm:$0xff]  ;;  %4348 = vmatpush.msrb.mxu2 %v3174_v22  ;;  %v403_v22 = vld [vmem:[%s7478_s17 + $0x5a8] sm:$0xff] }
 0x317   : > { %v3042_v27 = vld [vmem:[%s7478_s17 + $0x5820] sm:$0xff]  ;;  %4367 = vmatpush.msrb.mxu3 %v3242_v23  ;;  %v471_v23 = vld [vmem:[%s7478_s17 + $0x7c8] sm:$0xff] }
 0x318   : > { %v3110_v29 = vld [vmem:[%s7478_s17 + $0x5a40] sm:$0xff]  ;;  %4309 = vmatpush.msrb.mxu0 %v3042_v27  ;;  %v271_v27 = vld [vmem:[%s7478_s17 + $0x188] sm:$0xff] }
 0x319   : > { %v3170_v32 = vld [vmem:[%s7478_s17 + $0x5c20] sm:$0xff]  ;;  %4328 = vmatpush.msrb.mxu1 %v3110_v29  ;;  %v339_v29 = vld [vmem:[%s7478_s17 + $0x3a8] sm:$0xff] }
 0x31a   : > { %v3238_v33 = vld [vmem:[%s7478_s17 + $0x5e40] sm:$0xff]  ;;  %4349 = vmatpush.msrb.mxu2 %v3170_v32  ;;  %v399_v32 = vld [vmem:[%s7478_s17 + $0x588] sm:$0xff] }
 0x31b   : > { %v3038_v34 = vld [vmem:[%s7478_s17 + $0x5800] sm:$0xff]  ;;  %4368 = vmatpush.msrb.mxu3 %v3238_v33  ;;  %v467_v33 = vld [vmem:[%s7478_s17 + $0x7a8] sm:$0xff] }
 0x31c   : > { %v3106_v35 = vld [vmem:[%s7478_s17 + $0x5a20] sm:$0xff]  ;;  %4310 = vmatpush.msrb.mxu0 %v3038_v34  ;;  %v267_v34 = vld [vmem:[%s7478_s17 + $0x168] sm:$0xff] }
 0x31d   : > { %v3166_v50 = vld [vmem:[%s7478_s17 + $0x5c00] sm:$0xff]  ;;  %4329 = vmatpush.msrb.mxu1 %v3106_v35  ;;  %v335_v35 = vld [vmem:[%s7478_s17 + $0x388] sm:$0xff] }
 0x31e   : > { %v3234_v53 = vld [vmem:[%s7478_s17 + $0x5e20] sm:$0xff]  ;;  %4350 = vmatpush.msrb.mxu2 %v3166_v50  ;;  %4375 = vmatpush.msra.mxu0 %v283_v56  ;;  %v395_v50 = vld [vmem:[%s7478_s17 + $0x568] sm:$0xff] }
 0x31f   : > { %v3363_v54 = vld.sshfl [vmem:[#allocation1 + $0x20] sm:$0xff pattern:$0x73625140]  ;;  %4369 = vmatpush.msrb.mxu3 %v3234_v53  ;;  %4351 = vmatmul.f32.vlgmr.msrb.gmra.mxu2 %v3365_v55  ;;  %v463_v53 = vld [vmem:[%s7478_s17 + $0x788] sm:$0xff] }
 0x320   : > { %v3102_v58 = vld [vmem:[%s7478_s17 + $0x5a00] sm:$0xff]  ;;  %4311 = vmatmul.f32.vlgmr.msrb.gmra.mxu0 %v3363_v54  ;;  %4415 = vmatpush.msra.mxu2 %v411_v57  ;;  %v263_v54 = vld [vmem:[%s7478_s17 + $0x148] sm:$0xff] }
 0x321   : > { %v3230_v59 = vld [vmem:[%s7478_s17 + $0x5e00] sm:$0xff]  ;;  %4330 = vmatpush.msrb.mxu1 %v3102_v58  ;;  %4376 = vmatpush.msra.mxu0 %v279_v2  ;;  %v331_v55 = vld [vmem:[%s7478_s17 + $0x368] sm:$0xff] }
 0x322   : > { %4370 = vmatpush.msrb.mxu3 %v3230_v59  ;;  %4331 = vmatmul.f32.vlgmr.msrb.gmra.mxu1 %v3364_v60  ;;  %v391_v56 = vld [vmem:[%s7478_s17 + $0x548] sm:$0xff] }
 0x323   : > { %4371 = vmatmul.f32.vlgmr.msrb.gmra.mxu3 %v3366_v61  ;;  %4395 = vmatpush.msra.mxu1 %v347_v11  ;;  %v459_v57 = vld [vmem:[%s7478_s17 + $0x768] sm:$0xff] }
 0x324   : > { %4416 = vmatpush.msra.mxu2 %v407_v12  ;;  %4435 = vmatpush.msra.mxu3 %v475_v13  ;;  %v259_v58 = vld [vmem:[%s7478_s17 + $0x128] sm:$0xff] }
 0x325   : > { %4377 = vmatpush.msra.mxu0 %v275_v16  ;;  %4396 = vmatpush.msra.mxu1 %v343_v20  ;;  %v327_v59 = vld [vmem:[%s7478_s17 + $0x348] sm:$0xff] }
 0x326   : > { %4417 = vmatpush.msra.mxu2 %v403_v22  ;;  %4436 = vmatpush.msra.mxu3 %v471_v23  ;;  %v387_v60 = vld [vmem:[%s7478_s17 + $0x528] sm:$0xff] }
 0x327   : > { %4378 = vmatpush.msra.mxu0 %v271_v27  ;;  %4397 = vmatpush.msra.mxu1 %v339_v29  ;;  %v455_v61 = vld [vmem:[%s7478_s17 + $0x748] sm:$0xff] }
 0x328   : > { %4418 = vmatpush.msra.mxu2 %v399_v32  ;;  %4437 = vmatpush.msra.mxu3 %v467_v33  ;;  %v255_v2 = vld [vmem:[%s7478_s17 + $0x108] sm:$0xff] }
 0x329   : > { %4379 = vmatpush.msra.mxu0 %v267_v34  ;;  %4398 = vmatpush.msra.mxu1 %v335_v35  ;;  %v323_v11 = vld [vmem:[%s7478_s17 + $0x328] sm:$0xff] }
 0x32a   : > { %4419 = vmatpush.msra.mxu2 %v395_v50  ;;  %4438 = vmatpush.msra.mxu3 %v463_v53  ;;  %v383_v12 = vld [vmem:[%s7478_s17 + $0x508] sm:$0xff] }
 0x32b   : > { %4380 = vmatpush.msra.mxu0 %v263_v54  ;;  %4399 = vmatpush.msra.mxu1 %v331_v55  ;;  %v451_v13 = vld [vmem:[%s7478_s17 + $0x728] sm:$0xff] }
 0x32c   : > { %4420 = vmatpush.msra.mxu2 %v391_v56  ;;  %4439 = vmatpush.msra.mxu3 %v459_v57  ;;  %v251_v16 = vld [vmem:[%s7478_s17 + $0xe8] sm:$0xff] }
 0x32d   : > { %4381 = vmatpush.msra.mxu0 %v259_v58  ;;  %4400 = vmatpush.msra.mxu1 %v327_v59  ;;  %v319_v20 = vld [vmem:[%s7478_s17 + $0x308] sm:$0xff] }
 0x32e   : > { %4421 = vmatpush.msra.mxu2 %v387_v60  ;;  %4440 = vmatpush.msra.mxu3 %v455_v61  ;;  %v379_v22 = vld [vmem:[%s7478_s17 + $0x4e8] sm:$0xff] }
 0x32f   : > { %4382 = vmatpush.msra.mxu0 %v255_v2  ;;  %4401 = vmatpush.msra.mxu1 %v323_v11  ;;  %v447_v23 = vld [vmem:[%s7478_s17 + $0x708] sm:$0xff] }
 0x330   : > { %4422 = vmatpush.msra.mxu2 %v383_v12  ;;  %4441 = vmatpush.msra.mxu3 %v451_v13  ;;  %v247_v27 = vld [vmem:[%s7478_s17 + $0xc8] sm:$0xff] }
 0x331   : > { %v315_v29 = vld [vmem:[%s7478_s17 + $0x2e8] sm:$0xff]  ;;  %4383 = vmatpush.msra.mxu0 %v251_v16  ;;  %4402 = vmatpush.msra.mxu1 %v319_v20 }
 0x332   : > { %v375_v32 = vld [vmem:[%s7478_s17 + $0x4c8] sm:$0xff]  ;;  %4423 = vmatpush.msra.mxu2 %v379_v22  ;;  %4442 = vmatpush.msra.mxu3 %v447_v23 }
 0x333   : > { %v443_v33 = vld [vmem:[%s7478_s17 + $0x6e8] sm:$0xff]  ;;  %4384 = vmatpush.msra.mxu0 %v247_v27  ;;  %4403 = vmatpush.msra.mxu1 %v315_v29 }
 0x334   : > { %v243_v34 = vld [vmem:[%s7478_s17 + $0xa8] sm:$0xff]  ;;  %4424 = vmatpush.msra.mxu2 %v375_v32  ;;  %4443 = vmatpush.msra.mxu3 %v443_v33 }
 0x335   : > { %v311_v35 = vld [vmem:[%s7478_s17 + $0x2c8] sm:$0xff]  ;;  %4385 = vmatpush.msra.mxu0 %v243_v34 }
 0x336   : > { %v371_v50 = vld [vmem:[%s7478_s17 + $0x4a8] sm:$0xff]  ;;  %4404 = vmatpush.msra.mxu1 %v311_v35 }
 0x337   : > { %v439_v53 = vld [vmem:[%s7478_s17 + $0x6c8] sm:$0xff]  ;;  %4425 = vmatpush.msra.mxu2 %v371_v50 }
 0x338   : > { %v239_v54 = vld [vmem:[%s7478_s17 + $0x88] sm:$0xff]  ;;  %4444 = vmatpush.msra.mxu3 %v439_v53 }
 0x339   : > { %v307_v55 = vld [vmem:[%s7478_s17 + $0x2a8] sm:$0xff]  ;;  %4386 = vmatpush.msra.mxu0 %v239_v54 }
 0x33a   : > { %v367_v56 = vld [vmem:[%s7478_s17 + $0x488] sm:$0xff]  ;;  %4405 = vmatpush.msra.mxu1 %v307_v55 }
 0x33b   : > { %v435_v57 = vld [vmem:[%s7478_s17 + $0x6a8] sm:$0xff]  ;;  %4426 = vmatpush.msra.mxu2 %v367_v56 }
 0x33c   : > { %v235_v58 = vld [vmem:[%s7478_s17 + $0x68] sm:$0xff]  ;;  %4445 = vmatpush.msra.mxu3 %v435_v57 }
 0x33d   : > { %v303_v59 = vld [vmem:[%s7478_s17 + $0x288] sm:$0xff]  ;;  %4387 = vmatpush.msra.mxu0 %v235_v58 }
 0x33e   : > { %v363_v60 = vld [vmem:[%s7478_s17 + $0x468] sm:$0xff]  ;;  %4406 = vmatpush.msra.mxu1 %v303_v59 }
 0x33f   : > { %v431_v61 = vld [vmem:[%s7478_s17 + $0x688] sm:$0xff]  ;;  %4427 = vmatpush.msra.mxu2 %v363_v60 }
 0x340   : > { %v231_v2 = vld [vmem:[%s7478_s17 + $0x48] sm:$0xff]  ;;  %4446 = vmatpush.msra.mxu3 %v431_v61 }
 0x341   : > { %v299_v11 = vld [vmem:[%s7478_s17 + $0x268] sm:$0xff]  ;;  %4388 = vmatpush.msra.mxu0 %v231_v2 }
 0x342   : > { %v359_v12 = vld [vmem:[%s7478_s17 + $0x448] sm:$0xff]  ;;  %4407 = vmatpush.msra.mxu1 %v299_v11 }
 0x343   : > { %v427_v13 = vld [vmem:[%s7478_s17 + $0x668] sm:$0xff]  ;;  %4428 = vmatpush.msra.mxu2 %v359_v12 }
 0x344   : > { %v227_v16 = vld [vmem:[%s7478_s17 + $0x28] sm:$0xff]  ;;  %4447 = vmatpush.msra.mxu3 %v427_v13 }
 0x345   : > { %v295_v20 = vld [vmem:[%s7478_s17 + $0x248] sm:$0xff]  ;;  %4389 = vmatpush.msra.mxu0 %v227_v16 }
 0x346   : > { %v355_v22 = vld [vmem:[%s7478_s17 + $0x428] sm:$0xff]  ;;  %4408 = vmatpush.msra.mxu1 %v295_v20 }
 0x347   : > { %v423_v23 = vld [vmem:[%s7478_s17 + $0x648] sm:$0xff]  ;;  %4429 = vmatpush.msra.mxu2 %v355_v22 }
 0x348   : > { %v223_v27 = vld [vmem:[%s7478_s17 + $0x8] sm:$0xff]  ;;  %4448 = vmatpush.msra.mxu3 %v423_v23 }
 0x349   : > { %v291_v29 = vld [vmem:[%s7478_s17 + $0x228] sm:$0xff]  ;;  %4390 = vmatpush.msra.mxu0 %v223_v27 }
 0x34a   : > { %v351_v32 = vld [vmem:[%s7478_s17 + $0x408] sm:$0xff]  ;;  %4409 = vmatpush.msra.mxu1 %v291_v29  ;;  %4391 = vmatmul.f32.vlgmr.msra.gmra.mxu0 %v7608_v44 }
 0x34b   : > { %v419_v33 = vld [vmem:[%s7478_s17 + $0x628] sm:$0xff]  ;;  %4430 = vmatpush.msra.mxu2 %v351_v32 }
 0x34c   : > { %v539_v34 = vld [vmem:[%s7478_s17 + $0x9e8] sm:$0xff]  ;;  %4449 = vmatpush.msra.mxu3 %v419_v33  ;;  %4431 = vmatmul.f32.vlgmr.msra.gmra.mxu2 %v7606_v43 }
 0x34d   : > { %v667_v35 = vld [vmem:[%s7478_s17 + $0xde8] sm:$0xff]  ;;  %4455 = vmatpush.msrb.mxu0 %v539_v34 }
 0x34e   : > { %v287_v50 = vld [vmem:[%s7478_s17 + $0x208] sm:$0xff]  ;;  %4495 = vmatpush.msrb.mxu2 %v667_v35 }
 0x34f   : > { %v415_v53 = vld [vmem:[%s7478_s17 + $0x608] sm:$0xff]  ;;  %4410 = vmatpush.msra.mxu1 %v287_v50 }
 0x350   : > { %v535_v54 = vld [vmem:[%s7478_s17 + $0x9c8] sm:$0xff]  ;;  %4450 = vmatpush.msra.mxu3 %v415_v53  ;;  %4411 = vmatmul.f32.vlgmr.msra.gmra.mxu1 %v7612_v46 }
 0x351   : > { %v603_v55 = vld [vmem:[%s7478_s17 + $0xbe8] sm:$0xff]  ;;  %4456 = vmatpush.msrb.mxu0 %v535_v54  ;;  %4451 = vmatmul.f32.vlgmr.msra.gmra.mxu3 %v7610_v45 }
 0x352   : > { %v663_v56 = vld [vmem:[%s7478_s17 + $0xdc8] sm:$0xff]  ;;  %4475 = vmatpush.msrb.mxu1 %v603_v55 }
 0x353   : > { %v731_v57 = vld [vmem:[%s7478_s17 + $0xfe8] sm:$0xff]  ;;  %4496 = vmatpush.msrb.mxu2 %v663_v56 }
 0x354   : > { %v531_v58 = vld [vmem:[%s7478_s17 + $0x9a8] sm:$0xff]  ;;  %4515 = vmatpush.msrb.mxu3 %v731_v57 }
 0x355   : > { %v599_v59 = vld [vmem:[%s7478_s17 + $0xbc8] sm:$0xff]  ;;  %4457 = vmatpush.msrb.mxu0 %v531_v58 }
 0x356   : > { %v659_v60 = vld [vmem:[%s7478_s17 + $0xda8] sm:$0xff]  ;;  %4476 = vmatpush.msrb.mxu1 %v599_v59 }
 0x357   : > { %v727_v61 = vld [vmem:[%s7478_s17 + $0xfc8] sm:$0xff]  ;;  %4497 = vmatpush.msrb.mxu2 %v659_v60 }
 0x358   : > { %v527_v2 = vld [vmem:[%s7478_s17 + $0x988] sm:$0xff]  ;;  %4516 = vmatpush.msrb.mxu3 %v727_v61 }
 0x359   : > { %v595_v11 = vld [vmem:[%s7478_s17 + $0xba8] sm:$0xff]  ;;  %4458 = vmatpush.msrb.mxu0 %v527_v2 }
 0x35a   : > { %v655_v12 = vld [vmem:[%s7478_s17 + $0xd88] sm:$0xff]  ;;  %4477 = vmatpush.msrb.mxu1 %v595_v11 }
 0x35b   : > { %v723_v13 = vld [vmem:[%s7478_s17 + $0xfa8] sm:$0xff]  ;;  %4498 = vmatpush.msrb.mxu2 %v655_v12 }
 0x35c   : > { %v523_v16 = vld [vmem:[%s7478_s17 + $0x968] sm:$0xff]  ;;  %4517 = vmatpush.msrb.mxu3 %v723_v13 }
 0x35d   : > { %v591_v20 = vld [vmem:[%s7478_s17 + $0xb88] sm:$0xff]  ;;  %4459 = vmatpush.msrb.mxu0 %v523_v16 }
 0x35e   : > { %v651_v22 = vld [vmem:[%s7478_s17 + $0xd68] sm:$0xff]  ;;  %4478 = vmatpush.msrb.mxu1 %v591_v20 }
 0x35f   : > { %v719_v23 = vld [vmem:[%s7478_s17 + $0xf88] sm:$0xff]  ;;  %4499 = vmatpush.msrb.mxu2 %v651_v22 }
 0x360   : > { %v519_v27 = vld [vmem:[%s7478_s17 + $0x948] sm:$0xff]  ;;  %4518 = vmatpush.msrb.mxu3 %v719_v23 }
 0x361   : > { %v587_v29 = vld [vmem:[%s7478_s17 + $0xb68] sm:$0xff]  ;;  %4460 = vmatpush.msrb.mxu0 %v519_v27 }
 0x362   : > { %v647_v32 = vld [vmem:[%s7478_s17 + $0xd48] sm:$0xff]  ;;  %4479 = vmatpush.msrb.mxu1 %v587_v29 }
 0x363   : > { %v715_v33 = vld [vmem:[%s7478_s17 + $0xf68] sm:$0xff]  ;;  %4500 = vmatpush.msrb.mxu2 %v647_v32 }
 0x364   : > { %v515_v34 = vld [vmem:[%s7478_s17 + $0x928] sm:$0xff]  ;;  %4519 = vmatpush.msrb.mxu3 %v715_v33 }
 0x365   : > { %v583_v35 = vld [vmem:[%s7478_s17 + $0xb48] sm:$0xff]  ;;  %4461 = vmatpush.msrb.mxu0 %v515_v34 }
 0x366   : > { %v643_v50 = vld [vmem:[%s7478_s17 + $0xd28] sm:$0xff]  ;;  %4480 = vmatpush.msrb.mxu1 %v583_v35 }
 0x367   : > { %v711_v53 = vld [vmem:[%s7478_s17 + $0xf48] sm:$0xff]  ;;  %4501 = vmatpush.msrb.mxu2 %v643_v50 }
 0x368   : > { %v511_v54 = vld [vmem:[%s7478_s17 + $0x908] sm:$0xff]  ;;  %4520 = vmatpush.msrb.mxu3 %v711_v53 }
 0x369   : > { %v579_v55 = vld [vmem:[%s7478_s17 + $0xb28] sm:$0xff]  ;;  %4462 = vmatpush.msrb.mxu0 %v511_v54 }
 0x36a   : > { %v639_v56 = vld [vmem:[%s7478_s17 + $0xd08] sm:$0xff]  ;;  %4481 = vmatpush.msrb.mxu1 %v579_v55 }
 0x36b   : > { %v707_v57 = vld [vmem:[%s7478_s17 + $0xf28] sm:$0xff]  ;;  %4502 = vmatpush.msrb.mxu2 %v639_v56 }
 0x36c   : > { %v507_v58 = vld [vmem:[%s7478_s17 + $0x8e8] sm:$0xff]  ;;  %4521 = vmatpush.msrb.mxu3 %v707_v57 }
 0x36d   : > { %v575_v59 = vld [vmem:[%s7478_s17 + $0xb08] sm:$0xff]  ;;  %4463 = vmatpush.msrb.mxu0 %v507_v58 }
 0x36e   : > { %v635_v60 = vld [vmem:[%s7478_s17 + $0xce8] sm:$0xff]  ;;  %4482 = vmatpush.msrb.mxu1 %v575_v59 }
 0x36f   : > { %v703_v61 = vld [vmem:[%s7478_s17 + $0xf08] sm:$0xff]  ;;  %4503 = vmatpush.msrb.mxu2 %v635_v60 }
 0x370   : > { %v503_v2 = vld [vmem:[%s7478_s17 + $0x8c8] sm:$0xff]  ;;  %4522 = vmatpush.msrb.mxu3 %v703_v61 }
 0x371   : > { %v571_v11 = vld [vmem:[%s7478_s17 + $0xae8] sm:$0xff]  ;;  %4464 = vmatpush.msrb.mxu0 %v503_v2 }
 0x372   : > { %v631_v12 = vld [vmem:[%s7478_s17 + $0xcc8] sm:$0xff]  ;;  %4483 = vmatpush.msrb.mxu1 %v571_v11 }
 0x373   : > { %v699_v13 = vld [vmem:[%s7478_s17 + $0xee8] sm:$0xff]  ;;  %4504 = vmatpush.msrb.mxu2 %v631_v12 }
 0x374   : > { %v499_v16 = vld [vmem:[%s7478_s17 + $0x8a8] sm:$0xff]  ;;  %4523 = vmatpush.msrb.mxu3 %v699_v13 }
 0x375   : > { %v567_v20 = vld [vmem:[%s7478_s17 + $0xac8] sm:$0xff]  ;;  %4465 = vmatpush.msrb.mxu0 %v499_v16 }
 0x376   : > { %v627_v22 = vld [vmem:[%s7478_s17 + $0xca8] sm:$0xff]  ;;  %4484 = vmatpush.msrb.mxu1 %v567_v20 }
 0x377   : > { %v695_v23 = vld [vmem:[%s7478_s17 + $0xec8] sm:$0xff]  ;;  %4505 = vmatpush.msrb.mxu2 %v627_v22 }
 0x378   : > { %v495_v27 = vld [vmem:[%s7478_s17 + $0x888] sm:$0xff]  ;;  %4524 = vmatpush.msrb.mxu3 %v695_v23 }
 0x379   : > { %v563_v29 = vld [vmem:[%s7478_s17 + $0xaa8] sm:$0xff]  ;;  %4466 = vmatpush.msrb.mxu0 %v495_v27 }
 0x37a   : > { %v623_v32 = vld [vmem:[%s7478_s17 + $0xc88] sm:$0xff]  ;;  %4485 = vmatpush.msrb.mxu1 %v563_v29 }
 0x37b   : > { %v691_v33 = vld [vmem:[%s7478_s17 + $0xea8] sm:$0xff]  ;;  %4506 = vmatpush.msrb.mxu2 %v623_v32 }
 0x37c   : > { %v491_v34 = vld [vmem:[%s7478_s17 + $0x868] sm:$0xff]  ;;  %4525 = vmatpush.msrb.mxu3 %v691_v33 }
 0x37d   : > { %v559_v35 = vld [vmem:[%s7478_s17 + $0xa88] sm:$0xff]  ;;  %4467 = vmatpush.msrb.mxu0 %v491_v34 }
 0x37e   : > { %v619_v50 = vld [vmem:[%s7478_s17 + $0xc68] sm:$0xff]  ;;  %4486 = vmatpush.msrb.mxu1 %v559_v35 }
 0x37f   : > { %v687_v53 = vld [vmem:[%s7478_s17 + $0xe88] sm:$0xff]  ;;  %4507 = vmatpush.msrb.mxu2 %v619_v50 }
 0x380   : > { %v487_v54 = vld [vmem:[%s7478_s17 + $0x848] sm:$0xff]  ;;  %4526 = vmatpush.msrb.mxu3 %v687_v53 }
 0x381   : > { %v555_v55 = vld [vmem:[%s7478_s17 + $0xa68] sm:$0xff]  ;;  %4468 = vmatpush.msrb.mxu0 %v487_v54 }
 0x382   : > { %v615_v56 = vld [vmem:[%s7478_s17 + $0xc48] sm:$0xff]  ;;  %4487 = vmatpush.msrb.mxu1 %v555_v55 }
 0x383   : > { %v683_v57 = vld [vmem:[%s7478_s17 + $0xe68] sm:$0xff]  ;;  %4508 = vmatpush.msrb.mxu2 %v615_v56 }
 0x384   : > { %v483_v58 = vld [vmem:[%s7478_s17 + $0x828] sm:$0xff]  ;;  %4527 = vmatpush.msrb.mxu3 %v683_v57 }
 0x385   : > { %v551_v59 = vld [vmem:[%s7478_s17 + $0xa48] sm:$0xff]  ;;  %4469 = vmatpush.msrb.mxu0 %v483_v58 }
 0x386   : > { %v611_v60 = vld [vmem:[%s7478_s17 + $0xc28] sm:$0xff]  ;;  %4488 = vmatpush.msrb.mxu1 %v551_v59 }
 0x387   : > { %v679_v61 = vld [vmem:[%s7478_s17 + $0xe48] sm:$0xff]  ;;  %4509 = vmatpush.msrb.mxu2 %v611_v60 }
 0x388   : > { %v479_v2 = vld [vmem:[%s7478_s17 + $0x808] sm:$0xff]  ;;  %4528 = vmatpush.msrb.mxu3 %v679_v61 }
 0x389   : > { %v547_v11 = vld [vmem:[%s7478_s17 + $0xa28] sm:$0xff]  ;;  %4470 = vmatpush.msrb.mxu0 %v479_v2 }
 0x38a   : > { %v607_v12 = vld [vmem:[%s7478_s17 + $0xc08] sm:$0xff]  ;;  %4489 = vmatpush.msrb.mxu1 %v547_v11  ;;  %4471 = vmatmul.f32.vlgmr.msrb.gmra.mxu0 %v7636_v4 }
 0x38b   : > { %v675_v13 = vld [vmem:[%s7478_s17 + $0xe28] sm:$0xff]  ;;  %4510 = vmatpush.msrb.mxu2 %v607_v12 }
 0x38c   : > { %v795_v16 = vld [vmem:[%s7478_s17 + $0x11e8] sm:$0xff]  ;;  %4529 = vmatpush.msrb.mxu3 %v675_v13  ;;  %4511 = vmatmul.f32.vlgmr.msrb.gmra.mxu2 %v7634_v3 }
 0x38d   : > { %v923_v20 = vld [vmem:[%s7478_s17 + $0x15e8] sm:$0xff]  ;;  %4535 = vmatpush.msra.mxu0 %v795_v16 }
 0x38e   : > { %v543_v22 = vld [vmem:[%s7478_s17 + $0xa08] sm:$0xff]  ;;  %4575 = vmatpush.msra.mxu2 %v923_v20 }
 0x38f   : > { %v671_v23 = vld [vmem:[%s7478_s17 + $0xe08] sm:$0xff]  ;;  %4490 = vmatpush.msrb.mxu1 %v543_v22 }
 0x390   : > { %v791_v27 = vld [vmem:[%s7478_s17 + $0x11c8] sm:$0xff]  ;;  %4530 = vmatpush.msrb.mxu3 %v671_v23  ;;  %4491 = vmatmul.f32.vlgmr.msrb.gmra.mxu1 %v7640_v6 }
 0x391   : > { %v859_v29 = vld [vmem:[%s7478_s17 + $0x13e8] sm:$0xff]  ;;  %4536 = vmatpush.msra.mxu0 %v791_v27  ;;  %4531 = vmatmul.f32.vlgmr.msrb.gmra.mxu3 %v7638_v5 }
 0x392   : > { %v919_v32 = vld [vmem:[%s7478_s17 + $0x15c8] sm:$0xff]  ;;  %4555 = vmatpush.msra.mxu1 %v859_v29 }
 0x393   : > { %v987_v33 = vld [vmem:[%s7478_s17 + $0x17e8] sm:$0xff]  ;;  %4576 = vmatpush.msra.mxu2 %v919_v32 }
 0x394   : > { %v787_v34 = vld [vmem:[%s7478_s17 + $0x11a8] sm:$0xff]  ;;  %4595 = vmatpush.msra.mxu3 %v987_v33 }
 0x395   : > { %v855_v35 = vld [vmem:[%s7478_s17 + $0x13c8] sm:$0xff]  ;;  %4537 = vmatpush.msra.mxu0 %v787_v34 }
 0x396   : > { %v915_v50 = vld [vmem:[%s7478_s17 + $0x15a8] sm:$0xff]  ;;  %4556 = vmatpush.msra.mxu1 %v855_v35 }
 0x397   : > { %v983_v53 = vld [vmem:[%s7478_s17 + $0x17c8] sm:$0xff]  ;;  %4577 = vmatpush.msra.mxu2 %v915_v50 }
 0x398   : > { %v783_v54 = vld [vmem:[%s7478_s17 + $0x1188] sm:$0xff]  ;;  %4596 = vmatpush.msra.mxu3 %v983_v53 }
 0x399   : > { %v851_v55 = vld [vmem:[%s7478_s17 + $0x13a8] sm:$0xff]  ;;  %4538 = vmatpush.msra.mxu0 %v783_v54 }
 0x39a   : > { %v911_v56 = vld [vmem:[%s7478_s17 + $0x1588] sm:$0xff]  ;;  %4557 = vmatpush.msra.mxu1 %v851_v55 }
 0x39b   : > { %v979_v57 = vld [vmem:[%s7478_s17 + $0x17a8] sm:$0xff]  ;;  %4578 = vmatpush.msra.mxu2 %v911_v56 }
 0x39c   : > { %v779_v58 = vld [vmem:[%s7478_s17 + $0x1168] sm:$0xff]  ;;  %4597 = vmatpush.msra.mxu3 %v979_v57 }
 0x39d   : > { %v847_v59 = vld [vmem:[%s7478_s17 + $0x1388] sm:$0xff]  ;;  %4539 = vmatpush.msra.mxu0 %v779_v58 }
 0x39e   : > { %v907_v60 = vld [vmem:[%s7478_s17 + $0x1568] sm:$0xff]  ;;  %4558 = vmatpush.msra.mxu1 %v847_v59 }
 0x39f   : > { %v975_v61 = vld [vmem:[%s7478_s17 + $0x1788] sm:$0xff]  ;;  %4579 = vmatpush.msra.mxu2 %v907_v60 }
 0x3a0   : > { %v775_v2 = vld [vmem:[%s7478_s17 + $0x1148] sm:$0xff]  ;;  %4598 = vmatpush.msra.mxu3 %v975_v61 }
 0x3a1   : > { %v843_v11 = vld [vmem:[%s7478_s17 + $0x1368] sm:$0xff]  ;;  %4540 = vmatpush.msra.mxu0 %v775_v2 }
 0x3a2   : > { %v903_v12 = vld [vmem:[%s7478_s17 + $0x1548] sm:$0xff]  ;;  %4559 = vmatpush.msra.mxu1 %v843_v11 }
 0x3a3   : > { %v971_v13 = vld [vmem:[%s7478_s17 + $0x1768] sm:$0xff]  ;;  %4580 = vmatpush.msra.mxu2 %v903_v12 }
 0x3a4   : > { %v771_v16 = vld [vmem:[%s7478_s17 + $0x1128] sm:$0xff]  ;;  %4599 = vmatpush.msra.mxu3 %v971_v13 }
 0x3a5   : > { %v839_v20 = vld [vmem:[%s7478_s17 + $0x1348] sm:$0xff]  ;;  %4541 = vmatpush.msra.mxu0 %v771_v16 }
 0x3a6   : > { %v899_v22 = vld [vmem:[%s7478_s17 + $0x1528] sm:$0xff]  ;;  %4560 = vmatpush.msra.mxu1 %v839_v20 }
 0x3a7   : > { %v967_v23 = vld [vmem:[%s7478_s17 + $0x1748] sm:$0xff]  ;;  %4581 = vmatpush.msra.mxu2 %v899_v22 }
 0x3a8   : > { %v767_v27 = vld [vmem:[%s7478_s17 + $0x1108] sm:$0xff]  ;;  %4600 = vmatpush.msra.mxu3 %v967_v23 }
 0x3a9   : > { %v835_v29 = vld [vmem:[%s7478_s17 + $0x1328] sm:$0xff]  ;;  %4542 = vmatpush.msra.mxu0 %v767_v27 }
 0x3aa   : > { %v895_v32 = vld [vmem:[%s7478_s17 + $0x1508] sm:$0xff]  ;;  %4561 = vmatpush.msra.mxu1 %v835_v29 }
 0x3ab   : > { %v963_v33 = vld [vmem:[%s7478_s17 + $0x1728] sm:$0xff]  ;;  %4582 = vmatpush.msra.mxu2 %v895_v32 }
 0x3ac   : > { %v763_v34 = vld [vmem:[%s7478_s17 + $0x10e8] sm:$0xff]  ;;  %4601 = vmatpush.msra.mxu3 %v963_v33 }
 0x3ad   : > { %v831_v35 = vld [vmem:[%s7478_s17 + $0x1308] sm:$0xff]  ;;  %4543 = vmatpush.msra.mxu0 %v763_v34 }
 0x3ae   : > { %v891_v50 = vld [vmem:[%s7478_s17 + $0x14e8] sm:$0xff]  ;;  %4562 = vmatpush.msra.mxu1 %v831_v35 }
 0x3af   : > { %v959_v53 = vld [vmem:[%s7478_s17 + $0x1708] sm:$0xff]  ;;  %4583 = vmatpush.msra.mxu2 %v891_v50 }
 0x3b0   : > { %v759_v54 = vld [vmem:[%s7478_s17 + $0x10c8] sm:$0xff]  ;;  %4602 = vmatpush.msra.mxu3 %v959_v53 }
 0x3b1   : > { %v827_v55 = vld [vmem:[%s7478_s17 + $0x12e8] sm:$0xff]  ;;  %4544 = vmatpush.msra.mxu0 %v759_v54 }
 0x3b2   : > { %v887_v56 = vld [vmem:[%s7478_s17 + $0x14c8] sm:$0xff]  ;;  %4563 = vmatpush.msra.mxu1 %v827_v55 }
 0x3b3   : > { %v955_v57 = vld [vmem:[%s7478_s17 + $0x16e8] sm:$0xff]  ;;  %4584 = vmatpush.msra.mxu2 %v887_v56 }
 0x3b4   : > { %v755_v58 = vld [vmem:[%s7478_s17 + $0x10a8] sm:$0xff]  ;;  %4603 = vmatpush.msra.mxu3 %v955_v57 }
 0x3b5   : > { %v823_v59 = vld [vmem:[%s7478_s17 + $0x12c8] sm:$0xff]  ;;  %4545 = vmatpush.msra.mxu0 %v755_v58 }
 0x3b6   : > { %v883_v60 = vld [vmem:[%s7478_s17 + $0x14a8] sm:$0xff]  ;;  %4564 = vmatpush.msra.mxu1 %v823_v59 }
 0x3b7   : > { %v951_v61 = vld [vmem:[%s7478_s17 + $0x16c8] sm:$0xff]  ;;  %4585 = vmatpush.msra.mxu2 %v883_v60 }
 0x3b8   : > { %v751_v2 = vld [vmem:[%s7478_s17 + $0x1088] sm:$0xff]  ;;  %4604 = vmatpush.msra.mxu3 %v951_v61 }
 0x3b9   : > { %v819_v11 = vld [vmem:[%s7478_s17 + $0x12a8] sm:$0xff]  ;;  %4546 = vmatpush.msra.mxu0 %v751_v2 }
 0x3ba   : > { %v879_v12 = vld [vmem:[%s7478_s17 + $0x1488] sm:$0xff]  ;;  %4565 = vmatpush.msra.mxu1 %v819_v11 }
 0x3bb   : > { %v947_v13 = vld [vmem:[%s7478_s17 + $0x16a8] sm:$0xff]  ;;  %4586 = vmatpush.msra.mxu2 %v879_v12 }
 0x3bc   : > { %v747_v16 = vld [vmem:[%s7478_s17 + $0x1068] sm:$0xff]  ;;  %4605 = vmatpush.msra.mxu3 %v947_v13 }
 0x3bd   : > { %v815_v20 = vld [vmem:[%s7478_s17 + $0x1288] sm:$0xff]  ;;  %4547 = vmatpush.msra.mxu0 %v747_v16 }
 0x3be   : > { %v875_v22 = vld [vmem:[%s7478_s17 + $0x1468] sm:$0xff]  ;;  %4566 = vmatpush.msra.mxu1 %v815_v20 }
 0x3bf   : > { %v943_v23 = vld [vmem:[%s7478_s17 + $0x1688] sm:$0xff]  ;;  %4587 = vmatpush.msra.mxu2 %v875_v22 }
 0x3c0   : > { %v743_v27 = vld [vmem:[%s7478_s17 + $0x1048] sm:$0xff]  ;;  %4606 = vmatpush.msra.mxu3 %v943_v23 }
 0x3c1   : > { %v811_v29 = vld [vmem:[%s7478_s17 + $0x1268] sm:$0xff]  ;;  %4548 = vmatpush.msra.mxu0 %v743_v27 }
 0x3c2   : > { %v871_v32 = vld [vmem:[%s7478_s17 + $0x1448] sm:$0xff]  ;;  %4567 = vmatpush.msra.mxu1 %v811_v29 }
 0x3c3   : > { %v939_v33 = vld [vmem:[%s7478_s17 + $0x1668] sm:$0xff]  ;;  %4588 = vmatpush.msra.mxu2 %v871_v32 }
 0x3c4   : > { %v739_v34 = vld [vmem:[%s7478_s17 + $0x1028] sm:$0xff]  ;;  %4607 = vmatpush.msra.mxu3 %v939_v33 }
 0x3c5   : > { %v807_v35 = vld [vmem:[%s7478_s17 + $0x1248] sm:$0xff]  ;;  %4549 = vmatpush.msra.mxu0 %v739_v34 }
 0x3c6   : > { %v867_v50 = vld [vmem:[%s7478_s17 + $0x1428] sm:$0xff]  ;;  %4568 = vmatpush.msra.mxu1 %v807_v35 }
 0x3c7   : > { %v935_v53 = vld [vmem:[%s7478_s17 + $0x1648] sm:$0xff]  ;;  %4589 = vmatpush.msra.mxu2 %v867_v50 }
 0x3c8   : > { %v735_v54 = vld [vmem:[%s7478_s17 + $0x1008] sm:$0xff]  ;;  %4608 = vmatpush.msra.mxu3 %v935_v53 }
 0x3c9   : > { %v803_v55 = vld [vmem:[%s7478_s17 + $0x1228] sm:$0xff]  ;;  %4550 = vmatpush.msra.mxu0 %v735_v54 }
 0x3ca   : > { %v863_v56 = vld [vmem:[%s7478_s17 + $0x1408] sm:$0xff]  ;;  %4569 = vmatpush.msra.mxu1 %v803_v55  ;;  %4551 = vmatmul.f32.vlgmr.msra.gmra.mxu0 %v7665_v26 }
 0x3cb   : > { %v931_v57 = vld [vmem:[%s7478_s17 + $0x1628] sm:$0xff]  ;;  %4590 = vmatpush.msra.mxu2 %v863_v56 }
 0x3cc   : > { %v1051_v58 = vld [vmem:[%s7478_s17 + $0x19e8] sm:$0xff]  ;;  %4609 = vmatpush.msra.mxu3 %v931_v57  ;;  %4591 = vmatmul.f32.vlgmr.msra.gmra.mxu2 %v7668_v28 }
 0x3cd   : > { %v1179_v59 = vld [vmem:[%s7478_s17 + $0x1de8] sm:$0xff]  ;;  %4615 = vmatpush.msrb.mxu0 %v1051_v58 }
 0x3ce   : > { %v799_v60 = vld [vmem:[%s7478_s17 + $0x1208] sm:$0xff]  ;;  %4655 = vmatpush.msrb.mxu2 %v1179_v59 }
 0x3cf   : > { %v927_v61 = vld [vmem:[%s7478_s17 + $0x1608] sm:$0xff]  ;;  %4570 = vmatpush.msra.mxu1 %v799_v60 }
 0x3d0   : > { %v1047_v2 = vld [vmem:[%s7478_s17 + $0x19c8] sm:$0xff]  ;;  %4610 = vmatpush.msra.mxu3 %v927_v61  ;;  %4571 = vmatmul.f32.vlgmr.msra.gmra.mxu1 %v7672_v30 }
 0x3d1   : > { %v1115_v11 = vld [vmem:[%s7478_s17 + $0x1be8] sm:$0xff]  ;;  %4611 = vmatmul.f32.vlgmr.msra.gmra.mxu3 %v7674_v31  ;;  %4616 = vmatpush.msrb.mxu0 %v1047_v2 }
 0x3d2   : > { %v1175_v12 = vld [vmem:[%s7478_s17 + $0x1dc8] sm:$0xff]  ;;  %4635 = vmatpush.msrb.mxu1 %v1115_v11 }
 0x3d3   : > { %v1243_v13 = vld [vmem:[%s7478_s17 + $0x1fe8] sm:$0xff]  ;;  %4656 = vmatpush.msrb.mxu2 %v1175_v12 }
 0x3d4   : > { %v1043_v16 = vld [vmem:[%s7478_s17 + $0x19a8] sm:$0xff]  ;;  %4675 = vmatpush.msrb.mxu3 %v1243_v13 }
 0x3d5   : > { %v1111_v20 = vld [vmem:[%s7478_s17 + $0x1bc8] sm:$0xff]  ;;  %4617 = vmatpush.msrb.mxu0 %v1043_v16 }
 0x3d6   : > { %v1171_v22 = vld [vmem:[%s7478_s17 + $0x1da8] sm:$0xff]  ;;  %4636 = vmatpush.msrb.mxu1 %v1111_v20 }
 0x3d7   : > { %v1239_v23 = vld [vmem:[%s7478_s17 + $0x1fc8] sm:$0xff]  ;;  %4657 = vmatpush.msrb.mxu2 %v1171_v22 }
 0x3d8   : > { %v1039_v27 = vld [vmem:[%s7478_s17 + $0x1988] sm:$0xff]  ;;  %4676 = vmatpush.msrb.mxu3 %v1239_v23 }
 0x3d9   : > { %v1107_v29 = vld [vmem:[%s7478_s17 + $0x1ba8] sm:$0xff]  ;;  %4618 = vmatpush.msrb.mxu0 %v1039_v27 }
 0x3da   : > { %v1167_v32 = vld [vmem:[%s7478_s17 + $0x1d88] sm:$0xff]  ;;  %4637 = vmatpush.msrb.mxu1 %v1107_v29 }
 0x3db   : > { %v1235_v33 = vld [vmem:[%s7478_s17 + $0x1fa8] sm:$0xff]  ;;  %4658 = vmatpush.msrb.mxu2 %v1167_v32 }
 0x3dc   : > { %v1035_v34 = vld [vmem:[%s7478_s17 + $0x1968] sm:$0xff]  ;;  %4677 = vmatpush.msrb.mxu3 %v1235_v33 }
 0x3dd   : > { %v1103_v35 = vld [vmem:[%s7478_s17 + $0x1b88] sm:$0xff]  ;;  %4619 = vmatpush.msrb.mxu0 %v1035_v34 }
 0x3de   : > { %v1163_v50 = vld [vmem:[%s7478_s17 + $0x1d68] sm:$0xff]  ;;  %4638 = vmatpush.msrb.mxu1 %v1103_v35 }
 0x3df   : > { %v1231_v53 = vld [vmem:[%s7478_s17 + $0x1f88] sm:$0xff]  ;;  %4659 = vmatpush.msrb.mxu2 %v1163_v50 }
 0x3e0   : > { %v1031_v54 = vld [vmem:[%s7478_s17 + $0x1948] sm:$0xff]  ;;  %4678 = vmatpush.msrb.mxu3 %v1231_v53 }
 0x3e1   : > { %v1099_v55 = vld [vmem:[%s7478_s17 + $0x1b68] sm:$0xff]  ;;  %4620 = vmatpush.msrb.mxu0 %v1031_v54 }
 0x3e2   : > { %v1159_v56 = vld [vmem:[%s7478_s17 + $0x1d48] sm:$0xff]  ;;  %4639 = vmatpush.msrb.mxu1 %v1099_v55 }
 0x3e3   : > { %v1227_v57 = vld [vmem:[%s7478_s17 + $0x1f68] sm:$0xff]  ;;  %4660 = vmatpush.msrb.mxu2 %v1159_v56 }
 0x3e4   : > { %v1027_v58 = vld [vmem:[%s7478_s17 + $0x1928] sm:$0xff]  ;;  %4679 = vmatpush.msrb.mxu3 %v1227_v57 }
 0x3e5   : > { %v1095_v59 = vld [vmem:[%s7478_s17 + $0x1b48] sm:$0xff]  ;;  %4621 = vmatpush.msrb.mxu0 %v1027_v58 }
 0x3e6   : > { %v1155_v60 = vld [vmem:[%s7478_s17 + $0x1d28] sm:$0xff]  ;;  %4640 = vmatpush.msrb.mxu1 %v1095_v59 }
 0x3e7   : > { %v1223_v61 = vld [vmem:[%s7478_s17 + $0x1f48] sm:$0xff]  ;;  %4661 = vmatpush.msrb.mxu2 %v1155_v60 }
 0x3e8   : > { %v1023_v2 = vld [vmem:[%s7478_s17 + $0x1908] sm:$0xff]  ;;  %4680 = vmatpush.msrb.mxu3 %v1223_v61 }
 0x3e9   : > { %v1091_v11 = vld [vmem:[%s7478_s17 + $0x1b28] sm:$0xff]  ;;  %4622 = vmatpush.msrb.mxu0 %v1023_v2 }
 0x3ea   : > { %v1151_v12 = vld [vmem:[%s7478_s17 + $0x1d08] sm:$0xff]  ;;  %4641 = vmatpush.msrb.mxu1 %v1091_v11 }
 0x3eb   : > { %v1219_v13 = vld [vmem:[%s7478_s17 + $0x1f28] sm:$0xff]  ;;  %4662 = vmatpush.msrb.mxu2 %v1151_v12 }
 0x3ec   : > { %v1019_v16 = vld [vmem:[%s7478_s17 + $0x18e8] sm:$0xff]  ;;  %4681 = vmatpush.msrb.mxu3 %v1219_v13 }
 0x3ed   : > { %v1087_v20 = vld [vmem:[%s7478_s17 + $0x1b08] sm:$0xff]  ;;  %4623 = vmatpush.msrb.mxu0 %v1019_v16 }
 0x3ee   : > { %v1147_v22 = vld [vmem:[%s7478_s17 + $0x1ce8] sm:$0xff]  ;;  %4642 = vmatpush.msrb.mxu1 %v1087_v20 }
 0x3ef   : > { %v1215_v23 = vld [vmem:[%s7478_s17 + $0x1f08] sm:$0xff]  ;;  %4663 = vmatpush.msrb.mxu2 %v1147_v22 }
 0x3f0   : > { %v1015_v27 = vld [vmem:[%s7478_s17 + $0x18c8] sm:$0xff]  ;;  %4682 = vmatpush.msrb.mxu3 %v1215_v23 }
 0x3f1   : > { %v1083_v29 = vld [vmem:[%s7478_s17 + $0x1ae8] sm:$0xff]  ;;  %4624 = vmatpush.msrb.mxu0 %v1015_v27 }
 0x3f2   : > { %v1143_v32 = vld [vmem:[%s7478_s17 + $0x1cc8] sm:$0xff]  ;;  %4643 = vmatpush.msrb.mxu1 %v1083_v29 }
 0x3f3   : > { %v1211_v33 = vld [vmem:[%s7478_s17 + $0x1ee8] sm:$0xff]  ;;  %4664 = vmatpush.msrb.mxu2 %v1143_v32 }
 0x3f4   : > { %v1011_v34 = vld [vmem:[%s7478_s17 + $0x18a8] sm:$0xff]  ;;  %4683 = vmatpush.msrb.mxu3 %v1211_v33 }
 0x3f5   : > { %v1079_v35 = vld [vmem:[%s7478_s17 + $0x1ac8] sm:$0xff]  ;;  %4625 = vmatpush.msrb.mxu0 %v1011_v34 }
 0x3f6   : > { %v1139_v50 = vld [vmem:[%s7478_s17 + $0x1ca8] sm:$0xff]  ;;  %4644 = vmatpush.msrb.mxu1 %v1079_v35 }
 0x3f7   : > { %v1207_v53 = vld [vmem:[%s7478_s17 + $0x1ec8] sm:$0xff]  ;;  %4665 = vmatpush.msrb.mxu2 %v1139_v50 }
 0x3f8   : > { %v1007_v54 = vld [vmem:[%s7478_s17 + $0x1888] sm:$0xff]  ;;  %4684 = vmatpush.msrb.mxu3 %v1207_v53 }
 0x3f9   : > { %v1075_v55 = vld [vmem:[%s7478_s17 + $0x1aa8] sm:$0xff]  ;;  %4626 = vmatpush.msrb.mxu0 %v1007_v54 }
 0x3fa   : > { %v1135_v56 = vld [vmem:[%s7478_s17 + $0x1c88] sm:$0xff]  ;;  %4645 = vmatpush.msrb.mxu1 %v1075_v55 }
 0x3fb   : > { %v1203_v57 = vld [vmem:[%s7478_s17 + $0x1ea8] sm:$0xff]  ;;  %4666 = vmatpush.msrb.mxu2 %v1135_v56 }
 0x3fc   : > { %v1003_v58 = vld [vmem:[%s7478_s17 + $0x1868] sm:$0xff]  ;;  %4685 = vmatpush.msrb.mxu3 %v1203_v57 }
 0x3fd   : > { %v1071_v59 = vld [vmem:[%s7478_s17 + $0x1a88] sm:$0xff]  ;;  %4627 = vmatpush.msrb.mxu0 %v1003_v58 }
 0x3fe   : > { %v1131_v60 = vld [vmem:[%s7478_s17 + $0x1c68] sm:$0xff]  ;;  %4646 = vmatpush.msrb.mxu1 %v1071_v59 }
 0x3ff   : > { %v1199_v61 = vld [vmem:[%s7478_s17 + $0x1e88] sm:$0xff]  ;;  %4667 = vmatpush.msrb.mxu2 %v1131_v60 }
 0x400   : > { %v999_v2 = vld [vmem:[%s7478_s17 + $0x1848] sm:$0xff]  ;;  %4686 = vmatpush.msrb.mxu3 %v1199_v61 }
 0x401   : > { %v1067_v11 = vld [vmem:[%s7478_s17 + $0x1a68] sm:$0xff]  ;;  %4628 = vmatpush.msrb.mxu0 %v999_v2 }
 0x402   : > { %v1127_v12 = vld [vmem:[%s7478_s17 + $0x1c48] sm:$0xff]  ;;  %4647 = vmatpush.msrb.mxu1 %v1067_v11 }
 0x403   : > { %v1195_v13 = vld [vmem:[%s7478_s17 + $0x1e68] sm:$0xff]  ;;  %4668 = vmatpush.msrb.mxu2 %v1127_v12 }
 0x404   : > { %v995_v16 = vld [vmem:[%s7478_s17 + $0x1828] sm:$0xff]  ;;  %4687 = vmatpush.msrb.mxu3 %v1195_v13 }
 0x405   : > { %v1063_v20 = vld [vmem:[%s7478_s17 + $0x1a48] sm:$0xff]  ;;  %4629 = vmatpush.msrb.mxu0 %v995_v16 }
 0x406   : > { %v1123_v22 = vld [vmem:[%s7478_s17 + $0x1c28] sm:$0xff]  ;;  %4648 = vmatpush.msrb.mxu1 %v1063_v20 }
 0x407   : > { %v1191_v23 = vld [vmem:[%s7478_s17 + $0x1e48] sm:$0xff]  ;;  %4669 = vmatpush.msrb.mxu2 %v1123_v22 }
 0x408   : > { %v991_v27 = vld [vmem:[%s7478_s17 + $0x1808] sm:$0xff]  ;;  %4688 = vmatpush.msrb.mxu3 %v1191_v23 }
 0x409   : > { %v1059_v29 = vld [vmem:[%s7478_s17 + $0x1a28] sm:$0xff]  ;;  %4630 = vmatpush.msrb.mxu0 %v991_v27 }
 0x40a   : > { %v1119_v32 = vld [vmem:[%s7478_s17 + $0x1c08] sm:$0xff]  ;;  %4649 = vmatpush.msrb.mxu1 %v1059_v29  ;;  %4631 = vmatmul.f32.vlgmr.msrb.gmra.mxu0 %v7743_v40 }
 0x40b   : > { %v1187_v33 = vld [vmem:[%s7478_s17 + $0x1e28] sm:$0xff]  ;;  %4670 = vmatpush.msrb.mxu2 %v1119_v32 }
 0x40c   : > { %v1307_v34 = vld [vmem:[%s7478_s17 + $0x21e8] sm:$0xff]  ;;  %4689 = vmatpush.msrb.mxu3 %v1187_v33  ;;  %4671 = vmatmul.f32.vlgmr.msrb.gmra.mxu2 %v7745_v41 }
 0x40d   : > { %v1435_v35 = vld [vmem:[%s7478_s17 + $0x25e8] sm:$0xff]  ;;  %4695 = vmatpush.msra.mxu0 %v1307_v34 }
 0x40e   : > { %v1055_v50 = vld [vmem:[%s7478_s17 + $0x1a08] sm:$0xff]  ;;  %4735 = vmatpush.msra.mxu2 %v1435_v35 }
 0x40f   : > { %v1183_v53 = vld [vmem:[%s7478_s17 + $0x1e08] sm:$0xff]  ;;  %4650 = vmatpush.msrb.mxu1 %v1055_v50 }
 0x410   : > { %v1303_v54 = vld [vmem:[%s7478_s17 + $0x21c8] sm:$0xff]  ;;  %4690 = vmatpush.msrb.mxu3 %v1183_v53  ;;  %4651 = vmatmul.f32.vlgmr.msrb.gmra.mxu1 %v7747_v42 }
 0x411   : > { %v1371_v55 = vld [vmem:[%s7478_s17 + $0x23e8] sm:$0xff]  ;;  %4691 = vmatmul.f32.vlgmr.msrb.gmra.mxu3 %v7751_v49  ;;  %4696 = vmatpush.msra.mxu0 %v1303_v54 }
 0x412   : > { %v1431_v56 = vld [vmem:[%s7478_s17 + $0x25c8] sm:$0xff]  ;;  %4715 = vmatpush.msra.mxu1 %v1371_v55 }
 0x413   : > { %v1499_v57 = vld [vmem:[%s7478_s17 + $0x27e8] sm:$0xff]  ;;  %4736 = vmatpush.msra.mxu2 %v1431_v56 }
 0x414   : > { %v1299_v58 = vld [vmem:[%s7478_s17 + $0x21a8] sm:$0xff]  ;;  %4755 = vmatpush.msra.mxu3 %v1499_v57 }
 0x415   : > { %v1367_v59 = vld [vmem:[%s7478_s17 + $0x23c8] sm:$0xff]  ;;  %4697 = vmatpush.msra.mxu0 %v1299_v58 }
 0x416   : > { %v1427_v60 = vld [vmem:[%s7478_s17 + $0x25a8] sm:$0xff]  ;;  %4716 = vmatpush.msra.mxu1 %v1367_v59 }
 0x417   : > { %v1495_v61 = vld [vmem:[%s7478_s17 + $0x27c8] sm:$0xff]  ;;  %4737 = vmatpush.msra.mxu2 %v1427_v60 }
 0x418   : > { %v1295_v2 = vld [vmem:[%s7478_s17 + $0x2188] sm:$0xff]  ;;  %4756 = vmatpush.msra.mxu3 %v1495_v61 }
 0x419   : > { %v1363_v11 = vld [vmem:[%s7478_s17 + $0x23a8] sm:$0xff]  ;;  %4698 = vmatpush.msra.mxu0 %v1295_v2 }
 0x41a   : > { %v1423_v12 = vld [vmem:[%s7478_s17 + $0x2588] sm:$0xff]  ;;  %4717 = vmatpush.msra.mxu1 %v1363_v11 }
 0x41b   : > { %v1491_v13 = vld [vmem:[%s7478_s17 + $0x27a8] sm:$0xff]  ;;  %4738 = vmatpush.msra.mxu2 %v1423_v12 }
 0x41c   : > { %v1291_v16 = vld [vmem:[%s7478_s17 + $0x2168] sm:$0xff]  ;;  %4757 = vmatpush.msra.mxu3 %v1491_v13 }
 0x41d   : > { %v1359_v20 = vld [vmem:[%s7478_s17 + $0x2388] sm:$0xff]  ;;  %4699 = vmatpush.msra.mxu0 %v1291_v16 }
 0x41e   : > { %v1419_v22 = vld [vmem:[%s7478_s17 + $0x2568] sm:$0xff]  ;;  %4718 = vmatpush.msra.mxu1 %v1359_v20 }
 0x41f   : > { %v1487_v23 = vld [vmem:[%s7478_s17 + $0x2788] sm:$0xff]  ;;  %4739 = vmatpush.msra.mxu2 %v1419_v22 }
 0x420   : > { %v1287_v27 = vld [vmem:[%s7478_s17 + $0x2148] sm:$0xff]  ;;  %4758 = vmatpush.msra.mxu3 %v1487_v23 }
 0x421   : > { %v1355_v29 = vld [vmem:[%s7478_s17 + $0x2368] sm:$0xff]  ;;  %4700 = vmatpush.msra.mxu0 %v1287_v27 }
 0x422   : > { %v1415_v32 = vld [vmem:[%s7478_s17 + $0x2548] sm:$0xff]  ;;  %4719 = vmatpush.msra.mxu1 %v1355_v29 }
 0x423   : > { %v1483_v33 = vld [vmem:[%s7478_s17 + $0x2768] sm:$0xff]  ;;  %4740 = vmatpush.msra.mxu2 %v1415_v32 }
 0x424   : > { %v1283_v34 = vld [vmem:[%s7478_s17 + $0x2128] sm:$0xff]  ;;  %4759 = vmatpush.msra.mxu3 %v1483_v33 }
 0x425   : > { %v1351_v35 = vld [vmem:[%s7478_s17 + $0x2348] sm:$0xff]  ;;  %4701 = vmatpush.msra.mxu0 %v1283_v34 }
 0x426   : > { %v1411_v50 = vld [vmem:[%s7478_s17 + $0x2528] sm:$0xff]  ;;  %4720 = vmatpush.msra.mxu1 %v1351_v35 }
 0x427   : > { %v1479_v53 = vld [vmem:[%s7478_s17 + $0x2748] sm:$0xff]  ;;  %4741 = vmatpush.msra.mxu2 %v1411_v50 }
 0x428   : > { %v1279_v54 = vld [vmem:[%s7478_s17 + $0x2108] sm:$0xff]  ;;  %4760 = vmatpush.msra.mxu3 %v1479_v53 }
 0x429   : > { %v1347_v55 = vld [vmem:[%s7478_s17 + $0x2328] sm:$0xff]  ;;  %4702 = vmatpush.msra.mxu0 %v1279_v54 }
 0x42a   : > { %v1407_v56 = vld [vmem:[%s7478_s17 + $0x2508] sm:$0xff]  ;;  %4721 = vmatpush.msra.mxu1 %v1347_v55 }
 0x42b   : > { %v1475_v57 = vld [vmem:[%s7478_s17 + $0x2728] sm:$0xff]  ;;  %4742 = vmatpush.msra.mxu2 %v1407_v56 }
 0x42c   : > { %v1275_v58 = vld [vmem:[%s7478_s17 + $0x20e8] sm:$0xff]  ;;  %4761 = vmatpush.msra.mxu3 %v1475_v57 }
 0x42d   : > { %v1343_v59 = vld [vmem:[%s7478_s17 + $0x2308] sm:$0xff]  ;;  %4703 = vmatpush.msra.mxu0 %v1275_v58 }
 0x42e   : > { %v1403_v60 = vld [vmem:[%s7478_s17 + $0x24e8] sm:$0xff]  ;;  %4722 = vmatpush.msra.mxu1 %v1343_v59 }
 0x42f   : > { %v1471_v61 = vld [vmem:[%s7478_s17 + $0x2708] sm:$0xff]  ;;  %4743 = vmatpush.msra.mxu2 %v1403_v60 }
 0x430   : > { %v1271_v2 = vld [vmem:[%s7478_s17 + $0x20c8] sm:$0xff]  ;;  %4762 = vmatpush.msra.mxu3 %v1471_v61 }
 0x431   : > { %v1339_v11 = vld [vmem:[%s7478_s17 + $0x22e8] sm:$0xff]  ;;  %4704 = vmatpush.msra.mxu0 %v1271_v2 }
 0x432   : > { %v1399_v12 = vld [vmem:[%s7478_s17 + $0x24c8] sm:$0xff]  ;;  %4723 = vmatpush.msra.mxu1 %v1339_v11 }
 0x433   : > { %v1467_v13 = vld [vmem:[%s7478_s17 + $0x26e8] sm:$0xff]  ;;  %4744 = vmatpush.msra.mxu2 %v1399_v12 }
 0x434   : > { %v1267_v16 = vld [vmem:[%s7478_s17 + $0x20a8] sm:$0xff]  ;;  %4763 = vmatpush.msra.mxu3 %v1467_v13 }
 0x435   : > { %v1335_v20 = vld [vmem:[%s7478_s17 + $0x22c8] sm:$0xff]  ;;  %4705 = vmatpush.msra.mxu0 %v1267_v16 }
 0x436   : > { %v1395_v22 = vld [vmem:[%s7478_s17 + $0x24a8] sm:$0xff]  ;;  %4724 = vmatpush.msra.mxu1 %v1335_v20 }
 0x437   : > { %v1463_v23 = vld [vmem:[%s7478_s17 + $0x26c8] sm:$0xff]  ;;  %4745 = vmatpush.msra.mxu2 %v1395_v22 }
 0x438   : > { %v1263_v27 = vld [vmem:[%s7478_s17 + $0x2088] sm:$0xff]  ;;  %4764 = vmatpush.msra.mxu3 %v1463_v23 }
 0x439   : > { %v1331_v29 = vld [vmem:[%s7478_s17 + $0x22a8] sm:$0xff]  ;;  %4706 = vmatpush.msra.mxu0 %v1263_v27 }
 0x43a   : > { %v1391_v32 = vld [vmem:[%s7478_s17 + $0x2488] sm:$0xff]  ;;  %4725 = vmatpush.msra.mxu1 %v1331_v29 }
 0x43b   : > { %v1459_v33 = vld [vmem:[%s7478_s17 + $0x26a8] sm:$0xff]  ;;  %4746 = vmatpush.msra.mxu2 %v1391_v32 }
 0x43c   : > { %v1259_v34 = vld [vmem:[%s7478_s17 + $0x2068] sm:$0xff]  ;;  %4765 = vmatpush.msra.mxu3 %v1459_v33 }
 0x43d   : > { %v1327_v35 = vld [vmem:[%s7478_s17 + $0x2288] sm:$0xff]  ;;  %4707 = vmatpush.msra.mxu0 %v1259_v34 }
 0x43e   : > { %v1387_v50 = vld [vmem:[%s7478_s17 + $0x2468] sm:$0xff]  ;;  %4726 = vmatpush.msra.mxu1 %v1327_v35 }
 0x43f   : > { %v1455_v53 = vld [vmem:[%s7478_s17 + $0x2688] sm:$0xff]  ;;  %4747 = vmatpush.msra.mxu2 %v1387_v50 }
 0x440   : > { %v1255_v54 = vld [vmem:[%s7478_s17 + $0x2048] sm:$0xff]  ;;  %4766 = vmatpush.msra.mxu3 %v1455_v53 }
 0x441   : > { %v1323_v55 = vld [vmem:[%s7478_s17 + $0x2268] sm:$0xff]  ;;  %4708 = vmatpush.msra.mxu0 %v1255_v54 }
 0x442   : > { %v1383_v56 = vld [vmem:[%s7478_s17 + $0x2448] sm:$0xff]  ;;  %4727 = vmatpush.msra.mxu1 %v1323_v55 }
 0x443   : > { %v1451_v57 = vld [vmem:[%s7478_s17 + $0x2668] sm:$0xff]  ;;  %4748 = vmatpush.msra.mxu2 %v1383_v56 }
 0x444   : > { %v1251_v58 = vld [vmem:[%s7478_s17 + $0x2028] sm:$0xff]  ;;  %4767 = vmatpush.msra.mxu3 %v1451_v57 }
 0x445   : > { %v1319_v59 = vld [vmem:[%s7478_s17 + $0x2248] sm:$0xff]  ;;  %4709 = vmatpush.msra.mxu0 %v1251_v58 }
 0x446   : > { %v1379_v60 = vld [vmem:[%s7478_s17 + $0x2428] sm:$0xff]  ;;  %4728 = vmatpush.msra.mxu1 %v1319_v59 }
 0x447   : > { %v1447_v61 = vld [vmem:[%s7478_s17 + $0x2648] sm:$0xff]  ;;  %4749 = vmatpush.msra.mxu2 %v1379_v60 }
 0x448   : > { %v1247_v2 = vld [vmem:[%s7478_s17 + $0x2008] sm:$0xff]  ;;  %4768 = vmatpush.msra.mxu3 %v1447_v61 }
 0x449   : > { %v1315_v11 = vld [vmem:[%s7478_s17 + $0x2228] sm:$0xff]  ;;  %4710 = vmatpush.msra.mxu0 %v1247_v2 }
 0x44a   : > { %v1375_v12 = vld [vmem:[%s7478_s17 + $0x2408] sm:$0xff]  ;;  %4729 = vmatpush.msra.mxu1 %v1315_v11  ;;  %4711 = vmatmul.f32.vlgmr.msra.gmra.mxu0 %v7871_v8 }
 0x44b   : > { %v1443_v13 = vld [vmem:[%s7478_s17 + $0x2628] sm:$0xff]  ;;  %4750 = vmatpush.msra.mxu2 %v1375_v12 }
 0x44c   : > { %v1563_v16 = vld [vmem:[%s7478_s17 + $0x29e8] sm:$0xff]  ;;  %4769 = vmatpush.msra.mxu3 %v1443_v13  ;;  %4751 = vmatmul.f32.vlgmr.msra.gmra.mxu2 %v7873_v9 }
 0x44d   : > { %v1691_v20 = vld [vmem:[%s7478_s17 + $0x2de8] sm:$0xff]  ;;  %4775 = vmatpush.msrb.mxu0 %v1563_v16 }
 0x44e   : > { %v1311_v22 = vld [vmem:[%s7478_s17 + $0x2208] sm:$0xff]  ;;  %4815 = vmatpush.msrb.mxu2 %v1691_v20 }
 0x44f   : > { %v1439_v23 = vld [vmem:[%s7478_s17 + $0x2608] sm:$0xff]  ;;  %4730 = vmatpush.msra.mxu1 %v1311_v22 }
 0x450   : > { %v1559_v27 = vld [vmem:[%s7478_s17 + $0x29c8] sm:$0xff]  ;;  %4770 = vmatpush.msra.mxu3 %v1439_v23  ;;  %4731 = vmatmul.f32.vlgmr.msra.gmra.mxu1 %v7881_v14 }
 0x451   : > { %v1627_v29 = vld [vmem:[%s7478_s17 + $0x2be8] sm:$0xff]  ;;  %4771 = vmatmul.f32.vlgmr.msra.gmra.mxu3 %v7883_v15  ;;  %4776 = vmatpush.msrb.mxu0 %v1559_v27 }
 0x452   : > { %v1687_v32 = vld [vmem:[%s7478_s17 + $0x2dc8] sm:$0xff]  ;;  %4795 = vmatpush.msrb.mxu1 %v1627_v29 }
 0x453   : > { %v1755_v33 = vld [vmem:[%s7478_s17 + $0x2fe8] sm:$0xff]  ;;  %4816 = vmatpush.msrb.mxu2 %v1687_v32 }
 0x454   : > { %v1555_v34 = vld [vmem:[%s7478_s17 + $0x29a8] sm:$0xff]  ;;  %4835 = vmatpush.msrb.mxu3 %v1755_v33 }
 0x455   : > { %v1623_v35 = vld [vmem:[%s7478_s17 + $0x2bc8] sm:$0xff]  ;;  %4777 = vmatpush.msrb.mxu0 %v1555_v34 }
 0x456   : > { %v1683_v50 = vld [vmem:[%s7478_s17 + $0x2da8] sm:$0xff]  ;;  %4796 = vmatpush.msrb.mxu1 %v1623_v35 }
 0x457   : > { %v1751_v53 = vld [vmem:[%s7478_s17 + $0x2fc8] sm:$0xff]  ;;  %4817 = vmatpush.msrb.mxu2 %v1683_v50 }
 0x458   : > { %v1551_v54 = vld [vmem:[%s7478_s17 + $0x2988] sm:$0xff]  ;;  %4836 = vmatpush.msrb.mxu3 %v1751_v53 }
 0x459   : > { %v1619_v55 = vld [vmem:[%s7478_s17 + $0x2ba8] sm:$0xff]  ;;  %4778 = vmatpush.msrb.mxu0 %v1551_v54 }
 0x45a   : > { %v1679_v56 = vld [vmem:[%s7478_s17 + $0x2d88] sm:$0xff]  ;;  %4797 = vmatpush.msrb.mxu1 %v1619_v55 }
 0x45b   : > { %v1747_v57 = vld [vmem:[%s7478_s17 + $0x2fa8] sm:$0xff]  ;;  %4818 = vmatpush.msrb.mxu2 %v1679_v56 }
 0x45c   : > { %v1547_v58 = vld [vmem:[%s7478_s17 + $0x2968] sm:$0xff]  ;;  %4837 = vmatpush.msrb.mxu3 %v1747_v57 }
 0x45d   : > { %v1615_v59 = vld [vmem:[%s7478_s17 + $0x2b88] sm:$0xff]  ;;  %4779 = vmatpush.msrb.mxu0 %v1547_v58 }
 0x45e   : > { %v1675_v60 = vld [vmem:[%s7478_s17 + $0x2d68] sm:$0xff]  ;;  %4798 = vmatpush.msrb.mxu1 %v1615_v59 }
 0x45f   : > { %v1743_v61 = vld [vmem:[%s7478_s17 + $0x2f88] sm:$0xff]  ;;  %4819 = vmatpush.msrb.mxu2 %v1675_v60 }
 0x460   : > { %v1543_v2 = vld [vmem:[%s7478_s17 + $0x2948] sm:$0xff]  ;;  %4838 = vmatpush.msrb.mxu3 %v1743_v61 }
 0x461   : > { %v1611_v11 = vld [vmem:[%s7478_s17 + $0x2b68] sm:$0xff]  ;;  %4780 = vmatpush.msrb.mxu0 %v1543_v2 }
 0x462   : > { %v1671_v12 = vld [vmem:[%s7478_s17 + $0x2d48] sm:$0xff]  ;;  %4799 = vmatpush.msrb.mxu1 %v1611_v11 }
 0x463   : > { %v1739_v13 = vld [vmem:[%s7478_s17 + $0x2f68] sm:$0xff]  ;;  %4820 = vmatpush.msrb.mxu2 %v1671_v12 }
 0x464   : > { %v1539_v16 = vld [vmem:[%s7478_s17 + $0x2928] sm:$0xff]  ;;  %4839 = vmatpush.msrb.mxu3 %v1739_v13 }
 0x465   : > { %v1607_v20 = vld [vmem:[%s7478_s17 + $0x2b48] sm:$0xff]  ;;  %4781 = vmatpush.msrb.mxu0 %v1539_v16 }
 0x466   : > { %v1667_v22 = vld [vmem:[%s7478_s17 + $0x2d28] sm:$0xff]  ;;  %4800 = vmatpush.msrb.mxu1 %v1607_v20 }
 0x467   : > { %v1735_v23 = vld [vmem:[%s7478_s17 + $0x2f48] sm:$0xff]  ;;  %4821 = vmatpush.msrb.mxu2 %v1667_v22 }
 0x468   : > { %v1535_v27 = vld [vmem:[%s7478_s17 + $0x2908] sm:$0xff]  ;;  %4840 = vmatpush.msrb.mxu3 %v1735_v23 }
 0x469   : > { %v1603_v29 = vld [vmem:[%s7478_s17 + $0x2b28] sm:$0xff]  ;;  %4782 = vmatpush.msrb.mxu0 %v1535_v27 }
 0x46a   : > { %v1663_v32 = vld [vmem:[%s7478_s17 + $0x2d08] sm:$0xff]  ;;  %4801 = vmatpush.msrb.mxu1 %v1603_v29 }
 0x46b   : > { %v1731_v33 = vld [vmem:[%s7478_s17 + $0x2f28] sm:$0xff]  ;;  %4822 = vmatpush.msrb.mxu2 %v1663_v32 }
 0x46c   : > { %v1531_v34 = vld [vmem:[%s7478_s17 + $0x28e8] sm:$0xff]  ;;  %4841 = vmatpush.msrb.mxu3 %v1731_v33 }
 0x46d   : > { %v1599_v35 = vld [vmem:[%s7478_s17 + $0x2b08] sm:$0xff]  ;;  %4783 = vmatpush.msrb.mxu0 %v1531_v34 }
 0x46e   : > { %v1659_v50 = vld [vmem:[%s7478_s17 + $0x2ce8] sm:$0xff]  ;;  %4802 = vmatpush.msrb.mxu1 %v1599_v35 }
 0x46f   : > { %v1727_v53 = vld [vmem:[%s7478_s17 + $0x2f08] sm:$0xff]  ;;  %4823 = vmatpush.msrb.mxu2 %v1659_v50 }
 0x470   : > { %v1527_v54 = vld [vmem:[%s7478_s17 + $0x28c8] sm:$0xff]  ;;  %4842 = vmatpush.msrb.mxu3 %v1727_v53 }
 0x471   : > { %v1595_v55 = vld [vmem:[%s7478_s17 + $0x2ae8] sm:$0xff]  ;;  %4784 = vmatpush.msrb.mxu0 %v1527_v54 }
 0x472   : > { %v1655_v56 = vld [vmem:[%s7478_s17 + $0x2cc8] sm:$0xff]  ;;  %4803 = vmatpush.msrb.mxu1 %v1595_v55 }
 0x473   : > { %v1723_v57 = vld [vmem:[%s7478_s17 + $0x2ee8] sm:$0xff]  ;;  %4824 = vmatpush.msrb.mxu2 %v1655_v56 }
 0x474   : > { %v1523_v58 = vld [vmem:[%s7478_s17 + $0x28a8] sm:$0xff]  ;;  %4843 = vmatpush.msrb.mxu3 %v1723_v57 }
 0x475   : > { %v1591_v59 = vld [vmem:[%s7478_s17 + $0x2ac8] sm:$0xff]  ;;  %4785 = vmatpush.msrb.mxu0 %v1523_v58 }
 0x476   : > { %v1651_v60 = vld [vmem:[%s7478_s17 + $0x2ca8] sm:$0xff]  ;;  %4804 = vmatpush.msrb.mxu1 %v1591_v59 }
 0x477   : > { %v1719_v61 = vld [vmem:[%s7478_s17 + $0x2ec8] sm:$0xff]  ;;  %4825 = vmatpush.msrb.mxu2 %v1651_v60 }
 0x478   : > { %v1519_v2 = vld [vmem:[%s7478_s17 + $0x2888] sm:$0xff]  ;;  %4844 = vmatpush.msrb.mxu3 %v1719_v61 }
 0x479   : > { %v1587_v11 = vld [vmem:[%s7478_s17 + $0x2aa8] sm:$0xff]  ;;  %4786 = vmatpush.msrb.mxu0 %v1519_v2 }
 0x47a   : > { %v1647_v12 = vld [vmem:[%s7478_s17 + $0x2c88] sm:$0xff]  ;;  %4805 = vmatpush.msrb.mxu1 %v1587_v11 }
 0x47b   : > { %v1715_v13 = vld [vmem:[%s7478_s17 + $0x2ea8] sm:$0xff]  ;;  %4826 = vmatpush.msrb.mxu2 %v1647_v12 }
 0x47c   : > { %v1515_v16 = vld [vmem:[%s7478_s17 + $0x2868] sm:$0xff]  ;;  %4845 = vmatpush.msrb.mxu3 %v1715_v13 }
 0x47d   : > { %v1583_v20 = vld [vmem:[%s7478_s17 + $0x2a88] sm:$0xff]  ;;  %4787 = vmatpush.msrb.mxu0 %v1515_v16 }
 0x47e   : > { %v1643_v22 = vld [vmem:[%s7478_s17 + $0x2c68] sm:$0xff]  ;;  %4806 = vmatpush.msrb.mxu1 %v1583_v20 }
 0x47f   : > { %v1711_v23 = vld [vmem:[%s7478_s17 + $0x2e88] sm:$0xff]  ;;  %4827 = vmatpush.msrb.mxu2 %v1643_v22 }
 0x480   : > { %v1511_v27 = vld [vmem:[%s7478_s17 + $0x2848] sm:$0xff]  ;;  %4846 = vmatpush.msrb.mxu3 %v1711_v23 }
 0x481   : > { %v1579_v29 = vld [vmem:[%s7478_s17 + $0x2a68] sm:$0xff]  ;;  %4788 = vmatpush.msrb.mxu0 %v1511_v27 }
 0x482   : > { %v1639_v32 = vld [vmem:[%s7478_s17 + $0x2c48] sm:$0xff]  ;;  %4807 = vmatpush.msrb.mxu1 %v1579_v29 }
 0x483   : > { %v1707_v33 = vld [vmem:[%s7478_s17 + $0x2e68] sm:$0xff]  ;;  %4828 = vmatpush.msrb.mxu2 %v1639_v32 }
 0x484   : > { %v1507_v34 = vld [vmem:[%s7478_s17 + $0x2828] sm:$0xff]  ;;  %4847 = vmatpush.msrb.mxu3 %v1707_v33 }
 0x485   : > { %v1575_v35 = vld [vmem:[%s7478_s17 + $0x2a48] sm:$0xff]  ;;  %4789 = vmatpush.msrb.mxu0 %v1507_v34 }
 0x486   : > { %v1635_v50 = vld [vmem:[%s7478_s17 + $0x2c28] sm:$0xff]  ;;  %4808 = vmatpush.msrb.mxu1 %v1575_v35 }
 0x487   : > { %v1703_v53 = vld [vmem:[%s7478_s17 + $0x2e48] sm:$0xff]  ;;  %4829 = vmatpush.msrb.mxu2 %v1635_v50 }
 0x488   : > { %v1503_v54 = vld [vmem:[%s7478_s17 + $0x2808] sm:$0xff]  ;;  %4848 = vmatpush.msrb.mxu3 %v1703_v53 }
 0x489   : > { %v1571_v55 = vld [vmem:[%s7478_s17 + $0x2a28] sm:$0xff]  ;;  %4790 = vmatpush.msrb.mxu0 %v1503_v54 }
 0x48a   : > { %v1631_v56 = vld [vmem:[%s7478_s17 + $0x2c08] sm:$0xff]  ;;  %4809 = vmatpush.msrb.mxu1 %v1571_v55  ;;  %4791 = vmatmul.f32.vlgmr.msrb.gmra.mxu0 %v7948_v37 }
 0x48b   : > { %v1699_v57 = vld [vmem:[%s7478_s17 + $0x2e28] sm:$0xff]  ;;  %4830 = vmatpush.msrb.mxu2 %v1631_v56 }
 0x48c   : > { %v1819_v58 = vld [vmem:[%s7478_s17 + $0x31e8] sm:$0xff]  ;;  %4849 = vmatpush.msrb.mxu3 %v1699_v57  ;;  %4831 = vmatmul.f32.vlgmr.msrb.gmra.mxu2 %v7950_v38 }
 0x48d   : > { %v1947_v59 = vld [vmem:[%s7478_s17 + $0x35e8] sm:$0xff]  ;;  %4855 = vmatpush.msra.mxu0 %v1819_v58 }
 0x48e   : > { %v1567_v60 = vld [vmem:[%s7478_s17 + $0x2a08] sm:$0xff]  ;;  %4895 = vmatpush.msra.mxu2 %v1947_v59 }
 0x48f   : > { %v1695_v61 = vld [vmem:[%s7478_s17 + $0x2e08] sm:$0xff]  ;;  %4810 = vmatpush.msrb.mxu1 %v1567_v60 }
 0x490   : > { %v1815_v2 = vld [vmem:[%s7478_s17 + $0x31c8] sm:$0xff]  ;;  %4850 = vmatpush.msrb.mxu3 %v1695_v61  ;;  %4811 = vmatmul.f32.vlgmr.msrb.gmra.mxu1 %v7958_v51 }
 0x491   : > { %v1883_v11 = vld [vmem:[%s7478_s17 + $0x33e8] sm:$0xff]  ;;  %4851 = vmatmul.f32.vlgmr.msrb.gmra.mxu3 %v7960_v52  ;;  %4856 = vmatpush.msra.mxu0 %v1815_v2 }
 0x492   : > { %v1943_v12 = vld [vmem:[%s7478_s17 + $0x35c8] sm:$0xff]  ;;  %4875 = vmatpush.msra.mxu1 %v1883_v11 }
 0x493   : > { %v2011_v13 = vld [vmem:[%s7478_s17 + $0x37e8] sm:$0xff]  ;;  %4896 = vmatpush.msra.mxu2 %v1943_v12 }
 0x494   : > { %v1811_v16 = vld [vmem:[%s7478_s17 + $0x31a8] sm:$0xff]  ;;  %4915 = vmatpush.msra.mxu3 %v2011_v13 }
 0x495   : > { %v1879_v20 = vld [vmem:[%s7478_s17 + $0x33c8] sm:$0xff]  ;;  %4857 = vmatpush.msra.mxu0 %v1811_v16 }
 0x496   : > { %v1939_v22 = vld [vmem:[%s7478_s17 + $0x35a8] sm:$0xff]  ;;  %4876 = vmatpush.msra.mxu1 %v1879_v20 }
 0x497   : > { %v2007_v23 = vld [vmem:[%s7478_s17 + $0x37c8] sm:$0xff]  ;;  %4897 = vmatpush.msra.mxu2 %v1939_v22 }
 0x498   : > { %v1807_v27 = vld [vmem:[%s7478_s17 + $0x3188] sm:$0xff]  ;;  %4916 = vmatpush.msra.mxu3 %v2007_v23 }
 0x499   : > { %v1875_v29 = vld [vmem:[%s7478_s17 + $0x33a8] sm:$0xff]  ;;  %4858 = vmatpush.msra.mxu0 %v1807_v27 }
 0x49a   : > { %v1935_v32 = vld [vmem:[%s7478_s17 + $0x3588] sm:$0xff]  ;;  %4877 = vmatpush.msra.mxu1 %v1875_v29 }
 0x49b   : > { %v2003_v33 = vld [vmem:[%s7478_s17 + $0x37a8] sm:$0xff]  ;;  %4898 = vmatpush.msra.mxu2 %v1935_v32 }
 0x49c   : > { %v1803_v34 = vld [vmem:[%s7478_s17 + $0x3168] sm:$0xff]  ;;  %4917 = vmatpush.msra.mxu3 %v2003_v33 }
 0x49d   : > { %v1871_v35 = vld [vmem:[%s7478_s17 + $0x3388] sm:$0xff]  ;;  %4859 = vmatpush.msra.mxu0 %v1803_v34 }
 0x49e   : > { %v1931_v50 = vld [vmem:[%s7478_s17 + $0x3568] sm:$0xff]  ;;  %4878 = vmatpush.msra.mxu1 %v1871_v35 }
 0x49f   : > { %v1999_v53 = vld [vmem:[%s7478_s17 + $0x3788] sm:$0xff]  ;;  %4899 = vmatpush.msra.mxu2 %v1931_v50 }
 0x4a0   : > { %v1799_v54 = vld [vmem:[%s7478_s17 + $0x3148] sm:$0xff]  ;;  %4918 = vmatpush.msra.mxu3 %v1999_v53 }
 0x4a1   : > { %v1867_v55 = vld [vmem:[%s7478_s17 + $0x3368] sm:$0xff]  ;;  %4860 = vmatpush.msra.mxu0 %v1799_v54 }
 0x4a2   : > { %v1927_v56 = vld [vmem:[%s7478_s17 + $0x3548] sm:$0xff]  ;;  %4879 = vmatpush.msra.mxu1 %v1867_v55 }
 0x4a3   : > { %v1995_v57 = vld [vmem:[%s7478_s17 + $0x3768] sm:$0xff]  ;;  %4900 = vmatpush.msra.mxu2 %v1927_v56 }
 0x4a4   : > { %v1795_v58 = vld [vmem:[%s7478_s17 + $0x3128] sm:$0xff]  ;;  %4919 = vmatpush.msra.mxu3 %v1995_v57 }
 0x4a5   : > { %v1863_v59 = vld [vmem:[%s7478_s17 + $0x3348] sm:$0xff]  ;;  %4861 = vmatpush.msra.mxu0 %v1795_v58 }
 0x4a6   : > { %v1923_v60 = vld [vmem:[%s7478_s17 + $0x3528] sm:$0xff]  ;;  %4880 = vmatpush.msra.mxu1 %v1863_v59 }
 0x4a7   : > { %v1991_v61 = vld [vmem:[%s7478_s17 + $0x3748] sm:$0xff]  ;;  %4901 = vmatpush.msra.mxu2 %v1923_v60 }
 0x4a8   : > { %v1791_v2 = vld [vmem:[%s7478_s17 + $0x3108] sm:$0xff]  ;;  %4920 = vmatpush.msra.mxu3 %v1991_v61 }
 0x4a9   : > { %v1859_v11 = vld [vmem:[%s7478_s17 + $0x3328] sm:$0xff]  ;;  %4862 = vmatpush.msra.mxu0 %v1791_v2 }
 0x4aa   : > { %v1919_v12 = vld [vmem:[%s7478_s17 + $0x3508] sm:$0xff]  ;;  %4881 = vmatpush.msra.mxu1 %v1859_v11 }
 0x4ab   : > { %v1987_v13 = vld [vmem:[%s7478_s17 + $0x3728] sm:$0xff]  ;;  %4902 = vmatpush.msra.mxu2 %v1919_v12 }
 0x4ac   : > { %v1787_v16 = vld [vmem:[%s7478_s17 + $0x30e8] sm:$0xff]  ;;  %4921 = vmatpush.msra.mxu3 %v1987_v13 }
 0x4ad   : > { %v1855_v20 = vld [vmem:[%s7478_s17 + $0x3308] sm:$0xff]  ;;  %4863 = vmatpush.msra.mxu0 %v1787_v16 }
 0x4ae   : > { %v1915_v22 = vld [vmem:[%s7478_s17 + $0x34e8] sm:$0xff]  ;;  %4882 = vmatpush.msra.mxu1 %v1855_v20 }
 0x4af   : > { %v1983_v23 = vld [vmem:[%s7478_s17 + $0x3708] sm:$0xff]  ;;  %4903 = vmatpush.msra.mxu2 %v1915_v22 }
 0x4b0   : > { %v1783_v27 = vld [vmem:[%s7478_s17 + $0x30c8] sm:$0xff]  ;;  %4922 = vmatpush.msra.mxu3 %v1983_v23 }
 0x4b1   : > { %v1851_v29 = vld [vmem:[%s7478_s17 + $0x32e8] sm:$0xff]  ;;  %4864 = vmatpush.msra.mxu0 %v1783_v27 }
 0x4b2   : > { %v1911_v32 = vld [vmem:[%s7478_s17 + $0x34c8] sm:$0xff]  ;;  %4883 = vmatpush.msra.mxu1 %v1851_v29 }
 0x4b3   : > { %v1979_v33 = vld [vmem:[%s7478_s17 + $0x36e8] sm:$0xff]  ;;  %4904 = vmatpush.msra.mxu2 %v1911_v32 }
 0x4b4   : > { %v1779_v34 = vld [vmem:[%s7478_s17 + $0x30a8] sm:$0xff]  ;;  %4923 = vmatpush.msra.mxu3 %v1979_v33 }
 0x4b5   : > { %v1847_v35 = vld [vmem:[%s7478_s17 + $0x32c8] sm:$0xff]  ;;  %4865 = vmatpush.msra.mxu0 %v1779_v34 }
 0x4b6   : > { %v1907_v50 = vld [vmem:[%s7478_s17 + $0x34a8] sm:$0xff]  ;;  %4884 = vmatpush.msra.mxu1 %v1847_v35 }
 0x4b7   : > { %v1975_v53 = vld [vmem:[%s7478_s17 + $0x36c8] sm:$0xff]  ;;  %4905 = vmatpush.msra.mxu2 %v1907_v50 }
 0x4b8   : > { %v1775_v54 = vld [vmem:[%s7478_s17 + $0x3088] sm:$0xff]  ;;  %4924 = vmatpush.msra.mxu3 %v1975_v53 }
 0x4b9   : > { %v1843_v55 = vld [vmem:[%s7478_s17 + $0x32a8] sm:$0xff]  ;;  %4866 = vmatpush.msra.mxu0 %v1775_v54 }
 0x4ba   : > { %v1903_v56 = vld [vmem:[%s7478_s17 + $0x3488] sm:$0xff]  ;;  %4885 = vmatpush.msra.mxu1 %v1843_v55 }
 0x4bb   : > { %v1971_v57 = vld [vmem:[%s7478_s17 + $0x36a8] sm:$0xff]  ;;  %4906 = vmatpush.msra.mxu2 %v1903_v56 }
 0x4bc   : > { %v1771_v58 = vld [vmem:[%s7478_s17 + $0x3068] sm:$0xff]  ;;  %4925 = vmatpush.msra.mxu3 %v1971_v57 }
 0x4bd   : > { %v1839_v59 = vld [vmem:[%s7478_s17 + $0x3288] sm:$0xff]  ;;  %4867 = vmatpush.msra.mxu0 %v1771_v58 }
 0x4be   : > { %v1899_v60 = vld [vmem:[%s7478_s17 + $0x3468] sm:$0xff]  ;;  %4886 = vmatpush.msra.mxu1 %v1839_v59 }
 0x4bf   : > { %v1967_v61 = vld [vmem:[%s7478_s17 + $0x3688] sm:$0xff]  ;;  %4907 = vmatpush.msra.mxu2 %v1899_v60 }
 0x4c0   : > { %v1767_v2 = vld [vmem:[%s7478_s17 + $0x3048] sm:$0xff]  ;;  %4926 = vmatpush.msra.mxu3 %v1967_v61 }
 0x4c1   : > { %v1835_v11 = vld [vmem:[%s7478_s17 + $0x3268] sm:$0xff]  ;;  %4868 = vmatpush.msra.mxu0 %v1767_v2 }
 0x4c2   : > { %v1895_v12 = vld [vmem:[%s7478_s17 + $0x3448] sm:$0xff]  ;;  %4887 = vmatpush.msra.mxu1 %v1835_v11 }
 0x4c3   : > { %v1963_v13 = vld [vmem:[%s7478_s17 + $0x3668] sm:$0xff]  ;;  %4908 = vmatpush.msra.mxu2 %v1895_v12 }
 0x4c4   : > { %v1763_v16 = vld [vmem:[%s7478_s17 + $0x3028] sm:$0xff]  ;;  %4927 = vmatpush.msra.mxu3 %v1963_v13 }
 0x4c5   : > { %v1831_v20 = vld [vmem:[%s7478_s17 + $0x3248] sm:$0xff]  ;;  %4869 = vmatpush.msra.mxu0 %v1763_v16 }
 0x4c6   : > { %v1891_v22 = vld [vmem:[%s7478_s17 + $0x3428] sm:$0xff]  ;;  %4888 = vmatpush.msra.mxu1 %v1831_v20 }
 0x4c7   : > { %v1959_v23 = vld [vmem:[%s7478_s17 + $0x3648] sm:$0xff]  ;;  %4909 = vmatpush.msra.mxu2 %v1891_v22 }
 0x4c8   : > { %v1759_v27 = vld [vmem:[%s7478_s17 + $0x3008] sm:$0xff]  ;;  %4928 = vmatpush.msra.mxu3 %v1959_v23 }
 0x4c9   : > { %v1827_v29 = vld [vmem:[%s7478_s17 + $0x3228] sm:$0xff]  ;;  %4870 = vmatpush.msra.mxu0 %v1759_v27 }
 0x4ca   : > { %v1887_v32 = vld [vmem:[%s7478_s17 + $0x3408] sm:$0xff]  ;;  %4889 = vmatpush.msra.mxu1 %v1827_v29  ;;  %4871 = vmatmul.f32.vlgmr.msra.gmra.mxu0 %v8025_v18 }
 0x4cb   : > { %v1955_v33 = vld [vmem:[%s7478_s17 + $0x3628] sm:$0xff]  ;;  %4910 = vmatpush.msra.mxu2 %v1887_v32 }
 0x4cc   : > { %v2075_v34 = vld [vmem:[%s7478_s17 + $0x39e8] sm:$0xff]  ;;  %4929 = vmatpush.msra.mxu3 %v1955_v33  ;;  %4911 = vmatmul.f32.vlgmr.msra.gmra.mxu2 %v8027_v19 }
 0x4cd   : > { %v2203_v35 = vld [vmem:[%s7478_s17 + $0x3de8] sm:$0xff]  ;;  %4935 = vmatpush.msrb.mxu0 %v2075_v34 }
 0x4ce   : > { %v1823_v50 = vld [vmem:[%s7478_s17 + $0x3208] sm:$0xff]  ;;  %4975 = vmatpush.msrb.mxu2 %v2203_v35 }
 0x4cf   : > { %v1951_v53 = vld [vmem:[%s7478_s17 + $0x3608] sm:$0xff]  ;;  %4890 = vmatpush.msra.mxu1 %v1823_v50 }
 0x4d0   : > { %v2071_v54 = vld [vmem:[%s7478_s17 + $0x39c8] sm:$0xff]  ;;  %4930 = vmatpush.msra.mxu3 %v1951_v53  ;;  %4891 = vmatmul.f32.vlgmr.msra.gmra.mxu1 %v8035_v24 }
 0x4d1   : > { %v2139_v55 = vld [vmem:[%s7478_s17 + $0x3be8] sm:$0xff]  ;;  %4931 = vmatmul.f32.vlgmr.msra.gmra.mxu3 %v8037_v25  ;;  %4936 = vmatpush.msrb.mxu0 %v2071_v54 }
 0x4d2   : > { %v2199_v56 = vld [vmem:[%s7478_s17 + $0x3dc8] sm:$0xff]  ;;  %4955 = vmatpush.msrb.mxu1 %v2139_v55 }
 0x4d3   : > { %v2267_v57 = vld [vmem:[%s7478_s17 + $0x3fe8] sm:$0xff]  ;;  %4976 = vmatpush.msrb.mxu2 %v2199_v56 }
 0x4d4   : > { %v2067_v58 = vld [vmem:[%s7478_s17 + $0x39a8] sm:$0xff]  ;;  %4995 = vmatpush.msrb.mxu3 %v2267_v57 }
 0x4d5   : > { %v2135_v59 = vld [vmem:[%s7478_s17 + $0x3bc8] sm:$0xff]  ;;  %4937 = vmatpush.msrb.mxu0 %v2067_v58 }
 0x4d6   : > { %v2195_v60 = vld [vmem:[%s7478_s17 + $0x3da8] sm:$0xff]  ;;  %4956 = vmatpush.msrb.mxu1 %v2135_v59 }
 0x4d7   : > { %v2263_v61 = vld [vmem:[%s7478_s17 + $0x3fc8] sm:$0xff]  ;;  %4977 = vmatpush.msrb.mxu2 %v2195_v60 }
 0x4d8   : > { %v2063_v2 = vld [vmem:[%s7478_s17 + $0x3988] sm:$0xff]  ;;  %4996 = vmatpush.msrb.mxu3 %v2263_v61 }
 0x4d9   : > { %v2131_v11 = vld [vmem:[%s7478_s17 + $0x3ba8] sm:$0xff]  ;;  %4938 = vmatpush.msrb.mxu0 %v2063_v2 }
 0x4da   : > { %v2191_v12 = vld [vmem:[%s7478_s17 + $0x3d88] sm:$0xff]  ;;  %4957 = vmatpush.msrb.mxu1 %v2131_v11 }
 0x4db   : > { %v2259_v13 = vld [vmem:[%s7478_s17 + $0x3fa8] sm:$0xff]  ;;  %4978 = vmatpush.msrb.mxu2 %v2191_v12 }
 0x4dc   : > { %v2059_v16 = vld [vmem:[%s7478_s17 + $0x3968] sm:$0xff]  ;;  %4997 = vmatpush.msrb.mxu3 %v2259_v13 }
 0x4dd   : > { %v2127_v20 = vld [vmem:[%s7478_s17 + $0x3b88] sm:$0xff]  ;;  %4939 = vmatpush.msrb.mxu0 %v2059_v16 }
 0x4de   : > { %v2187_v22 = vld [vmem:[%s7478_s17 + $0x3d68] sm:$0xff]  ;;  %4958 = vmatpush.msrb.mxu1 %v2127_v20 }
 0x4df   : > { %v2255_v23 = vld [vmem:[%s7478_s17 + $0x3f88] sm:$0xff]  ;;  %4979 = vmatpush.msrb.mxu2 %v2187_v22 }
 0x4e0   : > { %v2055_v27 = vld [vmem:[%s7478_s17 + $0x3948] sm:$0xff]  ;;  %4998 = vmatpush.msrb.mxu3 %v2255_v23 }
 0x4e1   : > { %v2123_v29 = vld [vmem:[%s7478_s17 + $0x3b68] sm:$0xff]  ;;  %4940 = vmatpush.msrb.mxu0 %v2055_v27 }
 0x4e2   : > { %v2183_v32 = vld [vmem:[%s7478_s17 + $0x3d48] sm:$0xff]  ;;  %4959 = vmatpush.msrb.mxu1 %v2123_v29 }
 0x4e3   : > { %v2251_v33 = vld [vmem:[%s7478_s17 + $0x3f68] sm:$0xff]  ;;  %4980 = vmatpush.msrb.mxu2 %v2183_v32 }
 0x4e4   : > { %v2051_v34 = vld [vmem:[%s7478_s17 + $0x3928] sm:$0xff]  ;;  %4999 = vmatpush.msrb.mxu3 %v2251_v33 }
 0x4e5   : > { %v2119_v35 = vld [vmem:[%s7478_s17 + $0x3b48] sm:$0xff]  ;;  %4941 = vmatpush.msrb.mxu0 %v2051_v34 }
 0x4e6   : > { %v2179_v50 = vld [vmem:[%s7478_s17 + $0x3d28] sm:$0xff]  ;;  %4960 = vmatpush.msrb.mxu1 %v2119_v35 }
 0x4e7   : > { %v2247_v53 = vld [vmem:[%s7478_s17 + $0x3f48] sm:$0xff]  ;;  %4981 = vmatpush.msrb.mxu2 %v2179_v50 }
 0x4e8   : > { %v2047_v54 = vld [vmem:[%s7478_s17 + $0x3908] sm:$0xff]  ;;  %5000 = vmatpush.msrb.mxu3 %v2247_v53 }
 0x4e9   : > { %v2115_v55 = vld [vmem:[%s7478_s17 + $0x3b28] sm:$0xff]  ;;  %4942 = vmatpush.msrb.mxu0 %v2047_v54 }
 0x4ea   : > { %v2175_v56 = vld [vmem:[%s7478_s17 + $0x3d08] sm:$0xff]  ;;  %4961 = vmatpush.msrb.mxu1 %v2115_v55 }
 0x4eb   : > { %v2243_v57 = vld [vmem:[%s7478_s17 + $0x3f28] sm:$0xff]  ;;  %4982 = vmatpush.msrb.mxu2 %v2175_v56 }
 0x4ec   : > { %v2043_v58 = vld [vmem:[%s7478_s17 + $0x38e8] sm:$0xff]  ;;  %5001 = vmatpush.msrb.mxu3 %v2243_v57 }
 0x4ed   : > { %v2111_v59 = vld [vmem:[%s7478_s17 + $0x3b08] sm:$0xff]  ;;  %4943 = vmatpush.msrb.mxu0 %v2043_v58 }
 0x4ee   : > { %v2171_v60 = vld [vmem:[%s7478_s17 + $0x3ce8] sm:$0xff]  ;;  %4962 = vmatpush.msrb.mxu1 %v2111_v59 }
 0x4ef   : > { %v2239_v61 = vld [vmem:[%s7478_s17 + $0x3f08] sm:$0xff]  ;;  %4983 = vmatpush.msrb.mxu2 %v2171_v60 }
 0x4f0   : > { %v2039_v2 = vld [vmem:[%s7478_s17 + $0x38c8] sm:$0xff]  ;;  %5002 = vmatpush.msrb.mxu3 %v2239_v61 }
 0x4f1   : > { %v2107_v11 = vld [vmem:[%s7478_s17 + $0x3ae8] sm:$0xff]  ;;  %4944 = vmatpush.msrb.mxu0 %v2039_v2 }
 0x4f2   : > { %v2167_v12 = vld [vmem:[%s7478_s17 + $0x3cc8] sm:$0xff]  ;;  %4963 = vmatpush.msrb.mxu1 %v2107_v11 }
 0x4f3   : > { %v2235_v13 = vld [vmem:[%s7478_s17 + $0x3ee8] sm:$0xff]  ;;  %4984 = vmatpush.msrb.mxu2 %v2167_v12 }
 0x4f4   : > { %v2035_v16 = vld [vmem:[%s7478_s17 + $0x38a8] sm:$0xff]  ;;  %5003 = vmatpush.msrb.mxu3 %v2235_v13 }
 0x4f5   : > { %v2103_v20 = vld [vmem:[%s7478_s17 + $0x3ac8] sm:$0xff]  ;;  %4945 = vmatpush.msrb.mxu0 %v2035_v16 }
 0x4f6   : > { %v2163_v22 = vld [vmem:[%s7478_s17 + $0x3ca8] sm:$0xff]  ;;  %4964 = vmatpush.msrb.mxu1 %v2103_v20 }
 0x4f7   : > { %v2231_v23 = vld [vmem:[%s7478_s17 + $0x3ec8] sm:$0xff]  ;;  %4985 = vmatpush.msrb.mxu2 %v2163_v22 }
 0x4f8   : > { %v2031_v27 = vld [vmem:[%s7478_s17 + $0x3888] sm:$0xff]  ;;  %5004 = vmatpush.msrb.mxu3 %v2231_v23 }
 0x4f9   : > { %v2099_v29 = vld [vmem:[%s7478_s17 + $0x3aa8] sm:$0xff]  ;;  %4946 = vmatpush.msrb.mxu0 %v2031_v27 }
 0x4fa   : > { %v2159_v32 = vld [vmem:[%s7478_s17 + $0x3c88] sm:$0xff]  ;;  %4965 = vmatpush.msrb.mxu1 %v2099_v29 }
 0x4fb   : > { %v2227_v33 = vld [vmem:[%s7478_s17 + $0x3ea8] sm:$0xff]  ;;  %4986 = vmatpush.msrb.mxu2 %v2159_v32 }
 0x4fc   : > { %v2027_v34 = vld [vmem:[%s7478_s17 + $0x3868] sm:$0xff]  ;;  %5005 = vmatpush.msrb.mxu3 %v2227_v33 }
 0x4fd   : > { %v2095_v35 = vld [vmem:[%s7478_s17 + $0x3a88] sm:$0xff]  ;;  %4947 = vmatpush.msrb.mxu0 %v2027_v34 }
 0x4fe   : > { %v2155_v50 = vld [vmem:[%s7478_s17 + $0x3c68] sm:$0xff]  ;;  %4966 = vmatpush.msrb.mxu1 %v2095_v35 }
 0x4ff   : > { %v2223_v53 = vld [vmem:[%s7478_s17 + $0x3e88] sm:$0xff]  ;;  %4987 = vmatpush.msrb.mxu2 %v2155_v50 }
 0x500   : > { %v2023_v54 = vld [vmem:[%s7478_s17 + $0x3848] sm:$0xff]  ;;  %5006 = vmatpush.msrb.mxu3 %v2223_v53 }
 0x501   : > { %v2091_v55 = vld [vmem:[%s7478_s17 + $0x3a68] sm:$0xff]  ;;  %4948 = vmatpush.msrb.mxu0 %v2023_v54 }
 0x502   : > { %v2151_v56 = vld [vmem:[%s7478_s17 + $0x3c48] sm:$0xff]  ;;  %4967 = vmatpush.msrb.mxu1 %v2091_v55 }
 0x503   : > { %v2219_v57 = vld [vmem:[%s7478_s17 + $0x3e68] sm:$0xff]  ;;  %4988 = vmatpush.msrb.mxu2 %v2151_v56 }
 0x504   : > { %v2019_v58 = vld [vmem:[%s7478_s17 + $0x3828] sm:$0xff]  ;;  %5007 = vmatpush.msrb.mxu3 %v2219_v57 }
 0x505   : > { %v2087_v59 = vld [vmem:[%s7478_s17 + $0x3a48] sm:$0xff]  ;;  %4949 = vmatpush.msrb.mxu0 %v2019_v58 }
 0x506   : > { %v2147_v60 = vld [vmem:[%s7478_s17 + $0x3c28] sm:$0xff]  ;;  %4968 = vmatpush.msrb.mxu1 %v2087_v59 }
 0x507   : > { %v2215_v61 = vld [vmem:[%s7478_s17 + $0x3e48] sm:$0xff]  ;;  %4989 = vmatpush.msrb.mxu2 %v2147_v60 }
 0x508   : > { %v2015_v2 = vld [vmem:[%s7478_s17 + $0x3808] sm:$0xff]  ;;  %5008 = vmatpush.msrb.mxu3 %v2215_v61 }
 0x509   : > { %v2083_v11 = vld [vmem:[%s7478_s17 + $0x3a28] sm:$0xff]  ;;  %4950 = vmatpush.msrb.mxu0 %v2015_v2 }
 0x50a   : > { %v2143_v12 = vld [vmem:[%s7478_s17 + $0x3c08] sm:$0xff]  ;;  %4969 = vmatpush.msrb.mxu1 %v2083_v11  ;;  %4951 = vmatmul.f32.vlgmr.msrb.gmra.mxu0 %v8102_v7 }
 0x50b   : > { %v2211_v13 = vld [vmem:[%s7478_s17 + $0x3e28] sm:$0xff]  ;;  %4990 = vmatpush.msrb.mxu2 %v2143_v12 }
 0x50c   : > { %v2331_v16 = vld [vmem:[%s7478_s17 + $0x41e8] sm:$0xff]  ;;  %5009 = vmatpush.msrb.mxu3 %v2211_v13  ;;  %4991 = vmatmul.f32.vlgmr.msrb.gmra.mxu2 %v8104_v10 }
 0x50d   : > { %v2459_v20 = vld [vmem:[%s7478_s17 + $0x45e8] sm:$0xff]  ;;  %5015 = vmatpush.msra.mxu0 %v2331_v16 }
 0x50e   : > { %v2079_v22 = vld [vmem:[%s7478_s17 + $0x3a08] sm:$0xff]  ;;  %5055 = vmatpush.msra.mxu2 %v2459_v20 }
 0x50f   : > { %v2207_v23 = vld [vmem:[%s7478_s17 + $0x3e08] sm:$0xff]  ;;  %4970 = vmatpush.msrb.mxu1 %v2079_v22 }
 0x510   : > { %v2327_v27 = vld [vmem:[%s7478_s17 + $0x41c8] sm:$0xff]  ;;  %5010 = vmatpush.msrb.mxu3 %v2207_v23  ;;  %4971 = vmatmul.f32.vlgmr.msrb.gmra.mxu1 %v8110_v17 }
 0x511   : > { %v2395_v29 = vld [vmem:[%s7478_s17 + $0x43e8] sm:$0xff]  ;;  %5011 = vmatmul.f32.vlgmr.msrb.gmra.mxu3 %v8115_v21  ;;  %5016 = vmatpush.msra.mxu0 %v2327_v27 }
 0x512   : > { %v2455_v32 = vld [vmem:[%s7478_s17 + $0x45c8] sm:$0xff]  ;;  %5035 = vmatpush.msra.mxu1 %v2395_v29 }
 0x513   : > { %v2523_v33 = vld [vmem:[%s7478_s17 + $0x47e8] sm:$0xff]  ;;  %5056 = vmatpush.msra.mxu2 %v2455_v32 }
 0x514   : > { %v2323_v34 = vld [vmem:[%s7478_s17 + $0x41a8] sm:$0xff]  ;;  %5075 = vmatpush.msra.mxu3 %v2523_v33 }
 0x515   : > { %v2391_v35 = vld [vmem:[%s7478_s17 + $0x43c8] sm:$0xff]  ;;  %5017 = vmatpush.msra.mxu0 %v2323_v34 }
 0x516   : > { %v2451_v50 = vld [vmem:[%s7478_s17 + $0x45a8] sm:$0xff]  ;;  %5036 = vmatpush.msra.mxu1 %v2391_v35 }
 0x517   : > { %v2519_v53 = vld [vmem:[%s7478_s17 + $0x47c8] sm:$0xff]  ;;  %5057 = vmatpush.msra.mxu2 %v2451_v50 }
 0x518   : > { %v2319_v54 = vld [vmem:[%s7478_s17 + $0x4188] sm:$0xff]  ;;  %5076 = vmatpush.msra.mxu3 %v2519_v53 }
 0x519   : > { %v2387_v55 = vld [vmem:[%s7478_s17 + $0x43a8] sm:$0xff]  ;;  %5018 = vmatpush.msra.mxu0 %v2319_v54 }
 0x51a   : > { %v2447_v56 = vld [vmem:[%s7478_s17 + $0x4588] sm:$0xff]  ;;  %5037 = vmatpush.msra.mxu1 %v2387_v55 }
 0x51b   : > { %v2515_v57 = vld [vmem:[%s7478_s17 + $0x47a8] sm:$0xff]  ;;  %5058 = vmatpush.msra.mxu2 %v2447_v56 }
 0x51c   : > { %v2315_v58 = vld [vmem:[%s7478_s17 + $0x4168] sm:$0xff]  ;;  %5077 = vmatpush.msra.mxu3 %v2515_v57 }
 0x51d   : > { %v2383_v59 = vld [vmem:[%s7478_s17 + $0x4388] sm:$0xff]  ;;  %5019 = vmatpush.msra.mxu0 %v2315_v58 }
 0x51e   : > { %v2443_v60 = vld [vmem:[%s7478_s17 + $0x4568] sm:$0xff]  ;;  %5038 = vmatpush.msra.mxu1 %v2383_v59 }
 0x51f   : > { %v2511_v61 = vld [vmem:[%s7478_s17 + $0x4788] sm:$0xff]  ;;  %5059 = vmatpush.msra.mxu2 %v2443_v60 }
 0x520   : > { %v2311_v2 = vld [vmem:[%s7478_s17 + $0x4148] sm:$0xff]  ;;  %5078 = vmatpush.msra.mxu3 %v2511_v61 }
 0x521   : > { %v2379_v11 = vld [vmem:[%s7478_s17 + $0x4368] sm:$0xff]  ;;  %5020 = vmatpush.msra.mxu0 %v2311_v2 }
 0x522   : > { %v2439_v12 = vld [vmem:[%s7478_s17 + $0x4548] sm:$0xff]  ;;  %5039 = vmatpush.msra.mxu1 %v2379_v11 }
 0x523   : > { %v2507_v13 = vld [vmem:[%s7478_s17 + $0x4768] sm:$0xff]  ;;  %5060 = vmatpush.msra.mxu2 %v2439_v12 }
 0x524   : > { %v2307_v16 = vld [vmem:[%s7478_s17 + $0x4128] sm:$0xff]  ;;  %5079 = vmatpush.msra.mxu3 %v2507_v13 }
 0x525   : > { %v2375_v20 = vld [vmem:[%s7478_s17 + $0x4348] sm:$0xff]  ;;  %5021 = vmatpush.msra.mxu0 %v2307_v16 }
 0x526   : > { %v2435_v22 = vld [vmem:[%s7478_s17 + $0x4528] sm:$0xff]  ;;  %5040 = vmatpush.msra.mxu1 %v2375_v20 }
 0x527   : > { %v2503_v23 = vld [vmem:[%s7478_s17 + $0x4748] sm:$0xff]  ;;  %5061 = vmatpush.msra.mxu2 %v2435_v22 }
 0x528   : > { %v2303_v27 = vld [vmem:[%s7478_s17 + $0x4108] sm:$0xff]  ;;  %5080 = vmatpush.msra.mxu3 %v2503_v23 }
 0x529   : > { %v2371_v29 = vld [vmem:[%s7478_s17 + $0x4328] sm:$0xff]  ;;  %5022 = vmatpush.msra.mxu0 %v2303_v27 }
 0x52a   : > { %v2431_v32 = vld [vmem:[%s7478_s17 + $0x4508] sm:$0xff]  ;;  %5041 = vmatpush.msra.mxu1 %v2371_v29 }
 0x52b   : > { %v2499_v33 = vld [vmem:[%s7478_s17 + $0x4728] sm:$0xff]  ;;  %5062 = vmatpush.msra.mxu2 %v2431_v32 }
 0x52c   : > { %v2299_v34 = vld [vmem:[%s7478_s17 + $0x40e8] sm:$0xff]  ;;  %5081 = vmatpush.msra.mxu3 %v2499_v33 }
 0x52d   : > { %v2367_v35 = vld [vmem:[%s7478_s17 + $0x4308] sm:$0xff]  ;;  %5023 = vmatpush.msra.mxu0 %v2299_v34 }
 0x52e   : > { %v2427_v50 = vld [vmem:[%s7478_s17 + $0x44e8] sm:$0xff]  ;;  %5042 = vmatpush.msra.mxu1 %v2367_v35 }
 0x52f   : > { %v2495_v53 = vld [vmem:[%s7478_s17 + $0x4708] sm:$0xff]  ;;  %5063 = vmatpush.msra.mxu2 %v2427_v50 }
 0x530   : > { %v2295_v54 = vld [vmem:[%s7478_s17 + $0x40c8] sm:$0xff]  ;;  %5082 = vmatpush.msra.mxu3 %v2495_v53 }
 0x531   : > { %v2363_v55 = vld [vmem:[%s7478_s17 + $0x42e8] sm:$0xff]  ;;  %5024 = vmatpush.msra.mxu0 %v2295_v54 }
 0x532   : > { %v2423_v56 = vld [vmem:[%s7478_s17 + $0x44c8] sm:$0xff]  ;;  %5043 = vmatpush.msra.mxu1 %v2363_v55 }
 0x533   : > { %v2491_v57 = vld [vmem:[%s7478_s17 + $0x46e8] sm:$0xff]  ;;  %5064 = vmatpush.msra.mxu2 %v2423_v56 }
 0x534   : > { %v2291_v58 = vld [vmem:[%s7478_s17 + $0x40a8] sm:$0xff]  ;;  %5083 = vmatpush.msra.mxu3 %v2491_v57 }
 0x535   : > { %v2359_v59 = vld [vmem:[%s7478_s17 + $0x42c8] sm:$0xff]  ;;  %5025 = vmatpush.msra.mxu0 %v2291_v58 }
 0x536   : > { %v2419_v60 = vld [vmem:[%s7478_s17 + $0x44a8] sm:$0xff]  ;;  %5044 = vmatpush.msra.mxu1 %v2359_v59 }
 0x537   : > { %v2487_v61 = vld [vmem:[%s7478_s17 + $0x46c8] sm:$0xff]  ;;  %5065 = vmatpush.msra.mxu2 %v2419_v60 }
 0x538   : > { %v2287_v2 = vld [vmem:[%s7478_s17 + $0x4088] sm:$0xff]  ;;  %5084 = vmatpush.msra.mxu3 %v2487_v61 }
 0x539   : > { %v2355_v11 = vld [vmem:[%s7478_s17 + $0x42a8] sm:$0xff]  ;;  %5026 = vmatpush.msra.mxu0 %v2287_v2 }
 0x53a   : > { %v2415_v12 = vld [vmem:[%s7478_s17 + $0x4488] sm:$0xff]  ;;  %5045 = vmatpush.msra.mxu1 %v2355_v11 }
 0x53b   : > { %v2483_v13 = vld [vmem:[%s7478_s17 + $0x46a8] sm:$0xff]  ;;  %5066 = vmatpush.msra.mxu2 %v2415_v12 }
 0x53c   : > { %v2283_v16 = vld [vmem:[%s7478_s17 + $0x4068] sm:$0xff]  ;;  %5085 = vmatpush.msra.mxu3 %v2483_v13 }
 0x53d   : > { %v2351_v20 = vld [vmem:[%s7478_s17 + $0x4288] sm:$0xff]  ;;  %5027 = vmatpush.msra.mxu0 %v2283_v16 }
 0x53e   : > { %v2411_v22 = vld [vmem:[%s7478_s17 + $0x4468] sm:$0xff]  ;;  %5046 = vmatpush.msra.mxu1 %v2351_v20 }
 0x53f   : > { %v2479_v23 = vld [vmem:[%s7478_s17 + $0x4688] sm:$0xff]  ;;  %5067 = vmatpush.msra.mxu2 %v2411_v22 }
 0x540   : > { %v2279_v27 = vld [vmem:[%s7478_s17 + $0x4048] sm:$0xff]  ;;  %5086 = vmatpush.msra.mxu3 %v2479_v23 }
 0x541   : > { %v2347_v29 = vld [vmem:[%s7478_s17 + $0x4268] sm:$0xff]  ;;  %5028 = vmatpush.msra.mxu0 %v2279_v27 }
 0x542   : > { %v2407_v32 = vld [vmem:[%s7478_s17 + $0x4448] sm:$0xff]  ;;  %5047 = vmatpush.msra.mxu1 %v2347_v29 }
 0x543   : > { %v2475_v33 = vld [vmem:[%s7478_s17 + $0x4668] sm:$0xff]  ;;  %5068 = vmatpush.msra.mxu2 %v2407_v32 }
 0x544   : > { %v2275_v34 = vld [vmem:[%s7478_s17 + $0x4028] sm:$0xff]  ;;  %5087 = vmatpush.msra.mxu3 %v2475_v33 }
 0x545   : > { %v2343_v35 = vld [vmem:[%s7478_s17 + $0x4248] sm:$0xff]  ;;  %5029 = vmatpush.msra.mxu0 %v2275_v34 }
 0x546   : > { %v2403_v50 = vld [vmem:[%s7478_s17 + $0x4428] sm:$0xff]  ;;  %5048 = vmatpush.msra.mxu1 %v2343_v35 }
 0x547   : > { %v2471_v53 = vld [vmem:[%s7478_s17 + $0x4648] sm:$0xff]  ;;  %5069 = vmatpush.msra.mxu2 %v2403_v50 }
 0x548   : > { %v2271_v54 = vld [vmem:[%s7478_s17 + $0x4008] sm:$0xff]  ;;  %5088 = vmatpush.msra.mxu3 %v2471_v53 }
 0x549   : > { %v2339_v55 = vld [vmem:[%s7478_s17 + $0x4228] sm:$0xff]  ;;  %5030 = vmatpush.msra.mxu0 %v2271_v54 }
 0x54a   : > { %v2399_v56 = vld [vmem:[%s7478_s17 + $0x4408] sm:$0xff]  ;;  %5049 = vmatpush.msra.mxu1 %v2339_v55  ;;  %5031 = vmatmul.f32.vlgmr.msra.gmra.mxu0 %v8127_v36 }
 0x54b   : > { %v2467_v57 = vld [vmem:[%s7478_s17 + $0x4628] sm:$0xff]  ;;  %5070 = vmatpush.msra.mxu2 %v2399_v56 }
 0x54c   : > { %v2587_v58 = vld [vmem:[%s7478_s17 + $0x49e8] sm:$0xff]  ;;  %5089 = vmatpush.msra.mxu3 %v2467_v57  ;;  %5071 = vmatmul.f32.vlgmr.msra.gmra.mxu2 %v8129_v39 }
 0x54d   : > { %v2715_v59 = vld [vmem:[%s7478_s17 + $0x4de8] sm:$0xff]  ;;  %5095 = vmatpush.msrb.mxu0 %v2587_v58 }
 0x54e   : > { %v2335_v60 = vld [vmem:[%s7478_s17 + $0x4208] sm:$0xff]  ;;  %5135 = vmatpush.msrb.mxu2 %v2715_v59 }
 0x54f   : > { %v2463_v61 = vld [vmem:[%s7478_s17 + $0x4608] sm:$0xff]  ;;  %5050 = vmatpush.msra.mxu1 %v2335_v60 }
 0x550   : > { %v2583_v2 = vld [vmem:[%s7478_s17 + $0x49c8] sm:$0xff]  ;;  %5090 = vmatpush.msra.mxu3 %v2463_v61  ;;  %5051 = vmatmul.f32.vlgmr.msra.gmra.mxu1 %v8131_v47 }
 0x551   : > { %v2651_v11 = vld [vmem:[%s7478_s17 + $0x4be8] sm:$0xff]  ;;  %5091 = vmatmul.f32.vlgmr.msra.gmra.mxu3 %v8133_v48  ;;  %5096 = vmatpush.msrb.mxu0 %v2583_v2 }
 0x552   : > { %v2711_v12 = vld [vmem:[%s7478_s17 + $0x4dc8] sm:$0xff]  ;;  %5115 = vmatpush.msrb.mxu1 %v2651_v11 }
 0x553   : > { %v2779_v13 = vld [vmem:[%s7478_s17 + $0x4fe8] sm:$0xff]  ;;  %5136 = vmatpush.msrb.mxu2 %v2711_v12 }
 0x554   : > { %v2579_v16 = vld [vmem:[%s7478_s17 + $0x49a8] sm:$0xff]  ;;  %5155 = vmatpush.msrb.mxu3 %v2779_v13 }
 0x555   : > { %v2647_v20 = vld [vmem:[%s7478_s17 + $0x4bc8] sm:$0xff]  ;;  %5097 = vmatpush.msrb.mxu0 %v2579_v16 }
 0x556   : > { %v2707_v22 = vld [vmem:[%s7478_s17 + $0x4da8] sm:$0xff]  ;;  %5116 = vmatpush.msrb.mxu1 %v2647_v20 }
 0x557   : > { %v2775_v23 = vld [vmem:[%s7478_s17 + $0x4fc8] sm:$0xff]  ;;  %5137 = vmatpush.msrb.mxu2 %v2707_v22 }
 0x558   : > { %v2575_v27 = vld [vmem:[%s7478_s17 + $0x4988] sm:$0xff]  ;;  %5156 = vmatpush.msrb.mxu3 %v2775_v23 }
 0x559   : > { %v2643_v29 = vld [vmem:[%s7478_s17 + $0x4ba8] sm:$0xff]  ;;  %5098 = vmatpush.msrb.mxu0 %v2575_v27 }
 0x55a   : > { %v2703_v32 = vld [vmem:[%s7478_s17 + $0x4d88] sm:$0xff]  ;;  %5117 = vmatpush.msrb.mxu1 %v2643_v29 }
 0x55b   : > { %v2771_v33 = vld [vmem:[%s7478_s17 + $0x4fa8] sm:$0xff]  ;;  %5138 = vmatpush.msrb.mxu2 %v2703_v32 }
 0x55c   : > { %v2571_v34 = vld [vmem:[%s7478_s17 + $0x4968] sm:$0xff]  ;;  %5157 = vmatpush.msrb.mxu3 %v2771_v33 }
 0x55d   : > { %v2639_v35 = vld [vmem:[%s7478_s17 + $0x4b88] sm:$0xff]  ;;  %5099 = vmatpush.msrb.mxu0 %v2571_v34 }
 0x55e   : > { %v2699_v50 = vld [vmem:[%s7478_s17 + $0x4d68] sm:$0xff]  ;;  %5118 = vmatpush.msrb.mxu1 %v2639_v35 }
 0x55f   : > { %v2767_v53 = vld [vmem:[%s7478_s17 + $0x4f88] sm:$0xff]  ;;  %5139 = vmatpush.msrb.mxu2 %v2699_v50 }
 0x560   : > { %v2567_v54 = vld [vmem:[%s7478_s17 + $0x4948] sm:$0xff]  ;;  %5158 = vmatpush.msrb.mxu3 %v2767_v53 }
 0x561   : > { %v2635_v55 = vld [vmem:[%s7478_s17 + $0x4b68] sm:$0xff]  ;;  %5100 = vmatpush.msrb.mxu0 %v2567_v54 }
 0x562   : > { %v2695_v56 = vld [vmem:[%s7478_s17 + $0x4d48] sm:$0xff]  ;;  %5119 = vmatpush.msrb.mxu1 %v2635_v55 }
 0x563   : > { %v2763_v57 = vld [vmem:[%s7478_s17 + $0x4f68] sm:$0xff]  ;;  %5140 = vmatpush.msrb.mxu2 %v2695_v56 }
 0x564   : > { %v2563_v58 = vld [vmem:[%s7478_s17 + $0x4928] sm:$0xff]  ;;  %5159 = vmatpush.msrb.mxu3 %v2763_v57 }
 0x565   : > { %v2631_v59 = vld [vmem:[%s7478_s17 + $0x4b48] sm:$0xff]  ;;  %5101 = vmatpush.msrb.mxu0 %v2563_v58 }
 0x566   : > { %v2691_v60 = vld [vmem:[%s7478_s17 + $0x4d28] sm:$0xff]  ;;  %5120 = vmatpush.msrb.mxu1 %v2631_v59 }
 0x567   : > { %v2759_v61 = vld [vmem:[%s7478_s17 + $0x4f48] sm:$0xff]  ;;  %5141 = vmatpush.msrb.mxu2 %v2691_v60 }
 0x568   : > { %v2559_v2 = vld [vmem:[%s7478_s17 + $0x4908] sm:$0xff]  ;;  %5160 = vmatpush.msrb.mxu3 %v2759_v61 }
 0x569   : > { %v2627_v11 = vld [vmem:[%s7478_s17 + $0x4b28] sm:$0xff]  ;;  %5102 = vmatpush.msrb.mxu0 %v2559_v2 }
 0x56a   : > { %v2687_v12 = vld [vmem:[%s7478_s17 + $0x4d08] sm:$0xff]  ;;  %5121 = vmatpush.msrb.mxu1 %v2627_v11 }
 0x56b   : > { %v2755_v13 = vld [vmem:[%s7478_s17 + $0x4f28] sm:$0xff]  ;;  %5142 = vmatpush.msrb.mxu2 %v2687_v12 }
 0x56c   : > { %v2555_v16 = vld [vmem:[%s7478_s17 + $0x48e8] sm:$0xff]  ;;  %5161 = vmatpush.msrb.mxu3 %v2755_v13 }
 0x56d   : > { %v2623_v20 = vld [vmem:[%s7478_s17 + $0x4b08] sm:$0xff]  ;;  %5103 = vmatpush.msrb.mxu0 %v2555_v16 }
 0x56e   : > { %v2683_v22 = vld [vmem:[%s7478_s17 + $0x4ce8] sm:$0xff]  ;;  %5122 = vmatpush.msrb.mxu1 %v2623_v20 }
 0x56f   : > { %v2751_v23 = vld [vmem:[%s7478_s17 + $0x4f08] sm:$0xff]  ;;  %5143 = vmatpush.msrb.mxu2 %v2683_v22 }
 0x570   : > { %v2551_v27 = vld [vmem:[%s7478_s17 + $0x48c8] sm:$0xff]  ;;  %5162 = vmatpush.msrb.mxu3 %v2751_v23 }
 0x571   : > { %v2619_v29 = vld [vmem:[%s7478_s17 + $0x4ae8] sm:$0xff]  ;;  %5104 = vmatpush.msrb.mxu0 %v2551_v27 }
 0x572   : > { %v2679_v32 = vld [vmem:[%s7478_s17 + $0x4cc8] sm:$0xff]  ;;  %5123 = vmatpush.msrb.mxu1 %v2619_v29 }
 0x573   : > { %v2747_v33 = vld [vmem:[%s7478_s17 + $0x4ee8] sm:$0xff]  ;;  %5144 = vmatpush.msrb.mxu2 %v2679_v32 }
 0x574   : > { %v2547_v34 = vld [vmem:[%s7478_s17 + $0x48a8] sm:$0xff]  ;;  %5163 = vmatpush.msrb.mxu3 %v2747_v33 }
 0x575   : > { %v2615_v35 = vld [vmem:[%s7478_s17 + $0x4ac8] sm:$0xff]  ;;  %5105 = vmatpush.msrb.mxu0 %v2547_v34 }
 0x576   : > { %v2675_v50 = vld [vmem:[%s7478_s17 + $0x4ca8] sm:$0xff]  ;;  %5124 = vmatpush.msrb.mxu1 %v2615_v35 }
 0x577   : > { %v2743_v53 = vld [vmem:[%s7478_s17 + $0x4ec8] sm:$0xff]  ;;  %5145 = vmatpush.msrb.mxu2 %v2675_v50 }
 0x578   : > { %v2543_v54 = vld [vmem:[%s7478_s17 + $0x4888] sm:$0xff]  ;;  %5164 = vmatpush.msrb.mxu3 %v2743_v53 }
 0x579   : > { %v2611_v55 = vld [vmem:[%s7478_s17 + $0x4aa8] sm:$0xff]  ;;  %5106 = vmatpush.msrb.mxu0 %v2543_v54 }
 0x57a   : > { %v2671_v56 = vld [vmem:[%s7478_s17 + $0x4c88] sm:$0xff]  ;;  %5125 = vmatpush.msrb.mxu1 %v2611_v55 }
 0x57b   : > { %v2739_v57 = vld [vmem:[%s7478_s17 + $0x4ea8] sm:$0xff]  ;;  %5146 = vmatpush.msrb.mxu2 %v2671_v56 }
 0x57c   : > { %v2539_v58 = vld [vmem:[%s7478_s17 + $0x4868] sm:$0xff]  ;;  %5165 = vmatpush.msrb.mxu3 %v2739_v57 }
 0x57d   : > { %v2607_v59 = vld [vmem:[%s7478_s17 + $0x4a88] sm:$0xff]  ;;  %5107 = vmatpush.msrb.mxu0 %v2539_v58 }
 0x57e   : > { %v2667_v60 = vld [vmem:[%s7478_s17 + $0x4c68] sm:$0xff]  ;;  %5126 = vmatpush.msrb.mxu1 %v2607_v59 }
 0x57f   : > { %v2735_v61 = vld [vmem:[%s7478_s17 + $0x4e88] sm:$0xff]  ;;  %5147 = vmatpush.msrb.mxu2 %v2667_v60 }
 0x580   : > { %v2535_v2 = vld [vmem:[%s7478_s17 + $0x4848] sm:$0xff]  ;;  %5166 = vmatpush.msrb.mxu3 %v2735_v61 }
 0x581   : > { %v2603_v11 = vld [vmem:[%s7478_s17 + $0x4a68] sm:$0xff]  ;;  %5108 = vmatpush.msrb.mxu0 %v2535_v2 }
 0x582   : > { %v2663_v12 = vld [vmem:[%s7478_s17 + $0x4c48] sm:$0xff]  ;;  %5127 = vmatpush.msrb.mxu1 %v2603_v11 }
 0x583   : > { %v2731_v13 = vld [vmem:[%s7478_s17 + $0x4e68] sm:$0xff]  ;;  %5148 = vmatpush.msrb.mxu2 %v2663_v12 }
 0x584   : > { %v2531_v16 = vld [vmem:[%s7478_s17 + $0x4828] sm:$0xff]  ;;  %5167 = vmatpush.msrb.mxu3 %v2731_v13 }
 0x585   : > { %v2599_v20 = vld [vmem:[%s7478_s17 + $0x4a48] sm:$0xff]  ;;  %5109 = vmatpush.msrb.mxu0 %v2531_v16 }
 0x586   : > { %v2659_v22 = vld [vmem:[%s7478_s17 + $0x4c28] sm:$0xff]  ;;  %5128 = vmatpush.msrb.mxu1 %v2599_v20 }
 0x587   : > { %v2727_v23 = vld [vmem:[%s7478_s17 + $0x4e48] sm:$0xff]  ;;  %5149 = vmatpush.msrb.mxu2 %v2659_v22 }
 0x588   : > { %v2527_v27 = vld [vmem:[%s7478_s17 + $0x4808] sm:$0xff]  ;;  %5168 = vmatpush.msrb.mxu3 %v2727_v23 }
 0x589   : > { %v2595_v29 = vld [vmem:[%s7478_s17 + $0x4a28] sm:$0xff]  ;;  %5110 = vmatpush.msrb.mxu0 %v2527_v27 }
 0x58a   : > { %v2655_v32 = vld [vmem:[%s7478_s17 + $0x4c08] sm:$0xff]  ;;  %5129 = vmatpush.msrb.mxu1 %v2595_v29  ;;  %5111 = vmatmul.f32.vlgmr.msrb.gmra.mxu0 %v8205_v62 }
 0x58b   : > { %v2723_v33 = vld [vmem:[%s7478_s17 + $0x4e28] sm:$0xff]  ;;  %5150 = vmatpush.msrb.mxu2 %v2655_v32 }
 0x58c   : > { %v2843_v34 = vld [vmem:[%s7478_s17 + $0x51e8] sm:$0xff]  ;;  %5169 = vmatpush.msrb.mxu3 %v2723_v33  ;;  %5151 = vmatmul.f32.vlgmr.msrb.gmra.mxu2 %v8207_v63 }
 0x58d   : > { %v2971_v35 = vld [vmem:[%s7478_s17 + $0x55e8] sm:$0xff]  ;;  %5175 = vmatpush.msra.mxu0 %v2843_v34 }
 0x58e   : > { %v2591_v50 = vld [vmem:[%s7478_s17 + $0x4a08] sm:$0xff]  ;;  %5215 = vmatpush.msra.mxu2 %v2971_v35 }
 0x58f   : > { %v2719_v53 = vld [vmem:[%s7478_s17 + $0x4e08] sm:$0xff]  ;;  %5130 = vmatpush.msrb.mxu1 %v2591_v50 }
 0x590   : > { %v2839_v54 = vld [vmem:[%s7478_s17 + $0x51c8] sm:$0xff]  ;;  %5170 = vmatpush.msrb.mxu3 %v2719_v53  ;;  %5131 = vmatmul.f32.vlgmr.msrb.gmra.mxu1 %v8209_v0 }
 0x591   : > { %v2907_v55 = vld [vmem:[%s7478_s17 + $0x53e8] sm:$0xff]  ;;  %5171 = vmatmul.f32.vlgmr.msrb.gmra.mxu3 %v8211_v1  ;;  %5176 = vmatpush.msra.mxu0 %v2839_v54 }
 0x592   : > { %v2967_v56 = vld [vmem:[%s7478_s17 + $0x55c8] sm:$0xff]  ;;  %5195 = vmatpush.msra.mxu1 %v2907_v55 }
 0x593   : > { %v3035_v57 = vld [vmem:[%s7478_s17 + $0x57e8] sm:$0xff]  ;;  %5216 = vmatpush.msra.mxu2 %v2967_v56 }
 0x594   : > { %v2835_v58 = vld [vmem:[%s7478_s17 + $0x51a8] sm:$0xff]  ;;  %5235 = vmatpush.msra.mxu3 %v3035_v57 }
 0x595   : > { %v2903_v59 = vld [vmem:[%s7478_s17 + $0x53c8] sm:$0xff]  ;;  %5177 = vmatpush.msra.mxu0 %v2835_v58 }
 0x596   : > { %v2963_v60 = vld [vmem:[%s7478_s17 + $0x55a8] sm:$0xff]  ;;  %5196 = vmatpush.msra.mxu1 %v2903_v59 }
 0x597   : > { %v3031_v61 = vld [vmem:[%s7478_s17 + $0x57c8] sm:$0xff]  ;;  %5217 = vmatpush.msra.mxu2 %v2963_v60 }
 0x598   : > { %v2831_v2 = vld [vmem:[%s7478_s17 + $0x5188] sm:$0xff]  ;;  %5236 = vmatpush.msra.mxu3 %v3031_v61 }
 0x599   : > { %v2899_v11 = vld [vmem:[%s7478_s17 + $0x53a8] sm:$0xff]  ;;  %5178 = vmatpush.msra.mxu0 %v2831_v2 }
 0x59a   : > { %v2959_v12 = vld [vmem:[%s7478_s17 + $0x5588] sm:$0xff]  ;;  %5197 = vmatpush.msra.mxu1 %v2899_v11 }
 0x59b   : > { %v3027_v13 = vld [vmem:[%s7478_s17 + $0x57a8] sm:$0xff]  ;;  %5218 = vmatpush.msra.mxu2 %v2959_v12 }
 0x59c   : > { %v2827_v16 = vld [vmem:[%s7478_s17 + $0x5168] sm:$0xff]  ;;  %5237 = vmatpush.msra.mxu3 %v3027_v13 }
 0x59d   : > { %v2895_v20 = vld [vmem:[%s7478_s17 + $0x5388] sm:$0xff]  ;;  %5179 = vmatpush.msra.mxu0 %v2827_v16 }
 0x59e   : > { %v2955_v22 = vld [vmem:[%s7478_s17 + $0x5568] sm:$0xff]  ;;  %5198 = vmatpush.msra.mxu1 %v2895_v20 }
 0x59f   : > { %v3023_v23 = vld [vmem:[%s7478_s17 + $0x5788] sm:$0xff]  ;;  %5219 = vmatpush.msra.mxu2 %v2955_v22 }
 0x5a0   : > { %v2823_v27 = vld [vmem:[%s7478_s17 + $0x5148] sm:$0xff]  ;;  %5238 = vmatpush.msra.mxu3 %v3023_v23 }
 0x5a1   : > { %v2891_v29 = vld [vmem:[%s7478_s17 + $0x5368] sm:$0xff]  ;;  %5180 = vmatpush.msra.mxu0 %v2823_v27 }
 0x5a2   : > { %v2951_v32 = vld [vmem:[%s7478_s17 + $0x5548] sm:$0xff]  ;;  %5199 = vmatpush.msra.mxu1 %v2891_v29 }
 0x5a3   : > { %v3019_v33 = vld [vmem:[%s7478_s17 + $0x5768] sm:$0xff]  ;;  %5220 = vmatpush.msra.mxu2 %v2951_v32 }
 0x5a4   : > { %v2819_v34 = vld [vmem:[%s7478_s17 + $0x5128] sm:$0xff]  ;;  %5239 = vmatpush.msra.mxu3 %v3019_v33 }
 0x5a5   : > { %v2887_v35 = vld [vmem:[%s7478_s17 + $0x5348] sm:$0xff]  ;;  %5181 = vmatpush.msra.mxu0 %v2819_v34 }
 0x5a6   : > { %v2947_v50 = vld [vmem:[%s7478_s17 + $0x5528] sm:$0xff]  ;;  %5200 = vmatpush.msra.mxu1 %v2887_v35 }
 0x5a7   : > { %v3015_v53 = vld [vmem:[%s7478_s17 + $0x5748] sm:$0xff]  ;;  %5221 = vmatpush.msra.mxu2 %v2947_v50 }
 0x5a8   : > { %v2815_v54 = vld [vmem:[%s7478_s17 + $0x5108] sm:$0xff]  ;;  %5240 = vmatpush.msra.mxu3 %v3015_v53 }
 0x5a9   : > { %v2883_v55 = vld [vmem:[%s7478_s17 + $0x5328] sm:$0xff]  ;;  %5182 = vmatpush.msra.mxu0 %v2815_v54 }
 0x5aa   : > { %v2943_v56 = vld [vmem:[%s7478_s17 + $0x5508] sm:$0xff]  ;;  %5201 = vmatpush.msra.mxu1 %v2883_v55 }
 0x5ab   : > { %v3011_v57 = vld [vmem:[%s7478_s17 + $0x5728] sm:$0xff]  ;;  %5222 = vmatpush.msra.mxu2 %v2943_v56 }
 0x5ac   : > { %v2811_v58 = vld [vmem:[%s7478_s17 + $0x50e8] sm:$0xff]  ;;  %5241 = vmatpush.msra.mxu3 %v3011_v57 }
 0x5ad   : > { %v2879_v59 = vld [vmem:[%s7478_s17 + $0x5308] sm:$0xff]  ;;  %5183 = vmatpush.msra.mxu0 %v2811_v58 }
 0x5ae   : > { %v2939_v60 = vld [vmem:[%s7478_s17 + $0x54e8] sm:$0xff]  ;;  %5202 = vmatpush.msra.mxu1 %v2879_v59 }
 0x5af   : > { %v3007_v61 = vld [vmem:[%s7478_s17 + $0x5708] sm:$0xff]  ;;  %5223 = vmatpush.msra.mxu2 %v2939_v60 }
 0x5b0   : > { %v2807_v2 = vld [vmem:[%s7478_s17 + $0x50c8] sm:$0xff]  ;;  %5242 = vmatpush.msra.mxu3 %v3007_v61 }
 0x5b1   : > { %v2875_v11 = vld [vmem:[%s7478_s17 + $0x52e8] sm:$0xff]  ;;  %5184 = vmatpush.msra.mxu0 %v2807_v2 }
 0x5b2   : > { %v2935_v12 = vld [vmem:[%s7478_s17 + $0x54c8] sm:$0xff]  ;;  %5203 = vmatpush.msra.mxu1 %v2875_v11 }
 0x5b3   : > { %v3003_v13 = vld [vmem:[%s7478_s17 + $0x56e8] sm:$0xff]  ;;  %5224 = vmatpush.msra.mxu2 %v2935_v12 }
 0x5b4   : > { %v2803_v16 = vld [vmem:[%s7478_s17 + $0x50a8] sm:$0xff]  ;;  %5243 = vmatpush.msra.mxu3 %v3003_v13 }
 0x5b5   : > { %v2871_v20 = vld [vmem:[%s7478_s17 + $0x52c8] sm:$0xff]  ;;  %5185 = vmatpush.msra.mxu0 %v2803_v16 }
 0x5b6   : > { %v2931_v22 = vld [vmem:[%s7478_s17 + $0x54a8] sm:$0xff]  ;;  %5204 = vmatpush.msra.mxu1 %v2871_v20 }
 0x5b7   : > { %v2999_v23 = vld [vmem:[%s7478_s17 + $0x56c8] sm:$0xff]  ;;  %5225 = vmatpush.msra.mxu2 %v2931_v22 }
 0x5b8   : > { %v2799_v27 = vld [vmem:[%s7478_s17 + $0x5088] sm:$0xff]  ;;  %5244 = vmatpush.msra.mxu3 %v2999_v23 }
 0x5b9   : > { %v2867_v29 = vld [vmem:[%s7478_s17 + $0x52a8] sm:$0xff]  ;;  %5186 = vmatpush.msra.mxu0 %v2799_v27  ;;  %v7390_v27 = vld.sshfl [vmem:[#allocation1] sm:$0xff pattern:$0x73625140] }
 0x5ba   : > { %v2927_v32 = vld [vmem:[%s7478_s17 + $0x5488] sm:$0xff]  ;;  %5205 = vmatpush.msra.mxu1 %v2867_v29  ;;  %v7391_v29 = vld.sshfl [vmem:[#allocation1 + $0x10] sm:$0xff pattern:$0x73625140] }
 0x5bb   : > { %v2995_v33 = vld [vmem:[%s7478_s17 + $0x56a8] sm:$0xff]  ;;  %5226 = vmatpush.msra.mxu2 %v2927_v32 }
 0x5bc   : > { %v2795_v34 = vld [vmem:[%s7478_s17 + $0x5068] sm:$0xff]  ;;  %5245 = vmatpush.msra.mxu3 %v2995_v33 }
 0x5bd   : > { %v2863_v35 = vld [vmem:[%s7478_s17 + $0x5288] sm:$0xff]  ;;  %5187 = vmatpush.msra.mxu0 %v2795_v34 }
 0x5be   : > { %v2923_v50 = vld [vmem:[%s7478_s17 + $0x5468] sm:$0xff]  ;;  %5206 = vmatpush.msra.mxu1 %v2863_v35 }
 0x5bf   : > { %v2991_v53 = vld [vmem:[%s7478_s17 + $0x5688] sm:$0xff]  ;;  %5227 = vmatpush.msra.mxu2 %v2923_v50 }
 0x5c0   : > { %v2791_v54 = vld [vmem:[%s7478_s17 + $0x5048] sm:$0xff]  ;;  %5246 = vmatpush.msra.mxu3 %v2991_v53  ;;  %v7393_v53 = vld.sshfl [vmem:[#allocation1 + $0x18] sm:$0xff pattern:$0x73625140] }
 0x5c1   : > { %v2859_v55 = vld [vmem:[%s7478_s17 + $0x5268] sm:$0xff]  ;;  %5188 = vmatpush.msra.mxu0 %v2791_v54 }
 0x5c2   : > { %v2919_v56 = vld [vmem:[%s7478_s17 + $0x5448] sm:$0xff]  ;;  %5207 = vmatpush.msra.mxu1 %v2859_v55 }
 0x5c3   : > { %v2987_v57 = vld [vmem:[%s7478_s17 + $0x5668] sm:$0xff]  ;;  %5228 = vmatpush.msra.mxu2 %v2919_v56 }
 0x5c4   : > { %v2787_v58 = vld [vmem:[%s7478_s17 + $0x5028] sm:$0xff]  ;;  %5247 = vmatpush.msra.mxu3 %v2987_v57 }
 0x5c5   : > { %v2855_v59 = vld [vmem:[%s7478_s17 + $0x5248] sm:$0xff]  ;;  %5189 = vmatpush.msra.mxu0 %v2787_v58 }
 0x5c6   : > { %v2915_v60 = vld [vmem:[%s7478_s17 + $0x5428] sm:$0xff]  ;;  %5208 = vmatpush.msra.mxu1 %v2855_v59 }
 0x5c7   : > { %v2983_v61 = vld [vmem:[%s7478_s17 + $0x5648] sm:$0xff]  ;;  %5229 = vmatpush.msra.mxu2 %v2915_v60 }
 0x5c8   : > { %v2783_v2 = vld [vmem:[%s7478_s17 + $0x5008] sm:$0xff]  ;;  %5248 = vmatpush.msra.mxu3 %v2983_v61 }
 0x5c9   : > { %v2851_v11 = vld [vmem:[%s7478_s17 + $0x5228] sm:$0xff]  ;;  %5190 = vmatpush.msra.mxu0 %v2783_v2 }
 0x5ca   : > { %v2911_v12 = vld [vmem:[%s7478_s17 + $0x5408] sm:$0xff]  ;;  %5209 = vmatpush.msra.mxu1 %v2851_v11  ;;  %5191 = vmatmul.f32.vlgmr.msra.gmra.mxu0 %v7390_v27 }
 0x5cb   : > { %v2979_v13 = vld [vmem:[%s7478_s17 + $0x5628] sm:$0xff]  ;;  %5230 = vmatpush.msra.mxu2 %v2911_v12 }
 0x5cc   : > { %v3099_v16 = vld [vmem:[%s7478_s17 + $0x59e8] sm:$0xff]  ;;  %5249 = vmatpush.msra.mxu3 %v2979_v13  ;;  %5231 = vmatmul.f32.vlgmr.msra.gmra.mxu2 %v7391_v29 }
 0x5cd   : > { %v3227_v20 = vld [vmem:[%s7478_s17 + $0x5de8] sm:$0xff]  ;;  %5255 = vmatpush.msrb.mxu0 %v3099_v16 }
 0x5ce   : > { %v2847_v22 = vld [vmem:[%s7478_s17 + $0x5208] sm:$0xff]  ;;  %5295 = vmatpush.msrb.mxu2 %v3227_v20 }
 0x5cf   : > { %v2975_v23 = vld [vmem:[%s7478_s17 + $0x5608] sm:$0xff]  ;;  %5210 = vmatpush.msra.mxu1 %v2847_v22 }
 0x5d0   : > { %v3095_v32 = vld [vmem:[%s7478_s17 + $0x59c8] sm:$0xff]  ;;  %5250 = vmatpush.msra.mxu3 %v2975_v23 }
 0x5d1   : > { %v3163_v33 = vld [vmem:[%s7478_s17 + $0x5be8] sm:$0xff]  ;;  %5251 = vmatmul.f32.vlgmr.msra.gmra.mxu3 %v7393_v53  ;;  %5256 = vmatpush.msrb.mxu0 %v3095_v32 }
 0x5d2   : > { %v3223_v34 = vld [vmem:[%s7478_s17 + $0x5dc8] sm:$0xff]  ;;  %5275 = vmatpush.msrb.mxu1 %v3163_v33 }
 0x5d3   : > { %v3291_v35 = vld [vmem:[%s7478_s17 + $0x5fe8] sm:$0xff]  ;;  %5296 = vmatpush.msrb.mxu2 %v3223_v34 }
 0x5d4   : > { %v7392_v50 = vld.sshfl [vmem:[#allocation1 + $0x8] sm:$0xff pattern:$0x73625140]  ;;  %5315 = vmatpush.msrb.mxu3 %v3291_v35 }
 0x5d5   : > { %5211 = vmatmul.f32.vlgmr.msra.gmra.mxu1 %v7392_v50  ;;  %v3091_v54 = vld [vmem:[%s7478_s17 + $0x59a8] sm:$0xff] }
 0x5d6   : > { %v3159_v55 = vld [vmem:[%s7478_s17 + $0x5bc8] sm:$0xff]  ;;  %5257 = vmatpush.msrb.mxu0 %v3091_v54 }
 0x5d7   : > { %v3219_v56 = vld [vmem:[%s7478_s17 + $0x5da8] sm:$0xff]  ;;  %5276 = vmatpush.msrb.mxu1 %v3159_v55 }
 0x5d8   : > { %v3287_v57 = vld [vmem:[%s7478_s17 + $0x5fc8] sm:$0xff]  ;;  %5297 = vmatpush.msrb.mxu2 %v3219_v56 }
 0x5d9   : > { %v3087_v58 = vld [vmem:[%s7478_s17 + $0x5988] sm:$0xff]  ;;  %5316 = vmatpush.msrb.mxu3 %v3287_v57 }
 0x5da   : > { %v3155_v59 = vld [vmem:[%s7478_s17 + $0x5ba8] sm:$0xff]  ;;  %5258 = vmatpush.msrb.mxu0 %v3087_v58 }
 0x5db   : > { %v3215_v60 = vld [vmem:[%s7478_s17 + $0x5d88] sm:$0xff]  ;;  %5277 = vmatpush.msrb.mxu1 %v3155_v59 }
 0x5dc   : > { %v3283_v61 = vld [vmem:[%s7478_s17 + $0x5fa8] sm:$0xff]  ;;  %5298 = vmatpush.msrb.mxu2 %v3215_v60 }
 0x5dd   : > { %v3083_v2 = vld [vmem:[%s7478_s17 + $0x5968] sm:$0xff]  ;;  %5317 = vmatpush.msrb.mxu3 %v3283_v61 }
 0x5de   : > { %v3151_v11 = vld [vmem:[%s7478_s17 + $0x5b88] sm:$0xff]  ;;  %5259 = vmatpush.msrb.mxu0 %v3083_v2 }
 0x5df   : > { %v3211_v12 = vld [vmem:[%s7478_s17 + $0x5d68] sm:$0xff]  ;;  %5278 = vmatpush.msrb.mxu1 %v3151_v11 }
 0x5e0   : > { %v3279_v13 = vld [vmem:[%s7478_s17 + $0x5f88] sm:$0xff]  ;;  %5299 = vmatpush.msrb.mxu2 %v3211_v12 }
 0x5e1   : > { %v3079_v16 = vld [vmem:[%s7478_s17 + $0x5948] sm:$0xff]  ;;  %5318 = vmatpush.msrb.mxu3 %v3279_v13 }
 0x5e2   : > { %v3147_v20 = vld [vmem:[%s7478_s17 + $0x5b68] sm:$0xff]  ;;  %5260 = vmatpush.msrb.mxu0 %v3079_v16 }
 0x5e3   : > { %v3207_v22 = vld [vmem:[%s7478_s17 + $0x5d48] sm:$0xff]  ;;  %5279 = vmatpush.msrb.mxu1 %v3147_v20 }
 0x5e4   : > { %v3275_v23 = vld [vmem:[%s7478_s17 + $0x5f68] sm:$0xff]  ;;  %5300 = vmatpush.msrb.mxu2 %v3207_v22 }
 0x5e5   : > { %v3075_v27 = vld [vmem:[%s7478_s17 + $0x5928] sm:$0xff]  ;;  %5319 = vmatpush.msrb.mxu3 %v3275_v23 }
 0x5e6   : > { %v3143_v29 = vld [vmem:[%s7478_s17 + $0x5b48] sm:$0xff]  ;;  %5261 = vmatpush.msrb.mxu0 %v3075_v27 }
 0x5e7   : > { %v3203_v32 = vld [vmem:[%s7478_s17 + $0x5d28] sm:$0xff]  ;;  %5280 = vmatpush.msrb.mxu1 %v3143_v29 }
 0x5e8   : > { %v3271_v33 = vld [vmem:[%s7478_s17 + $0x5f48] sm:$0xff]  ;;  %5301 = vmatpush.msrb.mxu2 %v3203_v32 }
 0x5e9   : > { %v3071_v34 = vld [vmem:[%s7478_s17 + $0x5908] sm:$0xff]  ;;  %5320 = vmatpush.msrb.mxu3 %v3271_v33 }
 0x5ea   : > { %v3139_v35 = vld [vmem:[%s7478_s17 + $0x5b28] sm:$0xff]  ;;  %5262 = vmatpush.msrb.mxu0 %v3071_v34 }
 0x5eb   : > { %v3199_v50 = vld [vmem:[%s7478_s17 + $0x5d08] sm:$0xff]  ;;  %5281 = vmatpush.msrb.mxu1 %v3139_v35 }
 0x5ec   : > { %v3267_v53 = vld [vmem:[%s7478_s17 + $0x5f28] sm:$0xff]  ;;  %5302 = vmatpush.msrb.mxu2 %v3199_v50 }
 0x5ed   : > { %v3067_v54 = vld [vmem:[%s7478_s17 + $0x58e8] sm:$0xff]  ;;  %5321 = vmatpush.msrb.mxu3 %v3267_v53 }
 0x5ee   : > { %v3135_v55 = vld [vmem:[%s7478_s17 + $0x5b08] sm:$0xff]  ;;  %5263 = vmatpush.msrb.mxu0 %v3067_v54 }
 0x5ef   : > { %v3195_v56 = vld [vmem:[%s7478_s17 + $0x5ce8] sm:$0xff]  ;;  %5282 = vmatpush.msrb.mxu1 %v3135_v55 }
 0x5f0   : > { %v3263_v57 = vld [vmem:[%s7478_s17 + $0x5f08] sm:$0xff]  ;;  %5303 = vmatpush.msrb.mxu2 %v3195_v56 }
 0x5f1   : > { %v3063_v58 = vld [vmem:[%s7478_s17 + $0x58c8] sm:$0xff]  ;;  %5322 = vmatpush.msrb.mxu3 %v3263_v57 }
 0x5f2   : > { %v3131_v59 = vld [vmem:[%s7478_s17 + $0x5ae8] sm:$0xff]  ;;  %5264 = vmatpush.msrb.mxu0 %v3063_v58  ;;  %v9201_v58 = vpop.f32.mrf.mxu0 }
 0x5f3   : > { %v3191_v60 = vld [vmem:[%s7478_s17 + $0x5cc8] sm:$0xff]  ;;  %5283 = vmatpush.msrb.mxu1 %v3131_v59 }
 0x5f4   : > { %v3259_v61 = vld [vmem:[%s7478_s17 + $0x5ee8] sm:$0xff]  ;;  %5304 = vmatpush.msrb.mxu2 %v3191_v60 }
 0x5f5   : > { %v3059_v2 = vld [vmem:[%s7478_s17 + $0x58a8] sm:$0xff]  ;;  %5323 = vmatpush.msrb.mxu3 %v3259_v61 }
 0x5f6   : > { %v3127_v11 = vld [vmem:[%s7478_s17 + $0x5ac8] sm:$0xff]  ;;  %5265 = vmatpush.msrb.mxu0 %v3059_v2 }
 0x5f7   : > { %v3187_v12 = vld [vmem:[%s7478_s17 + $0x5ca8] sm:$0xff]  ;;  %5284 = vmatpush.msrb.mxu1 %v3127_v11  ;;  %v9207_v11 = vpop.f32.mrf.mxu1 }
 0x5f8   : > { %v3255_v13 = vld [vmem:[%s7478_s17 + $0x5ec8] sm:$0xff]  ;;  %5305 = vmatpush.msrb.mxu2 %v3187_v12  ;;  %v284_v12 = vld [vmem:[%s7478_s17 + $0x1f0] sm:$0xff] }
 0x5f9   : > { %v3055_v16 = vld [vmem:[%s7478_s17 + $0x5888] sm:$0xff]  ;;  %5324 = vmatpush.msrb.mxu3 %v3255_v13  ;;  %v412_v13 = vld [vmem:[%s7478_s17 + $0x5f0] sm:$0xff] }
 0x5fa   : > { %v3123_v20 = vld [vmem:[%s7478_s17 + $0x5aa8] sm:$0xff]  ;;  %5266 = vmatpush.msrb.mxu0 %v3055_v16  ;;  %v9211_v16 = vpop.f32.mrf.mxu2 }
 0x5fb   : > { %v3183_v22 = vld [vmem:[%s7478_s17 + $0x5c88] sm:$0xff]  ;;  %5285 = vmatpush.msrb.mxu1 %v3123_v20 }
 0x5fc   : > { %v3251_v23 = vld [vmem:[%s7478_s17 + $0x5ea8] sm:$0xff]  ;;  %5306 = vmatpush.msrb.mxu2 %v3183_v22 }
 0x5fd   : > { %v3051_v27 = vld [vmem:[%s7478_s17 + $0x5868] sm:$0xff]  ;;  %5325 = vmatpush.msrb.mxu3 %v3251_v23  ;;  %v7394_v23 = vld.sshfl [vmem:[#allocation1 + $0x20] sm:$0xff pattern:$0x73625140] }
 0x5fe   : > { %v3119_v29 = vld [vmem:[%s7478_s17 + $0x5a88] sm:$0xff]  ;;  %5267 = vmatpush.msrb.mxu0 %v3051_v27  ;;  %v7395_v27 = vld.sshfl [vmem:[#allocation1 + $0x30] sm:$0xff pattern:$0x73625140] }
 0x5ff   : > { %v3179_v32 = vld [vmem:[%s7478_s17 + $0x5c68] sm:$0xff]  ;;  %5286 = vmatpush.msrb.mxu1 %v3119_v29  ;;  %v280_v29 = vld [vmem:[%s7478_s17 + $0x1d0] sm:$0xff] }
 0x600   : > { %v3247_v33 = vld [vmem:[%s7478_s17 + $0x5e88] sm:$0xff]  ;;  %5307 = vmatpush.msrb.mxu2 %v3179_v32  ;;  %v348_v32 = vld [vmem:[%s7478_s17 + $0x3f0] sm:$0xff] }
 0x601   : > { %v3047_v34 = vld [vmem:[%s7478_s17 + $0x5848] sm:$0xff]  ;;  %5326 = vmatpush.msrb.mxu3 %v3247_v33  ;;  %v9217_v33 = vpop.f32.mrf.mxu3 }
 0x602   : > { %v3115_v35 = vld [vmem:[%s7478_s17 + $0x5a68] sm:$0xff]  ;;  %5268 = vmatpush.msrb.mxu0 %v3047_v34  ;;  %11179 = vst [vmem:[#allocation2_spill] sm:$0xff] %v9217_v33  ;;  %v408_v34 = vld [vmem:[%s7478_s17 + $0x5d0] sm:$0xff] }
 0x603   : > { %v3175_v50 = vld [vmem:[%s7478_s17 + $0x5c48] sm:$0xff]  ;;  %5287 = vmatpush.msrb.mxu1 %v3115_v35  ;;  %v476_v35 = vld [vmem:[%s7478_s17 + $0x7f0] sm:$0xff] }
 0x604   : > { %v3243_v53 = vld [vmem:[%s7478_s17 + $0x5e68] sm:$0xff]  ;;  %5308 = vmatpush.msrb.mxu2 %v3175_v50  ;;  %v1576_v33 = vld [vmem:[%s7478_s17 + $0x2a50] sm:$0xff] }
 0x605   : > { %v3043_v54 = vld [vmem:[%s7478_s17 + $0x5828] sm:$0xff]  ;;  %5327 = vmatpush.msrb.mxu3 %v3243_v53  ;;  %v7397_v53 = vld.sshfl [vmem:[#allocation1 + $0x38] sm:$0xff pattern:$0x73625140] }
 0x606   : > { %v3111_v55 = vld [vmem:[%s7478_s17 + $0x5a48] sm:$0xff]  ;;  %5269 = vmatpush.msrb.mxu0 %v3043_v54  ;;  %v276_v54 = vld [vmem:[%s7478_s17 + $0x1b0] sm:$0xff] }
 0x607   : > { %v3171_v56 = vld [vmem:[%s7478_s17 + $0x5c28] sm:$0xff]  ;;  %5288 = vmatpush.msrb.mxu1 %v3111_v55  ;;  %v344_v55 = vld [vmem:[%s7478_s17 + $0x3d0] sm:$0xff] }
 0x608   : > { %v3239_v57 = vld [vmem:[%s7478_s17 + $0x5e48] sm:$0xff]  ;;  %5309 = vmatpush.msrb.mxu2 %v3171_v56  ;;  %v404_v56 = vld [vmem:[%s7478_s17 + $0x5b0] sm:$0xff] }
 0x609   : > { %v3039_v59 = vld [vmem:[%s7478_s17 + $0x5808] sm:$0xff]  ;;  %5328 = vmatpush.msrb.mxu3 %v3239_v57  ;;  %v472_v57 = vld [vmem:[%s7478_s17 + $0x7d0] sm:$0xff] }
 0x60a   : > { %v3107_v60 = vld [vmem:[%s7478_s17 + $0x5a28] sm:$0xff]  ;;  %5270 = vmatpush.msrb.mxu0 %v3039_v59  ;;  %v9225_v59 = vpop.f32.mrf.mxu0 }
 0x60b   : > { %v3167_v61 = vld [vmem:[%s7478_s17 + $0x5c08] sm:$0xff]  ;;  %5289 = vmatpush.msrb.mxu1 %v3107_v60  ;;  %5271 = vmatmul.f32.vlgmr.msrb.gmra.mxu0 %v7394_v23  ;;  %11180 = vst [vmem:[#allocation3_spill] sm:$0xff] %v9225_v59  ;;  %v272_v60 = vld [vmem:[%s7478_s17 + $0x190] sm:$0xff] }
 0x60c   : > { %v3235_v2 = vld [vmem:[%s7478_s17 + $0x5e28] sm:$0xff]  ;;  %5310 = vmatpush.msrb.mxu2 %v3167_v61  ;;  %5335 = vmatpush.msra.mxu0 %v284_v12  ;;  %v340_v61 = vld [vmem:[%s7478_s17 + $0x3b0] sm:$0xff] }
 0x60d   : > { %5329 = vmatpush.msrb.mxu3 %v3235_v2  ;;  %v3103_v20 = vld [vmem:[%s7478_s17 + $0x5a08] sm:$0xff]  ;;  %5311 = vmatmul.f32.vlgmr.msrb.gmra.mxu2 %v7395_v27  ;;  %v400_v2 = vld [vmem:[%s7478_s17 + $0x590] sm:$0xff] }
 0x60e   : > { %v3231_v22 = vld [vmem:[%s7478_s17 + $0x5e08] sm:$0xff]  ;;  %5375 = vmatpush.msra.mxu2 %v412_v13  ;;  %5290 = vmatpush.msrb.mxu1 %v3103_v20  ;;  %v468_v12 = vld [vmem:[%s7478_s17 + $0x7b0] sm:$0xff] }
 0x60f   : > { %5330 = vmatpush.msrb.mxu3 %v3231_v22  ;;  %v7396_v50 = vld.sshfl [vmem:[#allocation1 + $0x28] sm:$0xff pattern:$0x73625140]  ;;  %5336 = vmatpush.msra.mxu0 %v280_v29  ;;  %v268_v13 = vld [vmem:[%s7478_s17 + $0x170] sm:$0xff]  ;;  %v9233_v22 = vpop.f32.mrf.mxu1  ;;  %v9237_v29 = vpop.f32.mrf.mxu2 }
 0x610   : > { %5291 = vmatmul.f32.vlgmr.msrb.gmra.mxu1 %v7396_v50  ;;  %5331 = vmatmul.f32.vlgmr.msrb.gmra.mxu3 %v7397_v53  ;;  %v336_v20 = vld [vmem:[%s7478_s17 + $0x390] sm:$0xff]  ;;  %11181 = vst [vmem:[#allocation4_spill] sm:$0xff] %v9233_v22 }
 0x611   : > { %5355 = vmatpush.msra.mxu1 %v348_v32  ;;  %5376 = vmatpush.msra.mxu2 %v408_v34  ;;  %v396_v23 = vld [vmem:[%s7478_s17 + $0x570] sm:$0xff]  ;;  %11182 = vst [vmem:[#allocation5_spill] sm:$0xff] %v9237_v29 }
 0x612   : > { %5395 = vmatpush.msra.mxu3 %v476_v35  ;;  %5337 = vmatpush.msra.mxu0 %v276_v54  ;;  %v464_v27 = vld [vmem:[%s7478_s17 + $0x790] sm:$0xff] }
 0x613   : > { %5356 = vmatpush.msra.mxu1 %v344_v55  ;;  %5377 = vmatpush.msra.mxu2 %v404_v56  ;;  %v264_v32 = vld [vmem:[%s7478_s17 + $0x150] sm:$0xff]  ;;  %v9245_v55 = vpop.f32.mrf.mxu3 }
 0x614   : > { %5396 = vmatpush.msra.mxu3 %v472_v57  ;;  %5338 = vmatpush.msra.mxu0 %v272_v60  ;;  %v332_v34 = vld [vmem:[%s7478_s17 + $0x370] sm:$0xff]  ;;  %11183 = vst [vmem:[#allocation6_spill] sm:$0xff] %v9245_v55  ;;  %v9249_v60 = vpop.f32.mrf.mxu0 }
 0x615   : > { %5357 = vmatpush.msra.mxu1 %v340_v61  ;;  %5378 = vmatpush.msra.mxu2 %v400_v2  ;;  %v392_v35 = vld [vmem:[%s7478_s17 + $0x550] sm:$0xff]  ;;  %11184 = vst [vmem:[#allocation7_spill] sm:$0xff] %v9249_v60 }
 0x616   : > { %5397 = vmatpush.msra.mxu3 %v468_v12  ;;  %5339 = vmatpush.msra.mxu0 %v268_v13  ;;  %v460_v50 = vld [vmem:[%s7478_s17 + $0x770] sm:$0xff] }
 0x617   : > { %5358 = vmatpush.msra.mxu1 %v336_v20  ;;  %5379 = vmatpush.msra.mxu2 %v396_v23  ;;  %v260_v53 = vld [vmem:[%s7478_s17 + $0x130] sm:$0xff] }
 0x618   : > { %5398 = vmatpush.msra.mxu3 %v464_v27  ;;  %v328_v54 = vld [vmem:[%s7478_s17 + $0x350] sm:$0xff]  ;;  %5340 = vmatpush.msra.mxu0 %v264_v32  ;;  %v9257_v27 = vpop.f32.mrf.mxu1 }
 0x619   : > { %5359 = vmatpush.msra.mxu1 %v332_v34  ;;  %v388_v56 = vld [vmem:[%s7478_s17 + $0x530] sm:$0xff]  ;;  %5380 = vmatpush.msra.mxu2 %v392_v35  ;;  %11185 = vst [vmem:[#allocation8_spill] sm:$0xff] %v9257_v27  ;;  %v9261_v35 = vpop.f32.mrf.mxu2 }
 0x61a   : > { %v456_v57 = vld [vmem:[%s7478_s17 + $0x750] sm:$0xff]  ;;  %5399 = vmatpush.msra.mxu3 %v460_v50  ;;  %5341 = vmatpush.msra.mxu0 %v260_v53  ;;  %11186 = vst [vmem:[#allocation9_spill] sm:$0xff] %v9261_v35 }
 0x61b   : > { %v256_v61 = vld [vmem:[%s7478_s17 + $0x110] sm:$0xff]  ;;  %5360 = vmatpush.msra.mxu1 %v328_v54  ;;  %5381 = vmatpush.msra.mxu2 %v388_v56 }
 0x61c   : > { %v324_v2 = vld [vmem:[%s7478_s17 + $0x330] sm:$0xff]  ;;  %5400 = vmatpush.msra.mxu3 %v456_v57  ;;  %5342 = vmatpush.msra.mxu0 %v256_v61 }
 0x61d   : > { %v384_v12 = vld [vmem:[%s7478_s17 + $0x510] sm:$0xff]  ;;  %5361 = vmatpush.msra.mxu1 %v324_v2  ;;  %v9269_v2 = vpop.f32.mrf.mxu3 }
 0x61e   : > { %v452_v13 = vld [vmem:[%s7478_s17 + $0x730] sm:$0xff]  ;;  %5382 = vmatpush.msra.mxu2 %v384_v12  ;;  %11187 = vst [vmem:[#allocation10_spill] sm:$0xff] %v9269_v2 }
 0x61f   : > { %v252_v20 = vld [vmem:[%s7478_s17 + $0xf0] sm:$0xff]  ;;  %5401 = vmatpush.msra.mxu3 %v452_v13 }
 0x620   : > { %v320_v23 = vld [vmem:[%s7478_s17 + $0x310] sm:$0xff]  ;;  %5343 = vmatpush.msra.mxu0 %v252_v20  ;;  %v9273_v20 = vpop.f32.mrf.mxu0  ;;  %v9281_v35 = vpop.f32.mrf.mxu1 }
 0x621   : > { %v380_v32 = vld [vmem:[%s7478_s17 + $0x4f0] sm:$0xff]  ;;  %5362 = vmatpush.msra.mxu1 %v320_v23  ;;  %11188 = vst [vmem:[#allocation11_spill] sm:$0xff] %v9273_v20 }
 0x622   : > { %v448_v34 = vld [vmem:[%s7478_s17 + $0x710] sm:$0xff]  ;;  %5383 = vmatpush.msra.mxu2 %v380_v32  ;;  %11189 = vst [vmem:[#allocation12_spill] sm:$0xff] %v9281_v35 }
 0x623   : > { %v248_v50 = vld [vmem:[%s7478_s17 + $0xd0] sm:$0xff]  ;;  %5402 = vmatpush.msra.mxu3 %v448_v34 }
 0x624   : > { %v316_v53 = vld [vmem:[%s7478_s17 + $0x2f0] sm:$0xff]  ;;  %5344 = vmatpush.msra.mxu0 %v248_v50 }
 0x625   : > { %v376_v54 = vld [vmem:[%s7478_s17 + $0x4d0] sm:$0xff]  ;;  %5363 = vmatpush.msra.mxu1 %v316_v53  ;;  %v9293_v20 = vpop.f32.mrf.mxu3 }
 0x626   : > { %v444_v56 = vld [vmem:[%s7478_s17 + $0x6f0] sm:$0xff]  ;;  %5384 = vmatpush.msra.mxu2 %v376_v54  ;;  %11191 = vst [vmem:[#allocation14_spill] sm:$0xff] %v9293_v20 }
 0x627   : > { %v244_v57 = vld [vmem:[%s7478_s17 + $0xb0] sm:$0xff]  ;;  %5403 = vmatpush.msra.mxu3 %v444_v56 }
 0x628   : > { %v312_v61 = vld [vmem:[%s7478_s17 + $0x2d0] sm:$0xff]  ;;  %5345 = vmatpush.msra.mxu0 %v244_v57  ;;  %v9285_v57 = vpop.f32.mrf.mxu2 }
 0x629   : > { %v372_v12 = vld [vmem:[%s7478_s17 + $0x4b0] sm:$0xff]  ;;  %5364 = vmatpush.msra.mxu1 %v312_v61  ;;  %11190 = vst [vmem:[#allocation13_spill] sm:$0xff] %v9285_v57  ;;  %v9305_v57 = vpop.f32.mrf.mxu1 }
 0x62a   : > { %v440_v13 = vld [vmem:[%s7478_s17 + $0x6d0] sm:$0xff]  ;;  %5385 = vmatpush.msra.mxu2 %v372_v12  ;;  %11193 = vst [vmem:[#allocation16_spill] sm:$0xff] %v9305_v57 }
 0x62b   : > { %v240_v23 = vld [vmem:[%s7478_s17 + $0x90] sm:$0xff]  ;;  %5404 = vmatpush.msra.mxu3 %v440_v13 }
 0x62c   : > { %v308_v32 = vld [vmem:[%s7478_s17 + $0x2b0] sm:$0xff]  ;;  %5346 = vmatpush.msra.mxu0 %v240_v23 }
 0x62d   : > { %v368_v34 = vld [vmem:[%s7478_s17 + $0x490] sm:$0xff]  ;;  %5365 = vmatpush.msra.mxu1 %v308_v32 }
 0x62e   : > { %v436_v2 = vld [vmem:[%s7478_s17 + $0x6b0] sm:$0xff]  ;;  %5386 = vmatpush.msra.mxu2 %v368_v34 }
 0x62f   : > { %v236_v50 = vld [vmem:[%s7478_s17 + $0x70] sm:$0xff]  ;;  %5405 = vmatpush.msra.mxu3 %v436_v2 }
 0x630   : > { %v304_v53 = vld [vmem:[%s7478_s17 + $0x290] sm:$0xff]  ;;  %5347 = vmatpush.msra.mxu0 %v236_v50  ;;  %v9297_v50 = vpop.f32.mrf.mxu0 }
 0x631   : > { %v364_v54 = vld [vmem:[%s7478_s17 + $0x470] sm:$0xff]  ;;  %5366 = vmatpush.msra.mxu1 %v304_v53  ;;  %11192 = vst [vmem:[#allocation15_spill] sm:$0xff] %v9297_v50  ;;  %v9317_v50 = vpop.f32.mrf.mxu3 }
 0x632   : > { %v432_v56 = vld [vmem:[%s7478_s17 + $0x690] sm:$0xff]  ;;  %5387 = vmatpush.msra.mxu2 %v364_v54  ;;  %11195 = vst [vmem:[#allocation18_spill] sm:$0xff] %v9317_v50 }
 0x633   : > { %v232_v61 = vld [vmem:[%s7478_s17 + $0x50] sm:$0xff]  ;;  %5406 = vmatpush.msra.mxu3 %v432_v56 }
 0x634   : > { %v300_v12 = vld [vmem:[%s7478_s17 + $0x270] sm:$0xff]  ;;  %5348 = vmatpush.msra.mxu0 %v232_v61 }
 0x635   : > { %v360_v13 = vld [vmem:[%s7478_s17 + $0x450] sm:$0xff]  ;;  %5367 = vmatpush.msra.mxu1 %v300_v12 }
 0x636   : > { %v428_v35 = vld [vmem:[%s7478_s17 + $0x670] sm:$0xff]  ;;  %5388 = vmatpush.msra.mxu2 %v360_v13 }
 0x637   : > { %v228_v23 = vld [vmem:[%s7478_s17 + $0x30] sm:$0xff]  ;;  %5407 = vmatpush.msra.mxu3 %v428_v35 }
 0x638   : > { %v296_v32 = vld [vmem:[%s7478_s17 + $0x250] sm:$0xff]  ;;  %5349 = vmatpush.msra.mxu0 %v228_v23  ;;  %v9309_v23 = vpop.f32.mrf.mxu2 }
 0x639   : > { %v356_v2 = vld [vmem:[%s7478_s17 + $0x430] sm:$0xff]  ;;  %5368 = vmatpush.msra.mxu1 %v296_v32  ;;  %11194 = vst [vmem:[#allocation17_spill] sm:$0xff] %v9309_v23  ;;  %v9329_v23 = vpop.f32.mrf.mxu1 }
 0x63a   : > { %v424_v34 = vld [vmem:[%s7478_s17 + $0x650] sm:$0xff]  ;;  %5389 = vmatpush.msra.mxu2 %v356_v2  ;;  %11197 = vst [vmem:[#allocation20_spill] sm:$0xff] %v9329_v23 }
 0x63b   : > { %v224_v53 = vld [vmem:[%s7478_s17 + $0x10] sm:$0xff]  ;;  %5408 = vmatpush.msra.mxu3 %v424_v34 }
 0x63c   : > { %v292_v54 = vld [vmem:[%s7478_s17 + $0x230] sm:$0xff]  ;;  %5350 = vmatpush.msra.mxu0 %v224_v53 }
 0x63d   : > { %v352_v56 = vld [vmem:[%s7478_s17 + $0x410] sm:$0xff]  ;;  %5369 = vmatpush.msra.mxu1 %v292_v54  ;;  %5351 = vmatmul.f32.vlgmr.msra.gmra.mxu0 %v7608_v44 }
 0x63e   : > { %v420_v20 = vld [vmem:[%s7478_s17 + $0x630] sm:$0xff]  ;;  %5390 = vmatpush.msra.mxu2 %v352_v56 }
 0x63f   : > { %v540_v61 = vld [vmem:[%s7478_s17 + $0x9f0] sm:$0xff]  ;;  %5409 = vmatpush.msra.mxu3 %v420_v20  ;;  %5391 = vmatmul.f32.vlgmr.msra.gmra.mxu2 %v7606_v43 }
 0x640   : > { %v668_v12 = vld [vmem:[%s7478_s17 + $0xdf0] sm:$0xff]  ;;  %5415 = vmatpush.msrb.mxu0 %v540_v61  ;;  %v9321_v61 = vpop.f32.mrf.mxu0 }
 0x641   : > { %v288_v35 = vld [vmem:[%s7478_s17 + $0x210] sm:$0xff]  ;;  %5455 = vmatpush.msrb.mxu2 %v668_v12  ;;  %11196 = vst [vmem:[#allocation19_spill] sm:$0xff] %v9321_v61  ;;  %v9341_v61 = vpop.f32.mrf.mxu3 }
 0x642   : > { %v416_v13 = vld [vmem:[%s7478_s17 + $0x610] sm:$0xff]  ;;  %5370 = vmatpush.msra.mxu1 %v288_v35  ;;  %11199 = vst [vmem:[#allocation22_spill] sm:$0xff] %v9341_v61 }
 0x643   : > { %v536_v32 = vld [vmem:[%s7478_s17 + $0x9d0] sm:$0xff]  ;;  %5410 = vmatpush.msra.mxu3 %v416_v13  ;;  %5371 = vmatmul.f32.vlgmr.msra.gmra.mxu1 %v7612_v46 }
 0x644   : > { %v604_v2 = vld [vmem:[%s7478_s17 + $0xbf0] sm:$0xff]  ;;  %5416 = vmatpush.msrb.mxu0 %v536_v32  ;;  %5411 = vmatmul.f32.vlgmr.msra.gmra.mxu3 %v7610_v45 }
 0x645   : > { %v664_v34 = vld [vmem:[%s7478_s17 + $0xdd0] sm:$0xff]  ;;  %5435 = vmatpush.msrb.mxu1 %v604_v2 }
 0x646   : > { %v732_v57 = vld [vmem:[%s7478_s17 + $0xff0] sm:$0xff]  ;;  %5456 = vmatpush.msrb.mxu2 %v664_v34 }
 0x647   : > { %v532_v53 = vld [vmem:[%s7478_s17 + $0x9b0] sm:$0xff]  ;;  %5475 = vmatpush.msrb.mxu3 %v732_v57 }
 0x648   : > { %v600_v54 = vld [vmem:[%s7478_s17 + $0xbd0] sm:$0xff]  ;;  %5417 = vmatpush.msrb.mxu0 %v532_v53  ;;  %v9333_v53 = vpop.f32.mrf.mxu2 }
 0x649   : > { %v660_v20 = vld [vmem:[%s7478_s17 + $0xdb0] sm:$0xff]  ;;  %5436 = vmatpush.msrb.mxu1 %v600_v54  ;;  %11198 = vst [vmem:[#allocation21_spill] sm:$0xff] %v9333_v53  ;;  %v9353_v53 = vpop.f32.mrf.mxu1 }
 0x64a   : > { %v728_v56 = vld [vmem:[%s7478_s17 + $0xfd0] sm:$0xff]  ;;  %5457 = vmatpush.msrb.mxu2 %v660_v20  ;;  %11201 = vst [vmem:[#allocation24_spill] sm:$0xff] %v9353_v53 }
 0x64b   : > { %v528_v12 = vld [vmem:[%s7478_s17 + $0x990] sm:$0xff]  ;;  %5476 = vmatpush.msrb.mxu3 %v728_v56 }
 0x64c   : > { %v596_v35 = vld [vmem:[%s7478_s17 + $0xbb0] sm:$0xff]  ;;  %5418 = vmatpush.msrb.mxu0 %v528_v12 }
 0x64d   : > { %v656_v13 = vld [vmem:[%s7478_s17 + $0xd90] sm:$0xff]  ;;  %5437 = vmatpush.msrb.mxu1 %v596_v35 }
 0x64e   : > { %v724_v50 = vld [vmem:[%s7478_s17 + $0xfb0] sm:$0xff]  ;;  %5458 = vmatpush.msrb.mxu2 %v656_v13 }
 0x64f   : > { %v524_v32 = vld [vmem:[%s7478_s17 + $0x970] sm:$0xff]  ;;  %5477 = vmatpush.msrb.mxu3 %v724_v50 }
 0x650   : > { %v592_v2 = vld [vmem:[%s7478_s17 + $0xb90] sm:$0xff]  ;;  %5419 = vmatpush.msrb.mxu0 %v524_v32  ;;  %v9345_v32 = vpop.f32.mrf.mxu0 }
 0x651   : > { %v652_v57 = vld [vmem:[%s7478_s17 + $0xd70] sm:$0xff]  ;;  %5438 = vmatpush.msrb.mxu1 %v592_v2  ;;  %11200 = vst [vmem:[#allocation23_spill] sm:$0xff] %v9345_v32  ;;  %v9365_v32 = vpop.f32.mrf.mxu3 }
 0x652   : > { %v720_v34 = vld [vmem:[%s7478_s17 + $0xf90] sm:$0xff]  ;;  %5459 = vmatpush.msrb.mxu2 %v652_v57  ;;  %11203 = vst [vmem:[#allocation26_spill] sm:$0xff] %v9365_v32 }
 0x653   : > { %v520_v54 = vld [vmem:[%s7478_s17 + $0x950] sm:$0xff]  ;;  %5478 = vmatpush.msrb.mxu3 %v720_v34 }
 0x654   : > { %v588_v20 = vld [vmem:[%s7478_s17 + $0xb70] sm:$0xff]  ;;  %5420 = vmatpush.msrb.mxu0 %v520_v54 }
 0x655   : > { %v648_v56 = vld [vmem:[%s7478_s17 + $0xd50] sm:$0xff]  ;;  %5439 = vmatpush.msrb.mxu1 %v588_v20 }
 0x656   : > { %v716_v23 = vld [vmem:[%s7478_s17 + $0xf70] sm:$0xff]  ;;  %5460 = vmatpush.msrb.mxu2 %v648_v56 }
 0x657   : > { %v516_v12 = vld [vmem:[%s7478_s17 + $0x930] sm:$0xff]  ;;  %5479 = vmatpush.msrb.mxu3 %v716_v23 }
 0x658   : > { %v584_v35 = vld [vmem:[%s7478_s17 + $0xb50] sm:$0xff]  ;;  %5421 = vmatpush.msrb.mxu0 %v516_v12  ;;  %v9357_v12 = vpop.f32.mrf.mxu2 }
 0x659   : > { %v644_v50 = vld [vmem:[%s7478_s17 + $0xd30] sm:$0xff]  ;;  %5440 = vmatpush.msrb.mxu1 %v584_v35  ;;  %11202 = vst [vmem:[#allocation25_spill] sm:$0xff] %v9357_v12  ;;  %v9377_v12 = vpop.f32.mrf.mxu1 }
 0x65a   : > { %v712_v13 = vld [vmem:[%s7478_s17 + $0xf50] sm:$0xff]  ;;  %5461 = vmatpush.msrb.mxu2 %v644_v50  ;;  %11205 = vst [vmem:[#allocation28_spill] sm:$0xff] %v9377_v12  ;;  %v9389_v12 = vpop.f32.mrf.mxu3 }
 0x65b   : > { %v512_v2 = vld [vmem:[%s7478_s17 + $0x910] sm:$0xff]  ;;  %5480 = vmatpush.msrb.mxu3 %v712_v13  ;;  %11207 = vst [vmem:[#allocation30_spill] sm:$0xff] %v9389_v12 }
 0x65c   : > { %v580_v57 = vld [vmem:[%s7478_s17 + $0xb30] sm:$0xff]  ;;  %5422 = vmatpush.msrb.mxu0 %v512_v2 }
 0x65d   : > { %v640_v34 = vld [vmem:[%s7478_s17 + $0xd10] sm:$0xff]  ;;  %5441 = vmatpush.msrb.mxu1 %v580_v57 }
 0x65e   : > { %v708_v61 = vld [vmem:[%s7478_s17 + $0xf30] sm:$0xff]  ;;  %5462 = vmatpush.msrb.mxu2 %v640_v34 }
 0x65f   : > { %v508_v54 = vld [vmem:[%s7478_s17 + $0x8f0] sm:$0xff]  ;;  %5481 = vmatpush.msrb.mxu3 %v708_v61 }
 0x660   : > { %v576_v20 = vld [vmem:[%s7478_s17 + $0xb10] sm:$0xff]  ;;  %5423 = vmatpush.msrb.mxu0 %v508_v54  ;;  %v9369_v54 = vpop.f32.mrf.mxu0 }
 0x661   : > { %v636_v23 = vld [vmem:[%s7478_s17 + $0xcf0] sm:$0xff]  ;;  %5442 = vmatpush.msrb.mxu1 %v576_v20  ;;  %11204 = vst [vmem:[#allocation27_spill] sm:$0xff] %v9369_v54 }
 0x662   : > { %v704_v56 = vld [vmem:[%s7478_s17 + $0xf10] sm:$0xff]  ;;  %5463 = vmatpush.msrb.mxu2 %v636_v23 }
 0x663   : > { %v504_v35 = vld [vmem:[%s7478_s17 + $0x8d0] sm:$0xff]  ;;  %5482 = vmatpush.msrb.mxu3 %v704_v56 }
 0x664   : > { %v572_v50 = vld [vmem:[%s7478_s17 + $0xaf0] sm:$0xff]  ;;  %5424 = vmatpush.msrb.mxu0 %v504_v35 }
 0x665   : > { %v632_v13 = vld [vmem:[%s7478_s17 + $0xcd0] sm:$0xff]  ;;  %5443 = vmatpush.msrb.mxu1 %v572_v50 }
 0x666   : > { %v700_v53 = vld [vmem:[%s7478_s17 + $0xef0] sm:$0xff]  ;;  %5464 = vmatpush.msrb.mxu2 %v632_v13 }
 0x667   : > { %v500_v2 = vld [vmem:[%s7478_s17 + $0x8b0] sm:$0xff]  ;;  %5483 = vmatpush.msrb.mxu3 %v700_v53 }
 0x668   : > { %v568_v57 = vld [vmem:[%s7478_s17 + $0xad0] sm:$0xff]  ;;  %5425 = vmatpush.msrb.mxu0 %v500_v2  ;;  %v9381_v2 = vpop.f32.mrf.mxu2 }
 0x669   : > { %v628_v61 = vld [vmem:[%s7478_s17 + $0xcb0] sm:$0xff]  ;;  %5444 = vmatpush.msrb.mxu1 %v568_v57  ;;  %11206 = vst [vmem:[#allocation29_spill] sm:$0xff] %v9381_v2  ;;  %v9393_v2 = vpop.f32.mrf.mxu0 }
 0x66a   : > { %v696_v34 = vld [vmem:[%s7478_s17 + $0xed0] sm:$0xff]  ;;  %5465 = vmatpush.msrb.mxu2 %v628_v61  ;;  %11208 = vst [vmem:[#allocation31_spill] sm:$0xff] %v9393_v2 }
 0x66b   : > { %v496_v20 = vld [vmem:[%s7478_s17 + $0x890] sm:$0xff]  ;;  %5484 = vmatpush.msrb.mxu3 %v696_v34 }
 0x66c   : > { %v564_v23 = vld [vmem:[%s7478_s17 + $0xab0] sm:$0xff]  ;;  %5426 = vmatpush.msrb.mxu0 %v496_v20 }
 0x66d   : > { %v624_v56 = vld [vmem:[%s7478_s17 + $0xc90] sm:$0xff]  ;;  %5445 = vmatpush.msrb.mxu1 %v564_v23 }
 0x66e   : > { %v692_v32 = vld [vmem:[%s7478_s17 + $0xeb0] sm:$0xff]  ;;  %5466 = vmatpush.msrb.mxu2 %v624_v56 }
 0x66f   : > { %v492_v35 = vld [vmem:[%s7478_s17 + $0x870] sm:$0xff]  ;;  %5485 = vmatpush.msrb.mxu3 %v692_v32 }
 0x670   : > { %v560_v50 = vld [vmem:[%s7478_s17 + $0xa90] sm:$0xff]  ;;  %5427 = vmatpush.msrb.mxu0 %v492_v35 }
 0x671   : > { %v620_v53 = vld [vmem:[%s7478_s17 + $0xc70] sm:$0xff]  ;;  %5446 = vmatpush.msrb.mxu1 %v560_v50 }
 0x672   : > { %v688_v13 = vld [vmem:[%s7478_s17 + $0xe90] sm:$0xff]  ;;  %5467 = vmatpush.msrb.mxu2 %v620_v53 }
 0x673   : > { %v488_v57 = vld [vmem:[%s7478_s17 + $0x850] sm:$0xff]  ;;  %5486 = vmatpush.msrb.mxu3 %v688_v13 }
 0x674   : > { %v556_v61 = vld [vmem:[%s7478_s17 + $0xa70] sm:$0xff]  ;;  %5428 = vmatpush.msrb.mxu0 %v488_v57  ;;  %v9399_v57 = vpop.f32.mrf.mxu1 }
 0x675   : > { %v616_v34 = vld [vmem:[%s7478_s17 + $0xc50] sm:$0xff]  ;;  %5447 = vmatpush.msrb.mxu1 %v556_v61  ;;  %11209 = vst [vmem:[#allocation32_spill] sm:$0xff] %v9399_v57 }
 0x676   : > { %v684_v54 = vld [vmem:[%s7478_s17 + $0xe70] sm:$0xff]  ;;  %5468 = vmatpush.msrb.mxu2 %v616_v34 }
 0x677   : > { %v484_v20 = vld [vmem:[%s7478_s17 + $0x830] sm:$0xff]  ;;  %5487 = vmatpush.msrb.mxu3 %v684_v54  ;;  %v9403_v54 = vpop.f32.mrf.mxu2 }
 0x678   : > { %v552_v23 = vld [vmem:[%s7478_s17 + $0xa50] sm:$0xff]  ;;  %5429 = vmatpush.msrb.mxu0 %v484_v20  ;;  %11210 = vst [vmem:[#allocation33_spill] sm:$0xff] %v9403_v54 }
 0x679   : > { %v612_v56 = vld [vmem:[%s7478_s17 + $0xc30] sm:$0xff]  ;;  %5448 = vmatpush.msrb.mxu1 %v552_v23 }
 0x67a   : > { %v680_v32 = vld [vmem:[%s7478_s17 + $0xe50] sm:$0xff]  ;;  %5469 = vmatpush.msrb.mxu2 %v612_v56 }
 0x67b   : > { %v480_v35 = vld [vmem:[%s7478_s17 + $0x810] sm:$0xff]  ;;  %5488 = vmatpush.msrb.mxu3 %v680_v32 }
 0x67c   : > { %v548_v50 = vld [vmem:[%s7478_s17 + $0xa30] sm:$0xff]  ;;  %5430 = vmatpush.msrb.mxu0 %v480_v35  ;;  %v9412_v35 = vpop.f32.mrf.mxu3 }
 0x67d   : > { %v608_v53 = vld [vmem:[%s7478_s17 + $0xc10] sm:$0xff]  ;;  %5449 = vmatpush.msrb.mxu1 %v548_v50  ;;  %11211 = vst [vmem:[#allocation34_spill] sm:$0xff] %v9412_v35  ;;  %5431 = vmatmul.f32.vlgmr.msrb.gmra.mxu0 %v7636_v4 }
 0x67e   : > { %v676_v13 = vld [vmem:[%s7478_s17 + $0xe30] sm:$0xff]  ;;  %5470 = vmatpush.msrb.mxu2 %v608_v53 }
 0x67f   : > { %v796_v61 = vld [vmem:[%s7478_s17 + $0x11f0] sm:$0xff]  ;;  %5489 = vmatpush.msrb.mxu3 %v676_v13  ;;  %v9416_v13 = vpop.f32.mrf.mxu0  ;;  %v9428_v2 = vpop.f32.mrf.mxu2  ;;  %5471 = vmatmul.f32.vlgmr.msrb.gmra.mxu2 %v7634_v3 }
 0x680   : > { %v924_v34 = vld [vmem:[%s7478_s17 + $0x15f0] sm:$0xff]  ;;  %5495 = vmatpush.msra.mxu0 %v796_v61  ;;  %11212 = vst [vmem:[#allocation35_spill] sm:$0xff] %v9416_v13 }
 0x681   : > { %v544_v20 = vld [vmem:[%s7478_s17 + $0xa10] sm:$0xff]  ;;  %5535 = vmatpush.msra.mxu2 %v924_v34  ;;  %11214 = vst [vmem:[#allocation37_spill] sm:$0xff] %v9428_v2 }
 0x682   : > { %v672_v23 = vld [vmem:[%s7478_s17 + $0xe10] sm:$0xff]  ;;  %5450 = vmatpush.msrb.mxu1 %v544_v20  ;;  %v9424_v20 = vpop.f32.mrf.mxu1 }
 0x683   : > { %v792_v56 = vld [vmem:[%s7478_s17 + $0x11d0] sm:$0xff]  ;;  %5490 = vmatpush.msrb.mxu3 %v672_v23  ;;  %11213 = vst [vmem:[#allocation36_spill] sm:$0xff] %v9424_v20  ;;  %5451 = vmatmul.f32.vlgmr.msrb.gmra.mxu1 %v7640_v6 }
 0x684   : > { %v860_v32 = vld [vmem:[%s7478_s17 + $0x13f0] sm:$0xff]  ;;  %5496 = vmatpush.msra.mxu0 %v792_v56  ;;  %5491 = vmatmul.f32.vlgmr.msrb.gmra.mxu3 %v7638_v5 }
 0x685   : > { %v920_v50 = vld [vmem:[%s7478_s17 + $0x15d0] sm:$0xff]  ;;  %5515 = vmatpush.msra.mxu1 %v860_v32 }
 0x686   : > { %v988_v53 = vld [vmem:[%s7478_s17 + $0x17f0] sm:$0xff]  ;;  %5536 = vmatpush.msra.mxu2 %v920_v50  ;;  %v9435_v50 = vpop.f32.mrf.mxu3 }
 0x687   : > { %v788_v54 = vld [vmem:[%s7478_s17 + $0x11b0] sm:$0xff]  ;;  %5555 = vmatpush.msra.mxu3 %v988_v53  ;;  %11215 = vst [vmem:[#allocation38_spill] sm:$0xff] %v9435_v50  ;;  %v9439_v53 = vpop.f32.mrf.mxu0  ;;  %v9453_v2 = vpop.f32.mrf.mxu2 }
 0x688   : > { %v856_v57 = vld [vmem:[%s7478_s17 + $0x13d0] sm:$0xff]  ;;  %5497 = vmatpush.msra.mxu0 %v788_v54  ;;  %11216 = vst [vmem:[#allocation39_spill] sm:$0xff] %v9439_v53 }
 0x689   : > { %v916_v61 = vld [vmem:[%s7478_s17 + $0x15b0] sm:$0xff]  ;;  %5516 = vmatpush.msra.mxu1 %v856_v57  ;;  %11218 = vst [vmem:[#allocation41_spill] sm:$0xff] %v9453_v2 }
 0x68a   : > { %v984_v35 = vld [vmem:[%s7478_s17 + $0x17d0] sm:$0xff]  ;;  %5537 = vmatpush.msra.mxu2 %v916_v61  ;;  %v9449_v50 = vpop.f32.mrf.mxu1 }
 0x68b   : > { %v784_v34 = vld [vmem:[%s7478_s17 + $0x1190] sm:$0xff]  ;;  %5556 = vmatpush.msra.mxu3 %v984_v35  ;;  %11217 = vst [vmem:[#allocation40_spill] sm:$0xff] %v9449_v50 }
 0x68c   : > { %v852_v23 = vld [vmem:[%s7478_s17 + $0x13b0] sm:$0xff]  ;;  %5498 = vmatpush.msra.mxu0 %v784_v34 }
 0x68d   : > { %v912_v13 = vld [vmem:[%s7478_s17 + $0x1590] sm:$0xff]  ;;  %5517 = vmatpush.msra.mxu1 %v852_v23 }
 0x68e   : > { %v980_v56 = vld [vmem:[%s7478_s17 + $0x17b0] sm:$0xff]  ;;  %5538 = vmatpush.msra.mxu2 %v912_v13  ;;  %v9461_v12 = vpop.f32.mrf.mxu3 }
 0x68f   : > { %v780_v32 = vld [vmem:[%s7478_s17 + $0x1170] sm:$0xff]  ;;  %5557 = vmatpush.msra.mxu3 %v980_v56  ;;  %11219 = vst [vmem:[#allocation42_spill] sm:$0xff] %v9461_v12 }
 0x690   : > { %v848_v54 = vld [vmem:[%s7478_s17 + $0x1390] sm:$0xff]  ;;  %5499 = vmatpush.msra.mxu0 %v780_v32 }
 0x691   : > { %v908_v57 = vld [vmem:[%s7478_s17 + $0x1570] sm:$0xff]  ;;  %5518 = vmatpush.msra.mxu1 %v848_v54 }
 0x692   : > { %v976_v35 = vld [vmem:[%s7478_s17 + $0x1790] sm:$0xff]  ;;  %5539 = vmatpush.msra.mxu2 %v908_v57  ;;  %v9473_v2 = vpop.f32.mrf.mxu1 }
 0x693   : > { %v776_v61 = vld [vmem:[%s7478_s17 + $0x1150] sm:$0xff]  ;;  %5558 = vmatpush.msra.mxu3 %v976_v35  ;;  %11221 = vst [vmem:[#allocation44_spill] sm:$0xff] %v9473_v2 }
 0x694   : > { %v844_v34 = vld [vmem:[%s7478_s17 + $0x1370] sm:$0xff]  ;;  %5500 = vmatpush.msra.mxu0 %v776_v61 }
 0x695   : > { %v904_v13 = vld [vmem:[%s7478_s17 + $0x1550] sm:$0xff]  ;;  %5519 = vmatpush.msra.mxu1 %v844_v34 }
 0x696   : > { %v972_v23 = vld [vmem:[%s7478_s17 + $0x1770] sm:$0xff]  ;;  %5540 = vmatpush.msra.mxu2 %v904_v13 }
 0x697   : > { %v772_v56 = vld [vmem:[%s7478_s17 + $0x1130] sm:$0xff]  ;;  %5559 = vmatpush.msra.mxu3 %v972_v23 }
 0x698   : > { %v840_v53 = vld [vmem:[%s7478_s17 + $0x1350] sm:$0xff]  ;;  %5501 = vmatpush.msra.mxu0 %v772_v56  ;;  %v9465_v56 = vpop.f32.mrf.mxu0 }
 0x699   : > { %v900_v32 = vld [vmem:[%s7478_s17 + $0x1530] sm:$0xff]  ;;  %5520 = vmatpush.msra.mxu1 %v840_v53  ;;  %11220 = vst [vmem:[#allocation43_spill] sm:$0xff] %v9465_v56  ;;  %v9485_v56 = vpop.f32.mrf.mxu3 }
 0x69a   : > { %v968_v54 = vld [vmem:[%s7478_s17 + $0x1750] sm:$0xff]  ;;  %5541 = vmatpush.msra.mxu2 %v900_v32  ;;  %11223 = vst [vmem:[#allocation46_spill] sm:$0xff] %v9485_v56 }
 0x69b   : > { %v768_v57 = vld [vmem:[%s7478_s17 + $0x1110] sm:$0xff]  ;;  %5560 = vmatpush.msra.mxu3 %v968_v54 }
 0x69c   : > { %v836_v35 = vld [vmem:[%s7478_s17 + $0x1330] sm:$0xff]  ;;  %5502 = vmatpush.msra.mxu0 %v768_v57 }
 0x69d   : > { %v896_v20 = vld [vmem:[%s7478_s17 + $0x1510] sm:$0xff]  ;;  %5521 = vmatpush.msra.mxu1 %v836_v35 }
 0x69e   : > { %v964_v50 = vld [vmem:[%s7478_s17 + $0x1730] sm:$0xff]  ;;  %5542 = vmatpush.msra.mxu2 %v896_v20 }
 0x69f   : > { %v764_v61 = vld [vmem:[%s7478_s17 + $0x10f0] sm:$0xff]  ;;  %5561 = vmatpush.msra.mxu3 %v964_v50 }
 0x6a0   : > { %v832_v34 = vld [vmem:[%s7478_s17 + $0x1310] sm:$0xff]  ;;  %5503 = vmatpush.msra.mxu0 %v764_v61  ;;  %v9477_v61 = vpop.f32.mrf.mxu2 }
 0x6a1   : > { %v892_v13 = vld [vmem:[%s7478_s17 + $0x14f0] sm:$0xff]  ;;  %5522 = vmatpush.msra.mxu1 %v832_v34  ;;  %11222 = vst [vmem:[#allocation45_spill] sm:$0xff] %v9477_v61  ;;  %v9497_v61 = vpop.f32.mrf.mxu1 }
 0x6a2   : > { %v960_v23 = vld [vmem:[%s7478_s17 + $0x1710] sm:$0xff]  ;;  %5543 = vmatpush.msra.mxu2 %v892_v13 }
 0x6a3   : > { %v760_v53 = vld [vmem:[%s7478_s17 + $0x10d0] sm:$0xff]  ;;  %5562 = vmatpush.msra.mxu3 %v960_v23 }
 0x6a4   : > { %v828_v32 = vld [vmem:[%s7478_s17 + $0x12f0] sm:$0xff]  ;;  %5504 = vmatpush.msra.mxu0 %v760_v53 }
 0x6a5   : > { %v888_v54 = vld [vmem:[%s7478_s17 + $0x14d0] sm:$0xff]  ;;  %5523 = vmatpush.msra.mxu1 %v828_v32 }
 0x6a6   : > { %v956_v12 = vld [vmem:[%s7478_s17 + $0x16f0] sm:$0xff]  ;;  %5544 = vmatpush.msra.mxu2 %v888_v54 }
 0x6a7   : > { %v756_v57 = vld [vmem:[%s7478_s17 + $0x10b0] sm:$0xff]  ;;  %5563 = vmatpush.msra.mxu3 %v956_v12 }
 0x6a8   : > { %v824_v35 = vld [vmem:[%s7478_s17 + $0x12d0] sm:$0xff]  ;;  %5505 = vmatpush.msra.mxu0 %v756_v57  ;;  %v9489_v57 = vpop.f32.mrf.mxu0 }
 0x6a9   : > { %v884_v20 = vld [vmem:[%s7478_s17 + $0x14b0] sm:$0xff]  ;;  %5524 = vmatpush.msra.mxu1 %v824_v35  ;;  %v9525_v60 = vpop.f32.mrf.mxu1 }
 0x6aa   : > { %v952_v50 = vld [vmem:[%s7478_s17 + $0x16d0] sm:$0xff]  ;;  %5545 = vmatpush.msra.mxu2 %v884_v20  ;;  %11225 = vst [vmem:[#allocation48_spill] sm:$0xff] %v9525_v60 }
 0x6ab   : > { %v752_v34 = vld [vmem:[%s7478_s17 + $0x1090] sm:$0xff]  ;;  %5564 = vmatpush.msra.mxu3 %v952_v50 }
 0x6ac   : > { %v820_v13 = vld [vmem:[%s7478_s17 + $0x12b0] sm:$0xff]  ;;  %5506 = vmatpush.msra.mxu0 %v752_v34 }
 0x6ad   : > { %v880_v23 = vld [vmem:[%s7478_s17 + $0x1490] sm:$0xff]  ;;  %5525 = vmatpush.msra.mxu1 %v820_v13 }
 0x6ae   : > { %v948_v2 = vld [vmem:[%s7478_s17 + $0x16b0] sm:$0xff]  ;;  %5546 = vmatpush.msra.mxu2 %v880_v23 }
 0x6af   : > { %v748_v53 = vld [vmem:[%s7478_s17 + $0x1070] sm:$0xff]  ;;  %5565 = vmatpush.msra.mxu3 %v948_v2 }
 0x6b0   : > { %v816_v32 = vld [vmem:[%s7478_s17 + $0x1290] sm:$0xff]  ;;  %5507 = vmatpush.msra.mxu0 %v748_v53  ;;  %v9501_v53 = vpop.f32.mrf.mxu2 }
 0x6b1   : > { %v876_v12 = vld [vmem:[%s7478_s17 + $0x1470] sm:$0xff]  ;;  %5526 = vmatpush.msra.mxu1 %v816_v32 }
 0x6b2   : > { %v944_v54 = vld [vmem:[%s7478_s17 + $0x1690] sm:$0xff]  ;;  %5547 = vmatpush.msra.mxu2 %v876_v12 }
 0x6b3   : > { %v744_v35 = vld [vmem:[%s7478_s17 + $0x1050] sm:$0xff]  ;;  %5566 = vmatpush.msra.mxu3 %v944_v54 }
 0x6b4   : > { %v812_v20 = vld [vmem:[%s7478_s17 + $0x1270] sm:$0xff]  ;;  %5508 = vmatpush.msra.mxu0 %v744_v35  ;;  %v9507_v35 = vpop.f32.mrf.mxu3 }
 0x6b5   : > { %v872_v50 = vld [vmem:[%s7478_s17 + $0x1450] sm:$0xff]  ;;  %5527 = vmatpush.msra.mxu1 %v812_v20 }
 0x6b6   : > { %v940_v56 = vld [vmem:[%s7478_s17 + $0x1670] sm:$0xff]  ;;  %5548 = vmatpush.msra.mxu2 %v872_v50 }
 0x6b7   : > { %v740_v34 = vld [vmem:[%s7478_s17 + $0x1030] sm:$0xff]  ;;  %5567 = vmatpush.msra.mxu3 %v940_v56 }
 0x6b8   : > { %v808_v13 = vld [vmem:[%s7478_s17 + $0x1250] sm:$0xff]  ;;  %5509 = vmatpush.msra.mxu0 %v740_v34 }
 0x6b9   : > { %v868_v23 = vld [vmem:[%s7478_s17 + $0x1430] sm:$0xff]  ;;  %5528 = vmatpush.msra.mxu1 %v808_v13  ;;  %v9515_v13 = vpop.f32.mrf.mxu0 }
 0x6ba   : > { %v936_v2 = vld [vmem:[%s7478_s17 + $0x1650] sm:$0xff]  ;;  %5549 = vmatpush.msra.mxu2 %v868_v23  ;;  %11224 = vst [vmem:[#allocation47_spill] sm:$0xff] %v9515_v13 }
 0x6bb   : > { %v736_v32 = vld [vmem:[%s7478_s17 + $0x1010] sm:$0xff]  ;;  %5568 = vmatpush.msra.mxu3 %v936_v2 }
 0x6bc   : > { %v804_v12 = vld [vmem:[%s7478_s17 + $0x1230] sm:$0xff]  ;;  %5510 = vmatpush.msra.mxu0 %v736_v32  ;;  %v9537_v59 = vpop.f32.mrf.mxu3 }
 0x6bd   : > { %v864_v54 = vld [vmem:[%s7478_s17 + $0x1410] sm:$0xff]  ;;  %5529 = vmatpush.msra.mxu1 %v804_v12  ;;  %5511 = vmatmul.f32.vlgmr.msra.gmra.mxu0 %v7665_v26  ;;  %11227 = vst [vmem:[#allocation50_spill] sm:$0xff] %v9537_v59 }
 0x6be   : > { %v932_v27 = vld [vmem:[%s7478_s17 + $0x1630] sm:$0xff]  ;;  %5550 = vmatpush.msra.mxu2 %v864_v54 }
 0x6bf   : > { %v1052_v20 = vld [vmem:[%s7478_s17 + $0x19f0] sm:$0xff]  ;;  %5569 = vmatpush.msra.mxu3 %v932_v27  ;;  %5551 = vmatmul.f32.vlgmr.msra.gmra.mxu2 %v7668_v28 }
 0x6c0   : > { %v1180_v56 = vld [vmem:[%s7478_s17 + $0x1df0] sm:$0xff]  ;;  %5575 = vmatpush.msrb.mxu0 %v1052_v20 }
 0x6c1   : > { %v800_v50 = vld [vmem:[%s7478_s17 + $0x1210] sm:$0xff]  ;;  %5615 = vmatpush.msrb.mxu2 %v1180_v56 }
 0x6c2   : > { %v928_v34 = vld [vmem:[%s7478_s17 + $0x1610] sm:$0xff]  ;;  %5530 = vmatpush.msra.mxu1 %v800_v50  ;;  %v9529_v50 = vpop.f32.mrf.mxu2 }
 0x6c3   : > { %v1048_v23 = vld [vmem:[%s7478_s17 + $0x19d0] sm:$0xff]  ;;  %5570 = vmatpush.msra.mxu3 %v928_v34  ;;  %5531 = vmatmul.f32.vlgmr.msra.gmra.mxu1 %v7672_v30  ;;  %11226 = vst [vmem:[#allocation49_spill] sm:$0xff] %v9529_v50  ;;  %v9549_v50 = vpop.f32.mrf.mxu1 }
 0x6c4   : > { %v1116_v2 = vld [vmem:[%s7478_s17 + $0x1bf0] sm:$0xff]  ;;  %5571 = vmatmul.f32.vlgmr.msra.gmra.mxu3 %v7674_v31  ;;  %5576 = vmatpush.msrb.mxu0 %v1048_v23  ;;  %11229 = vst [vmem:[#allocation52_spill] sm:$0xff] %v9549_v50 }
 0x6c5   : > { %v1176_v27 = vld [vmem:[%s7478_s17 + $0x1dd0] sm:$0xff]  ;;  %5595 = vmatpush.msrb.mxu1 %v1116_v2 }
 0x6c6   : > { %v1244_v32 = vld [vmem:[%s7478_s17 + $0x1ff0] sm:$0xff]  ;;  %5616 = vmatpush.msrb.mxu2 %v1176_v27 }
 0x6c7   : > { %v1044_v12 = vld [vmem:[%s7478_s17 + $0x19b0] sm:$0xff]  ;;  %5635 = vmatpush.msrb.mxu3 %v1244_v32 }
 0x6c8   : > { %v1112_v54 = vld [vmem:[%s7478_s17 + $0x1bd0] sm:$0xff]  ;;  %5577 = vmatpush.msrb.mxu0 %v1044_v12  ;;  %v9541_v12 = vpop.f32.mrf.mxu0 }
 0x6c9   : > { %v1172_v20 = vld [vmem:[%s7478_s17 + $0x1db0] sm:$0xff]  ;;  %5596 = vmatpush.msrb.mxu1 %v1112_v54  ;;  %11228 = vst [vmem:[#allocation51_spill] sm:$0xff] %v9541_v12  ;;  %v9561_v12 = vpop.f32.mrf.mxu3 }
 0x6ca   : > { %v1240_v56 = vld [vmem:[%s7478_s17 + $0x1fd0] sm:$0xff]  ;;  %5617 = vmatpush.msrb.mxu2 %v1172_v20  ;;  %11231 = vst [vmem:[#allocation54_spill] sm:$0xff] %v9561_v12 }
 0x6cb   : > { %v1040_v34 = vld [vmem:[%s7478_s17 + $0x1990] sm:$0xff]  ;;  %5636 = vmatpush.msrb.mxu3 %v1240_v56 }
 0x6cc   : > { %v1108_v55 = vld [vmem:[%s7478_s17 + $0x1bb0] sm:$0xff]  ;;  %5578 = vmatpush.msrb.mxu0 %v1040_v34 }
 0x6cd   : > { %v1168_v29 = vld [vmem:[%s7478_s17 + $0x1d90] sm:$0xff]  ;;  %5597 = vmatpush.msrb.mxu1 %v1108_v55 }
 0x6ce   : > { %v1236_v22 = vld [vmem:[%s7478_s17 + $0x1fb0] sm:$0xff]  ;;  %5618 = vmatpush.msrb.mxu2 %v1168_v29 }
 0x6cf   : > { %v1036_v23 = vld [vmem:[%s7478_s17 + $0x1970] sm:$0xff]  ;;  %5637 = vmatpush.msrb.mxu3 %v1236_v22 }
 0x6d0   : > { %v1104_v2 = vld [vmem:[%s7478_s17 + $0x1b90] sm:$0xff]  ;;  %5579 = vmatpush.msrb.mxu0 %v1036_v23  ;;  %v9553_v23 = vpop.f32.mrf.mxu2 }
 0x6d1   : > { %v1164_v27 = vld [vmem:[%s7478_s17 + $0x1d70] sm:$0xff]  ;;  %5598 = vmatpush.msrb.mxu1 %v1104_v2  ;;  %11230 = vst [vmem:[#allocation53_spill] sm:$0xff] %v9553_v23  ;;  %v9573_v23 = vpop.f32.mrf.mxu1 }
 0x6d2   : > { %v1232_v32 = vld [vmem:[%s7478_s17 + $0x1f90] sm:$0xff]  ;;  %5619 = vmatpush.msrb.mxu2 %v1164_v27  ;;  %11233 = vst [vmem:[#allocation56_spill] sm:$0xff] %v9573_v23 }
 0x6d3   : > { %v1032_v54 = vld [vmem:[%s7478_s17 + $0x1950] sm:$0xff]  ;;  %5638 = vmatpush.msrb.mxu3 %v1232_v32 }
 0x6d4   : > { %v1100_v20 = vld [vmem:[%s7478_s17 + $0x1b70] sm:$0xff]  ;;  %5580 = vmatpush.msrb.mxu0 %v1032_v54 }
 0x6d5   : > { %v1160_v56 = vld [vmem:[%s7478_s17 + $0x1d50] sm:$0xff]  ;;  %5599 = vmatpush.msrb.mxu1 %v1100_v20 }
 0x6d6   : > { %v1228_v59 = vld [vmem:[%s7478_s17 + $0x1f70] sm:$0xff]  ;;  %5620 = vmatpush.msrb.mxu2 %v1160_v56 }
 0x6d7   : > { %v1028_v55 = vld [vmem:[%s7478_s17 + $0x1930] sm:$0xff]  ;;  %5639 = vmatpush.msrb.mxu3 %v1228_v59 }
 0x6d8   : > { %v1096_v34 = vld [vmem:[%s7478_s17 + $0x1b50] sm:$0xff]  ;;  %5581 = vmatpush.msrb.mxu0 %v1028_v55  ;;  %v9565_v55 = vpop.f32.mrf.mxu0 }
 0x6d9   : > { %v1156_v22 = vld [vmem:[%s7478_s17 + $0x1d30] sm:$0xff]  ;;  %5600 = vmatpush.msrb.mxu1 %v1096_v34  ;;  %11232 = vst [vmem:[#allocation55_spill] sm:$0xff] %v9565_v55  ;;  %v9585_v55 = vpop.f32.mrf.mxu3 }
 0x6da   : > { %v1224_v29 = vld [vmem:[%s7478_s17 + $0x1f50] sm:$0xff]  ;;  %5621 = vmatpush.msrb.mxu2 %v1156_v22  ;;  %11235 = vst [vmem:[#allocation58_spill] sm:$0xff] %v9585_v55 }
 0x6db   : > { %v1024_v2 = vld [vmem:[%s7478_s17 + $0x1910] sm:$0xff]  ;;  %5640 = vmatpush.msrb.mxu3 %v1224_v29 }
 0x6dc   : > { %v1092_v27 = vld [vmem:[%s7478_s17 + $0x1b30] sm:$0xff]  ;;  %5582 = vmatpush.msrb.mxu0 %v1024_v2 }
 0x6dd   : > { %v1152_v32 = vld [vmem:[%s7478_s17 + $0x1d10] sm:$0xff]  ;;  %5601 = vmatpush.msrb.mxu1 %v1092_v27 }
 0x6de   : > { %v1220_v50 = vld [vmem:[%s7478_s17 + $0x1f30] sm:$0xff]  ;;  %5622 = vmatpush.msrb.mxu2 %v1152_v32 }
 0x6df   : > { %v1020_v54 = vld [vmem:[%s7478_s17 + $0x18f0] sm:$0xff]  ;;  %5641 = vmatpush.msrb.mxu3 %v1220_v50 }
 0x6e0   : > { %v1088_v20 = vld [vmem:[%s7478_s17 + $0x1b10] sm:$0xff]  ;;  %5583 = vmatpush.msrb.mxu0 %v1020_v54  ;;  %v9577_v54 = vpop.f32.mrf.mxu2 }
 0x6e1   : > { %v1148_v59 = vld [vmem:[%s7478_s17 + $0x1cf0] sm:$0xff]  ;;  %5602 = vmatpush.msrb.mxu1 %v1088_v20  ;;  %11234 = vst [vmem:[#allocation57_spill] sm:$0xff] %v9577_v54  ;;  %v9597_v54 = vpop.f32.mrf.mxu1 }
 0x6e2   : > { %v1216_v56 = vld [vmem:[%s7478_s17 + $0x1f10] sm:$0xff]  ;;  %5623 = vmatpush.msrb.mxu2 %v1148_v59  ;;  %11237 = vst [vmem:[#allocation60_spill] sm:$0xff] %v9597_v54 }
 0x6e3   : > { %v1016_v34 = vld [vmem:[%s7478_s17 + $0x18d0] sm:$0xff]  ;;  %5642 = vmatpush.msrb.mxu3 %v1216_v56 }
 0x6e4   : > { %v1084_v22 = vld [vmem:[%s7478_s17 + $0x1af0] sm:$0xff]  ;;  %5584 = vmatpush.msrb.mxu0 %v1016_v34 }
 0x6e5   : > { %v1144_v29 = vld [vmem:[%s7478_s17 + $0x1cd0] sm:$0xff]  ;;  %5603 = vmatpush.msrb.mxu1 %v1084_v22 }
 0x6e6   : > { %v1212_v12 = vld [vmem:[%s7478_s17 + $0x1ef0] sm:$0xff]  ;;  %5624 = vmatpush.msrb.mxu2 %v1144_v29 }
 0x6e7   : > { %v1012_v2 = vld [vmem:[%s7478_s17 + $0x18b0] sm:$0xff]  ;;  %5643 = vmatpush.msrb.mxu3 %v1212_v12 }
 0x6e8   : > { %v1080_v27 = vld [vmem:[%s7478_s17 + $0x1ad0] sm:$0xff]  ;;  %5585 = vmatpush.msrb.mxu0 %v1012_v2  ;;  %v9589_v2 = vpop.f32.mrf.mxu0 }
 0x6e9   : > { %v1140_v50 = vld [vmem:[%s7478_s17 + $0x1cb0] sm:$0xff]  ;;  %5604 = vmatpush.msrb.mxu1 %v1080_v27  ;;  %11236 = vst [vmem:[#allocation59_spill] sm:$0xff] %v9589_v2 }
 0x6ea   : > { %v1208_v32 = vld [vmem:[%s7478_s17 + $0x1ed0] sm:$0xff]  ;;  %5625 = vmatpush.msrb.mxu2 %v1140_v50 }
 0x6eb   : > { %v1008_v20 = vld [vmem:[%s7478_s17 + $0x1890] sm:$0xff]  ;;  %5644 = vmatpush.msrb.mxu3 %v1208_v32 }
 0x6ec   : > { %v1076_v59 = vld [vmem:[%s7478_s17 + $0x1ab0] sm:$0xff]  ;;  %5586 = vmatpush.msrb.mxu0 %v1008_v20 }
 0x6ed   : > { %v1136_v56 = vld [vmem:[%s7478_s17 + $0x1c90] sm:$0xff]  ;;  %5605 = vmatpush.msrb.mxu1 %v1076_v59 }
 0x6ee   : > { %v1204_v23 = vld [vmem:[%s7478_s17 + $0x1eb0] sm:$0xff]  ;;  %5626 = vmatpush.msrb.mxu2 %v1136_v56 }
 0x6ef   : > { %v1004_v34 = vld [vmem:[%s7478_s17 + $0x1870] sm:$0xff]  ;;  %5645 = vmatpush.msrb.mxu3 %v1204_v23 }
 0x6f0   : > { %v1072_v22 = vld [vmem:[%s7478_s17 + $0x1a90] sm:$0xff]  ;;  %5587 = vmatpush.msrb.mxu0 %v1004_v34  ;;  %v9601_v34 = vpop.f32.mrf.mxu2 }
 0x6f1   : > { %v1132_v12 = vld [vmem:[%s7478_s17 + $0x1c70] sm:$0xff]  ;;  %5606 = vmatpush.msrb.mxu1 %v1072_v22  ;;  %11238 = vst [vmem:[#allocation61_spill] sm:$0xff] %v9601_v34 }
 0x6f2   : > { %v1200_v29 = vld [vmem:[%s7478_s17 + $0x1e90] sm:$0xff]  ;;  %5627 = vmatpush.msrb.mxu2 %v1132_v12 }
 0x6f3   : > { %v1000_v27 = vld [vmem:[%s7478_s17 + $0x1850] sm:$0xff]  ;;  %5646 = vmatpush.msrb.mxu3 %v1200_v29 }
 0x6f4   : > { %v1068_v50 = vld [vmem:[%s7478_s17 + $0x1a70] sm:$0xff]  ;;  %5588 = vmatpush.msrb.mxu0 %v1000_v27  ;;  %v9607_v27 = vpop.f32.mrf.mxu3 }
 0x6f5   : > { %v1128_v32 = vld [vmem:[%s7478_s17 + $0x1c50] sm:$0xff]  ;;  %5607 = vmatpush.msrb.mxu1 %v1068_v50  ;;  %11239 = vst [vmem:[#allocation62_spill] sm:$0xff] %v9607_v27 }
 0x6f6   : > { %v1196_v55 = vld [vmem:[%s7478_s17 + $0x1e70] sm:$0xff]  ;;  %5628 = vmatpush.msrb.mxu2 %v1128_v32 }
 0x6f7   : > { %v996_v20 = vld [vmem:[%s7478_s17 + $0x1830] sm:$0xff]  ;;  %5647 = vmatpush.msrb.mxu3 %v1196_v55  ;;  %v9611_v55 = vpop.f32.mrf.mxu0 }
 0x6f8   : > { %v1064_v59 = vld [vmem:[%s7478_s17 + $0x1a50] sm:$0xff]  ;;  %5589 = vmatpush.msrb.mxu0 %v996_v20  ;;  %11240 = vst [vmem:[#allocation63_spill] sm:$0xff] %v9611_v55 }
 0x6f9   : > { %v1124_v56 = vld [vmem:[%s7478_s17 + $0x1c30] sm:$0xff]  ;;  %5608 = vmatpush.msrb.mxu1 %v1064_v59 }
 0x6fa   : > { %v1192_v23 = vld [vmem:[%s7478_s17 + $0x1e50] sm:$0xff]  ;;  %5629 = vmatpush.msrb.mxu2 %v1124_v56 }
 0x6fb   : > { %v992_v22 = vld [vmem:[%s7478_s17 + $0x1810] sm:$0xff]  ;;  %5648 = vmatpush.msrb.mxu3 %v1192_v23 }
 0x6fc   : > { %v1060_v12 = vld [vmem:[%s7478_s17 + $0x1a30] sm:$0xff]  ;;  %5590 = vmatpush.msrb.mxu0 %v992_v22  ;;  %v9619_v22 = vpop.f32.mrf.mxu1  ;;  %v9633_v55 = vpop.f32.mrf.mxu3 }
 0x6fd   : > { %v1120_v29 = vld [vmem:[%s7478_s17 + $0x1c10] sm:$0xff]  ;;  %5609 = vmatpush.msrb.mxu1 %v1060_v12  ;;  %5591 = vmatmul.f32.vlgmr.msrb.gmra.mxu0 %v7743_v40  ;;  %11241 = vst [vmem:[#allocation64_spill] sm:$0xff] %v9619_v22 }
 0x6fe   : > { %v1188_v2 = vld [vmem:[%s7478_s17 + $0x1e30] sm:$0xff]  ;;  %5630 = vmatpush.msrb.mxu2 %v1120_v29  ;;  %v9623_v29 = vpop.f32.mrf.mxu2  ;;  %11243 = vst [vmem:[#allocation66_spill] sm:$0xff] %v9633_v55 }
 0x6ff   : > { %v1308_v50 = vld [vmem:[%s7478_s17 + $0x21f0] sm:$0xff]  ;;  %5649 = vmatpush.msrb.mxu3 %v1188_v2  ;;  %5631 = vmatmul.f32.vlgmr.msrb.gmra.mxu2 %v7745_v41  ;;  %11242 = vst [vmem:[#allocation65_spill] sm:$0xff] %v9623_v29 }
 0x700   : > { %v1436_v32 = vld [vmem:[%s7478_s17 + $0x25f0] sm:$0xff]  ;;  %5655 = vmatpush.msra.mxu0 %v1308_v50 }
 0x701   : > { %v1056_v20 = vld [vmem:[%s7478_s17 + $0x1a10] sm:$0xff]  ;;  %5695 = vmatpush.msra.mxu2 %v1436_v32 }
 0x702   : > { %v1184_v59 = vld [vmem:[%s7478_s17 + $0x1e10] sm:$0xff]  ;;  %5610 = vmatpush.msrb.mxu1 %v1056_v20 }
 0x703   : > { %v1304_v56 = vld [vmem:[%s7478_s17 + $0x21d0] sm:$0xff]  ;;  %5650 = vmatpush.msrb.mxu3 %v1184_v59  ;;  %5611 = vmatmul.f32.vlgmr.msrb.gmra.mxu1 %v7747_v42 }
 0x704   : > { %v1372_v23 = vld [vmem:[%s7478_s17 + $0x23f0] sm:$0xff]  ;;  %5651 = vmatmul.f32.vlgmr.msrb.gmra.mxu3 %v7751_v49  ;;  %5656 = vmatpush.msra.mxu0 %v1304_v56  ;;  %v9637_v56 = vpop.f32.mrf.mxu0  ;;  %v9645_v54 = vpop.f32.mrf.mxu1 }
 0x705   : > { %v1432_v2 = vld [vmem:[%s7478_s17 + $0x25d0] sm:$0xff]  ;;  %5675 = vmatpush.msra.mxu1 %v1372_v23  ;;  %11244 = vst [vmem:[#allocation67_spill] sm:$0xff] %v9637_v56  ;;  %v9657_v56 = vpop.f32.mrf.mxu3 }
 0x706   : > { %v1500_v12 = vld [vmem:[%s7478_s17 + $0x27f0] sm:$0xff]  ;;  %5696 = vmatpush.msra.mxu2 %v1432_v2  ;;  %11245 = vst [vmem:[#allocation68_spill] sm:$0xff] %v9645_v54 }
 0x707   : > { %v1300_v50 = vld [vmem:[%s7478_s17 + $0x21b0] sm:$0xff]  ;;  %5715 = vmatpush.msra.mxu3 %v1500_v12  ;;  %11247 = vst [vmem:[#allocation70_spill] sm:$0xff] %v9657_v56 }
 0x708   : > { %v1368_v32 = vld [vmem:[%s7478_s17 + $0x23d0] sm:$0xff]  ;;  %5657 = vmatpush.msra.mxu0 %v1300_v50 }
 0x709   : > { %v1428_v22 = vld [vmem:[%s7478_s17 + $0x25b0] sm:$0xff]  ;;  %5676 = vmatpush.msra.mxu1 %v1368_v32 }
 0x70a   : > { %v1496_v20 = vld [vmem:[%s7478_s17 + $0x27d0] sm:$0xff]  ;;  %5697 = vmatpush.msra.mxu2 %v1428_v22 }
 0x70b   : > { %v1296_v59 = vld [vmem:[%s7478_s17 + $0x2190] sm:$0xff]  ;;  %5716 = vmatpush.msra.mxu3 %v1496_v20 }
 0x70c   : > { %v1364_v29 = vld [vmem:[%s7478_s17 + $0x23b0] sm:$0xff]  ;;  %5658 = vmatpush.msra.mxu0 %v1296_v59  ;;  %v9649_v59 = vpop.f32.mrf.mxu2 }
 0x70d   : > { %v1424_v27 = vld [vmem:[%s7478_s17 + $0x2590] sm:$0xff]  ;;  %5677 = vmatpush.msra.mxu1 %v1364_v29  ;;  %11246 = vst [vmem:[#allocation69_spill] sm:$0xff] %v9649_v59  ;;  %v9669_v59 = vpop.f32.mrf.mxu1 }
 0x70e   : > { %v1492_v34 = vld [vmem:[%s7478_s17 + $0x27b0] sm:$0xff]  ;;  %5698 = vmatpush.msra.mxu2 %v1424_v27  ;;  %11249 = vst [vmem:[#allocation72_spill] sm:$0xff] %v9669_v59 }
 0x70f   : > { %v1292_v23 = vld [vmem:[%s7478_s17 + $0x2170] sm:$0xff]  ;;  %5717 = vmatpush.msra.mxu3 %v1492_v34 }
 0x710   : > { %v1360_v2 = vld [vmem:[%s7478_s17 + $0x2390] sm:$0xff]  ;;  %5659 = vmatpush.msra.mxu0 %v1292_v23 }
 0x711   : > { %v1420_v12 = vld [vmem:[%s7478_s17 + $0x2570] sm:$0xff]  ;;  %5678 = vmatpush.msra.mxu1 %v1360_v2 }
 0x712   : > { %v1488_v55 = vld [vmem:[%s7478_s17 + $0x2790] sm:$0xff]  ;;  %5699 = vmatpush.msra.mxu2 %v1420_v12 }
 0x713   : > { %v1288_v50 = vld [vmem:[%s7478_s17 + $0x2150] sm:$0xff]  ;;  %5718 = vmatpush.msra.mxu3 %v1488_v55 }
 0x714   : > { %v1356_v32 = vld [vmem:[%s7478_s17 + $0x2370] sm:$0xff]  ;;  %5660 = vmatpush.msra.mxu0 %v1288_v50  ;;  %v9661_v50 = vpop.f32.mrf.mxu0 }
 0x715   : > { %v1416_v22 = vld [vmem:[%s7478_s17 + $0x2550] sm:$0xff]  ;;  %5679 = vmatpush.msra.mxu1 %v1356_v32  ;;  %11248 = vst [vmem:[#allocation71_spill] sm:$0xff] %v9661_v50  ;;  %v9681_v50 = vpop.f32.mrf.mxu3 }
 0x716   : > { %v1484_v20 = vld [vmem:[%s7478_s17 + $0x2770] sm:$0xff]  ;;  %5700 = vmatpush.msra.mxu2 %v1416_v22  ;;  %11251 = vst [vmem:[#allocation74_spill] sm:$0xff] %v9681_v50 }
 0x717   : > { %v1284_v27 = vld [vmem:[%s7478_s17 + $0x2130] sm:$0xff]  ;;  %5719 = vmatpush.msra.mxu3 %v1484_v20 }
 0x718   : > { %v1352_v29 = vld [vmem:[%s7478_s17 + $0x2350] sm:$0xff]  ;;  %5661 = vmatpush.msra.mxu0 %v1284_v27 }
 0x719   : > { %v1412_v34 = vld [vmem:[%s7478_s17 + $0x2530] sm:$0xff]  ;;  %5680 = vmatpush.msra.mxu1 %v1352_v29 }
 0x71a   : > { %v1480_v54 = vld [vmem:[%s7478_s17 + $0x2750] sm:$0xff]  ;;  %5701 = vmatpush.msra.mxu2 %v1412_v34 }
 0x71b   : > { %v1280_v23 = vld [vmem:[%s7478_s17 + $0x2110] sm:$0xff]  ;;  %5720 = vmatpush.msra.mxu3 %v1480_v54 }
 0x71c   : > { %v1348_v2 = vld [vmem:[%s7478_s17 + $0x2330] sm:$0xff]  ;;  %5662 = vmatpush.msra.mxu0 %v1280_v23  ;;  %v9673_v23 = vpop.f32.mrf.mxu2 }
 0x71d   : > { %v1408_v55 = vld [vmem:[%s7478_s17 + $0x2510] sm:$0xff]  ;;  %5681 = vmatpush.msra.mxu1 %v1348_v2  ;;  %11250 = vst [vmem:[#allocation73_spill] sm:$0xff] %v9673_v23  ;;  %v9693_v23 = vpop.f32.mrf.mxu1 }
 0x71e   : > { %v1476_v12 = vld [vmem:[%s7478_s17 + $0x2730] sm:$0xff]  ;;  %5702 = vmatpush.msra.mxu2 %v1408_v55  ;;  %11253 = vst [vmem:[#allocation76_spill] sm:$0xff] %v9693_v23  ;;  %v9705_v23 = vpop.f32.mrf.mxu3 }
 0x71f   : > { %v1276_v32 = vld [vmem:[%s7478_s17 + $0x20f0] sm:$0xff]  ;;  %5721 = vmatpush.msra.mxu3 %v1476_v12  ;;  %11255 = vst [vmem:[#allocation78_spill] sm:$0xff] %v9705_v23 }
 0x720   : > { %v1344_v22 = vld [vmem:[%s7478_s17 + $0x2310] sm:$0xff]  ;;  %5663 = vmatpush.msra.mxu0 %v1276_v32 }
 0x721   : > { %v1404_v20 = vld [vmem:[%s7478_s17 + $0x24f0] sm:$0xff]  ;;  %5682 = vmatpush.msra.mxu1 %v1344_v22 }
 0x722   : > { %v1472_v56 = vld [vmem:[%s7478_s17 + $0x2710] sm:$0xff]  ;;  %5703 = vmatpush.msra.mxu2 %v1404_v20 }
 0x723   : > { %v1272_v27 = vld [vmem:[%s7478_s17 + $0x20d0] sm:$0xff]  ;;  %5722 = vmatpush.msra.mxu3 %v1472_v56 }
 0x724   : > { %v1340_v29 = vld [vmem:[%s7478_s17 + $0x22f0] sm:$0xff]  ;;  %5664 = vmatpush.msra.mxu0 %v1272_v27  ;;  %v9685_v27 = vpop.f32.mrf.mxu0 }
 0x725   : > { %v1400_v54 = vld [vmem:[%s7478_s17 + $0x24d0] sm:$0xff]  ;;  %5683 = vmatpush.msra.mxu1 %v1340_v29  ;;  %11252 = vst [vmem:[#allocation75_spill] sm:$0xff] %v9685_v27 }
 0x726   : > { %v1468_v34 = vld [vmem:[%s7478_s17 + $0x26f0] sm:$0xff]  ;;  %5704 = vmatpush.msra.mxu2 %v1400_v54 }
 0x727   : > { %v1268_v2 = vld [vmem:[%s7478_s17 + $0x20b0] sm:$0xff]  ;;  %5723 = vmatpush.msra.mxu3 %v1468_v34 }
 0x728   : > { %v1336_v55 = vld [vmem:[%s7478_s17 + $0x22d0] sm:$0xff]  ;;  %5665 = vmatpush.msra.mxu0 %v1268_v2 }
 0x729   : > { %v1396_v12 = vld [vmem:[%s7478_s17 + $0x24b0] sm:$0xff]  ;;  %5684 = vmatpush.msra.mxu1 %v1336_v55 }
 0x72a   : > { %v1464_v59 = vld [vmem:[%s7478_s17 + $0x26d0] sm:$0xff]  ;;  %5705 = vmatpush.msra.mxu2 %v1396_v12 }
 0x72b   : > { %v1264_v32 = vld [vmem:[%s7478_s17 + $0x2090] sm:$0xff]  ;;  %5724 = vmatpush.msra.mxu3 %v1464_v59 }
 0x72c   : > { %v1332_v22 = vld [vmem:[%s7478_s17 + $0x22b0] sm:$0xff]  ;;  %5666 = vmatpush.msra.mxu0 %v1264_v32  ;;  %v9697_v32 = vpop.f32.mrf.mxu2 }
 0x72d   : > { %v1392_v56 = vld [vmem:[%s7478_s17 + $0x2490] sm:$0xff]  ;;  %5685 = vmatpush.msra.mxu1 %v1332_v22  ;;  %11254 = vst [vmem:[#allocation77_spill] sm:$0xff] %v9697_v32  ;;  %v9709_v32 = vpop.f32.mrf.mxu0 }
 0x72e   : > { %v1460_v20 = vld [vmem:[%s7478_s17 + $0x26b0] sm:$0xff]  ;;  %5706 = vmatpush.msra.mxu2 %v1392_v56  ;;  %11256 = vst [vmem:[#allocation79_spill] sm:$0xff] %v9709_v32 }
 0x72f   : > { %v1260_v29 = vld [vmem:[%s7478_s17 + $0x2070] sm:$0xff]  ;;  %5725 = vmatpush.msra.mxu3 %v1460_v20 }
 0x730   : > { %v1328_v54 = vld [vmem:[%s7478_s17 + $0x2290] sm:$0xff]  ;;  %5667 = vmatpush.msra.mxu0 %v1260_v29 }
 0x731   : > { %v1388_v34 = vld [vmem:[%s7478_s17 + $0x2470] sm:$0xff]  ;;  %5686 = vmatpush.msra.mxu1 %v1328_v54 }
 0x732   : > { %v1456_v50 = vld [vmem:[%s7478_s17 + $0x2690] sm:$0xff]  ;;  %5707 = vmatpush.msra.mxu2 %v1388_v34 }
 0x733   : > { %v1256_v2 = vld [vmem:[%s7478_s17 + $0x2050] sm:$0xff]  ;;  %5726 = vmatpush.msra.mxu3 %v1456_v50 }
 0x734   : > { %v1324_v55 = vld [vmem:[%s7478_s17 + $0x2270] sm:$0xff]  ;;  %5668 = vmatpush.msra.mxu0 %v1256_v2 }
 0x735   : > { %v1384_v59 = vld [vmem:[%s7478_s17 + $0x2450] sm:$0xff]  ;;  %5687 = vmatpush.msra.mxu1 %v1324_v55 }
 0x736   : > { %v1452_v12 = vld [vmem:[%s7478_s17 + $0x2670] sm:$0xff]  ;;  %5708 = vmatpush.msra.mxu2 %v1384_v59 }
 0x737   : > { %v1252_v22 = vld [vmem:[%s7478_s17 + $0x2030] sm:$0xff]  ;;  %5727 = vmatpush.msra.mxu3 %v1452_v12 }
 0x738   : > { %v1320_v56 = vld [vmem:[%s7478_s17 + $0x2250] sm:$0xff]  ;;  %5669 = vmatpush.msra.mxu0 %v1252_v22  ;;  %v9715_v22 = vpop.f32.mrf.mxu1 }
 0x739   : > { %v1380_v20 = vld [vmem:[%s7478_s17 + $0x2430] sm:$0xff]  ;;  %5688 = vmatpush.msra.mxu1 %v1320_v56  ;;  %11257 = vst [vmem:[#allocation80_spill] sm:$0xff] %v9715_v22 }
 0x73a   : > { %v1448_v27 = vld [vmem:[%s7478_s17 + $0x2650] sm:$0xff]  ;;  %5709 = vmatpush.msra.mxu2 %v1380_v20 }
 0x73b   : > { %v1248_v29 = vld [vmem:[%s7478_s17 + $0x2010] sm:$0xff]  ;;  %5728 = vmatpush.msra.mxu3 %v1448_v27  ;;  %v9719_v27 = vpop.f32.mrf.mxu2 }
 0x73c   : > { %v1316_v54 = vld [vmem:[%s7478_s17 + $0x2230] sm:$0xff]  ;;  %5670 = vmatpush.msra.mxu0 %v1248_v29  ;;  %11258 = vst [vmem:[#allocation81_spill] sm:$0xff] %v9719_v27  ;;  %v9729_v27 = vpop.f32.mrf.mxu3 }
 0x73d   : > { %v1376_v34 = vld [vmem:[%s7478_s17 + $0x2410] sm:$0xff]  ;;  %5689 = vmatpush.msra.mxu1 %v1316_v54  ;;  %5671 = vmatmul.f32.vlgmr.msra.gmra.mxu0 %v7871_v8  ;;  %11259 = vst [vmem:[#allocation82_spill] sm:$0xff] %v9729_v27 }
 0x73e   : > { %v1444_v50 = vld [vmem:[%s7478_s17 + $0x2630] sm:$0xff]  ;;  %5710 = vmatpush.msra.mxu2 %v1376_v34 }
 0x73f   : > { %v1564_v2 = vld [vmem:[%s7478_s17 + $0x29f0] sm:$0xff]  ;;  %5729 = vmatpush.msra.mxu3 %v1444_v50  ;;  %5711 = vmatmul.f32.vlgmr.msra.gmra.mxu2 %v7873_v9 }
 0x740   : > { %v1692_v55 = vld [vmem:[%s7478_s17 + $0x2df0] sm:$0xff]  ;;  %5735 = vmatpush.msrb.mxu0 %v1564_v2  ;;  %v9741_v23 = vpop.f32.mrf.mxu1 }
 0x741   : > { %v1312_v59 = vld [vmem:[%s7478_s17 + $0x2210] sm:$0xff]  ;;  %5775 = vmatpush.msrb.mxu2 %v1692_v55  ;;  %11261 = vst [vmem:[#allocation84_spill] sm:$0xff] %v9741_v23 }
 0x742   : > { %v1440_v12 = vld [vmem:[%s7478_s17 + $0x2610] sm:$0xff]  ;;  %5690 = vmatpush.msra.mxu1 %v1312_v59  ;;  %v9733_v59 = vpop.f32.mrf.mxu0 }
 0x743   : > { %v1560_v56 = vld [vmem:[%s7478_s17 + $0x29d0] sm:$0xff]  ;;  %5730 = vmatpush.msra.mxu3 %v1440_v12  ;;  %5691 = vmatmul.f32.vlgmr.msra.gmra.mxu1 %v7881_v14  ;;  %11260 = vst [vmem:[#allocation83_spill] sm:$0xff] %v9733_v59 }
 0x744   : > { %v1628_v20 = vld [vmem:[%s7478_s17 + $0x2bf0] sm:$0xff]  ;;  %5731 = vmatmul.f32.vlgmr.msra.gmra.mxu3 %v7883_v15  ;;  %5736 = vmatpush.msrb.mxu0 %v1560_v56  ;;  %v9753_v59 = vpop.f32.mrf.mxu3 }
 0x745   : > { %v1688_v29 = vld [vmem:[%s7478_s17 + $0x2dd0] sm:$0xff]  ;;  %5755 = vmatpush.msrb.mxu1 %v1628_v20  ;;  %11263 = vst [vmem:[#allocation86_spill] sm:$0xff] %v9753_v59 }
 0x746   : > { %v1756_v54 = vld [vmem:[%s7478_s17 + $0x2ff0] sm:$0xff]  ;;  %5776 = vmatpush.msrb.mxu2 %v1688_v29 }
 0x747   : > { %v1556_v34 = vld [vmem:[%s7478_s17 + $0x29b0] sm:$0xff]  ;;  %5795 = vmatpush.msrb.mxu3 %v1756_v54 }
 0x748   : > { %v1624_v50 = vld [vmem:[%s7478_s17 + $0x2bd0] sm:$0xff]  ;;  %5737 = vmatpush.msrb.mxu0 %v1556_v34  ;;  %v9745_v34 = vpop.f32.mrf.mxu2 }
 0x749   : > { %v1684_v2 = vld [vmem:[%s7478_s17 + $0x2db0] sm:$0xff]  ;;  %5756 = vmatpush.msrb.mxu1 %v1624_v50  ;;  %11262 = vst [vmem:[#allocation85_spill] sm:$0xff] %v9745_v34  ;;  %v9765_v34 = vpop.f32.mrf.mxu1 }
 0x74a   : > { %v1752_v55 = vld [vmem:[%s7478_s17 + $0x2fd0] sm:$0xff]  ;;  %5777 = vmatpush.msrb.mxu2 %v1684_v2  ;;  %11265 = vst [vmem:[#allocation88_spill] sm:$0xff] %v9765_v34 }
 0x74b   : > { %v1552_v12 = vld [vmem:[%s7478_s17 + $0x2990] sm:$0xff]  ;;  %5796 = vmatpush.msrb.mxu3 %v1752_v55 }
 0x74c   : > { %v1620_v22 = vld [vmem:[%s7478_s17 + $0x2bb0] sm:$0xff]  ;;  %5738 = vmatpush.msrb.mxu0 %v1552_v12 }
 0x74d   : > { %v1680_v32 = vld [vmem:[%s7478_s17 + $0x2d90] sm:$0xff]  ;;  %5757 = vmatpush.msrb.mxu1 %v1620_v22 }
 0x74e   : > { %v1748_v27 = vld [vmem:[%s7478_s17 + $0x2fb0] sm:$0xff]  ;;  %5778 = vmatpush.msrb.mxu2 %v1680_v32 }
 0x74f   : > { %v1548_v56 = vld [vmem:[%s7478_s17 + $0x2970] sm:$0xff]  ;;  %5797 = vmatpush.msrb.mxu3 %v1748_v27 }
 0x750   : > { %v1616_v20 = vld [vmem:[%s7478_s17 + $0x2b90] sm:$0xff]  ;;  %5739 = vmatpush.msrb.mxu0 %v1548_v56  ;;  %v9757_v56 = vpop.f32.mrf.mxu0 }
 0x751   : > { %v1676_v29 = vld [vmem:[%s7478_s17 + $0x2d70] sm:$0xff]  ;;  %5758 = vmatpush.msrb.mxu1 %v1616_v20  ;;  %11264 = vst [vmem:[#allocation87_spill] sm:$0xff] %v9757_v56  ;;  %v9777_v56 = vpop.f32.mrf.mxu3 }
 0x752   : > { %v1744_v54 = vld [vmem:[%s7478_s17 + $0x2f90] sm:$0xff]  ;;  %5779 = vmatpush.msrb.mxu2 %v1676_v29  ;;  %11267 = vst [vmem:[#allocation90_spill] sm:$0xff] %v9777_v56  ;;  %v5372_v56 = vpop.f32.mrf.mxu1 }
 0x753   : > { %v1544_v50 = vld [vmem:[%s7478_s17 + $0x2950] sm:$0xff]  ;;  %5798 = vmatpush.msrb.mxu3 %v1744_v54 }
 0x754   : > { %v1612_v2 = vld [vmem:[%s7478_s17 + $0x2b70] sm:$0xff]  ;;  %5740 = vmatpush.msrb.mxu0 %v1544_v50 }
 0x755   : > { %v1672_v55 = vld [vmem:[%s7478_s17 + $0x2d50] sm:$0xff]  ;;  %5759 = vmatpush.msrb.mxu1 %v1612_v2 }
 0x756   : > { %v1740_v23 = vld [vmem:[%s7478_s17 + $0x2f70] sm:$0xff]  ;;  %5780 = vmatpush.msrb.mxu2 %v1672_v55 }
 0x757   : > { %v1540_v22 = vld [vmem:[%s7478_s17 + $0x2930] sm:$0xff]  ;;  %5799 = vmatpush.msrb.mxu3 %v1740_v23 }
 0x758   : > { %v1608_v12 = vld [vmem:[%s7478_s17 + $0x2b50] sm:$0xff]  ;;  %5741 = vmatpush.msrb.mxu0 %v1540_v22  ;;  %v9769_v22 = vpop.f32.mrf.mxu2 }
 0x759   : > { %v1668_v32 = vld [vmem:[%s7478_s17 + $0x2d30] sm:$0xff]  ;;  %5760 = vmatpush.msrb.mxu1 %v1608_v12  ;;  %11266 = vst [vmem:[#allocation89_spill] sm:$0xff] %v9769_v22 }
 0x75a   : > { %v1736_v27 = vld [vmem:[%s7478_s17 + $0x2f50] sm:$0xff]  ;;  %5781 = vmatpush.msrb.mxu2 %v1668_v32 }
 0x75b   : > { %v1536_v20 = vld [vmem:[%s7478_s17 + $0x2910] sm:$0xff]  ;;  %5800 = vmatpush.msrb.mxu3 %v1736_v27 }
 0x75c   : > { %v1604_v29 = vld [vmem:[%s7478_s17 + $0x2b30] sm:$0xff]  ;;  %5742 = vmatpush.msrb.mxu0 %v1536_v20 }
 0x75d   : > { %v1664_v54 = vld [vmem:[%s7478_s17 + $0x2d10] sm:$0xff]  ;;  %5761 = vmatpush.msrb.mxu1 %v1604_v29 }
 0x75e   : > { %v1732_v59 = vld [vmem:[%s7478_s17 + $0x2f30] sm:$0xff]  ;;  %5782 = vmatpush.msrb.mxu2 %v1664_v54 }
 0x75f   : > { %v1532_v50 = vld [vmem:[%s7478_s17 + $0x28f0] sm:$0xff]  ;;  %5801 = vmatpush.msrb.mxu3 %v1732_v59 }
 0x760   : > { %v1600_v2 = vld [vmem:[%s7478_s17 + $0x2b10] sm:$0xff]  ;;  %5743 = vmatpush.msrb.mxu0 %v1532_v50 }
 0x761   : > { %v1660_v23 = vld [vmem:[%s7478_s17 + $0x2cf0] sm:$0xff]  ;;  %5762 = vmatpush.msrb.mxu1 %v1600_v2 }
 0x762   : > { %v1728_v55 = vld [vmem:[%s7478_s17 + $0x2f10] sm:$0xff]  ;;  %5783 = vmatpush.msrb.mxu2 %v1660_v23  ;;  %v5352_v23 = vpop.f32.mrf.mxu0 }
 0x763   : > { %v1528_v12 = vld [vmem:[%s7478_s17 + $0x28d0] sm:$0xff]  ;;  %5802 = vmatpush.msrb.mxu3 %v1728_v55  ;;  %v5373_v60 = vadd.f32 %v5372_v56, %v5352_v23  ;;  %v5412_v56 = vpop.f32.mrf.mxu3 }
 0x764   : > { %v1596_v32 = vld [vmem:[%s7478_s17 + $0x2af0] sm:$0xff]  ;;  %5744 = vmatpush.msrb.mxu0 %v1528_v12 }
 0x765   : > { %v1656_v27 = vld [vmem:[%s7478_s17 + $0x2cd0] sm:$0xff]  ;;  %5763 = vmatpush.msrb.mxu1 %v1596_v32 }
 0x766   : > { %v1724_v34 = vld [vmem:[%s7478_s17 + $0x2ef0] sm:$0xff]  ;;  %5784 = vmatpush.msrb.mxu2 %v1656_v27 }
 0x767   : > { %v1524_v20 = vld [vmem:[%s7478_s17 + $0x28b0] sm:$0xff]  ;;  %5803 = vmatpush.msrb.mxu3 %v1724_v34 }
 0x768   : > { %v1592_v29 = vld [vmem:[%s7478_s17 + $0x2ad0] sm:$0xff]  ;;  %5745 = vmatpush.msrb.mxu0 %v1524_v20 }
 0x769   : > { %v1652_v59 = vld [vmem:[%s7478_s17 + $0x2cb0] sm:$0xff]  ;;  %5764 = vmatpush.msrb.mxu1 %v1592_v29 }
 0x76a   : > { %v1720_v54 = vld [vmem:[%s7478_s17 + $0x2ed0] sm:$0xff]  ;;  %5785 = vmatpush.msrb.mxu2 %v1652_v59  ;;  %v5392_v59 = vpop.f32.mrf.mxu2 }
 0x76b   : > { %v1520_v50 = vld [vmem:[%s7478_s17 + $0x2890] sm:$0xff]  ;;  %5804 = vmatpush.msrb.mxu3 %v1720_v54 }
 0x76c   : > { %v1588_v2 = vld [vmem:[%s7478_s17 + $0x2ab0] sm:$0xff]  ;;  %5746 = vmatpush.msrb.mxu0 %v1520_v50 }
 0x76d   : > { %v1648_v55 = vld [vmem:[%s7478_s17 + $0x2c90] sm:$0xff]  ;;  %5765 = vmatpush.msrb.mxu1 %v1588_v2 }
 0x76e   : > { %v1716_v22 = vld [vmem:[%s7478_s17 + $0x2eb0] sm:$0xff]  ;;  %5786 = vmatpush.msrb.mxu2 %v1648_v55  ;;  %v5393_v55 = vadd.f32 %v5392_v59, %v5373_v60  ;;  %v5432_v60 = vpop.f32.mrf.mxu0 }
 0x76f   : > { %v1516_v12 = vld [vmem:[%s7478_s17 + $0x2870] sm:$0xff]  ;;  %5805 = vmatpush.msrb.mxu3 %v1716_v22 }
 0x770   : > { %v1584_v32 = vld [vmem:[%s7478_s17 + $0x2a90] sm:$0xff]  ;;  %5747 = vmatpush.msrb.mxu0 %v1516_v12 }
 0x771   : > { %v1644_v27 = vld [vmem:[%s7478_s17 + $0x2c70] sm:$0xff]  ;;  %5766 = vmatpush.msrb.mxu1 %v1584_v32  ;;  %v5413_v32 = vadd.f32 %v5412_v56, %v5393_v55 }
 0x772   : > { %v1712_v34 = vld [vmem:[%s7478_s17 + $0x2e90] sm:$0xff]  ;;  %5787 = vmatpush.msrb.mxu2 %v1644_v27 }
 0x773   : > { %v1512_v20 = vld [vmem:[%s7478_s17 + $0x2850] sm:$0xff]  ;;  %5806 = vmatpush.msrb.mxu3 %v1712_v34  ;;  %v5433_v59 = vadd.f32 %v5432_v60, %v5413_v32 }
 0x774   : > { %v1580_v29 = vld [vmem:[%s7478_s17 + $0x2a70] sm:$0xff]  ;;  %5748 = vmatpush.msrb.mxu0 %v1512_v20 }
 0x775   : > { %v1640_v54 = vld [vmem:[%s7478_s17 + $0x2c50] sm:$0xff]  ;;  %5767 = vmatpush.msrb.mxu1 %v1580_v29 }
 0x776   : > { %v1708_v50 = vld [vmem:[%s7478_s17 + $0x2e70] sm:$0xff]  ;;  %5788 = vmatpush.msrb.mxu2 %v1640_v54 }
 0x777   : > { %v1508_v2 = vld [vmem:[%s7478_s17 + $0x2830] sm:$0xff]  ;;  %5807 = vmatpush.msrb.mxu3 %v1708_v50  ;;  %5768 = vmatpush.msrb.mxu1 %v1576_v33  ;;  %v5452_v33 = vpop.f32.mrf.mxu1 }
 0x778   : > { %v1636_v22 = vld [vmem:[%s7478_s17 + $0x2c30] sm:$0xff]  ;;  %5749 = vmatpush.msrb.mxu0 %v1508_v2  ;;  %v5453_v55 = vadd.f32 %v5452_v33, %v5433_v59 }
 0x779   : > { %v1704_v13 = vld [vmem:[%s7478_s17 + $0x2e50] sm:$0xff]  ;;  %5789 = vmatpush.msrb.mxu2 %v1636_v22  ;;  %v5472_v22 = vpop.f32.mrf.mxu2 }
 0x77a   : > { %v1504_v23 = vld [vmem:[%s7478_s17 + $0x2810] sm:$0xff]  ;;  %5808 = vmatpush.msrb.mxu3 %v1704_v13 }
 0x77b   : > { %v1572_v12 = vld [vmem:[%s7478_s17 + $0x2a30] sm:$0xff]  ;;  %5750 = vmatpush.msrb.mxu0 %v1504_v23 }
 0x77c   : > { %v1632_v27 = vld [vmem:[%s7478_s17 + $0x2c10] sm:$0xff]  ;;  %5769 = vmatpush.msrb.mxu1 %v1572_v12  ;;  %5751 = vmatmul.f32.vlgmr.msrb.gmra.mxu0 %v7948_v37 }
 0x77d   : > { %v1700_v34 = vld [vmem:[%s7478_s17 + $0x2e30] sm:$0xff]  ;;  %5790 = vmatpush.msrb.mxu2 %v1632_v27  ;;  %v5473_v27 = vadd.f32 %v5472_v22, %v5453_v55 }
 0x77e   : > { %v1820_v20 = vld [vmem:[%s7478_s17 + $0x31f0] sm:$0xff]  ;;  %5809 = vmatpush.msrb.mxu3 %v1700_v34  ;;  %5791 = vmatmul.f32.vlgmr.msrb.gmra.mxu2 %v7950_v38 }
 0x77f   : > { %v1948_v29 = vld [vmem:[%s7478_s17 + $0x35f0] sm:$0xff]  ;;  %5815 = vmatpush.msra.mxu0 %v1820_v20  ;;  %v5492_v20 = vpop.f32.mrf.mxu3 }
 0x780   : > { %v1568_v54 = vld [vmem:[%s7478_s17 + $0x2a10] sm:$0xff]  ;;  %5855 = vmatpush.msra.mxu2 %v1948_v29 }
 0x781   : > { %v1696_v50 = vld [vmem:[%s7478_s17 + $0x2e10] sm:$0xff]  ;;  %5770 = vmatpush.msrb.mxu1 %v1568_v54  ;;  %v9819_v54 = vadd.f32 %v5492_v20, %v5473_v27 }
 0x782   : > { %v1816_v13 = vld [vmem:[%s7478_s17 + $0x31d0] sm:$0xff]  ;;  %5810 = vmatpush.msrb.mxu3 %v1696_v50  ;;  %5771 = vmatmul.f32.vlgmr.msrb.gmra.mxu1 %v7958_v51 }
 0x783   : > { %v1884_v2 = vld [vmem:[%s7478_s17 + $0x33f0] sm:$0xff]  ;;  %5811 = vmatmul.f32.vlgmr.msrb.gmra.mxu3 %v7960_v52  ;;  %5816 = vmatpush.msra.mxu0 %v1816_v13 }
 0x784   : > { %v1944_v56 = vld [vmem:[%s7478_s17 + $0x35d0] sm:$0xff]  ;;  %5835 = vmatpush.msra.mxu1 %v1884_v2 }
 0x785   : > { %v2012_v23 = vld [vmem:[%s7478_s17 + $0x37f0] sm:$0xff]  ;;  %5856 = vmatpush.msra.mxu2 %v1944_v56 }
 0x786   : > { %v1812_v12 = vld [vmem:[%s7478_s17 + $0x31b0] sm:$0xff]  ;;  %5875 = vmatpush.msra.mxu3 %v2012_v23 }
 0x787   : > { %v1880_v32 = vld [vmem:[%s7478_s17 + $0x33d0] sm:$0xff]  ;;  %5817 = vmatpush.msra.mxu0 %v1812_v12 }
 0x788   : > { %v1940_v34 = vld [vmem:[%s7478_s17 + $0x35b0] sm:$0xff]  ;;  %5836 = vmatpush.msra.mxu1 %v1880_v32 }
 0x789   : > { %v2008_v60 = vld [vmem:[%s7478_s17 + $0x37d0] sm:$0xff]  ;;  %5857 = vmatpush.msra.mxu2 %v1940_v34 }
 0x78a   : > { %v1808_v29 = vld [vmem:[%s7478_s17 + $0x3190] sm:$0xff]  ;;  %5876 = vmatpush.msra.mxu3 %v2008_v60 }
 0x78b   : > { %v1876_v59 = vld [vmem:[%s7478_s17 + $0x33b0] sm:$0xff]  ;;  %5818 = vmatpush.msra.mxu0 %v1808_v29 }
 0x78c   : > { %v1936_v50 = vld [vmem:[%s7478_s17 + $0x3590] sm:$0xff]  ;;  %5837 = vmatpush.msra.mxu1 %v1876_v59 }
 0x78d   : > { %v2004_v33 = vld [vmem:[%s7478_s17 + $0x37b0] sm:$0xff]  ;;  %5858 = vmatpush.msra.mxu2 %v1936_v50 }
 0x78e   : > { %v1804_v13 = vld [vmem:[%s7478_s17 + $0x3170] sm:$0xff]  ;;  %5877 = vmatpush.msra.mxu3 %v2004_v33 }
 0x78f   : > { %v1872_v2 = vld [vmem:[%s7478_s17 + $0x3390] sm:$0xff]  ;;  %5819 = vmatpush.msra.mxu0 %v1804_v13 }
 0x790   : > { %v1932_v55 = vld [vmem:[%s7478_s17 + $0x3570] sm:$0xff]  ;;  %5838 = vmatpush.msra.mxu1 %v1872_v2 }
 0x791   : > { %v2000_v22 = vld [vmem:[%s7478_s17 + $0x3790] sm:$0xff]  ;;  %5859 = vmatpush.msra.mxu2 %v1932_v55 }
 0x792   : > { %v1800_v56 = vld [vmem:[%s7478_s17 + $0x3150] sm:$0xff]  ;;  %5878 = vmatpush.msra.mxu3 %v2000_v22 }
 0x793   : > { %v1868_v23 = vld [vmem:[%s7478_s17 + $0x3370] sm:$0xff]  ;;  %5820 = vmatpush.msra.mxu0 %v1800_v56 }
 0x794   : > { %v1928_v12 = vld [vmem:[%s7478_s17 + $0x3550] sm:$0xff]  ;;  %5839 = vmatpush.msra.mxu1 %v1868_v23 }
 0x795   : > { %v1996_v32 = vld [vmem:[%s7478_s17 + $0x3770] sm:$0xff]  ;;  %5860 = vmatpush.msra.mxu2 %v1928_v12 }
 0x796   : > { %v1796_v27 = vld [vmem:[%s7478_s17 + $0x3130] sm:$0xff]  ;;  %5879 = vmatpush.msra.mxu3 %v1996_v32 }
 0x797   : > { %v1864_v34 = vld [vmem:[%s7478_s17 + $0x3350] sm:$0xff]  ;;  %5821 = vmatpush.msra.mxu0 %v1796_v27 }
 0x798   : > { %v1924_v60 = vld [vmem:[%s7478_s17 + $0x3530] sm:$0xff]  ;;  %5840 = vmatpush.msra.mxu1 %v1864_v34 }
 0x799   : > { %v1992_v20 = vld [vmem:[%s7478_s17 + $0x3750] sm:$0xff]  ;;  %5861 = vmatpush.msra.mxu2 %v1924_v60 }
 0x79a   : > { %v1792_v29 = vld [vmem:[%s7478_s17 + $0x3110] sm:$0xff]  ;;  %5880 = vmatpush.msra.mxu3 %v1992_v20 }
 0x79b   : > { %v1860_v59 = vld [vmem:[%s7478_s17 + $0x3330] sm:$0xff]  ;;  %5822 = vmatpush.msra.mxu0 %v1792_v29 }
 0x79c   : > { %v1920_v50 = vld [vmem:[%s7478_s17 + $0x3510] sm:$0xff]  ;;  %5841 = vmatpush.msra.mxu1 %v1860_v59 }
 0x79d   : > { %v1988_v33 = vld [vmem:[%s7478_s17 + $0x3730] sm:$0xff]  ;;  %5862 = vmatpush.msra.mxu2 %v1920_v50 }
 0x79e   : > { %v1788_v13 = vld [vmem:[%s7478_s17 + $0x30f0] sm:$0xff]  ;;  %5881 = vmatpush.msra.mxu3 %v1988_v33 }
 0x79f   : > { %v1856_v2 = vld [vmem:[%s7478_s17 + $0x3310] sm:$0xff]  ;;  %5823 = vmatpush.msra.mxu0 %v1788_v13 }
 0x7a0   : > { %v1916_v55 = vld [vmem:[%s7478_s17 + $0x34f0] sm:$0xff]  ;;  %5842 = vmatpush.msra.mxu1 %v1856_v2 }
 0x7a1   : > { %v1984_v22 = vld [vmem:[%s7478_s17 + $0x3710] sm:$0xff]  ;;  %5863 = vmatpush.msra.mxu2 %v1916_v55  ;;  %v5512_v55 = vpop.f32.mrf.mxu0 }
 0x7a2   : > { %v1784_v56 = vld [vmem:[%s7478_s17 + $0x30d0] sm:$0xff]  ;;  %5882 = vmatpush.msra.mxu3 %v1984_v22 }
 0x7a3   : > { %v1852_v23 = vld [vmem:[%s7478_s17 + $0x32f0] sm:$0xff]  ;;  %5824 = vmatpush.msra.mxu0 %v1784_v56 }
 0x7a4   : > { %v1912_v12 = vld [vmem:[%s7478_s17 + $0x34d0] sm:$0xff]  ;;  %5843 = vmatpush.msra.mxu1 %v1852_v23  ;;  %v5513_v23 = vadd.f32 %v5512_v55, %v9819_v54 }
 0x7a5   : > { %v1980_v32 = vld [vmem:[%s7478_s17 + $0x36f0] sm:$0xff]  ;;  %5864 = vmatpush.msra.mxu2 %v1912_v12 }
 0x7a6   : > { %v1780_v27 = vld [vmem:[%s7478_s17 + $0x30b0] sm:$0xff]  ;;  %5883 = vmatpush.msra.mxu3 %v1980_v32 }
 0x7a7   : > { %v1848_v34 = vld [vmem:[%s7478_s17 + $0x32d0] sm:$0xff]  ;;  %5825 = vmatpush.msra.mxu0 %v1780_v27 }
 0x7a8   : > { %v1908_v60 = vld [vmem:[%s7478_s17 + $0x34b0] sm:$0xff]  ;;  %5844 = vmatpush.msra.mxu1 %v1848_v34 }
 0x7a9   : > { %v1976_v20 = vld [vmem:[%s7478_s17 + $0x36d0] sm:$0xff]  ;;  %5865 = vmatpush.msra.mxu2 %v1908_v60  ;;  %v5532_v60 = vpop.f32.mrf.mxu1 }
 0x7aa   : > { %v1776_v29 = vld [vmem:[%s7478_s17 + $0x3090] sm:$0xff]  ;;  %5884 = vmatpush.msra.mxu3 %v1976_v20  ;;  %v5533_v54 = vadd.f32 %v5532_v60, %v5513_v23 }
 0x7ab   : > { %v1844_v59 = vld [vmem:[%s7478_s17 + $0x32b0] sm:$0xff]  ;;  %5826 = vmatpush.msra.mxu0 %v1776_v29 }
 0x7ac   : > { %v1904_v50 = vld [vmem:[%s7478_s17 + $0x3490] sm:$0xff]  ;;  %5845 = vmatpush.msra.mxu1 %v1844_v59 }
 0x7ad   : > { %v1972_v33 = vld [vmem:[%s7478_s17 + $0x36b0] sm:$0xff]  ;;  %5866 = vmatpush.msra.mxu2 %v1904_v50 }
 0x7ae   : > { %v1772_v13 = vld [vmem:[%s7478_s17 + $0x3070] sm:$0xff]  ;;  %5885 = vmatpush.msra.mxu3 %v1972_v33 }
 0x7af   : > { %v1840_v2 = vld [vmem:[%s7478_s17 + $0x3290] sm:$0xff]  ;;  %5827 = vmatpush.msra.mxu0 %v1772_v13 }
 0x7b0   : > { %v1900_v22 = vld [vmem:[%s7478_s17 + $0x3470] sm:$0xff]  ;;  %5846 = vmatpush.msra.mxu1 %v1840_v2  ;;  %v5552_v2 = vpop.f32.mrf.mxu2 }
 0x7b1   : > { %v1968_v56 = vld [vmem:[%s7478_s17 + $0x3690] sm:$0xff]  ;;  %5867 = vmatpush.msra.mxu2 %v1900_v22 }
 0x7b2   : > { %v1768_v12 = vld [vmem:[%s7478_s17 + $0x3050] sm:$0xff]  ;;  %5886 = vmatpush.msra.mxu3 %v1968_v56  ;;  %v5553_v56 = vadd.f32 %v5552_v2, %v5533_v54 }
 0x7b3   : > { %v1836_v32 = vld [vmem:[%s7478_s17 + $0x3270] sm:$0xff]  ;;  %5828 = vmatpush.msra.mxu0 %v1768_v12 }
 0x7b4   : > { %v1896_v27 = vld [vmem:[%s7478_s17 + $0x3450] sm:$0xff]  ;;  %5847 = vmatpush.msra.mxu1 %v1836_v32  ;;  %v5572_v32 = vpop.f32.mrf.mxu3 }
 0x7b5   : > { %v1964_v34 = vld [vmem:[%s7478_s17 + $0x3670] sm:$0xff]  ;;  %5868 = vmatpush.msra.mxu2 %v1896_v27  ;;  %v9876_v60 = vadd.f32 %v5572_v32, %v5553_v56 }
 0x7b6   : > { %v1764_v20 = vld [vmem:[%s7478_s17 + $0x3030] sm:$0xff]  ;;  %5887 = vmatpush.msra.mxu3 %v1964_v34 }
 0x7b7   : > { %v1832_v29 = vld [vmem:[%s7478_s17 + $0x3250] sm:$0xff]  ;;  %5829 = vmatpush.msra.mxu0 %v1764_v20 }
 0x7b8   : > { %v1892_v59 = vld [vmem:[%s7478_s17 + $0x3430] sm:$0xff]  ;;  %5848 = vmatpush.msra.mxu1 %v1832_v29 }
 0x7b9   : > { %v1960_v50 = vld [vmem:[%s7478_s17 + $0x3650] sm:$0xff]  ;;  %5869 = vmatpush.msra.mxu2 %v1892_v59 }
 0x7ba   : > { %v1760_v33 = vld [vmem:[%s7478_s17 + $0x3010] sm:$0xff]  ;;  %5888 = vmatpush.msra.mxu3 %v1960_v50 }
 0x7bb   : > { %v1828_v13 = vld [vmem:[%s7478_s17 + $0x3230] sm:$0xff]  ;;  %5830 = vmatpush.msra.mxu0 %v1760_v33 }
 0x7bc   : > { %v1888_v55 = vld [vmem:[%s7478_s17 + $0x3410] sm:$0xff]  ;;  %5849 = vmatpush.msra.mxu1 %v1828_v13  ;;  %5831 = vmatmul.f32.vlgmr.msra.gmra.mxu0 %v8025_v18 }
 0x7bd   : > { %v1956_v22 = vld [vmem:[%s7478_s17 + $0x3630] sm:$0xff]  ;;  %5870 = vmatpush.msra.mxu2 %v1888_v55 }
 0x7be   : > { %v2076_v23 = vld [vmem:[%s7478_s17 + $0x39f0] sm:$0xff]  ;;  %5889 = vmatpush.msra.mxu3 %v1956_v22  ;;  %5871 = vmatmul.f32.vlgmr.msra.gmra.mxu2 %v8027_v19 }
 0x7bf   : > { %v2204_v12 = vld [vmem:[%s7478_s17 + $0x3df0] sm:$0xff]  ;;  %5895 = vmatpush.msrb.mxu0 %v2076_v23 }
 0x7c0   : > { %v1824_v27 = vld [vmem:[%s7478_s17 + $0x3210] sm:$0xff]  ;;  %5935 = vmatpush.msrb.mxu2 %v2204_v12 }
 0x7c1   : > { %v1952_v34 = vld [vmem:[%s7478_s17 + $0x3610] sm:$0xff]  ;;  %5850 = vmatpush.msra.mxu1 %v1824_v27 }
 0x7c2   : > { %v2072_v20 = vld [vmem:[%s7478_s17 + $0x39d0] sm:$0xff]  ;;  %5890 = vmatpush.msra.mxu3 %v1952_v34  ;;  %5851 = vmatmul.f32.vlgmr.msra.gmra.mxu1 %v8035_v24 }
 0x7c3   : > { %v2140_v29 = vld [vmem:[%s7478_s17 + $0x3bf0] sm:$0xff]  ;;  %5891 = vmatmul.f32.vlgmr.msra.gmra.mxu3 %v8037_v25  ;;  %5896 = vmatpush.msrb.mxu0 %v2072_v20 }
 0x7c4   : > { %v2200_v54 = vld [vmem:[%s7478_s17 + $0x3dd0] sm:$0xff]  ;;  %5915 = vmatpush.msrb.mxu1 %v2140_v29 }
 0x7c5   : > { %v2268_v59 = vld [vmem:[%s7478_s17 + $0x3ff0] sm:$0xff]  ;;  %5936 = vmatpush.msrb.mxu2 %v2200_v54 }
 0x7c6   : > { %v2068_v50 = vld [vmem:[%s7478_s17 + $0x39b0] sm:$0xff]  ;;  %5955 = vmatpush.msrb.mxu3 %v2268_v59 }
 0x7c7   : > { %v2136_v33 = vld [vmem:[%s7478_s17 + $0x3bd0] sm:$0xff]  ;;  %5897 = vmatpush.msrb.mxu0 %v2068_v50 }
 0x7c8   : > { %v2196_v13 = vld [vmem:[%s7478_s17 + $0x3db0] sm:$0xff]  ;;  %5916 = vmatpush.msrb.mxu1 %v2136_v33 }
 0x7c9   : > { %v2264_v2 = vld [vmem:[%s7478_s17 + $0x3fd0] sm:$0xff]  ;;  %5937 = vmatpush.msrb.mxu2 %v2196_v13 }
 0x7ca   : > { %v2064_v55 = vld [vmem:[%s7478_s17 + $0x3990] sm:$0xff]  ;;  %5956 = vmatpush.msrb.mxu3 %v2264_v2 }
 0x7cb   : > { %v2132_v22 = vld [vmem:[%s7478_s17 + $0x3bb0] sm:$0xff]  ;;  %5898 = vmatpush.msrb.mxu0 %v2064_v55 }
 0x7cc   : > { %v2192_v56 = vld [vmem:[%s7478_s17 + $0x3d90] sm:$0xff]  ;;  %5917 = vmatpush.msrb.mxu1 %v2132_v22 }
 0x7cd   : > { %v2260_v23 = vld [vmem:[%s7478_s17 + $0x3fb0] sm:$0xff]  ;;  %5938 = vmatpush.msrb.mxu2 %v2192_v56 }
 0x7ce   : > { %v2060_v12 = vld [vmem:[%s7478_s17 + $0x3970] sm:$0xff]  ;;  %5957 = vmatpush.msrb.mxu3 %v2260_v23 }
 0x7cf   : > { %v2128_v32 = vld [vmem:[%s7478_s17 + $0x3b90] sm:$0xff]  ;;  %5899 = vmatpush.msrb.mxu0 %v2060_v12 }
 0x7d0   : > { %v2188_v27 = vld [vmem:[%s7478_s17 + $0x3d70] sm:$0xff]  ;;  %5918 = vmatpush.msrb.mxu1 %v2128_v32 }
 0x7d1   : > { %v2256_v34 = vld [vmem:[%s7478_s17 + $0x3f90] sm:$0xff]  ;;  %5939 = vmatpush.msrb.mxu2 %v2188_v27 }
 0x7d2   : > { %v2056_v20 = vld [vmem:[%s7478_s17 + $0x3950] sm:$0xff]  ;;  %5958 = vmatpush.msrb.mxu3 %v2256_v34 }
 0x7d3   : > { %v2124_v29 = vld [vmem:[%s7478_s17 + $0x3b70] sm:$0xff]  ;;  %5900 = vmatpush.msrb.mxu0 %v2056_v20 }
 0x7d4   : > { %v2184_v54 = vld [vmem:[%s7478_s17 + $0x3d50] sm:$0xff]  ;;  %5919 = vmatpush.msrb.mxu1 %v2124_v29 }
 0x7d5   : > { %v2252_v59 = vld [vmem:[%s7478_s17 + $0x3f70] sm:$0xff]  ;;  %5940 = vmatpush.msrb.mxu2 %v2184_v54 }
 0x7d6   : > { %v2052_v50 = vld [vmem:[%s7478_s17 + $0x3930] sm:$0xff]  ;;  %5959 = vmatpush.msrb.mxu3 %v2252_v59 }
 0x7d7   : > { %v2120_v33 = vld [vmem:[%s7478_s17 + $0x3b50] sm:$0xff]  ;;  %5901 = vmatpush.msrb.mxu0 %v2052_v50 }
 0x7d8   : > { %v2180_v13 = vld [vmem:[%s7478_s17 + $0x3d30] sm:$0xff]  ;;  %5920 = vmatpush.msrb.mxu1 %v2120_v33 }
 0x7d9   : > { %v2248_v2 = vld [vmem:[%s7478_s17 + $0x3f50] sm:$0xff]  ;;  %5941 = vmatpush.msrb.mxu2 %v2180_v13 }
 0x7da   : > { %v2048_v55 = vld [vmem:[%s7478_s17 + $0x3910] sm:$0xff]  ;;  %5960 = vmatpush.msrb.mxu3 %v2248_v2 }
 0x7db   : > { %v2116_v22 = vld [vmem:[%s7478_s17 + $0x3b30] sm:$0xff]  ;;  %5902 = vmatpush.msrb.mxu0 %v2048_v55 }
 0x7dc   : > { %v2176_v56 = vld [vmem:[%s7478_s17 + $0x3d10] sm:$0xff]  ;;  %5921 = vmatpush.msrb.mxu1 %v2116_v22 }
 0x7dd   : > { %v2244_v23 = vld [vmem:[%s7478_s17 + $0x3f30] sm:$0xff]  ;;  %5942 = vmatpush.msrb.mxu2 %v2176_v56 }
 0x7de   : > { %v2044_v12 = vld [vmem:[%s7478_s17 + $0x38f0] sm:$0xff]  ;;  %5961 = vmatpush.msrb.mxu3 %v2244_v23 }
 0x7df   : > { %v2112_v32 = vld [vmem:[%s7478_s17 + $0x3b10] sm:$0xff]  ;;  %5903 = vmatpush.msrb.mxu0 %v2044_v12 }
 0x7e0   : > { %v2172_v27 = vld [vmem:[%s7478_s17 + $0x3cf0] sm:$0xff]  ;;  %5922 = vmatpush.msrb.mxu1 %v2112_v32 }
 0x7e1   : > { %v2240_v34 = vld [vmem:[%s7478_s17 + $0x3f10] sm:$0xff]  ;;  %5943 = vmatpush.msrb.mxu2 %v2172_v27  ;;  %v5592_v27 = vpop.f32.mrf.mxu0 }
 0x7e2   : > { %v2040_v20 = vld [vmem:[%s7478_s17 + $0x38d0] sm:$0xff]  ;;  %5962 = vmatpush.msrb.mxu3 %v2240_v34 }
 0x7e3   : > { %v2108_v29 = vld [vmem:[%s7478_s17 + $0x3af0] sm:$0xff]  ;;  %5904 = vmatpush.msrb.mxu0 %v2040_v20 }
 0x7e4   : > { %v2168_v54 = vld [vmem:[%s7478_s17 + $0x3cd0] sm:$0xff]  ;;  %5923 = vmatpush.msrb.mxu1 %v2108_v29  ;;  %v5593_v29 = vadd.f32 %v5592_v27, %v9876_v60 }
 0x7e5   : > { %v2236_v59 = vld [vmem:[%s7478_s17 + $0x3ef0] sm:$0xff]  ;;  %5944 = vmatpush.msrb.mxu2 %v2168_v54 }
 0x7e6   : > { %v2036_v50 = vld [vmem:[%s7478_s17 + $0x38b0] sm:$0xff]  ;;  %5963 = vmatpush.msrb.mxu3 %v2236_v59 }
 0x7e7   : > { %v2104_v33 = vld [vmem:[%s7478_s17 + $0x3ad0] sm:$0xff]  ;;  %5905 = vmatpush.msrb.mxu0 %v2036_v50 }
 0x7e8   : > { %v2164_v13 = vld [vmem:[%s7478_s17 + $0x3cb0] sm:$0xff]  ;;  %5924 = vmatpush.msrb.mxu1 %v2104_v33 }
 0x7e9   : > { %v2232_v2 = vld [vmem:[%s7478_s17 + $0x3ed0] sm:$0xff]  ;;  %5945 = vmatpush.msrb.mxu2 %v2164_v13  ;;  %v5612_v13 = vpop.f32.mrf.mxu1 }
 0x7ea   : > { %v2032_v55 = vld [vmem:[%s7478_s17 + $0x3890] sm:$0xff]  ;;  %5964 = vmatpush.msrb.mxu3 %v2232_v2  ;;  %v5613_v60 = vadd.f32 %v5612_v13, %v5593_v29 }
 0x7eb   : > { %v2100_v22 = vld [vmem:[%s7478_s17 + $0x3ab0] sm:$0xff]  ;;  %5906 = vmatpush.msrb.mxu0 %v2032_v55 }
 0x7ec   : > { %v2160_v56 = vld [vmem:[%s7478_s17 + $0x3c90] sm:$0xff]  ;;  %5925 = vmatpush.msrb.mxu1 %v2100_v22 }
 0x7ed   : > { %v2228_v23 = vld [vmem:[%s7478_s17 + $0x3eb0] sm:$0xff]  ;;  %5946 = vmatpush.msrb.mxu2 %v2160_v56 }
 0x7ee   : > { %v2028_v12 = vld [vmem:[%s7478_s17 + $0x3870] sm:$0xff]  ;;  %5965 = vmatpush.msrb.mxu3 %v2228_v23 }
 0x7ef   : > { %v2096_v32 = vld [vmem:[%s7478_s17 + $0x3a90] sm:$0xff]  ;;  %5907 = vmatpush.msrb.mxu0 %v2028_v12 }
 0x7f0   : > { %v2156_v34 = vld [vmem:[%s7478_s17 + $0x3c70] sm:$0xff]  ;;  %5926 = vmatpush.msrb.mxu1 %v2096_v32  ;;  %v5632_v32 = vpop.f32.mrf.mxu2 }
 0x7f1   : > { %v2224_v20 = vld [vmem:[%s7478_s17 + $0x3e90] sm:$0xff]  ;;  %5947 = vmatpush.msrb.mxu2 %v2156_v34 }
 0x7f2   : > { %v2024_v54 = vld [vmem:[%s7478_s17 + $0x3850] sm:$0xff]  ;;  %5966 = vmatpush.msrb.mxu3 %v2224_v20  ;;  %v5633_v20 = vadd.f32 %v5632_v32, %v5613_v60 }
 0x7f3   : > { %v2092_v59 = vld [vmem:[%s7478_s17 + $0x3a70] sm:$0xff]  ;;  %5908 = vmatpush.msrb.mxu0 %v2024_v54 }
 0x7f4   : > { %v2152_v50 = vld [vmem:[%s7478_s17 + $0x3c50] sm:$0xff]  ;;  %5927 = vmatpush.msrb.mxu1 %v2092_v59  ;;  %v5652_v59 = vpop.f32.mrf.mxu3 }
 0x7f5   : > { %v2220_v33 = vld [vmem:[%s7478_s17 + $0x3e70] sm:$0xff]  ;;  %5948 = vmatpush.msrb.mxu2 %v2152_v50  ;;  %v9947_v13 = vadd.f32 %v5652_v59, %v5633_v20 }
 0x7f6   : > { %v2020_v2 = vld [vmem:[%s7478_s17 + $0x3830] sm:$0xff]  ;;  %5967 = vmatpush.msrb.mxu3 %v2220_v33 }
 0x7f7   : > { %v2088_v55 = vld [vmem:[%s7478_s17 + $0x3a50] sm:$0xff]  ;;  %5909 = vmatpush.msrb.mxu0 %v2020_v2 }
 0x7f8   : > { %v2148_v22 = vld [vmem:[%s7478_s17 + $0x3c30] sm:$0xff]  ;;  %5928 = vmatpush.msrb.mxu1 %v2088_v55 }
 0x7f9   : > { %v2216_v56 = vld [vmem:[%s7478_s17 + $0x3e50] sm:$0xff]  ;;  %5949 = vmatpush.msrb.mxu2 %v2148_v22 }
 0x7fa   : > { %v2016_v23 = vld [vmem:[%s7478_s17 + $0x3810] sm:$0xff]  ;;  %5968 = vmatpush.msrb.mxu3 %v2216_v56 }
 0x7fb   : > { %v2084_v12 = vld [vmem:[%s7478_s17 + $0x3a30] sm:$0xff]  ;;  %5910 = vmatpush.msrb.mxu0 %v2016_v23 }
 0x7fc   : > { %v2144_v27 = vld [vmem:[%s7478_s17 + $0x3c10] sm:$0xff]  ;;  %5929 = vmatpush.msrb.mxu1 %v2084_v12  ;;  %5911 = vmatmul.f32.vlgmr.msrb.gmra.mxu0 %v8102_v7 }
 0x7fd   : > { %v2212_v34 = vld [vmem:[%s7478_s17 + $0x3e30] sm:$0xff]  ;;  %5950 = vmatpush.msrb.mxu2 %v2144_v27 }
 0x7fe   : > { %v2332_v29 = vld [vmem:[%s7478_s17 + $0x41f0] sm:$0xff]  ;;  %5969 = vmatpush.msrb.mxu3 %v2212_v34  ;;  %5951 = vmatmul.f32.vlgmr.msrb.gmra.mxu2 %v8104_v10 }
 0x7ff   : > { %v2460_v54 = vld [vmem:[%s7478_s17 + $0x45f0] sm:$0xff]  ;;  %5975 = vmatpush.msra.mxu0 %v2332_v29 }
 0x800   : > { %v2080_v50 = vld [vmem:[%s7478_s17 + $0x3a10] sm:$0xff]  ;;  %6015 = vmatpush.msra.mxu2 %v2460_v54 }
 0x801   : > { %v2208_v33 = vld [vmem:[%s7478_s17 + $0x3e10] sm:$0xff]  ;;  %5930 = vmatpush.msrb.mxu1 %v2080_v50 }
 0x802   : > { %v2328_v2 = vld [vmem:[%s7478_s17 + $0x41d0] sm:$0xff]  ;;  %5970 = vmatpush.msrb.mxu3 %v2208_v33  ;;  %5931 = vmatmul.f32.vlgmr.msrb.gmra.mxu1 %v8110_v17 }
 0x803   : > { %v2396_v55 = vld [vmem:[%s7478_s17 + $0x43f0] sm:$0xff]  ;;  %5971 = vmatmul.f32.vlgmr.msrb.gmra.mxu3 %v8115_v21  ;;  %5976 = vmatpush.msra.mxu0 %v2328_v2 }
 0x804   : > { %v2456_v60 = vld [vmem:[%s7478_s17 + $0x45d0] sm:$0xff]  ;;  %5995 = vmatpush.msra.mxu1 %v2396_v55 }
 0x805   : > { %v2524_v22 = vld [vmem:[%s7478_s17 + $0x47f0] sm:$0xff]  ;;  %6016 = vmatpush.msra.mxu2 %v2456_v60 }
 0x806   : > { %v2324_v56 = vld [vmem:[%s7478_s17 + $0x41b0] sm:$0xff]  ;;  %6035 = vmatpush.msra.mxu3 %v2524_v22 }
 0x807   : > { %v2392_v23 = vld [vmem:[%s7478_s17 + $0x43d0] sm:$0xff]  ;;  %5977 = vmatpush.msra.mxu0 %v2324_v56 }
 0x808   : > { %v2452_v12 = vld [vmem:[%s7478_s17 + $0x45b0] sm:$0xff]  ;;  %5996 = vmatpush.msra.mxu1 %v2392_v23 }
 0x809   : > { %v2520_v32 = vld [vmem:[%s7478_s17 + $0x47d0] sm:$0xff]  ;;  %6017 = vmatpush.msra.mxu2 %v2452_v12 }
 0x80a   : > { %v2320_v27 = vld [vmem:[%s7478_s17 + $0x4190] sm:$0xff]  ;;  %6036 = vmatpush.msra.mxu3 %v2520_v32 }
 0x80b   : > { %v2388_v34 = vld [vmem:[%s7478_s17 + $0x43b0] sm:$0xff]  ;;  %5978 = vmatpush.msra.mxu0 %v2320_v27 }
 0x80c   : > { %v2448_v20 = vld [vmem:[%s7478_s17 + $0x4590] sm:$0xff]  ;;  %5997 = vmatpush.msra.mxu1 %v2388_v34 }
 0x80d   : > { %v2516_v29 = vld [vmem:[%s7478_s17 + $0x47b0] sm:$0xff]  ;;  %6018 = vmatpush.msra.mxu2 %v2448_v20 }
 0x80e   : > { %v2316_v54 = vld [vmem:[%s7478_s17 + $0x4170] sm:$0xff]  ;;  %6037 = vmatpush.msra.mxu3 %v2516_v29 }
 0x80f   : > { %v2384_v59 = vld [vmem:[%s7478_s17 + $0x4390] sm:$0xff]  ;;  %5979 = vmatpush.msra.mxu0 %v2316_v54 }
 0x810   : > { %v2444_v50 = vld [vmem:[%s7478_s17 + $0x4570] sm:$0xff]  ;;  %5998 = vmatpush.msra.mxu1 %v2384_v59 }
 0x811   : > { %v2512_v33 = vld [vmem:[%s7478_s17 + $0x4790] sm:$0xff]  ;;  %6019 = vmatpush.msra.mxu2 %v2444_v50 }
 0x812   : > { %v2312_v2 = vld [vmem:[%s7478_s17 + $0x4150] sm:$0xff]  ;;  %6038 = vmatpush.msra.mxu3 %v2512_v33 }
 0x813   : > { %v2380_v55 = vld [vmem:[%s7478_s17 + $0x4370] sm:$0xff]  ;;  %5980 = vmatpush.msra.mxu0 %v2312_v2 }
 0x814   : > { %v2440_v60 = vld [vmem:[%s7478_s17 + $0x4550] sm:$0xff]  ;;  %5999 = vmatpush.msra.mxu1 %v2380_v55 }
 0x815   : > { %v2508_v22 = vld [vmem:[%s7478_s17 + $0x4770] sm:$0xff]  ;;  %6020 = vmatpush.msra.mxu2 %v2440_v60 }
 0x816   : > { %v2308_v56 = vld [vmem:[%s7478_s17 + $0x4130] sm:$0xff]  ;;  %6039 = vmatpush.msra.mxu3 %v2508_v22 }
 0x817   : > { %v2376_v23 = vld [vmem:[%s7478_s17 + $0x4350] sm:$0xff]  ;;  %5981 = vmatpush.msra.mxu0 %v2308_v56 }
 0x818   : > { %v2436_v12 = vld [vmem:[%s7478_s17 + $0x4530] sm:$0xff]  ;;  %6000 = vmatpush.msra.mxu1 %v2376_v23 }
 0x819   : > { %v2504_v32 = vld [vmem:[%s7478_s17 + $0x4750] sm:$0xff]  ;;  %6021 = vmatpush.msra.mxu2 %v2436_v12 }
 0x81a   : > { %v2304_v27 = vld [vmem:[%s7478_s17 + $0x4110] sm:$0xff]  ;;  %6040 = vmatpush.msra.mxu3 %v2504_v32 }
 0x81b   : > { %v2372_v34 = vld [vmem:[%s7478_s17 + $0x4330] sm:$0xff]  ;;  %5982 = vmatpush.msra.mxu0 %v2304_v27 }
 0x81c   : > { %v2432_v20 = vld [vmem:[%s7478_s17 + $0x4510] sm:$0xff]  ;;  %6001 = vmatpush.msra.mxu1 %v2372_v34 }
 0x81d   : > { %v2500_v29 = vld [vmem:[%s7478_s17 + $0x4730] sm:$0xff]  ;;  %6022 = vmatpush.msra.mxu2 %v2432_v20 }
 0x81e   : > { %v2300_v54 = vld [vmem:[%s7478_s17 + $0x40f0] sm:$0xff]  ;;  %6041 = vmatpush.msra.mxu3 %v2500_v29 }
 0x81f   : > { %v2368_v59 = vld [vmem:[%s7478_s17 + $0x4310] sm:$0xff]  ;;  %5983 = vmatpush.msra.mxu0 %v2300_v54 }
 0x820   : > { %v2428_v50 = vld [vmem:[%s7478_s17 + $0x44f0] sm:$0xff]  ;;  %6002 = vmatpush.msra.mxu1 %v2368_v59 }
 0x821   : > { %v2496_v33 = vld [vmem:[%s7478_s17 + $0x4710] sm:$0xff]  ;;  %6023 = vmatpush.msra.mxu2 %v2428_v50  ;;  %v5672_v50 = vpop.f32.mrf.mxu0 }
 0x822   : > { %v2296_v2 = vld [vmem:[%s7478_s17 + $0x40d0] sm:$0xff]  ;;  %6042 = vmatpush.msra.mxu3 %v2496_v33 }
 0x823   : > { %v2364_v55 = vld [vmem:[%s7478_s17 + $0x42f0] sm:$0xff]  ;;  %5984 = vmatpush.msra.mxu0 %v2296_v2 }
 0x824   : > { %v2424_v60 = vld [vmem:[%s7478_s17 + $0x44d0] sm:$0xff]  ;;  %6003 = vmatpush.msra.mxu1 %v2364_v55  ;;  %v5673_v55 = vadd.f32 %v5672_v50, %v9947_v13 }
 0x825   : > { %v2492_v22 = vld [vmem:[%s7478_s17 + $0x46f0] sm:$0xff]  ;;  %6024 = vmatpush.msra.mxu2 %v2424_v60 }
 0x826   : > { %v2292_v56 = vld [vmem:[%s7478_s17 + $0x40b0] sm:$0xff]  ;;  %6043 = vmatpush.msra.mxu3 %v2492_v22 }
 0x827   : > { %v2360_v23 = vld [vmem:[%s7478_s17 + $0x42d0] sm:$0xff]  ;;  %5985 = vmatpush.msra.mxu0 %v2292_v56 }
 0x828   : > { %v2420_v12 = vld [vmem:[%s7478_s17 + $0x44b0] sm:$0xff]  ;;  %6004 = vmatpush.msra.mxu1 %v2360_v23 }
 0x829   : > { %v2488_v32 = vld [vmem:[%s7478_s17 + $0x46d0] sm:$0xff]  ;;  %6025 = vmatpush.msra.mxu2 %v2420_v12  ;;  %v5692_v12 = vpop.f32.mrf.mxu1 }
 0x82a   : > { %v2288_v27 = vld [vmem:[%s7478_s17 + $0x4090] sm:$0xff]  ;;  %6044 = vmatpush.msra.mxu3 %v2488_v32  ;;  %v5693_v13 = vadd.f32 %v5692_v12, %v5673_v55 }
 0x82b   : > { %v2356_v34 = vld [vmem:[%s7478_s17 + $0x42b0] sm:$0xff]  ;;  %5986 = vmatpush.msra.mxu0 %v2288_v27 }
 0x82c   : > { %v2416_v20 = vld [vmem:[%s7478_s17 + $0x4490] sm:$0xff]  ;;  %6005 = vmatpush.msra.mxu1 %v2356_v34 }
 0x82d   : > { %v2484_v29 = vld [vmem:[%s7478_s17 + $0x46b0] sm:$0xff]  ;;  %6026 = vmatpush.msra.mxu2 %v2416_v20 }
 0x82e   : > { %v2284_v54 = vld [vmem:[%s7478_s17 + $0x4070] sm:$0xff]  ;;  %6045 = vmatpush.msra.mxu3 %v2484_v29 }
 0x82f   : > { %v2352_v59 = vld [vmem:[%s7478_s17 + $0x4290] sm:$0xff]  ;;  %5987 = vmatpush.msra.mxu0 %v2284_v54 }
 0x830   : > { %v2412_v33 = vld [vmem:[%s7478_s17 + $0x4470] sm:$0xff]  ;;  %6006 = vmatpush.msra.mxu1 %v2352_v59  ;;  %v5712_v59 = vpop.f32.mrf.mxu2 }
 0x831   : > { %v2480_v2 = vld [vmem:[%s7478_s17 + $0x4690] sm:$0xff]  ;;  %6027 = vmatpush.msra.mxu2 %v2412_v33 }
 0x832   : > { %v2280_v60 = vld [vmem:[%s7478_s17 + $0x4050] sm:$0xff]  ;;  %6046 = vmatpush.msra.mxu3 %v2480_v2  ;;  %v5713_v2 = vadd.f32 %v5712_v59, %v5693_v13 }
 0x833   : > { %v2348_v22 = vld [vmem:[%s7478_s17 + $0x4270] sm:$0xff]  ;;  %5988 = vmatpush.msra.mxu0 %v2280_v60 }
 0x834   : > { %v2408_v56 = vld [vmem:[%s7478_s17 + $0x4450] sm:$0xff]  ;;  %6007 = vmatpush.msra.mxu1 %v2348_v22  ;;  %v5732_v22 = vpop.f32.mrf.mxu3 }
 0x835   : > { %v2476_v23 = vld [vmem:[%s7478_s17 + $0x4670] sm:$0xff]  ;;  %6028 = vmatpush.msra.mxu2 %v2408_v56  ;;  %v10018_v12 = vadd.f32 %v5732_v22, %v5713_v2 }
 0x836   : > { %v2276_v32 = vld [vmem:[%s7478_s17 + $0x4030] sm:$0xff]  ;;  %6047 = vmatpush.msra.mxu3 %v2476_v23 }
 0x837   : > { %v2344_v27 = vld [vmem:[%s7478_s17 + $0x4250] sm:$0xff]  ;;  %5989 = vmatpush.msra.mxu0 %v2276_v32 }
 0x838   : > { %v2404_v34 = vld [vmem:[%s7478_s17 + $0x4430] sm:$0xff]  ;;  %6008 = vmatpush.msra.mxu1 %v2344_v27 }
 0x839   : > { %v2472_v20 = vld [vmem:[%s7478_s17 + $0x4650] sm:$0xff]  ;;  %6029 = vmatpush.msra.mxu2 %v2404_v34 }
 0x83a   : > { %v2272_v29 = vld [vmem:[%s7478_s17 + $0x4010] sm:$0xff]  ;;  %6048 = vmatpush.msra.mxu3 %v2472_v20 }
 0x83b   : > { %v2340_v54 = vld [vmem:[%s7478_s17 + $0x4230] sm:$0xff]  ;;  %5990 = vmatpush.msra.mxu0 %v2272_v29 }
 0x83c   : > { %v2400_v50 = vld [vmem:[%s7478_s17 + $0x4410] sm:$0xff]  ;;  %6009 = vmatpush.msra.mxu1 %v2340_v54  ;;  %5991 = vmatmul.f32.vlgmr.msra.gmra.mxu0 %v8127_v36 }
 0x83d   : > { %v2468_v33 = vld [vmem:[%s7478_s17 + $0x4630] sm:$0xff]  ;;  %6030 = vmatpush.msra.mxu2 %v2400_v50 }
 0x83e   : > { %v2588_v55 = vld [vmem:[%s7478_s17 + $0x49f0] sm:$0xff]  ;;  %6049 = vmatpush.msra.mxu3 %v2468_v33  ;;  %6031 = vmatmul.f32.vlgmr.msra.gmra.mxu2 %v8129_v39 }
 0x83f   : > { %v2716_v60 = vld [vmem:[%s7478_s17 + $0x4df0] sm:$0xff]  ;;  %6055 = vmatpush.msrb.mxu0 %v2588_v55 }
 0x840   : > { %v2336_v56 = vld [vmem:[%s7478_s17 + $0x4210] sm:$0xff]  ;;  %6095 = vmatpush.msrb.mxu2 %v2716_v60 }
 0x841   : > { %v2464_v23 = vld [vmem:[%s7478_s17 + $0x4610] sm:$0xff]  ;;  %6010 = vmatpush.msra.mxu1 %v2336_v56 }
 0x842   : > { %v2584_v32 = vld [vmem:[%s7478_s17 + $0x49d0] sm:$0xff]  ;;  %6050 = vmatpush.msra.mxu3 %v2464_v23  ;;  %6011 = vmatmul.f32.vlgmr.msra.gmra.mxu1 %v8131_v47 }
 0x843   : > { %v2652_v27 = vld [vmem:[%s7478_s17 + $0x4bf0] sm:$0xff]  ;;  %6051 = vmatmul.f32.vlgmr.msra.gmra.mxu3 %v8133_v48  ;;  %6056 = vmatpush.msrb.mxu0 %v2584_v32 }
 0x844   : > { %v2712_v13 = vld [vmem:[%s7478_s17 + $0x4dd0] sm:$0xff]  ;;  %6075 = vmatpush.msrb.mxu1 %v2652_v27 }
 0x845   : > { %v2780_v34 = vld [vmem:[%s7478_s17 + $0x4ff0] sm:$0xff]  ;;  %6096 = vmatpush.msrb.mxu2 %v2712_v13 }
 0x846   : > { %v2580_v20 = vld [vmem:[%s7478_s17 + $0x49b0] sm:$0xff]  ;;  %6115 = vmatpush.msrb.mxu3 %v2780_v34 }
 0x847   : > { %v2648_v29 = vld [vmem:[%s7478_s17 + $0x4bd0] sm:$0xff]  ;;  %6057 = vmatpush.msrb.mxu0 %v2580_v20 }
 0x848   : > { %v2708_v54 = vld [vmem:[%s7478_s17 + $0x4db0] sm:$0xff]  ;;  %6076 = vmatpush.msrb.mxu1 %v2648_v29 }
 0x849   : > { %v2776_v59 = vld [vmem:[%s7478_s17 + $0x4fd0] sm:$0xff]  ;;  %6097 = vmatpush.msrb.mxu2 %v2708_v54 }
 0x84a   : > { %v2576_v50 = vld [vmem:[%s7478_s17 + $0x4990] sm:$0xff]  ;;  %6116 = vmatpush.msrb.mxu3 %v2776_v59 }
 0x84b   : > { %v2644_v33 = vld [vmem:[%s7478_s17 + $0x4bb0] sm:$0xff]  ;;  %6058 = vmatpush.msrb.mxu0 %v2576_v50 }
 0x84c   : > { %v2704_v2 = vld [vmem:[%s7478_s17 + $0x4d90] sm:$0xff]  ;;  %6077 = vmatpush.msrb.mxu1 %v2644_v33 }
 0x84d   : > { %v2772_v55 = vld [vmem:[%s7478_s17 + $0x4fb0] sm:$0xff]  ;;  %6098 = vmatpush.msrb.mxu2 %v2704_v2 }
 0x84e   : > { %v2572_v60 = vld [vmem:[%s7478_s17 + $0x4970] sm:$0xff]  ;;  %6117 = vmatpush.msrb.mxu3 %v2772_v55 }
 0x84f   : > { %v2640_v22 = vld [vmem:[%s7478_s17 + $0x4b90] sm:$0xff]  ;;  %6059 = vmatpush.msrb.mxu0 %v2572_v60 }
 0x850   : > { %v2700_v56 = vld [vmem:[%s7478_s17 + $0x4d70] sm:$0xff]  ;;  %6078 = vmatpush.msrb.mxu1 %v2640_v22 }
 0x851   : > { %v2768_v23 = vld [vmem:[%s7478_s17 + $0x4f90] sm:$0xff]  ;;  %6099 = vmatpush.msrb.mxu2 %v2700_v56 }
 0x852   : > { %v2568_v32 = vld [vmem:[%s7478_s17 + $0x4950] sm:$0xff]  ;;  %6118 = vmatpush.msrb.mxu3 %v2768_v23 }
 0x853   : > { %v2636_v27 = vld [vmem:[%s7478_s17 + $0x4b70] sm:$0xff]  ;;  %6060 = vmatpush.msrb.mxu0 %v2568_v32 }
 0x854   : > { %v2696_v13 = vld [vmem:[%s7478_s17 + $0x4d50] sm:$0xff]  ;;  %6079 = vmatpush.msrb.mxu1 %v2636_v27 }
 0x855   : > { %v2764_v34 = vld [vmem:[%s7478_s17 + $0x4f70] sm:$0xff]  ;;  %6100 = vmatpush.msrb.mxu2 %v2696_v13 }
 0x856   : > { %v2564_v20 = vld [vmem:[%s7478_s17 + $0x4930] sm:$0xff]  ;;  %6119 = vmatpush.msrb.mxu3 %v2764_v34 }
 0x857   : > { %v2632_v29 = vld [vmem:[%s7478_s17 + $0x4b50] sm:$0xff]  ;;  %6061 = vmatpush.msrb.mxu0 %v2564_v20 }
 0x858   : > { %v2692_v54 = vld [vmem:[%s7478_s17 + $0x4d30] sm:$0xff]  ;;  %6080 = vmatpush.msrb.mxu1 %v2632_v29 }
 0x859   : > { %v2760_v59 = vld [vmem:[%s7478_s17 + $0x4f50] sm:$0xff]  ;;  %6101 = vmatpush.msrb.mxu2 %v2692_v54 }
 0x85a   : > { %v2560_v50 = vld [vmem:[%s7478_s17 + $0x4910] sm:$0xff]  ;;  %6120 = vmatpush.msrb.mxu3 %v2760_v59 }
 0x85b   : > { %v2628_v33 = vld [vmem:[%s7478_s17 + $0x4b30] sm:$0xff]  ;;  %6062 = vmatpush.msrb.mxu0 %v2560_v50 }
 0x85c   : > { %v2688_v2 = vld [vmem:[%s7478_s17 + $0x4d10] sm:$0xff]  ;;  %6081 = vmatpush.msrb.mxu1 %v2628_v33 }
 0x85d   : > { %v2756_v55 = vld [vmem:[%s7478_s17 + $0x4f30] sm:$0xff]  ;;  %6102 = vmatpush.msrb.mxu2 %v2688_v2 }
 0x85e   : > { %v2556_v60 = vld [vmem:[%s7478_s17 + $0x48f0] sm:$0xff]  ;;  %6121 = vmatpush.msrb.mxu3 %v2756_v55 }
 0x85f   : > { %v2624_v22 = vld [vmem:[%s7478_s17 + $0x4b10] sm:$0xff]  ;;  %6063 = vmatpush.msrb.mxu0 %v2556_v60 }
 0x860   : > { %v2684_v56 = vld [vmem:[%s7478_s17 + $0x4cf0] sm:$0xff]  ;;  %6082 = vmatpush.msrb.mxu1 %v2624_v22 }
 0x861   : > { %v2752_v23 = vld [vmem:[%s7478_s17 + $0x4f10] sm:$0xff]  ;;  %6103 = vmatpush.msrb.mxu2 %v2684_v56  ;;  %v5752_v56 = vpop.f32.mrf.mxu0 }
 0x862   : > { %v2552_v32 = vld [vmem:[%s7478_s17 + $0x48d0] sm:$0xff]  ;;  %6122 = vmatpush.msrb.mxu3 %v2752_v23 }
 0x863   : > { %v2620_v27 = vld [vmem:[%s7478_s17 + $0x4af0] sm:$0xff]  ;;  %6064 = vmatpush.msrb.mxu0 %v2552_v32 }
 0x864   : > { %v2680_v13 = vld [vmem:[%s7478_s17 + $0x4cd0] sm:$0xff]  ;;  %6083 = vmatpush.msrb.mxu1 %v2620_v27  ;;  %v5753_v27 = vadd.f32 %v5752_v56, %v10018_v12 }
 0x865   : > { %v2748_v34 = vld [vmem:[%s7478_s17 + $0x4ef0] sm:$0xff]  ;;  %6104 = vmatpush.msrb.mxu2 %v2680_v13 }
 0x866   : > { %v2548_v20 = vld [vmem:[%s7478_s17 + $0x48b0] sm:$0xff]  ;;  %6123 = vmatpush.msrb.mxu3 %v2748_v34 }
 0x867   : > { %v2616_v29 = vld [vmem:[%s7478_s17 + $0x4ad0] sm:$0xff]  ;;  %6065 = vmatpush.msrb.mxu0 %v2548_v20 }
 0x868   : > { %v2676_v54 = vld [vmem:[%s7478_s17 + $0x4cb0] sm:$0xff]  ;;  %6084 = vmatpush.msrb.mxu1 %v2616_v29 }
 0x869   : > { %v2744_v59 = vld [vmem:[%s7478_s17 + $0x4ed0] sm:$0xff]  ;;  %6105 = vmatpush.msrb.mxu2 %v2676_v54  ;;  %v5772_v54 = vpop.f32.mrf.mxu1 }
 0x86a   : > { %v2544_v50 = vld [vmem:[%s7478_s17 + $0x4890] sm:$0xff]  ;;  %6124 = vmatpush.msrb.mxu3 %v2744_v59  ;;  %v5773_v12 = vadd.f32 %v5772_v54, %v5753_v27 }
 0x86b   : > { %v2612_v33 = vld [vmem:[%s7478_s17 + $0x4ab0] sm:$0xff]  ;;  %6066 = vmatpush.msrb.mxu0 %v2544_v50 }
 0x86c   : > { %v2672_v2 = vld [vmem:[%s7478_s17 + $0x4c90] sm:$0xff]  ;;  %6085 = vmatpush.msrb.mxu1 %v2612_v33 }
 0x86d   : > { %v2740_v55 = vld [vmem:[%s7478_s17 + $0x4eb0] sm:$0xff]  ;;  %6106 = vmatpush.msrb.mxu2 %v2672_v2 }
 0x86e   : > { %v2540_v60 = vld [vmem:[%s7478_s17 + $0x4870] sm:$0xff]  ;;  %6125 = vmatpush.msrb.mxu3 %v2740_v55 }
 0x86f   : > { %v2608_v22 = vld [vmem:[%s7478_s17 + $0x4a90] sm:$0xff]  ;;  %6067 = vmatpush.msrb.mxu0 %v2540_v60 }
 0x870   : > { %v2668_v23 = vld [vmem:[%s7478_s17 + $0x4c70] sm:$0xff]  ;;  %6086 = vmatpush.msrb.mxu1 %v2608_v22  ;;  %v5792_v22 = vpop.f32.mrf.mxu2 }
 0x871   : > { %v2736_v32 = vld [vmem:[%s7478_s17 + $0x4e90] sm:$0xff]  ;;  %6107 = vmatpush.msrb.mxu2 %v2668_v23 }
 0x872   : > { %v2536_v13 = vld [vmem:[%s7478_s17 + $0x4850] sm:$0xff]  ;;  %6126 = vmatpush.msrb.mxu3 %v2736_v32  ;;  %v5793_v32 = vadd.f32 %v5792_v22, %v5773_v12 }
 0x873   : > { %v2604_v34 = vld [vmem:[%s7478_s17 + $0x4a70] sm:$0xff]  ;;  %6068 = vmatpush.msrb.mxu0 %v2536_v13 }
 0x874   : > { %v2664_v20 = vld [vmem:[%s7478_s17 + $0x4c50] sm:$0xff]  ;;  %6087 = vmatpush.msrb.mxu1 %v2604_v34  ;;  %v5812_v34 = vpop.f32.mrf.mxu3 }
 0x875   : > { %v2732_v29 = vld [vmem:[%s7478_s17 + $0x4e70] sm:$0xff]  ;;  %6108 = vmatpush.msrb.mxu2 %v2664_v20  ;;  %v10089_v54 = vadd.f32 %v5812_v34, %v5793_v32 }
 0x876   : > { %v2532_v59 = vld [vmem:[%s7478_s17 + $0x4830] sm:$0xff]  ;;  %6127 = vmatpush.msrb.mxu3 %v2732_v29 }
 0x877   : > { %v2600_v50 = vld [vmem:[%s7478_s17 + $0x4a50] sm:$0xff]  ;;  %6069 = vmatpush.msrb.mxu0 %v2532_v59 }
 0x878   : > { %v2660_v33 = vld [vmem:[%s7478_s17 + $0x4c30] sm:$0xff]  ;;  %6088 = vmatpush.msrb.mxu1 %v2600_v50 }
 0x879   : > { %v2728_v2 = vld [vmem:[%s7478_s17 + $0x4e50] sm:$0xff]  ;;  %6109 = vmatpush.msrb.mxu2 %v2660_v33 }
 0x87a   : > { %v2528_v55 = vld [vmem:[%s7478_s17 + $0x4810] sm:$0xff]  ;;  %6128 = vmatpush.msrb.mxu3 %v2728_v2 }
 0x87b   : > { %v2596_v60 = vld [vmem:[%s7478_s17 + $0x4a30] sm:$0xff]  ;;  %6070 = vmatpush.msrb.mxu0 %v2528_v55 }
 0x87c   : > { %v2656_v56 = vld [vmem:[%s7478_s17 + $0x4c10] sm:$0xff]  ;;  %6089 = vmatpush.msrb.mxu1 %v2596_v60  ;;  %6071 = vmatmul.f32.vlgmr.msrb.gmra.mxu0 %v8205_v62 }
 0x87d   : > { %v2724_v23 = vld [vmem:[%s7478_s17 + $0x4e30] sm:$0xff]  ;;  %6110 = vmatpush.msrb.mxu2 %v2656_v56 }
 0x87e   : > { %v2844_v27 = vld [vmem:[%s7478_s17 + $0x51f0] sm:$0xff]  ;;  %6129 = vmatpush.msrb.mxu3 %v2724_v23  ;;  %6111 = vmatmul.f32.vlgmr.msrb.gmra.mxu2 %v8207_v63 }
 0x87f   : > { %v2972_v13 = vld [vmem:[%s7478_s17 + $0x55f0] sm:$0xff]  ;;  %6135 = vmatpush.msra.mxu0 %v2844_v27 }
 0x880   : > { %v2592_v20 = vld [vmem:[%s7478_s17 + $0x4a10] sm:$0xff]  ;;  %6175 = vmatpush.msra.mxu2 %v2972_v13 }
 0x881   : > { %v2720_v29 = vld [vmem:[%s7478_s17 + $0x4e10] sm:$0xff]  ;;  %6090 = vmatpush.msrb.mxu1 %v2592_v20 }
 0x882   : > { %v2840_v59 = vld [vmem:[%s7478_s17 + $0x51d0] sm:$0xff]  ;;  %6130 = vmatpush.msrb.mxu3 %v2720_v29  ;;  %6091 = vmatmul.f32.vlgmr.msrb.gmra.mxu1 %v8209_v0 }
 0x883   : > { %v2908_v50 = vld [vmem:[%s7478_s17 + $0x53f0] sm:$0xff]  ;;  %6131 = vmatmul.f32.vlgmr.msrb.gmra.mxu3 %v8211_v1  ;;  %6136 = vmatpush.msra.mxu0 %v2840_v59 }
 0x884   : > { %v2968_v12 = vld [vmem:[%s7478_s17 + $0x55d0] sm:$0xff]  ;;  %6155 = vmatpush.msra.mxu1 %v2908_v50 }
 0x885   : > { %v3036_v33 = vld [vmem:[%s7478_s17 + $0x57f0] sm:$0xff]  ;;  %6176 = vmatpush.msra.mxu2 %v2968_v12 }
 0x886   : > { %v2836_v2 = vld [vmem:[%s7478_s17 + $0x51b0] sm:$0xff]  ;;  %6195 = vmatpush.msra.mxu3 %v3036_v33 }
 0x887   : > { %v2904_v55 = vld [vmem:[%s7478_s17 + $0x53d0] sm:$0xff]  ;;  %6137 = vmatpush.msra.mxu0 %v2836_v2 }
 0x888   : > { %v2964_v60 = vld [vmem:[%s7478_s17 + $0x55b0] sm:$0xff]  ;;  %6156 = vmatpush.msra.mxu1 %v2904_v55 }
 0x889   : > { %v3032_v22 = vld [vmem:[%s7478_s17 + $0x57d0] sm:$0xff]  ;;  %6177 = vmatpush.msra.mxu2 %v2964_v60 }
 0x88a   : > { %v2832_v56 = vld [vmem:[%s7478_s17 + $0x5190] sm:$0xff]  ;;  %6196 = vmatpush.msra.mxu3 %v3032_v22 }
 0x88b   : > { %v2900_v23 = vld [vmem:[%s7478_s17 + $0x53b0] sm:$0xff]  ;;  %6138 = vmatpush.msra.mxu0 %v2832_v56 }
 0x88c   : > { %v2960_v32 = vld [vmem:[%s7478_s17 + $0x5590] sm:$0xff]  ;;  %6157 = vmatpush.msra.mxu1 %v2900_v23 }
 0x88d   : > { %v3028_v27 = vld [vmem:[%s7478_s17 + $0x57b0] sm:$0xff]  ;;  %6178 = vmatpush.msra.mxu2 %v2960_v32 }
 0x88e   : > { %v2828_v13 = vld [vmem:[%s7478_s17 + $0x5170] sm:$0xff]  ;;  %6197 = vmatpush.msra.mxu3 %v3028_v27 }
 0x88f   : > { %v2896_v34 = vld [vmem:[%s7478_s17 + $0x5390] sm:$0xff]  ;;  %6139 = vmatpush.msra.mxu0 %v2828_v13 }
 0x890   : > { %v2956_v20 = vld [vmem:[%s7478_s17 + $0x5570] sm:$0xff]  ;;  %6158 = vmatpush.msra.mxu1 %v2896_v34 }
 0x891   : > { %v3024_v29 = vld [vmem:[%s7478_s17 + $0x5790] sm:$0xff]  ;;  %6179 = vmatpush.msra.mxu2 %v2956_v20 }
 0x892   : > { %v2824_v59 = vld [vmem:[%s7478_s17 + $0x5150] sm:$0xff]  ;;  %6198 = vmatpush.msra.mxu3 %v3024_v29 }
 0x893   : > { %v2892_v50 = vld [vmem:[%s7478_s17 + $0x5370] sm:$0xff]  ;;  %6140 = vmatpush.msra.mxu0 %v2824_v59 }
 0x894   : > { %v2952_v12 = vld [vmem:[%s7478_s17 + $0x5550] sm:$0xff]  ;;  %6159 = vmatpush.msra.mxu1 %v2892_v50 }
 0x895   : > { %v3020_v33 = vld [vmem:[%s7478_s17 + $0x5770] sm:$0xff]  ;;  %6180 = vmatpush.msra.mxu2 %v2952_v12 }
 0x896   : > { %v2820_v2 = vld [vmem:[%s7478_s17 + $0x5130] sm:$0xff]  ;;  %6199 = vmatpush.msra.mxu3 %v3020_v33 }
 0x897   : > { %v2888_v55 = vld [vmem:[%s7478_s17 + $0x5350] sm:$0xff]  ;;  %6141 = vmatpush.msra.mxu0 %v2820_v2 }
 0x898   : > { %v2948_v60 = vld [vmem:[%s7478_s17 + $0x5530] sm:$0xff]  ;;  %6160 = vmatpush.msra.mxu1 %v2888_v55 }
 0x899   : > { %v3016_v22 = vld [vmem:[%s7478_s17 + $0x5750] sm:$0xff]  ;;  %6181 = vmatpush.msra.mxu2 %v2948_v60 }
 0x89a   : > { %v2816_v56 = vld [vmem:[%s7478_s17 + $0x5110] sm:$0xff]  ;;  %6200 = vmatpush.msra.mxu3 %v3016_v22 }
 0x89b   : > { %v2884_v23 = vld [vmem:[%s7478_s17 + $0x5330] sm:$0xff]  ;;  %6142 = vmatpush.msra.mxu0 %v2816_v56 }
 0x89c   : > { %v2944_v32 = vld [vmem:[%s7478_s17 + $0x5510] sm:$0xff]  ;;  %6161 = vmatpush.msra.mxu1 %v2884_v23 }
 0x89d   : > { %v3012_v27 = vld [vmem:[%s7478_s17 + $0x5730] sm:$0xff]  ;;  %6182 = vmatpush.msra.mxu2 %v2944_v32 }
 0x89e   : > { %v2812_v13 = vld [vmem:[%s7478_s17 + $0x50f0] sm:$0xff]  ;;  %6201 = vmatpush.msra.mxu3 %v3012_v27 }
 0x89f   : > { %v2880_v34 = vld [vmem:[%s7478_s17 + $0x5310] sm:$0xff]  ;;  %6143 = vmatpush.msra.mxu0 %v2812_v13 }
 0x8a0   : > { %v2940_v20 = vld [vmem:[%s7478_s17 + $0x54f0] sm:$0xff]  ;;  %6162 = vmatpush.msra.mxu1 %v2880_v34 }
 0x8a1   : > { %v3008_v29 = vld [vmem:[%s7478_s17 + $0x5710] sm:$0xff]  ;;  %6183 = vmatpush.msra.mxu2 %v2940_v20  ;;  %v5832_v20 = vpop.f32.mrf.mxu0 }
 0x8a2   : > { %v2808_v59 = vld [vmem:[%s7478_s17 + $0x50d0] sm:$0xff]  ;;  %6202 = vmatpush.msra.mxu3 %v3008_v29 }
 0x8a3   : > { %v2876_v50 = vld [vmem:[%s7478_s17 + $0x52f0] sm:$0xff]  ;;  %6144 = vmatpush.msra.mxu0 %v2808_v59 }
 0x8a4   : > { %v2936_v12 = vld [vmem:[%s7478_s17 + $0x54d0] sm:$0xff]  ;;  %6163 = vmatpush.msra.mxu1 %v2876_v50  ;;  %v5833_v50 = vadd.f32 %v5832_v20, %v10089_v54 }
 0x8a5   : > { %v3004_v33 = vld [vmem:[%s7478_s17 + $0x56f0] sm:$0xff]  ;;  %6184 = vmatpush.msra.mxu2 %v2936_v12 }
 0x8a6   : > { %v2804_v2 = vld [vmem:[%s7478_s17 + $0x50b0] sm:$0xff]  ;;  %6203 = vmatpush.msra.mxu3 %v3004_v33 }
 0x8a7   : > { %v2872_v55 = vld [vmem:[%s7478_s17 + $0x52d0] sm:$0xff]  ;;  %6145 = vmatpush.msra.mxu0 %v2804_v2 }
 0x8a8   : > { %v2932_v60 = vld [vmem:[%s7478_s17 + $0x54b0] sm:$0xff]  ;;  %6164 = vmatpush.msra.mxu1 %v2872_v55 }
 0x8a9   : > { %v3000_v22 = vld [vmem:[%s7478_s17 + $0x56d0] sm:$0xff]  ;;  %6185 = vmatpush.msra.mxu2 %v2932_v60  ;;  %v5852_v60 = vpop.f32.mrf.mxu1 }
 0x8aa   : > { %v2800_v56 = vld [vmem:[%s7478_s17 + $0x5090] sm:$0xff]  ;;  %6204 = vmatpush.msra.mxu3 %v3000_v22  ;;  %v5853_v54 = vadd.f32 %v5852_v60, %v5833_v50 }
 0x8ab   : > { %v2868_v23 = vld [vmem:[%s7478_s17 + $0x52b0] sm:$0xff]  ;;  %6146 = vmatpush.msra.mxu0 %v2800_v56 }
 0x8ac   : > { %v2928_v32 = vld [vmem:[%s7478_s17 + $0x5490] sm:$0xff]  ;;  %6165 = vmatpush.msra.mxu1 %v2868_v23 }
 0x8ad   : > { %v2996_v27 = vld [vmem:[%s7478_s17 + $0x56b0] sm:$0xff]  ;;  %6186 = vmatpush.msra.mxu2 %v2928_v32 }
 0x8ae   : > { %v2796_v13 = vld [vmem:[%s7478_s17 + $0x5070] sm:$0xff]  ;;  %6205 = vmatpush.msra.mxu3 %v2996_v27 }
 0x8af   : > { %v2864_v34 = vld [vmem:[%s7478_s17 + $0x5290] sm:$0xff]  ;;  %6147 = vmatpush.msra.mxu0 %v2796_v13 }
 0x8b0   : > { %v2924_v29 = vld [vmem:[%s7478_s17 + $0x5470] sm:$0xff]  ;;  %6166 = vmatpush.msra.mxu1 %v2864_v34  ;;  %v5872_v34 = vpop.f32.mrf.mxu2 }
 0x8b1   : > { %v2992_v59 = vld [vmem:[%s7478_s17 + $0x5690] sm:$0xff]  ;;  %6187 = vmatpush.msra.mxu2 %v2924_v29 }
 0x8b2   : > { %v2792_v12 = vld [vmem:[%s7478_s17 + $0x5050] sm:$0xff]  ;;  %6206 = vmatpush.msra.mxu3 %v2992_v59  ;;  %v5873_v59 = vadd.f32 %v5872_v34, %v5853_v54  ;;  %v7401_v34 = vld.sshfl [vmem:[#allocation1 + $0x18] sm:$0xff pattern:$0x73625140] }
 0x8b3   : > { %v2860_v33 = vld [vmem:[%s7478_s17 + $0x5270] sm:$0xff]  ;;  %6148 = vmatpush.msra.mxu0 %v2792_v12 }
 0x8b4   : > { %v2920_v2 = vld [vmem:[%s7478_s17 + $0x5450] sm:$0xff]  ;;  %6167 = vmatpush.msra.mxu1 %v2860_v33  ;;  %v5892_v33 = vpop.f32.mrf.mxu3 }
 0x8b5   : > { %v2988_v55 = vld [vmem:[%s7478_s17 + $0x5670] sm:$0xff]  ;;  %6188 = vmatpush.msra.mxu2 %v2920_v2  ;;  %v10160_v60 = vadd.f32 %v5892_v33, %v5873_v59 }
 0x8b6   : > { %v2788_v22 = vld [vmem:[%s7478_s17 + $0x5030] sm:$0xff]  ;;  %6207 = vmatpush.msra.mxu3 %v2988_v55 }
 0x8b7   : > { %v2856_v56 = vld [vmem:[%s7478_s17 + $0x5250] sm:$0xff]  ;;  %6149 = vmatpush.msra.mxu0 %v2788_v22  ;;  %v7398_v22 = vld.sshfl [vmem:[#allocation1] sm:$0xff pattern:$0x73625140] }
 0x8b8   : > { %v2916_v23 = vld [vmem:[%s7478_s17 + $0x5430] sm:$0xff]  ;;  %6168 = vmatpush.msra.mxu1 %v2856_v56 }
 0x8b9   : > { %v2984_v32 = vld [vmem:[%s7478_s17 + $0x5650] sm:$0xff]  ;;  %6189 = vmatpush.msra.mxu2 %v2916_v23 }
 0x8ba   : > { %v2784_v27 = vld [vmem:[%s7478_s17 + $0x5010] sm:$0xff]  ;;  %6208 = vmatpush.msra.mxu3 %v2984_v32 }
 0x8bb   : > { %v2852_v13 = vld [vmem:[%s7478_s17 + $0x5230] sm:$0xff]  ;;  %6150 = vmatpush.msra.mxu0 %v2784_v27 }
 0x8bc   : > { %v2912_v20 = vld [vmem:[%s7478_s17 + $0x5410] sm:$0xff]  ;;  %6169 = vmatpush.msra.mxu1 %v2852_v13  ;;  %6151 = vmatmul.f32.vlgmr.msra.gmra.mxu0 %v7398_v22  ;;  %v7400_v13 = vld.sshfl [vmem:[#allocation1 + $0x8] sm:$0xff pattern:$0x73625140] }
 0x8bd   : > { %v2980_v29 = vld [vmem:[%s7478_s17 + $0x5630] sm:$0xff]  ;;  %6190 = vmatpush.msra.mxu2 %v2912_v20 }
 0x8be   : > { %v3100_v50 = vld [vmem:[%s7478_s17 + $0x59f0] sm:$0xff]  ;;  %6209 = vmatpush.msra.mxu3 %v2980_v29 }
 0x8bf   : > { %v3228_v12 = vld [vmem:[%s7478_s17 + $0x5df0] sm:$0xff]  ;;  %6215 = vmatpush.msrb.mxu0 %v3100_v50 }
 0x8c0   : > { %v2848_v2 = vld [vmem:[%s7478_s17 + $0x5210] sm:$0xff]  ;;  %6255 = vmatpush.msrb.mxu2 %v3228_v12 }
 0x8c1   : > { %v2976_v55 = vld [vmem:[%s7478_s17 + $0x5610] sm:$0xff]  ;;  %6170 = vmatpush.msra.mxu1 %v2848_v2 }
 0x8c2   : > { %v7399_v56 = vld.sshfl [vmem:[#allocation1 + $0x10] sm:$0xff pattern:$0x73625140]  ;;  %6210 = vmatpush.msra.mxu3 %v2976_v55  ;;  %6171 = vmatmul.f32.vlgmr.msra.gmra.mxu1 %v7400_v13 }
 0x8c3   : > { %6191 = vmatmul.f32.vlgmr.msra.gmra.mxu2 %v7399_v56  ;;  %v3096_v54 = vld [vmem:[%s7478_s17 + $0x59d0] sm:$0xff]  ;;  %6211 = vmatmul.f32.vlgmr.msra.gmra.mxu3 %v7401_v34 }
 0x8c4   : > { %v3164_v23 = vld [vmem:[%s7478_s17 + $0x5bf0] sm:$0xff]  ;;  %6216 = vmatpush.msrb.mxu0 %v3096_v54 }
 0x8c5   : > { %v3224_v32 = vld [vmem:[%s7478_s17 + $0x5dd0] sm:$0xff]  ;;  %6235 = vmatpush.msrb.mxu1 %v3164_v23 }
 0x8c6   : > { %v3292_v27 = vld [vmem:[%s7478_s17 + $0x5ff0] sm:$0xff]  ;;  %6256 = vmatpush.msrb.mxu2 %v3224_v32 }
 0x8c7   : > { %v3092_v20 = vld [vmem:[%s7478_s17 + $0x59b0] sm:$0xff]  ;;  %6275 = vmatpush.msrb.mxu3 %v3292_v27 }
 0x8c8   : > { %v3160_v29 = vld [vmem:[%s7478_s17 + $0x5bd0] sm:$0xff]  ;;  %6217 = vmatpush.msrb.mxu0 %v3092_v20 }
 0x8c9   : > { %v3220_v59 = vld [vmem:[%s7478_s17 + $0x5db0] sm:$0xff]  ;;  %6236 = vmatpush.msrb.mxu1 %v3160_v29 }
 0x8ca   : > { %v3288_v50 = vld [vmem:[%s7478_s17 + $0x5fd0] sm:$0xff]  ;;  %6257 = vmatpush.msrb.mxu2 %v3220_v59 }
 0x8cb   : > { %v3088_v12 = vld [vmem:[%s7478_s17 + $0x5990] sm:$0xff]  ;;  %6276 = vmatpush.msrb.mxu3 %v3288_v50 }
 0x8cc   : > { %v3156_v33 = vld [vmem:[%s7478_s17 + $0x5bb0] sm:$0xff]  ;;  %6218 = vmatpush.msrb.mxu0 %v3088_v12 }
 0x8cd   : > { %v3216_v2 = vld [vmem:[%s7478_s17 + $0x5d90] sm:$0xff]  ;;  %6237 = vmatpush.msrb.mxu1 %v3156_v33 }
 0x8ce   : > { %v3284_v55 = vld [vmem:[%s7478_s17 + $0x5fb0] sm:$0xff]  ;;  %6258 = vmatpush.msrb.mxu2 %v3216_v2 }
 0x8cf   : > { %v3084_v22 = vld [vmem:[%s7478_s17 + $0x5970] sm:$0xff]  ;;  %6277 = vmatpush.msrb.mxu3 %v3284_v55 }
 0x8d0   : > { %v3152_v56 = vld [vmem:[%s7478_s17 + $0x5b90] sm:$0xff]  ;;  %6219 = vmatpush.msrb.mxu0 %v3084_v22 }
 0x8d1   : > { %v3212_v54 = vld [vmem:[%s7478_s17 + $0x5d70] sm:$0xff]  ;;  %6238 = vmatpush.msrb.mxu1 %v3152_v56 }
 0x8d2   : > { %v3280_v23 = vld [vmem:[%s7478_s17 + $0x5f90] sm:$0xff]  ;;  %6259 = vmatpush.msrb.mxu2 %v3212_v54 }
 0x8d3   : > { %v3080_v32 = vld [vmem:[%s7478_s17 + $0x5950] sm:$0xff]  ;;  %6278 = vmatpush.msrb.mxu3 %v3280_v23 }
 0x8d4   : > { %v3148_v27 = vld [vmem:[%s7478_s17 + $0x5b70] sm:$0xff]  ;;  %6220 = vmatpush.msrb.mxu0 %v3080_v32 }
 0x8d5   : > { %v3208_v13 = vld [vmem:[%s7478_s17 + $0x5d50] sm:$0xff]  ;;  %6239 = vmatpush.msrb.mxu1 %v3148_v27 }
 0x8d6   : > { %v3276_v34 = vld [vmem:[%s7478_s17 + $0x5f70] sm:$0xff]  ;;  %6260 = vmatpush.msrb.mxu2 %v3208_v13 }
 0x8d7   : > { %v3076_v20 = vld [vmem:[%s7478_s17 + $0x5930] sm:$0xff]  ;;  %6279 = vmatpush.msrb.mxu3 %v3276_v34 }
 0x8d8   : > { %v3144_v29 = vld [vmem:[%s7478_s17 + $0x5b50] sm:$0xff]  ;;  %6221 = vmatpush.msrb.mxu0 %v3076_v20 }
 0x8d9   : > { %v3204_v59 = vld [vmem:[%s7478_s17 + $0x5d30] sm:$0xff]  ;;  %6240 = vmatpush.msrb.mxu1 %v3144_v29 }
 0x8da   : > { %v3272_v50 = vld [vmem:[%s7478_s17 + $0x5f50] sm:$0xff]  ;;  %6261 = vmatpush.msrb.mxu2 %v3204_v59 }
 0x8db   : > { %v3072_v12 = vld [vmem:[%s7478_s17 + $0x5910] sm:$0xff]  ;;  %6280 = vmatpush.msrb.mxu3 %v3272_v50 }
 0x8dc   : > { %v3140_v33 = vld [vmem:[%s7478_s17 + $0x5b30] sm:$0xff]  ;;  %6222 = vmatpush.msrb.mxu0 %v3072_v12 }
 0x8dd   : > { %v3200_v2 = vld [vmem:[%s7478_s17 + $0x5d10] sm:$0xff]  ;;  %6241 = vmatpush.msrb.mxu1 %v3140_v33 }
 0x8de   : > { %v3268_v55 = vld [vmem:[%s7478_s17 + $0x5f30] sm:$0xff]  ;;  %6262 = vmatpush.msrb.mxu2 %v3200_v2 }
 0x8df   : > { %v3068_v22 = vld [vmem:[%s7478_s17 + $0x58f0] sm:$0xff]  ;;  %6281 = vmatpush.msrb.mxu3 %v3268_v55 }
 0x8e0   : > { %v3136_v56 = vld [vmem:[%s7478_s17 + $0x5b10] sm:$0xff]  ;;  %6223 = vmatpush.msrb.mxu0 %v3068_v22 }
 0x8e1   : > { %v3196_v54 = vld [vmem:[%s7478_s17 + $0x5cf0] sm:$0xff]  ;;  %6242 = vmatpush.msrb.mxu1 %v3136_v56 }
 0x8e2   : > { %v3264_v23 = vld [vmem:[%s7478_s17 + $0x5f10] sm:$0xff]  ;;  %6263 = vmatpush.msrb.mxu2 %v3196_v54  ;;  %v5912_v54 = vpop.f32.mrf.mxu0 }
 0x8e3   : > { %v3064_v32 = vld [vmem:[%s7478_s17 + $0x58d0] sm:$0xff]  ;;  %6282 = vmatpush.msrb.mxu3 %v3264_v23 }
 0x8e4   : > { %v3132_v27 = vld [vmem:[%s7478_s17 + $0x5af0] sm:$0xff]  ;;  %6224 = vmatpush.msrb.mxu0 %v3064_v32 }
 0x8e5   : > { %v3192_v13 = vld [vmem:[%s7478_s17 + $0x5cd0] sm:$0xff]  ;;  %6243 = vmatpush.msrb.mxu1 %v3132_v27  ;;  %v5913_v27 = vadd.f32 %v5912_v54, %v10160_v60 }
 0x8e6   : > { %v3260_v34 = vld [vmem:[%s7478_s17 + $0x5ef0] sm:$0xff]  ;;  %6264 = vmatpush.msrb.mxu2 %v3192_v13 }
 0x8e7   : > { %v3060_v20 = vld [vmem:[%s7478_s17 + $0x58b0] sm:$0xff]  ;;  %6283 = vmatpush.msrb.mxu3 %v3260_v34 }
 0x8e8   : > { %v3128_v29 = vld [vmem:[%s7478_s17 + $0x5ad0] sm:$0xff]  ;;  %6225 = vmatpush.msrb.mxu0 %v3060_v20 }
 0x8e9   : > { %v3188_v59 = vld [vmem:[%s7478_s17 + $0x5cb0] sm:$0xff]  ;;  %6244 = vmatpush.msrb.mxu1 %v3128_v29 }
 0x8ea   : > { %v3256_v50 = vld [vmem:[%s7478_s17 + $0x5ed0] sm:$0xff]  ;;  %6265 = vmatpush.msrb.mxu2 %v3188_v59  ;;  %v5932_v59 = vpop.f32.mrf.mxu1 }
 0x8eb   : > { %v3056_v12 = vld [vmem:[%s7478_s17 + $0x5890] sm:$0xff]  ;;  %6284 = vmatpush.msrb.mxu3 %v3256_v50  ;;  %v5933_v60 = vadd.f32 %v5932_v59, %v5913_v27  ;;  %v285_v27 = vld [vmem:[%s7478_s17 + $0x1f8] sm:$0xff] }
 0x8ec   : > { %v3124_v33 = vld [vmem:[%s7478_s17 + $0x5ab0] sm:$0xff]  ;;  %6226 = vmatpush.msrb.mxu0 %v3056_v12 }
 0x8ed   : > { %v3184_v2 = vld [vmem:[%s7478_s17 + $0x5c90] sm:$0xff]  ;;  %6245 = vmatpush.msrb.mxu1 %v3124_v33 }
 0x8ee   : > { %v3252_v55 = vld [vmem:[%s7478_s17 + $0x5eb0] sm:$0xff]  ;;  %6266 = vmatpush.msrb.mxu2 %v3184_v2 }
 0x8ef   : > { %v3052_v22 = vld [vmem:[%s7478_s17 + $0x5870] sm:$0xff]  ;;  %6285 = vmatpush.msrb.mxu3 %v3252_v55 }
 0x8f0   : > { %v3120_v56 = vld [vmem:[%s7478_s17 + $0x5a90] sm:$0xff]  ;;  %6227 = vmatpush.msrb.mxu0 %v3052_v22 }
 0x8f1   : > { %v3180_v23 = vld [vmem:[%s7478_s17 + $0x5c70] sm:$0xff]  ;;  %6246 = vmatpush.msrb.mxu1 %v3120_v56  ;;  %v5952_v56 = vpop.f32.mrf.mxu2 }
 0x8f2   : > { %v3248_v32 = vld [vmem:[%s7478_s17 + $0x5e90] sm:$0xff]  ;;  %6267 = vmatpush.msrb.mxu2 %v3180_v23 }
 0x8f3   : > { %v3048_v13 = vld [vmem:[%s7478_s17 + $0x5850] sm:$0xff]  ;;  %6286 = vmatpush.msrb.mxu3 %v3248_v32  ;;  %v5953_v32 = vadd.f32 %v5952_v56, %v5933_v60  ;;  %v281_v60 = vld [vmem:[%s7478_s17 + $0x1d8] sm:$0xff] }
 0x8f4   : > { %v3116_v34 = vld [vmem:[%s7478_s17 + $0x5a70] sm:$0xff]  ;;  %6228 = vmatpush.msrb.mxu0 %v3048_v13  ;;  %v413_v13 = vld [vmem:[%s7478_s17 + $0x5f8] sm:$0xff] }
 0x8f5   : > { %v3176_v20 = vld [vmem:[%s7478_s17 + $0x5c50] sm:$0xff]  ;;  %6247 = vmatpush.msrb.mxu1 %v3116_v34  ;;  %v5972_v34 = vpop.f32.mrf.mxu3  ;;  %v7405_v56 = vld.sshfl [vmem:[#allocation1 + $0x38] sm:$0xff pattern:$0x73625140] }
 0x8f6   : > { %v3244_v29 = vld [vmem:[%s7478_s17 + $0x5e70] sm:$0xff]  ;;  %6268 = vmatpush.msrb.mxu2 %v3176_v20  ;;  %v10227_v59 = vadd.f32 %v5972_v34, %v5953_v32  ;;  %v405_v32 = vld [vmem:[%s7478_s17 + $0x5b8] sm:$0xff] }
 0x8f7   : > { %v3044_v50 = vld [vmem:[%s7478_s17 + $0x5830] sm:$0xff]  ;;  %6287 = vmatpush.msrb.mxu3 %v3244_v29  ;;  %v341_v34 = vld [vmem:[%s7478_s17 + $0x3b8] sm:$0xff] }
 0x8f8   : > { %v3112_v12 = vld [vmem:[%s7478_s17 + $0x5a50] sm:$0xff]  ;;  %6229 = vmatpush.msrb.mxu0 %v3044_v50  ;;  %v7402_v50 = vld.sshfl [vmem:[#allocation1 + $0x20] sm:$0xff pattern:$0x73625140] }
 0x8f9   : > { %v3172_v33 = vld [vmem:[%s7478_s17 + $0x5c30] sm:$0xff]  ;;  %6248 = vmatpush.msrb.mxu1 %v3112_v12 }
 0x8fa   : > { %v3240_v2 = vld [vmem:[%s7478_s17 + $0x5e50] sm:$0xff]  ;;  %6269 = vmatpush.msrb.mxu2 %v3172_v33  ;;  %v349_v33 = vld [vmem:[%s7478_s17 + $0x3f8] sm:$0xff] }
 0x8fb   : > { %v3040_v55 = vld [vmem:[%s7478_s17 + $0x5810] sm:$0xff]  ;;  %6288 = vmatpush.msrb.mxu3 %v3240_v2  ;;  %v409_v2 = vld [vmem:[%s7478_s17 + $0x5d8] sm:$0xff] }
 0x8fc   : > { %v3108_v22 = vld [vmem:[%s7478_s17 + $0x5a30] sm:$0xff]  ;;  %6230 = vmatpush.msrb.mxu0 %v3040_v55  ;;  %v477_v55 = vld [vmem:[%s7478_s17 + $0x7f8] sm:$0xff] }
 0x8fd   : > { %v3168_v54 = vld [vmem:[%s7478_s17 + $0x5c10] sm:$0xff]  ;;  %6249 = vmatpush.msrb.mxu1 %v3108_v22  ;;  %6231 = vmatmul.f32.vlgmr.msrb.gmra.mxu0 %v7402_v50  ;;  %v7404_v22 = vld.sshfl [vmem:[#allocation1 + $0x28] sm:$0xff pattern:$0x73625140]  ;;  %v269_v50 = vld [vmem:[%s7478_s17 + $0x178] sm:$0xff] }
 0x8fe   : > { %v3236_v23 = vld [vmem:[%s7478_s17 + $0x5e30] sm:$0xff]  ;;  %6270 = vmatpush.msrb.mxu2 %v3168_v54  ;;  %6295 = vmatpush.msra.mxu0 %v285_v27  ;;  %v277_v54 = vld [vmem:[%s7478_s17 + $0x1b8] sm:$0xff] }
 0x8ff   : > { %6289 = vmatpush.msrb.mxu3 %v3236_v23  ;;  %v3104_v20 = vld [vmem:[%s7478_s17 + $0x5a10] sm:$0xff]  ;;  %v345_v23 = vld [vmem:[%s7478_s17 + $0x3d8] sm:$0xff] }
 0x900   : > { %v3232_v29 = vld [vmem:[%s7478_s17 + $0x5e10] sm:$0xff]  ;;  %6335 = vmatpush.msra.mxu2 %v413_v13  ;;  %6250 = vmatpush.msrb.mxu1 %v3104_v20  ;;  %v473_v27 = vld [vmem:[%s7478_s17 + $0x7d8] sm:$0xff] }
 0x901   : > { %v7403_v12 = vld.sshfl [vmem:[#allocation1 + $0x30] sm:$0xff pattern:$0x73625140]  ;;  %6290 = vmatpush.msrb.mxu3 %v3232_v29  ;;  %6251 = vmatmul.f32.vlgmr.msrb.gmra.mxu1 %v7404_v22  ;;  %v273_v13 = vld [vmem:[%s7478_s17 + $0x198] sm:$0xff] }
 0x902   : > { %6271 = vmatmul.f32.vlgmr.msrb.gmra.mxu2 %v7403_v12  ;;  %6291 = vmatmul.f32.vlgmr.msrb.gmra.mxu3 %v7405_v56  ;;  %v401_v20 = vld [vmem:[%s7478_s17 + $0x598] sm:$0xff] }
 0x903   : > { %6296 = vmatpush.msra.mxu0 %v281_v60  ;;  %6315 = vmatpush.msra.mxu1 %v349_v33  ;;  %v469_v29 = vld [vmem:[%s7478_s17 + $0x7b8] sm:$0xff] }
 0x904   : > { %6336 = vmatpush.msra.mxu2 %v409_v2  ;;  %6355 = vmatpush.msra.mxu3 %v477_v55  ;;  %v337_v12 = vld [vmem:[%s7478_s17 + $0x398] sm:$0xff] }
 0x905   : > { %6297 = vmatpush.msra.mxu0 %v277_v54  ;;  %6316 = vmatpush.msra.mxu1 %v345_v23  ;;  %v397_v60 = vld [vmem:[%s7478_s17 + $0x578] sm:$0xff] }
 0x906   : > { %6337 = vmatpush.msra.mxu2 %v405_v32  ;;  %6356 = vmatpush.msra.mxu3 %v473_v27  ;;  %v465_v33 = vld [vmem:[%s7478_s17 + $0x798] sm:$0xff] }
 0x907   : > { %6298 = vmatpush.msra.mxu0 %v273_v13  ;;  %6317 = vmatpush.msra.mxu1 %v341_v34  ;;  %v265_v2 = vld [vmem:[%s7478_s17 + $0x158] sm:$0xff] }
 0x908   : > { %6338 = vmatpush.msra.mxu2 %v401_v20  ;;  %6357 = vmatpush.msra.mxu3 %v469_v29  ;;  %v333_v55 = vld [vmem:[%s7478_s17 + $0x378] sm:$0xff] }
 0x909   : > { %6299 = vmatpush.msra.mxu0 %v269_v50  ;;  %6318 = vmatpush.msra.mxu1 %v337_v12  ;;  %v393_v22 = vld [vmem:[%s7478_s17 + $0x558] sm:$0xff] }
 0x90a   : > { %v461_v56 = vld [vmem:[%s7478_s17 + $0x778] sm:$0xff]  ;;  %6339 = vmatpush.msra.mxu2 %v397_v60  ;;  %6358 = vmatpush.msra.mxu3 %v465_v33 }
 0x90b   : > { %v261_v54 = vld [vmem:[%s7478_s17 + $0x138] sm:$0xff]  ;;  %6300 = vmatpush.msra.mxu0 %v265_v2  ;;  %6319 = vmatpush.msra.mxu1 %v333_v55 }
 0x90c   : > { %v329_v23 = vld [vmem:[%s7478_s17 + $0x358] sm:$0xff]  ;;  %6340 = vmatpush.msra.mxu2 %v393_v22  ;;  %6359 = vmatpush.msra.mxu3 %v461_v56 }
 0x90d   : > { %v389_v32 = vld [vmem:[%s7478_s17 + $0x538] sm:$0xff]  ;;  %6301 = vmatpush.msra.mxu0 %v261_v54  ;;  %6320 = vmatpush.msra.mxu1 %v329_v23 }
 0x90e   : > { %v457_v27 = vld [vmem:[%s7478_s17 + $0x758] sm:$0xff]  ;;  %6341 = vmatpush.msra.mxu2 %v389_v32 }
 0x90f   : > { %v257_v13 = vld [vmem:[%s7478_s17 + $0x118] sm:$0xff]  ;;  %6360 = vmatpush.msra.mxu3 %v457_v27 }
 0x910   : > { %v325_v34 = vld [vmem:[%s7478_s17 + $0x338] sm:$0xff]  ;;  %6302 = vmatpush.msra.mxu0 %v257_v13 }
 0x911   : > { %v385_v20 = vld [vmem:[%s7478_s17 + $0x518] sm:$0xff]  ;;  %6321 = vmatpush.msra.mxu1 %v325_v34 }
 0x912   : > { %v453_v29 = vld [vmem:[%s7478_s17 + $0x738] sm:$0xff]  ;;  %6342 = vmatpush.msra.mxu2 %v385_v20 }
 0x913   : > { %v253_v50 = vld [vmem:[%s7478_s17 + $0xf8] sm:$0xff]  ;;  %6361 = vmatpush.msra.mxu3 %v453_v29 }
 0x914   : > { %v321_v12 = vld [vmem:[%s7478_s17 + $0x318] sm:$0xff]  ;;  %6303 = vmatpush.msra.mxu0 %v253_v50 }
 0x915   : > { %v381_v60 = vld [vmem:[%s7478_s17 + $0x4f8] sm:$0xff]  ;;  %6322 = vmatpush.msra.mxu1 %v321_v12 }
 0x916   : > { %v449_v33 = vld [vmem:[%s7478_s17 + $0x718] sm:$0xff]  ;;  %6343 = vmatpush.msra.mxu2 %v381_v60  ;;  %v5992_v60 = vpop.f32.mrf.mxu0 }
 0x917   : > { %v249_v2 = vld [vmem:[%s7478_s17 + $0xd8] sm:$0xff]  ;;  %6362 = vmatpush.msra.mxu3 %v449_v33 }
 0x918   : > { %v317_v55 = vld [vmem:[%s7478_s17 + $0x2f8] sm:$0xff]  ;;  %6304 = vmatpush.msra.mxu0 %v249_v2 }
 0x919   : > { %v377_v22 = vld [vmem:[%s7478_s17 + $0x4d8] sm:$0xff]  ;;  %6323 = vmatpush.msra.mxu1 %v317_v55  ;;  %v5993_v55 = vadd.f32 %v5992_v60, %v10227_v59 }
 0x91a   : > { %v445_v56 = vld [vmem:[%s7478_s17 + $0x6f8] sm:$0xff]  ;;  %6344 = vmatpush.msra.mxu2 %v377_v22 }
 0x91b   : > { %v245_v54 = vld [vmem:[%s7478_s17 + $0xb8] sm:$0xff]  ;;  %6363 = vmatpush.msra.mxu3 %v445_v56 }
 0x91c   : > { %v313_v23 = vld [vmem:[%s7478_s17 + $0x2d8] sm:$0xff]  ;;  %6305 = vmatpush.msra.mxu0 %v245_v54 }
 0x91d   : > { %v373_v32 = vld [vmem:[%s7478_s17 + $0x4b8] sm:$0xff]  ;;  %6324 = vmatpush.msra.mxu1 %v313_v23 }
 0x91e   : > { %v441_v27 = vld [vmem:[%s7478_s17 + $0x6d8] sm:$0xff]  ;;  %6345 = vmatpush.msra.mxu2 %v373_v32  ;;  %v6012_v32 = vpop.f32.mrf.mxu1 }
 0x91f   : > { %v241_v13 = vld [vmem:[%s7478_s17 + $0x98] sm:$0xff]  ;;  %6364 = vmatpush.msra.mxu3 %v441_v27  ;;  %v6013_v59 = vadd.f32 %v6012_v32, %v5993_v55 }
 0x920   : > { %v309_v34 = vld [vmem:[%s7478_s17 + $0x2b8] sm:$0xff]  ;;  %6306 = vmatpush.msra.mxu0 %v241_v13 }
 0x921   : > { %v369_v20 = vld [vmem:[%s7478_s17 + $0x498] sm:$0xff]  ;;  %6325 = vmatpush.msra.mxu1 %v309_v34 }
 0x922   : > { %v437_v29 = vld [vmem:[%s7478_s17 + $0x6b8] sm:$0xff]  ;;  %6346 = vmatpush.msra.mxu2 %v369_v20 }
 0x923   : > { %v237_v50 = vld [vmem:[%s7478_s17 + $0x78] sm:$0xff]  ;;  %6365 = vmatpush.msra.mxu3 %v437_v29 }
 0x924   : > { %v305_v12 = vld [vmem:[%s7478_s17 + $0x298] sm:$0xff]  ;;  %6307 = vmatpush.msra.mxu0 %v237_v50 }
 0x925   : > { %v365_v33 = vld [vmem:[%s7478_s17 + $0x478] sm:$0xff]  ;;  %6326 = vmatpush.msra.mxu1 %v305_v12  ;;  %v6032_v12 = vpop.f32.mrf.mxu2 }
 0x926   : > { %v433_v2 = vld [vmem:[%s7478_s17 + $0x698] sm:$0xff]  ;;  %6347 = vmatpush.msra.mxu2 %v365_v33 }
 0x927   : > { %v233_v22 = vld [vmem:[%s7478_s17 + $0x58] sm:$0xff]  ;;  %6366 = vmatpush.msra.mxu3 %v433_v2  ;;  %v6033_v2 = vadd.f32 %v6032_v12, %v6013_v59 }
 0x928   : > { %v301_v56 = vld [vmem:[%s7478_s17 + $0x278] sm:$0xff]  ;;  %6308 = vmatpush.msra.mxu0 %v233_v22 }
 0x929   : > { %v361_v54 = vld [vmem:[%s7478_s17 + $0x458] sm:$0xff]  ;;  %6327 = vmatpush.msra.mxu1 %v301_v56 }
 0x92a   : > { %v429_v23 = vld [vmem:[%s7478_s17 + $0x678] sm:$0xff]  ;;  %6348 = vmatpush.msra.mxu2 %v361_v54 }
 0x92b   : > { %v229_v27 = vld [vmem:[%s7478_s17 + $0x38] sm:$0xff]  ;;  %6367 = vmatpush.msra.mxu3 %v429_v23  ;;  %v6052_v23 = vpop.f32.mrf.mxu3 }
 0x92c   : > { %v297_v13 = vld [vmem:[%s7478_s17 + $0x258] sm:$0xff]  ;;  %6309 = vmatpush.msra.mxu0 %v229_v27 }
 0x92d   : > { %v357_v34 = vld [vmem:[%s7478_s17 + $0x438] sm:$0xff]  ;;  %6328 = vmatpush.msra.mxu1 %v297_v13  ;;  %v10296_v13 = vadd.f32 %v6052_v23, %v6033_v2 }
 0x92e   : > { %v425_v20 = vld [vmem:[%s7478_s17 + $0x658] sm:$0xff]  ;;  %6349 = vmatpush.msra.mxu2 %v357_v34 }
 0x92f   : > { %v225_v29 = vld [vmem:[%s7478_s17 + $0x18] sm:$0xff]  ;;  %6368 = vmatpush.msra.mxu3 %v425_v20 }
 0x930   : > { %v293_v50 = vld [vmem:[%s7478_s17 + $0x238] sm:$0xff]  ;;  %6310 = vmatpush.msra.mxu0 %v225_v29 }
 0x931   : > { %v353_v60 = vld [vmem:[%s7478_s17 + $0x418] sm:$0xff]  ;;  %6329 = vmatpush.msra.mxu1 %v293_v50  ;;  %6311 = vmatmul.f32.vlgmr.msra.gmra.mxu0 %v7608_v44 }
 0x932   : > { %v421_v33 = vld [vmem:[%s7478_s17 + $0x638] sm:$0xff]  ;;  %6350 = vmatpush.msra.mxu2 %v353_v60 }
 0x933   : > { %v541_v55 = vld [vmem:[%s7478_s17 + $0x9f8] sm:$0xff]  ;;  %6369 = vmatpush.msra.mxu3 %v421_v33  ;;  %6351 = vmatmul.f32.vlgmr.msra.gmra.mxu2 %v7606_v43 }
 0x934   : > { %v669_v22 = vld [vmem:[%s7478_s17 + $0xdf8] sm:$0xff]  ;;  %6375 = vmatpush.msrb.mxu0 %v541_v55 }
 0x935   : > { %v289_v56 = vld [vmem:[%s7478_s17 + $0x218] sm:$0xff]  ;;  %6415 = vmatpush.msrb.mxu2 %v669_v22 }
 0x936   : > { %v417_v54 = vld [vmem:[%s7478_s17 + $0x618] sm:$0xff]  ;;  %6330 = vmatpush.msra.mxu1 %v289_v56 }
 0x937   : > { %v537_v32 = vld [vmem:[%s7478_s17 + $0x9d8] sm:$0xff]  ;;  %6370 = vmatpush.msra.mxu3 %v417_v54  ;;  %6331 = vmatmul.f32.vlgmr.msra.gmra.mxu1 %v7612_v46 }
 0x938   : > { %v605_v27 = vld [vmem:[%s7478_s17 + $0xbf8] sm:$0xff]  ;;  %6376 = vmatpush.msrb.mxu0 %v537_v32  ;;  %6371 = vmatmul.f32.vlgmr.msra.gmra.mxu3 %v7610_v45 }
 0x939   : > { %v665_v59 = vld [vmem:[%s7478_s17 + $0xdd8] sm:$0xff]  ;;  %6395 = vmatpush.msrb.mxu1 %v605_v27 }
 0x93a   : > { %v733_v34 = vld [vmem:[%s7478_s17 + $0xff8] sm:$0xff]  ;;  %6416 = vmatpush.msrb.mxu2 %v665_v59 }
 0x93b   : > { %v533_v20 = vld [vmem:[%s7478_s17 + $0x9b8] sm:$0xff]  ;;  %6435 = vmatpush.msrb.mxu3 %v733_v34 }
 0x93c   : > { %v601_v29 = vld [vmem:[%s7478_s17 + $0xbd8] sm:$0xff]  ;;  %6377 = vmatpush.msrb.mxu0 %v533_v20 }
 0x93d   : > { %v661_v50 = vld [vmem:[%s7478_s17 + $0xdb8] sm:$0xff]  ;;  %6396 = vmatpush.msrb.mxu1 %v601_v29 }
 0x93e   : > { %v729_v12 = vld [vmem:[%s7478_s17 + $0xfd8] sm:$0xff]  ;;  %6417 = vmatpush.msrb.mxu2 %v661_v50 }
 0x93f   : > { %v529_v60 = vld [vmem:[%s7478_s17 + $0x998] sm:$0xff]  ;;  %6436 = vmatpush.msrb.mxu3 %v729_v12 }
 0x940   : > { %v597_v33 = vld [vmem:[%s7478_s17 + $0xbb8] sm:$0xff]  ;;  %6378 = vmatpush.msrb.mxu0 %v529_v60 }
 0x941   : > { %v657_v2 = vld [vmem:[%s7478_s17 + $0xd98] sm:$0xff]  ;;  %6397 = vmatpush.msrb.mxu1 %v597_v33 }
 0x942   : > { %v725_v55 = vld [vmem:[%s7478_s17 + $0xfb8] sm:$0xff]  ;;  %6418 = vmatpush.msrb.mxu2 %v657_v2 }
 0x943   : > { %v525_v22 = vld [vmem:[%s7478_s17 + $0x978] sm:$0xff]  ;;  %6437 = vmatpush.msrb.mxu3 %v725_v55 }
 0x944   : > { %v593_v56 = vld [vmem:[%s7478_s17 + $0xb98] sm:$0xff]  ;;  %6379 = vmatpush.msrb.mxu0 %v525_v22 }
 0x945   : > { %v653_v54 = vld [vmem:[%s7478_s17 + $0xd78] sm:$0xff]  ;;  %6398 = vmatpush.msrb.mxu1 %v593_v56 }
 0x946   : > { %v721_v23 = vld [vmem:[%s7478_s17 + $0xf98] sm:$0xff]  ;;  %6419 = vmatpush.msrb.mxu2 %v653_v54 }
 0x947   : > { %v521_v32 = vld [vmem:[%s7478_s17 + $0x958] sm:$0xff]  ;;  %6438 = vmatpush.msrb.mxu3 %v721_v23 }
 0x948   : > { %v589_v27 = vld [vmem:[%s7478_s17 + $0xb78] sm:$0xff]  ;;  %6380 = vmatpush.msrb.mxu0 %v521_v32 }
 0x949   : > { %v649_v59 = vld [vmem:[%s7478_s17 + $0xd58] sm:$0xff]  ;;  %6399 = vmatpush.msrb.mxu1 %v589_v27 }
 0x94a   : > { %v717_v34 = vld [vmem:[%s7478_s17 + $0xf78] sm:$0xff]  ;;  %6420 = vmatpush.msrb.mxu2 %v649_v59 }
 0x94b   : > { %v517_v20 = vld [vmem:[%s7478_s17 + $0x938] sm:$0xff]  ;;  %6439 = vmatpush.msrb.mxu3 %v717_v34 }
 0x94c   : > { %v585_v29 = vld [vmem:[%s7478_s17 + $0xb58] sm:$0xff]  ;;  %6381 = vmatpush.msrb.mxu0 %v517_v20 }
 0x94d   : > { %v645_v50 = vld [vmem:[%s7478_s17 + $0xd38] sm:$0xff]  ;;  %6400 = vmatpush.msrb.mxu1 %v585_v29 }
 0x94e   : > { %v713_v12 = vld [vmem:[%s7478_s17 + $0xf58] sm:$0xff]  ;;  %6421 = vmatpush.msrb.mxu2 %v645_v50 }
 0x94f   : > { %v513_v60 = vld [vmem:[%s7478_s17 + $0x918] sm:$0xff]  ;;  %6440 = vmatpush.msrb.mxu3 %v713_v12 }
 0x950   : > { %v581_v33 = vld [vmem:[%s7478_s17 + $0xb38] sm:$0xff]  ;;  %6382 = vmatpush.msrb.mxu0 %v513_v60 }
 0x951   : > { %v641_v2 = vld [vmem:[%s7478_s17 + $0xd18] sm:$0xff]  ;;  %6401 = vmatpush.msrb.mxu1 %v581_v33 }
 0x952   : > { %v709_v55 = vld [vmem:[%s7478_s17 + $0xf38] sm:$0xff]  ;;  %6422 = vmatpush.msrb.mxu2 %v641_v2 }
 0x953   : > { %v509_v22 = vld [vmem:[%s7478_s17 + $0x8f8] sm:$0xff]  ;;  %6441 = vmatpush.msrb.mxu3 %v709_v55 }
 0x954   : > { %v577_v56 = vld [vmem:[%s7478_s17 + $0xb18] sm:$0xff]  ;;  %6383 = vmatpush.msrb.mxu0 %v509_v22 }
 0x955   : > { %v637_v54 = vld [vmem:[%s7478_s17 + $0xcf8] sm:$0xff]  ;;  %6402 = vmatpush.msrb.mxu1 %v577_v56 }
 0x956   : > { %v705_v23 = vld [vmem:[%s7478_s17 + $0xf18] sm:$0xff]  ;;  %6423 = vmatpush.msrb.mxu2 %v637_v54 }
 0x957   : > { %v505_v32 = vld [vmem:[%s7478_s17 + $0x8d8] sm:$0xff]  ;;  %6442 = vmatpush.msrb.mxu3 %v705_v23 }
 0x958   : > { %v573_v27 = vld [vmem:[%s7478_s17 + $0xaf8] sm:$0xff]  ;;  %6384 = vmatpush.msrb.mxu0 %v505_v32 }
 0x959   : > { %v633_v59 = vld [vmem:[%s7478_s17 + $0xcd8] sm:$0xff]  ;;  %6403 = vmatpush.msrb.mxu1 %v573_v27 }
 0x95a   : > { %v701_v34 = vld [vmem:[%s7478_s17 + $0xef8] sm:$0xff]  ;;  %6424 = vmatpush.msrb.mxu2 %v633_v59  ;;  %v6072_v59 = vpop.f32.mrf.mxu0 }
 0x95b   : > { %v501_v20 = vld [vmem:[%s7478_s17 + $0x8b8] sm:$0xff]  ;;  %6443 = vmatpush.msrb.mxu3 %v701_v34 }
 0x95c   : > { %v569_v29 = vld [vmem:[%s7478_s17 + $0xad8] sm:$0xff]  ;;  %6385 = vmatpush.msrb.mxu0 %v501_v20 }
 0x95d   : > { %v629_v50 = vld [vmem:[%s7478_s17 + $0xcb8] sm:$0xff]  ;;  %6404 = vmatpush.msrb.mxu1 %v569_v29  ;;  %v6073_v29 = vadd.f32 %v6072_v59, %v10296_v13 }
 0x95e   : > { %v697_v12 = vld [vmem:[%s7478_s17 + $0xed8] sm:$0xff]  ;;  %6425 = vmatpush.msrb.mxu2 %v629_v50 }
 0x95f   : > { %v497_v60 = vld [vmem:[%s7478_s17 + $0x898] sm:$0xff]  ;;  %6444 = vmatpush.msrb.mxu3 %v697_v12 }
 0x960   : > { %v565_v33 = vld [vmem:[%s7478_s17 + $0xab8] sm:$0xff]  ;;  %6386 = vmatpush.msrb.mxu0 %v497_v60 }
 0x961   : > { %v625_v2 = vld [vmem:[%s7478_s17 + $0xc98] sm:$0xff]  ;;  %6405 = vmatpush.msrb.mxu1 %v565_v33 }
 0x962   : > { %v693_v55 = vld [vmem:[%s7478_s17 + $0xeb8] sm:$0xff]  ;;  %6426 = vmatpush.msrb.mxu2 %v625_v2  ;;  %v6092_v2 = vpop.f32.mrf.mxu1 }
 0x963   : > { %v493_v22 = vld [vmem:[%s7478_s17 + $0x878] sm:$0xff]  ;;  %6445 = vmatpush.msrb.mxu3 %v693_v55 }
 0x964   : > { %v561_v56 = vld [vmem:[%s7478_s17 + $0xa98] sm:$0xff]  ;;  %6387 = vmatpush.msrb.mxu0 %v493_v22  ;;  %v6093_v22 = vadd.f32 %v6092_v2, %v6073_v29  ;;  %v6132_v29 = vpop.f32.mrf.mxu3 }
 0x965   : > { %v621_v54 = vld [vmem:[%s7478_s17 + $0xc78] sm:$0xff]  ;;  %6406 = vmatpush.msrb.mxu1 %v561_v56 }
 0x966   : > { %v689_v23 = vld [vmem:[%s7478_s17 + $0xe98] sm:$0xff]  ;;  %6427 = vmatpush.msrb.mxu2 %v621_v54 }
 0x967   : > { %v489_v32 = vld [vmem:[%s7478_s17 + $0x858] sm:$0xff]  ;;  %6446 = vmatpush.msrb.mxu3 %v689_v23  ;;  %v6112_v23 = vpop.f32.mrf.mxu2 }
 0x968   : > { %v557_v27 = vld [vmem:[%s7478_s17 + $0xa78] sm:$0xff]  ;;  %6388 = vmatpush.msrb.mxu0 %v489_v32 }
 0x969   : > { %v617_v34 = vld [vmem:[%s7478_s17 + $0xc58] sm:$0xff]  ;;  %6407 = vmatpush.msrb.mxu1 %v557_v27  ;;  %v6113_v27 = vadd.f32 %v6112_v23, %v6093_v22 }
 0x96a   : > { %v685_v20 = vld [vmem:[%s7478_s17 + $0xe78] sm:$0xff]  ;;  %6428 = vmatpush.msrb.mxu2 %v617_v34 }
 0x96b   : > { %v485_v50 = vld [vmem:[%s7478_s17 + $0x838] sm:$0xff]  ;;  %6447 = vmatpush.msrb.mxu3 %v685_v20 }
 0x96c   : > { %v553_v12 = vld [vmem:[%s7478_s17 + $0xa58] sm:$0xff]  ;;  %6389 = vmatpush.msrb.mxu0 %v485_v50 }
 0x96d   : > { %v613_v60 = vld [vmem:[%s7478_s17 + $0xc38] sm:$0xff]  ;;  %6408 = vmatpush.msrb.mxu1 %v553_v12  ;;  %v10366_v12 = vadd.f32 %v6132_v29, %v6113_v27 }
 0x96e   : > { %v681_v33 = vld [vmem:[%s7478_s17 + $0xe58] sm:$0xff]  ;;  %6429 = vmatpush.msrb.mxu2 %v613_v60 }
 0x96f   : > { %v481_v55 = vld [vmem:[%s7478_s17 + $0x818] sm:$0xff]  ;;  %6448 = vmatpush.msrb.mxu3 %v681_v33 }
 0x970   : > { %v549_v13 = vld [vmem:[%s7478_s17 + $0xa38] sm:$0xff]  ;;  %6390 = vmatpush.msrb.mxu0 %v481_v55 }
 0x971   : > { %v609_v56 = vld [vmem:[%s7478_s17 + $0xc18] sm:$0xff]  ;;  %6409 = vmatpush.msrb.mxu1 %v549_v13  ;;  %6391 = vmatmul.f32.vlgmr.msrb.gmra.mxu0 %v7636_v4 }
 0x972   : > { %v677_v54 = vld [vmem:[%s7478_s17 + $0xe38] sm:$0xff]  ;;  %6430 = vmatpush.msrb.mxu2 %v609_v56 }
 0x973   : > { %v797_v32 = vld [vmem:[%s7478_s17 + $0x11f8] sm:$0xff]  ;;  %6449 = vmatpush.msrb.mxu3 %v677_v54  ;;  %6431 = vmatmul.f32.vlgmr.msrb.gmra.mxu2 %v7634_v3 }
 0x974   : > { %v925_v59 = vld [vmem:[%s7478_s17 + $0x15f8] sm:$0xff]  ;;  %6455 = vmatpush.msra.mxu0 %v797_v32 }
 0x975   : > { %v545_v34 = vld [vmem:[%s7478_s17 + $0xa18] sm:$0xff]  ;;  %6495 = vmatpush.msra.mxu2 %v925_v59 }
 0x976   : > { %v673_v20 = vld [vmem:[%s7478_s17 + $0xe18] sm:$0xff]  ;;  %6410 = vmatpush.msrb.mxu1 %v545_v34 }
 0x977   : > { %v793_v43 = vld [vmem:[%s7478_s17 + $0x11d8] sm:$0xff]  ;;  %6450 = vmatpush.msrb.mxu3 %v673_v20  ;;  %6411 = vmatmul.f32.vlgmr.msrb.gmra.mxu1 %v7640_v6 }
 0x978   : > { %v861_v50 = vld [vmem:[%s7478_s17 + $0x13f8] sm:$0xff]  ;;  %6456 = vmatpush.msra.mxu0 %v793_v43  ;;  %6451 = vmatmul.f32.vlgmr.msrb.gmra.mxu3 %v7638_v5 }
 0x979   : > { %v921_v60 = vld [vmem:[%s7478_s17 + $0x15d8] sm:$0xff]  ;;  %6475 = vmatpush.msra.mxu1 %v861_v50 }
 0x97a   : > { %v989_v33 = vld [vmem:[%s7478_s17 + $0x17f8] sm:$0xff]  ;;  %6496 = vmatpush.msra.mxu2 %v921_v60 }
 0x97b   : > { %v789_v44 = vld [vmem:[%s7478_s17 + $0x11b8] sm:$0xff]  ;;  %6515 = vmatpush.msra.mxu3 %v989_v33 }
 0x97c   : > { %v857_v2 = vld [vmem:[%s7478_s17 + $0x13d8] sm:$0xff]  ;;  %6457 = vmatpush.msra.mxu0 %v789_v44 }
 0x97d   : > { %v917_v45 = vld [vmem:[%s7478_s17 + $0x15b8] sm:$0xff]  ;;  %6476 = vmatpush.msra.mxu1 %v857_v2 }
 0x97e   : > { %v985_v55 = vld [vmem:[%s7478_s17 + $0x17d8] sm:$0xff]  ;;  %6497 = vmatpush.msra.mxu2 %v917_v45 }
 0x97f   : > { %v785_v22 = vld [vmem:[%s7478_s17 + $0x1198] sm:$0xff]  ;;  %6516 = vmatpush.msra.mxu3 %v985_v55 }
 0x980   : > { %v853_v13 = vld [vmem:[%s7478_s17 + $0x13b8] sm:$0xff]  ;;  %6458 = vmatpush.msra.mxu0 %v785_v22 }
 0x981   : > { %v913_v56 = vld [vmem:[%s7478_s17 + $0x1598] sm:$0xff]  ;;  %6477 = vmatpush.msra.mxu1 %v853_v13 }
 0x982   : > { %v981_v46 = vld [vmem:[%s7478_s17 + $0x17b8] sm:$0xff]  ;;  %6498 = vmatpush.msra.mxu2 %v913_v56 }
 0x983   : > { %v781_v54 = vld [vmem:[%s7478_s17 + $0x1178] sm:$0xff]  ;;  %6517 = vmatpush.msra.mxu3 %v981_v46 }
 0x984   : > { %v849_v23 = vld [vmem:[%s7478_s17 + $0x1398] sm:$0xff]  ;;  %6459 = vmatpush.msra.mxu0 %v781_v54 }
 0x985   : > { %v909_v32 = vld [vmem:[%s7478_s17 + $0x1578] sm:$0xff]  ;;  %6478 = vmatpush.msra.mxu1 %v849_v23 }
 0x986   : > { %v977_v27 = vld [vmem:[%s7478_s17 + $0x1798] sm:$0xff]  ;;  %6499 = vmatpush.msra.mxu2 %v909_v32 }
 0x987   : > { %v777_v3 = vld [vmem:[%s7478_s17 + $0x1158] sm:$0xff]  ;;  %6518 = vmatpush.msra.mxu3 %v977_v27 }
 0x988   : > { %v845_v59 = vld [vmem:[%s7478_s17 + $0x1378] sm:$0xff]  ;;  %6460 = vmatpush.msra.mxu0 %v777_v3 }
 0x989   : > { %v905_v34 = vld [vmem:[%s7478_s17 + $0x1558] sm:$0xff]  ;;  %6479 = vmatpush.msra.mxu1 %v845_v59 }
 0x98a   : > { %v973_v20 = vld [vmem:[%s7478_s17 + $0x1778] sm:$0xff]  ;;  %6500 = vmatpush.msra.mxu2 %v905_v34 }
 0x98b   : > { %v773_v4 = vld [vmem:[%s7478_s17 + $0x1138] sm:$0xff]  ;;  %6519 = vmatpush.msra.mxu3 %v973_v20 }
 0x98c   : > { %v841_v29 = vld [vmem:[%s7478_s17 + $0x1358] sm:$0xff]  ;;  %6461 = vmatpush.msra.mxu0 %v773_v4 }
 0x98d   : > { %v901_v5 = vld [vmem:[%s7478_s17 + $0x1538] sm:$0xff]  ;;  %6480 = vmatpush.msra.mxu1 %v841_v29 }
 0x98e   : > { %v969_v43 = vld [vmem:[%s7478_s17 + $0x1758] sm:$0xff]  ;;  %6501 = vmatpush.msra.mxu2 %v901_v5  ;;  %v6152_v5 = vpop.f32.mrf.mxu0 }
 0x98f   : > { %v769_v50 = vld [vmem:[%s7478_s17 + $0x1118] sm:$0xff]  ;;  %6520 = vmatpush.msra.mxu3 %v969_v43 }
 0x990   : > { %v837_v60 = vld [vmem:[%s7478_s17 + $0x1338] sm:$0xff]  ;;  %6462 = vmatpush.msra.mxu0 %v769_v50 }
 0x991   : > { %v897_v33 = vld [vmem:[%s7478_s17 + $0x1518] sm:$0xff]  ;;  %6481 = vmatpush.msra.mxu1 %v837_v60  ;;  %v6153_v60 = vadd.f32 %v6152_v5, %v10366_v12 }
 0x992   : > { %v965_v6 = vld [vmem:[%s7478_s17 + $0x1738] sm:$0xff]  ;;  %6502 = vmatpush.msra.mxu2 %v897_v33 }
 0x993   : > { %v765_v44 = vld [vmem:[%s7478_s17 + $0x10f8] sm:$0xff]  ;;  %6521 = vmatpush.msra.mxu3 %v965_v6 }
 0x994   : > { %v833_v2 = vld [vmem:[%s7478_s17 + $0x1318] sm:$0xff]  ;;  %6463 = vmatpush.msra.mxu0 %v765_v44 }
 0x995   : > { %v893_v45 = vld [vmem:[%s7478_s17 + $0x14f8] sm:$0xff]  ;;  %6482 = vmatpush.msra.mxu1 %v833_v2 }
 0x996   : > { %v961_v55 = vld [vmem:[%s7478_s17 + $0x1718] sm:$0xff]  ;;  %6503 = vmatpush.msra.mxu2 %v893_v45  ;;  %v6172_v45 = vpop.f32.mrf.mxu1 }
 0x997   : > { %v761_v22 = vld [vmem:[%s7478_s17 + $0x10d8] sm:$0xff]  ;;  %6522 = vmatpush.msra.mxu3 %v961_v55  ;;  %v6173_v12 = vadd.f32 %v6172_v45, %v6153_v60 }
 0x998   : > { %v829_v13 = vld [vmem:[%s7478_s17 + $0x12f8] sm:$0xff]  ;;  %6464 = vmatpush.msra.mxu0 %v761_v22 }
 0x999   : > { %v889_v56 = vld [vmem:[%s7478_s17 + $0x14d8] sm:$0xff]  ;;  %6483 = vmatpush.msra.mxu1 %v829_v13 }
 0x99a   : > { %v957_v46 = vld [vmem:[%s7478_s17 + $0x16f8] sm:$0xff]  ;;  %6504 = vmatpush.msra.mxu2 %v889_v56 }
 0x99b   : > { %v757_v54 = vld [vmem:[%s7478_s17 + $0x10b8] sm:$0xff]  ;;  %6523 = vmatpush.msra.mxu3 %v957_v46 }
 0x99c   : > { %v825_v23 = vld [vmem:[%s7478_s17 + $0x12d8] sm:$0xff]  ;;  %6465 = vmatpush.msra.mxu0 %v757_v54 }
 0x99d   : > { %v885_v32 = vld [vmem:[%s7478_s17 + $0x14b8] sm:$0xff]  ;;  %6484 = vmatpush.msra.mxu1 %v825_v23  ;;  %v6192_v23 = vpop.f32.mrf.mxu2 }
 0x99e   : > { %v953_v27 = vld [vmem:[%s7478_s17 + $0x16d8] sm:$0xff]  ;;  %6505 = vmatpush.msra.mxu2 %v885_v32 }
 0x99f   : > { %v753_v3 = vld [vmem:[%s7478_s17 + $0x1098] sm:$0xff]  ;;  %6524 = vmatpush.msra.mxu3 %v953_v27 }
 0x9a0   : > { %v821_v59 = vld [vmem:[%s7478_s17 + $0x12b8] sm:$0xff]  ;;  %6466 = vmatpush.msra.mxu0 %v753_v3  ;;  %v6193_v3 = vadd.f32 %v6192_v23, %v6173_v12 }
 0x9a1   : > { %v881_v34 = vld [vmem:[%s7478_s17 + $0x1498] sm:$0xff]  ;;  %6485 = vmatpush.msra.mxu1 %v821_v59 }
 0x9a2   : > { %v949_v20 = vld [vmem:[%s7478_s17 + $0x16b8] sm:$0xff]  ;;  %6506 = vmatpush.msra.mxu2 %v881_v34 }
 0x9a3   : > { %v749_v4 = vld [vmem:[%s7478_s17 + $0x1078] sm:$0xff]  ;;  %6525 = vmatpush.msra.mxu3 %v949_v20  ;;  %v6212_v20 = vpop.f32.mrf.mxu3 }
 0x9a4   : > { %v817_v29 = vld [vmem:[%s7478_s17 + $0x1298] sm:$0xff]  ;;  %6467 = vmatpush.msra.mxu0 %v749_v4  ;;  %v10436_v5 = vadd.f32 %v6212_v20, %v6193_v3 }
 0x9a5   : > { %v877_v43 = vld [vmem:[%s7478_s17 + $0x1478] sm:$0xff]  ;;  %6486 = vmatpush.msra.mxu1 %v817_v29 }
 0x9a6   : > { %v945_v50 = vld [vmem:[%s7478_s17 + $0x1698] sm:$0xff]  ;;  %6507 = vmatpush.msra.mxu2 %v877_v43 }
 0x9a7   : > { %v745_v33 = vld [vmem:[%s7478_s17 + $0x1058] sm:$0xff]  ;;  %6526 = vmatpush.msra.mxu3 %v945_v50 }
 0x9a8   : > { %v813_v6 = vld [vmem:[%s7478_s17 + $0x1278] sm:$0xff]  ;;  %6468 = vmatpush.msra.mxu0 %v745_v33 }
 0x9a9   : > { %v873_v44 = vld [vmem:[%s7478_s17 + $0x1458] sm:$0xff]  ;;  %6487 = vmatpush.msra.mxu1 %v813_v6 }
 0x9aa   : > { %v941_v2 = vld [vmem:[%s7478_s17 + $0x1678] sm:$0xff]  ;;  %6508 = vmatpush.msra.mxu2 %v873_v44 }
 0x9ab   : > { %v741_v55 = vld [vmem:[%s7478_s17 + $0x1038] sm:$0xff]  ;;  %6527 = vmatpush.msra.mxu3 %v941_v2 }
 0x9ac   : > { %v809_v22 = vld [vmem:[%s7478_s17 + $0x1258] sm:$0xff]  ;;  %6469 = vmatpush.msra.mxu0 %v741_v55 }
 0x9ad   : > { %v869_v13 = vld [vmem:[%s7478_s17 + $0x1438] sm:$0xff]  ;;  %6488 = vmatpush.msra.mxu1 %v809_v22 }
 0x9ae   : > { %v937_v56 = vld [vmem:[%s7478_s17 + $0x1658] sm:$0xff]  ;;  %6509 = vmatpush.msra.mxu2 %v869_v13 }
 0x9af   : > { %v737_v46 = vld [vmem:[%s7478_s17 + $0x1018] sm:$0xff]  ;;  %6528 = vmatpush.msra.mxu3 %v937_v56 }
 0x9b0   : > { %v805_v54 = vld [vmem:[%s7478_s17 + $0x1238] sm:$0xff]  ;;  %6470 = vmatpush.msra.mxu0 %v737_v46 }
 0x9b1   : > { %v865_v32 = vld [vmem:[%s7478_s17 + $0x1418] sm:$0xff]  ;;  %6489 = vmatpush.msra.mxu1 %v805_v54  ;;  %6471 = vmatmul.f32.vlgmr.msra.gmra.mxu0 %v7665_v26 }
 0x9b2   : > { %v933_v27 = vld [vmem:[%s7478_s17 + $0x1638] sm:$0xff]  ;;  %6510 = vmatpush.msra.mxu2 %v865_v32 }
 0x9b3   : > { %v1053_v59 = vld [vmem:[%s7478_s17 + $0x19f8] sm:$0xff]  ;;  %6529 = vmatpush.msra.mxu3 %v933_v27  ;;  %6511 = vmatmul.f32.vlgmr.msra.gmra.mxu2 %v7668_v28 }
 0x9b4   : > { %v1181_v34 = vld [vmem:[%s7478_s17 + $0x1df8] sm:$0xff]  ;;  %6535 = vmatpush.msrb.mxu0 %v1053_v59 }
 0x9b5   : > { %v801_v4 = vld [vmem:[%s7478_s17 + $0x1218] sm:$0xff]  ;;  %6575 = vmatpush.msrb.mxu2 %v1181_v34 }
 0x9b6   : > { %v929_v29 = vld [vmem:[%s7478_s17 + $0x1618] sm:$0xff]  ;;  %6490 = vmatpush.msra.mxu1 %v801_v4 }
 0x9b7   : > { %v1049_v43 = vld [vmem:[%s7478_s17 + $0x19d8] sm:$0xff]  ;;  %6530 = vmatpush.msra.mxu3 %v929_v29  ;;  %6491 = vmatmul.f32.vlgmr.msra.gmra.mxu1 %v7672_v30 }
 0x9b8   : > { %v1117_v50 = vld [vmem:[%s7478_s17 + $0x1bf8] sm:$0xff]  ;;  %6531 = vmatmul.f32.vlgmr.msra.gmra.mxu3 %v7674_v31  ;;  %6536 = vmatpush.msrb.mxu0 %v1049_v43 }
 0x9b9   : > { %v1177_v60 = vld [vmem:[%s7478_s17 + $0x1dd8] sm:$0xff]  ;;  %6555 = vmatpush.msrb.mxu1 %v1117_v50 }
 0x9ba   : > { %v1245_v33 = vld [vmem:[%s7478_s17 + $0x1ff8] sm:$0xff]  ;;  %6576 = vmatpush.msrb.mxu2 %v1177_v60 }
 0x9bb   : > { %v1045_v26 = vld [vmem:[%s7478_s17 + $0x19b8] sm:$0xff]  ;;  %6595 = vmatpush.msrb.mxu3 %v1245_v33 }
 0x9bc   : > { %v1113_v28 = vld [vmem:[%s7478_s17 + $0x1bd8] sm:$0xff]  ;;  %6537 = vmatpush.msrb.mxu0 %v1045_v26 }
 0x9bd   : > { %v1173_v6 = vld [vmem:[%s7478_s17 + $0x1db8] sm:$0xff]  ;;  %6556 = vmatpush.msrb.mxu1 %v1113_v28 }
 0x9be   : > { %v1241_v44 = vld [vmem:[%s7478_s17 + $0x1fd8] sm:$0xff]  ;;  %6577 = vmatpush.msrb.mxu2 %v1173_v6 }
 0x9bf   : > { %v1041_v2 = vld [vmem:[%s7478_s17 + $0x1998] sm:$0xff]  ;;  %6596 = vmatpush.msrb.mxu3 %v1241_v44 }
 0x9c0   : > { %v1109_v45 = vld [vmem:[%s7478_s17 + $0x1bb8] sm:$0xff]  ;;  %6538 = vmatpush.msrb.mxu0 %v1041_v2 }
 0x9c1   : > { %v1169_v30 = vld [vmem:[%s7478_s17 + $0x1d98] sm:$0xff]  ;;  %6557 = vmatpush.msrb.mxu1 %v1109_v45 }
 0x9c2   : > { %v1237_v31 = vld [vmem:[%s7478_s17 + $0x1fb8] sm:$0xff]  ;;  %6578 = vmatpush.msrb.mxu2 %v1169_v30 }
 0x9c3   : > { %v1037_v55 = vld [vmem:[%s7478_s17 + $0x1978] sm:$0xff]  ;;  %6597 = vmatpush.msrb.mxu3 %v1237_v31 }
 0x9c4   : > { %v1105_v22 = vld [vmem:[%s7478_s17 + $0x1b98] sm:$0xff]  ;;  %6539 = vmatpush.msrb.mxu0 %v1037_v55 }
 0x9c5   : > { %v1165_v12 = vld [vmem:[%s7478_s17 + $0x1d78] sm:$0xff]  ;;  %6558 = vmatpush.msrb.mxu1 %v1105_v22 }
 0x9c6   : > { %v1233_v13 = vld [vmem:[%s7478_s17 + $0x1f98] sm:$0xff]  ;;  %6579 = vmatpush.msrb.mxu2 %v1165_v12 }
 0x9c7   : > { %v1033_v56 = vld [vmem:[%s7478_s17 + $0x1958] sm:$0xff]  ;;  %6598 = vmatpush.msrb.mxu3 %v1233_v13 }
 0x9c8   : > { %v1101_v46 = vld [vmem:[%s7478_s17 + $0x1b78] sm:$0xff]  ;;  %6540 = vmatpush.msrb.mxu0 %v1033_v56 }
 0x9c9   : > { %v1161_v54 = vld [vmem:[%s7478_s17 + $0x1d58] sm:$0xff]  ;;  %6559 = vmatpush.msrb.mxu1 %v1101_v46 }
 0x9ca   : > { %v1229_v23 = vld [vmem:[%s7478_s17 + $0x1f78] sm:$0xff]  ;;  %6580 = vmatpush.msrb.mxu2 %v1161_v54  ;;  %v6232_v54 = vpop.f32.mrf.mxu0 }
 0x9cb   : > { %v1029_v32 = vld [vmem:[%s7478_s17 + $0x1938] sm:$0xff]  ;;  %6599 = vmatpush.msrb.mxu3 %v1229_v23 }
 0x9cc   : > { %v1097_v27 = vld [vmem:[%s7478_s17 + $0x1b58] sm:$0xff]  ;;  %6541 = vmatpush.msrb.mxu0 %v1029_v32 }
 0x9cd   : > { %v1157_v3 = vld [vmem:[%s7478_s17 + $0x1d38] sm:$0xff]  ;;  %6560 = vmatpush.msrb.mxu1 %v1097_v27  ;;  %v6233_v27 = vadd.f32 %v6232_v54, %v10436_v5 }
 0x9ce   : > { %v1225_v59 = vld [vmem:[%s7478_s17 + $0x1f58] sm:$0xff]  ;;  %6581 = vmatpush.msrb.mxu2 %v1157_v3 }
 0x9cf   : > { %v1025_v34 = vld [vmem:[%s7478_s17 + $0x1918] sm:$0xff]  ;;  %6600 = vmatpush.msrb.mxu3 %v1225_v59 }
 0x9d0   : > { %v1093_v20 = vld [vmem:[%s7478_s17 + $0x1b38] sm:$0xff]  ;;  %6542 = vmatpush.msrb.mxu0 %v1025_v34 }
 0x9d1   : > { %v1153_v4 = vld [vmem:[%s7478_s17 + $0x1d18] sm:$0xff]  ;;  %6561 = vmatpush.msrb.mxu1 %v1093_v20 }
 0x9d2   : > { %v1221_v29 = vld [vmem:[%s7478_s17 + $0x1f38] sm:$0xff]  ;;  %6582 = vmatpush.msrb.mxu2 %v1153_v4  ;;  %v6252_v4 = vpop.f32.mrf.mxu1 }
 0x9d3   : > { %v1021_v43 = vld [vmem:[%s7478_s17 + $0x18f8] sm:$0xff]  ;;  %6601 = vmatpush.msrb.mxu3 %v1221_v29 }
 0x9d4   : > { %v1089_v50 = vld [vmem:[%s7478_s17 + $0x1b18] sm:$0xff]  ;;  %6543 = vmatpush.msrb.mxu0 %v1021_v43 }
 0x9d5   : > { %v1149_v60 = vld [vmem:[%s7478_s17 + $0x1cf8] sm:$0xff]  ;;  %6562 = vmatpush.msrb.mxu1 %v1089_v50 }
 0x9d6   : > { %v1217_v33 = vld [vmem:[%s7478_s17 + $0x1f18] sm:$0xff]  ;;  %6583 = vmatpush.msrb.mxu2 %v1149_v60  ;;  %v6253_v60 = vadd.f32 %v6252_v4, %v6233_v27 }
 0x9d7   : > { %v1017_v26 = vld [vmem:[%s7478_s17 + $0x18d8] sm:$0xff]  ;;  %6602 = vmatpush.msrb.mxu3 %v1217_v33 }
 0x9d8   : > { %v1085_v28 = vld [vmem:[%s7478_s17 + $0x1af8] sm:$0xff]  ;;  %6544 = vmatpush.msrb.mxu0 %v1017_v26 }
 0x9d9   : > { %v1145_v6 = vld [vmem:[%s7478_s17 + $0x1cd8] sm:$0xff]  ;;  %6563 = vmatpush.msrb.mxu1 %v1085_v28  ;;  %v6272_v28 = vpop.f32.mrf.mxu2 }
 0x9da   : > { %v1213_v44 = vld [vmem:[%s7478_s17 + $0x1ef8] sm:$0xff]  ;;  %6584 = vmatpush.msrb.mxu2 %v1145_v6 }
 0x9db   : > { %v1013_v2 = vld [vmem:[%s7478_s17 + $0x18b8] sm:$0xff]  ;;  %6603 = vmatpush.msrb.mxu3 %v1213_v44 }
 0x9dc   : > { %v1081_v45 = vld [vmem:[%s7478_s17 + $0x1ad8] sm:$0xff]  ;;  %6545 = vmatpush.msrb.mxu0 %v1013_v2  ;;  %v6273_v2 = vadd.f32 %v6272_v28, %v6253_v60 }
 0x9dd   : > { %v1141_v30 = vld [vmem:[%s7478_s17 + $0x1cb8] sm:$0xff]  ;;  %6564 = vmatpush.msrb.mxu1 %v1081_v45 }
 0x9de   : > { %v1209_v31 = vld [vmem:[%s7478_s17 + $0x1ed8] sm:$0xff]  ;;  %6585 = vmatpush.msrb.mxu2 %v1141_v30 }
 0x9df   : > { %v1009_v55 = vld [vmem:[%s7478_s17 + $0x1898] sm:$0xff]  ;;  %6604 = vmatpush.msrb.mxu3 %v1209_v31  ;;  %v6292_v31 = vpop.f32.mrf.mxu3 }
 0x9e0   : > { %v1077_v22 = vld [vmem:[%s7478_s17 + $0x1ab8] sm:$0xff]  ;;  %6546 = vmatpush.msrb.mxu0 %v1009_v55 }
 0x9e1   : > { %v1137_v12 = vld [vmem:[%s7478_s17 + $0x1c98] sm:$0xff]  ;;  %6565 = vmatpush.msrb.mxu1 %v1077_v22 }
 0x9e2   : > { %v1205_v13 = vld [vmem:[%s7478_s17 + $0x1eb8] sm:$0xff]  ;;  %6586 = vmatpush.msrb.mxu2 %v1137_v12  ;;  %v10507_v12 = vadd.f32 %v6292_v31, %v6273_v2 }
 0x9e3   : > { %v1005_v56 = vld [vmem:[%s7478_s17 + $0x1878] sm:$0xff]  ;;  %6605 = vmatpush.msrb.mxu3 %v1205_v13 }
 0x9e4   : > { %v1073_v46 = vld [vmem:[%s7478_s17 + $0x1a98] sm:$0xff]  ;;  %6547 = vmatpush.msrb.mxu0 %v1005_v56 }
 0x9e5   : > { %v1133_v23 = vld [vmem:[%s7478_s17 + $0x1c78] sm:$0xff]  ;;  %6566 = vmatpush.msrb.mxu1 %v1073_v46 }
 0x9e6   : > { %v1201_v32 = vld [vmem:[%s7478_s17 + $0x1e98] sm:$0xff]  ;;  %6587 = vmatpush.msrb.mxu2 %v1133_v23 }
 0x9e7   : > { %v1001_v3 = vld [vmem:[%s7478_s17 + $0x1858] sm:$0xff]  ;;  %6606 = vmatpush.msrb.mxu3 %v1201_v32 }
 0x9e8   : > { %v1069_v59 = vld [vmem:[%s7478_s17 + $0x1a78] sm:$0xff]  ;;  %6548 = vmatpush.msrb.mxu0 %v1001_v3 }
 0x9e9   : > { %v1129_v34 = vld [vmem:[%s7478_s17 + $0x1c58] sm:$0xff]  ;;  %6567 = vmatpush.msrb.mxu1 %v1069_v59 }
 0x9ea   : > { %v1197_v20 = vld [vmem:[%s7478_s17 + $0x1e78] sm:$0xff]  ;;  %6588 = vmatpush.msrb.mxu2 %v1129_v34 }
 0x9eb   : > { %v997_v29 = vld [vmem:[%s7478_s17 + $0x1838] sm:$0xff]  ;;  %6607 = vmatpush.msrb.mxu3 %v1197_v20 }
 0x9ec   : > { %v1065_v43 = vld [vmem:[%s7478_s17 + $0x1a58] sm:$0xff]  ;;  %6549 = vmatpush.msrb.mxu0 %v997_v29 }
 0x9ed   : > { %v1125_v5 = vld [vmem:[%s7478_s17 + $0x1c38] sm:$0xff]  ;;  %6568 = vmatpush.msrb.mxu1 %v1065_v43 }
 0x9ee   : > { %v1193_v50 = vld [vmem:[%s7478_s17 + $0x1e58] sm:$0xff]  ;;  %6589 = vmatpush.msrb.mxu2 %v1125_v5 }
 0x9ef   : > { %v993_v33 = vld [vmem:[%s7478_s17 + $0x1818] sm:$0xff]  ;;  %6608 = vmatpush.msrb.mxu3 %v1193_v50 }
 0x9f0   : > { %v1061_v26 = vld [vmem:[%s7478_s17 + $0x1a38] sm:$0xff]  ;;  %6550 = vmatpush.msrb.mxu0 %v993_v33 }
 0x9f1   : > { %v1121_v6 = vld [vmem:[%s7478_s17 + $0x1c18] sm:$0xff]  ;;  %6569 = vmatpush.msrb.mxu1 %v1061_v26  ;;  %6551 = vmatmul.f32.vlgmr.msrb.gmra.mxu0 %v7743_v40 }
 0x9f2   : > { %v1189_v44 = vld [vmem:[%s7478_s17 + $0x1e38] sm:$0xff]  ;;  %6590 = vmatpush.msrb.mxu2 %v1121_v6 }
 0x9f3   : > { %v1309_v45 = vld [vmem:[%s7478_s17 + $0x21f8] sm:$0xff]  ;;  %6609 = vmatpush.msrb.mxu3 %v1189_v44  ;;  %6591 = vmatmul.f32.vlgmr.msrb.gmra.mxu2 %v7745_v41 }
 0x9f4   : > { %v1437_v30 = vld [vmem:[%s7478_s17 + $0x25f8] sm:$0xff]  ;;  %6615 = vmatpush.msra.mxu0 %v1309_v45 }
 0x9f5   : > { %v1057_v55 = vld [vmem:[%s7478_s17 + $0x1a18] sm:$0xff]  ;;  %6655 = vmatpush.msra.mxu2 %v1437_v30 }
 0x9f6   : > { %v1185_v22 = vld [vmem:[%s7478_s17 + $0x1e18] sm:$0xff]  ;;  %6570 = vmatpush.msrb.mxu1 %v1057_v55 }
 0x9f7   : > { %v1305_v13 = vld [vmem:[%s7478_s17 + $0x21d8] sm:$0xff]  ;;  %6610 = vmatpush.msrb.mxu3 %v1185_v22  ;;  %6571 = vmatmul.f32.vlgmr.msrb.gmra.mxu1 %v7747_v42 }
 0x9f8   : > { %v1373_v56 = vld [vmem:[%s7478_s17 + $0x23f8] sm:$0xff]  ;;  %6611 = vmatmul.f32.vlgmr.msrb.gmra.mxu3 %v7751_v49  ;;  %6616 = vmatpush.msra.mxu0 %v1305_v13 }
 0x9f9   : > { %v1433_v46 = vld [vmem:[%s7478_s17 + $0x25d8] sm:$0xff]  ;;  %6635 = vmatpush.msra.mxu1 %v1373_v56 }
 0x9fa   : > { %v1501_v54 = vld [vmem:[%s7478_s17 + $0x27f8] sm:$0xff]  ;;  %6656 = vmatpush.msra.mxu2 %v1433_v46 }
 0x9fb   : > { %v1301_v40 = vld [vmem:[%s7478_s17 + $0x21b8] sm:$0xff]  ;;  %6675 = vmatpush.msra.mxu3 %v1501_v54 }
 0x9fc   : > { %v1369_v41 = vld [vmem:[%s7478_s17 + $0x23d8] sm:$0xff]  ;;  %6617 = vmatpush.msra.mxu0 %v1301_v40 }
 0x9fd   : > { %v1429_v23 = vld [vmem:[%s7478_s17 + $0x25b8] sm:$0xff]  ;;  %6636 = vmatpush.msra.mxu1 %v1369_v41 }
 0x9fe   : > { %v1497_v32 = vld [vmem:[%s7478_s17 + $0x27d8] sm:$0xff]  ;;  %6657 = vmatpush.msra.mxu2 %v1429_v23 }
 0x9ff   : > { %v1297_v27 = vld [vmem:[%s7478_s17 + $0x2198] sm:$0xff]  ;;  %6676 = vmatpush.msra.mxu3 %v1497_v32 }
 0xa00   : > { %v1365_v3 = vld [vmem:[%s7478_s17 + $0x23b8] sm:$0xff]  ;;  %6618 = vmatpush.msra.mxu0 %v1297_v27 }
 0xa01   : > { %v1425_v42 = vld [vmem:[%s7478_s17 + $0x2598] sm:$0xff]  ;;  %6637 = vmatpush.msra.mxu1 %v1365_v3 }
 0xa02   : > { %v1493_v49 = vld [vmem:[%s7478_s17 + $0x27b8] sm:$0xff]  ;;  %6658 = vmatpush.msra.mxu2 %v1425_v42 }
 0xa03   : > { %v1293_v59 = vld [vmem:[%s7478_s17 + $0x2178] sm:$0xff]  ;;  %6677 = vmatpush.msra.mxu3 %v1493_v49 }
 0xa04   : > { %v1361_v34 = vld [vmem:[%s7478_s17 + $0x2398] sm:$0xff]  ;;  %6619 = vmatpush.msra.mxu0 %v1293_v59 }
 0xa05   : > { %v1421_v20 = vld [vmem:[%s7478_s17 + $0x2578] sm:$0xff]  ;;  %6638 = vmatpush.msra.mxu1 %v1361_v34 }
 0xa06   : > { %v1489_v4 = vld [vmem:[%s7478_s17 + $0x2798] sm:$0xff]  ;;  %6659 = vmatpush.msra.mxu2 %v1421_v20 }
 0xa07   : > { %v1289_v29 = vld [vmem:[%s7478_s17 + $0x2158] sm:$0xff]  ;;  %6678 = vmatpush.msra.mxu3 %v1489_v4 }
 0xa08   : > { %v1357_v43 = vld [vmem:[%s7478_s17 + $0x2378] sm:$0xff]  ;;  %6620 = vmatpush.msra.mxu0 %v1289_v29 }
 0xa09   : > { %v1417_v5 = vld [vmem:[%s7478_s17 + $0x2558] sm:$0xff]  ;;  %6639 = vmatpush.msra.mxu1 %v1357_v43 }
 0xa0a   : > { %v1485_v50 = vld [vmem:[%s7478_s17 + $0x2778] sm:$0xff]  ;;  %6660 = vmatpush.msra.mxu2 %v1417_v5 }
 0xa0b   : > { %v1285_v60 = vld [vmem:[%s7478_s17 + $0x2138] sm:$0xff]  ;;  %6679 = vmatpush.msra.mxu3 %v1485_v50 }
 0xa0c   : > { %v1353_v33 = vld [vmem:[%s7478_s17 + $0x2358] sm:$0xff]  ;;  %6621 = vmatpush.msra.mxu0 %v1285_v60 }
 0xa0d   : > { %v1413_v26 = vld [vmem:[%s7478_s17 + $0x2538] sm:$0xff]  ;;  %6640 = vmatpush.msra.mxu1 %v1353_v33 }
 0xa0e   : > { %v1481_v28 = vld [vmem:[%s7478_s17 + $0x2758] sm:$0xff]  ;;  %6661 = vmatpush.msra.mxu2 %v1413_v26 }
 0xa0f   : > { %v1281_v6 = vld [vmem:[%s7478_s17 + $0x2118] sm:$0xff]  ;;  %6680 = vmatpush.msra.mxu3 %v1481_v28 }
 0xa10   : > { %v1349_v44 = vld [vmem:[%s7478_s17 + $0x2338] sm:$0xff]  ;;  %6622 = vmatpush.msra.mxu0 %v1281_v6 }
 0xa11   : > { %v1409_v2 = vld [vmem:[%s7478_s17 + $0x2518] sm:$0xff]  ;;  %6641 = vmatpush.msra.mxu1 %v1349_v44 }
 0xa12   : > { %v1477_v45 = vld [vmem:[%s7478_s17 + $0x2738] sm:$0xff]  ;;  %6662 = vmatpush.msra.mxu2 %v1409_v2 }
 0xa13   : > { %v1277_v30 = vld [vmem:[%s7478_s17 + $0x20f8] sm:$0xff]  ;;  %6681 = vmatpush.msra.mxu3 %v1477_v45 }
 0xa14   : > { %v1345_v31 = vld [vmem:[%s7478_s17 + $0x2318] sm:$0xff]  ;;  %6623 = vmatpush.msra.mxu0 %v1277_v30 }
 0xa15   : > { %v1405_v55 = vld [vmem:[%s7478_s17 + $0x24f8] sm:$0xff]  ;;  %6642 = vmatpush.msra.mxu1 %v1345_v31 }
 0xa16   : > { %v1473_v22 = vld [vmem:[%s7478_s17 + $0x2718] sm:$0xff]  ;;  %6663 = vmatpush.msra.mxu2 %v1405_v55 }
 0xa17   : > { %v1273_v13 = vld [vmem:[%s7478_s17 + $0x20d8] sm:$0xff]  ;;  %6682 = vmatpush.msra.mxu3 %v1473_v22 }
 0xa18   : > { %v1341_v56 = vld [vmem:[%s7478_s17 + $0x22f8] sm:$0xff]  ;;  %6624 = vmatpush.msra.mxu0 %v1273_v13 }
 0xa19   : > { %v1401_v46 = vld [vmem:[%s7478_s17 + $0x24d8] sm:$0xff]  ;;  %6643 = vmatpush.msra.mxu1 %v1341_v56 }
 0xa1a   : > { %v1469_v54 = vld [vmem:[%s7478_s17 + $0x26f8] sm:$0xff]  ;;  %6664 = vmatpush.msra.mxu2 %v1401_v46 }
 0xa1b   : > { %v1269_v40 = vld [vmem:[%s7478_s17 + $0x20b8] sm:$0xff]  ;;  %6683 = vmatpush.msra.mxu3 %v1469_v54 }
 0xa1c   : > { %v1337_v41 = vld [vmem:[%s7478_s17 + $0x22d8] sm:$0xff]  ;;  %6625 = vmatpush.msra.mxu0 %v1269_v40 }
 0xa1d   : > { %v1397_v23 = vld [vmem:[%s7478_s17 + $0x24b8] sm:$0xff]  ;;  %6644 = vmatpush.msra.mxu1 %v1337_v41 }
 0xa1e   : > { %v1465_v32 = vld [vmem:[%s7478_s17 + $0x26d8] sm:$0xff]  ;;  %6665 = vmatpush.msra.mxu2 %v1397_v23 }
 0xa1f   : > { %v1265_v27 = vld [vmem:[%s7478_s17 + $0x2098] sm:$0xff]  ;;  %6684 = vmatpush.msra.mxu3 %v1465_v32 }
 0xa20   : > { %v1333_v3 = vld [vmem:[%s7478_s17 + $0x22b8] sm:$0xff]  ;;  %6626 = vmatpush.msra.mxu0 %v1265_v27 }
 0xa21   : > { %v1393_v42 = vld [vmem:[%s7478_s17 + $0x2498] sm:$0xff]  ;;  %6645 = vmatpush.msra.mxu1 %v1333_v3 }
 0xa22   : > { %v1461_v49 = vld [vmem:[%s7478_s17 + $0x26b8] sm:$0xff]  ;;  %6666 = vmatpush.msra.mxu2 %v1393_v42 }
 0xa23   : > { %v1261_v59 = vld [vmem:[%s7478_s17 + $0x2078] sm:$0xff]  ;;  %6685 = vmatpush.msra.mxu3 %v1461_v49 }
 0xa24   : > { %v1329_v34 = vld [vmem:[%s7478_s17 + $0x2298] sm:$0xff]  ;;  %6627 = vmatpush.msra.mxu0 %v1261_v59 }
 0xa25   : > { %v1389_v20 = vld [vmem:[%s7478_s17 + $0x2478] sm:$0xff]  ;;  %6646 = vmatpush.msra.mxu1 %v1329_v34 }
 0xa26   : > { %v1457_v4 = vld [vmem:[%s7478_s17 + $0x2698] sm:$0xff]  ;;  %6667 = vmatpush.msra.mxu2 %v1389_v20 }
 0xa27   : > { %v1257_v29 = vld [vmem:[%s7478_s17 + $0x2058] sm:$0xff]  ;;  %6686 = vmatpush.msra.mxu3 %v1457_v4 }
 0xa28   : > { %v1325_v43 = vld [vmem:[%s7478_s17 + $0x2278] sm:$0xff]  ;;  %6628 = vmatpush.msra.mxu0 %v1257_v29 }
 0xa29   : > { %v1385_v5 = vld [vmem:[%s7478_s17 + $0x2458] sm:$0xff]  ;;  %6647 = vmatpush.msra.mxu1 %v1325_v43 }
 0xa2a   : > { %v1453_v50 = vld [vmem:[%s7478_s17 + $0x2678] sm:$0xff]  ;;  %6668 = vmatpush.msra.mxu2 %v1385_v5 }
 0xa2b   : > { %v1253_v60 = vld [vmem:[%s7478_s17 + $0x2038] sm:$0xff]  ;;  %6687 = vmatpush.msra.mxu3 %v1453_v50 }
 0xa2c   : > { %v1321_v33 = vld [vmem:[%s7478_s17 + $0x2258] sm:$0xff]  ;;  %6629 = vmatpush.msra.mxu0 %v1253_v60 }
 0xa2d   : > { %v1381_v26 = vld [vmem:[%s7478_s17 + $0x2438] sm:$0xff]  ;;  %6648 = vmatpush.msra.mxu1 %v1321_v33 }
 0xa2e   : > { %v1449_v28 = vld [vmem:[%s7478_s17 + $0x2658] sm:$0xff]  ;;  %6669 = vmatpush.msra.mxu2 %v1381_v26 }
 0xa2f   : > { %v1249_v6 = vld [vmem:[%s7478_s17 + $0x2018] sm:$0xff]  ;;  %6688 = vmatpush.msra.mxu3 %v1449_v28 }
 0xa30   : > { %v1317_v44 = vld [vmem:[%s7478_s17 + $0x2238] sm:$0xff]  ;;  %6630 = vmatpush.msra.mxu0 %v1249_v6 }
 0xa31   : > { %v1377_v2 = vld [vmem:[%s7478_s17 + $0x2418] sm:$0xff]  ;;  %6649 = vmatpush.msra.mxu1 %v1317_v44  ;;  %6631 = vmatmul.f32.vlgmr.msra.gmra.mxu0 %v7871_v8 }
 0xa32   : > { %v1445_v45 = vld [vmem:[%s7478_s17 + $0x2638] sm:$0xff]  ;;  %6670 = vmatpush.msra.mxu2 %v1377_v2 }
 0xa33   : > { %v1565_v30 = vld [vmem:[%s7478_s17 + $0x29f8] sm:$0xff]  ;;  %6689 = vmatpush.msra.mxu3 %v1445_v45  ;;  %6671 = vmatmul.f32.vlgmr.msra.gmra.mxu2 %v7873_v9 }
 0xa34   : > { %v1693_v31 = vld [vmem:[%s7478_s17 + $0x2df8] sm:$0xff]  ;;  %6695 = vmatpush.msrb.mxu0 %v1565_v30 }
 0xa35   : > { %v1313_v55 = vld [vmem:[%s7478_s17 + $0x2218] sm:$0xff]  ;;  %6735 = vmatpush.msrb.mxu2 %v1693_v31 }
 0xa36   : > { %v1441_v22 = vld [vmem:[%s7478_s17 + $0x2618] sm:$0xff]  ;;  %6650 = vmatpush.msra.mxu1 %v1313_v55 }
 0xa37   : > { %v1561_v13 = vld [vmem:[%s7478_s17 + $0x29d8] sm:$0xff]  ;;  %6690 = vmatpush.msra.mxu3 %v1441_v22  ;;  %6651 = vmatmul.f32.vlgmr.msra.gmra.mxu1 %v7881_v14 }
 0xa38   : > { %v1629_v56 = vld [vmem:[%s7478_s17 + $0x2bf8] sm:$0xff]  ;;  %6691 = vmatmul.f32.vlgmr.msra.gmra.mxu3 %v7883_v15  ;;  %6696 = vmatpush.msrb.mxu0 %v1561_v13 }
 0xa39   : > { %v1689_v46 = vld [vmem:[%s7478_s17 + $0x2dd8] sm:$0xff]  ;;  %6715 = vmatpush.msrb.mxu1 %v1629_v56 }
 0xa3a   : > { %v1757_v54 = vld [vmem:[%s7478_s17 + $0x2ff8] sm:$0xff]  ;;  %6736 = vmatpush.msrb.mxu2 %v1689_v46 }
 0xa3b   : > { %v1557_v8 = vld [vmem:[%s7478_s17 + $0x29b8] sm:$0xff]  ;;  %6755 = vmatpush.msrb.mxu3 %v1757_v54 }
 0xa3c   : > { %v1625_v9 = vld [vmem:[%s7478_s17 + $0x2bd8] sm:$0xff]  ;;  %6697 = vmatpush.msrb.mxu0 %v1557_v8 }
 0xa3d   : > { %v1685_v40 = vld [vmem:[%s7478_s17 + $0x2db8] sm:$0xff]  ;;  %6716 = vmatpush.msrb.mxu1 %v1625_v9 }
 0xa3e   : > { %v1753_v41 = vld [vmem:[%s7478_s17 + $0x2fd8] sm:$0xff]  ;;  %6737 = vmatpush.msrb.mxu2 %v1685_v40 }
 0xa3f   : > { %v1553_v23 = vld [vmem:[%s7478_s17 + $0x2998] sm:$0xff]  ;;  %6756 = vmatpush.msrb.mxu3 %v1753_v41 }
 0xa40   : > { %v1621_v32 = vld [vmem:[%s7478_s17 + $0x2bb8] sm:$0xff]  ;;  %6698 = vmatpush.msrb.mxu0 %v1553_v23 }
 0xa41   : > { %v1681_v14 = vld [vmem:[%s7478_s17 + $0x2d98] sm:$0xff]  ;;  %6717 = vmatpush.msrb.mxu1 %v1621_v32 }
 0xa42   : > { %v1749_v15 = vld [vmem:[%s7478_s17 + $0x2fb8] sm:$0xff]  ;;  %6738 = vmatpush.msrb.mxu2 %v1681_v14 }
 0xa43   : > { %v1549_v27 = vld [vmem:[%s7478_s17 + $0x2978] sm:$0xff]  ;;  %6757 = vmatpush.msrb.mxu3 %v1749_v15 }
 0xa44   : > { %v1617_v3 = vld [vmem:[%s7478_s17 + $0x2b98] sm:$0xff]  ;;  %6699 = vmatpush.msrb.mxu0 %v1549_v27 }
 0xa45   : > { %v1677_v42 = vld [vmem:[%s7478_s17 + $0x2d78] sm:$0xff]  ;;  %6718 = vmatpush.msrb.mxu1 %v1617_v3 }
 0xa46   : > { %v1745_v49 = vld [vmem:[%s7478_s17 + $0x2f98] sm:$0xff]  ;;  %6739 = vmatpush.msrb.mxu2 %v1677_v42 }
 0xa47   : > { %v1545_v59 = vld [vmem:[%s7478_s17 + $0x2958] sm:$0xff]  ;;  %6758 = vmatpush.msrb.mxu3 %v1745_v49 }
 0xa48   : > { %v1613_v34 = vld [vmem:[%s7478_s17 + $0x2b78] sm:$0xff]  ;;  %6700 = vmatpush.msrb.mxu0 %v1545_v59 }
 0xa49   : > { %v1673_v20 = vld [vmem:[%s7478_s17 + $0x2d58] sm:$0xff]  ;;  %6719 = vmatpush.msrb.mxu1 %v1613_v34 }
 0xa4a   : > { %v1741_v4 = vld [vmem:[%s7478_s17 + $0x2f78] sm:$0xff]  ;;  %6740 = vmatpush.msrb.mxu2 %v1673_v20 }
 0xa4b   : > { %v1541_v29 = vld [vmem:[%s7478_s17 + $0x2938] sm:$0xff]  ;;  %6759 = vmatpush.msrb.mxu3 %v1741_v4 }
 0xa4c   : > { %v1609_v43 = vld [vmem:[%s7478_s17 + $0x2b58] sm:$0xff]  ;;  %6701 = vmatpush.msrb.mxu0 %v1541_v29 }
 0xa4d   : > { %v1669_v5 = vld [vmem:[%s7478_s17 + $0x2d38] sm:$0xff]  ;;  %6720 = vmatpush.msrb.mxu1 %v1609_v43 }
 0xa4e   : > { %v1737_v50 = vld [vmem:[%s7478_s17 + $0x2f58] sm:$0xff]  ;;  %6741 = vmatpush.msrb.mxu2 %v1669_v5 }
 0xa4f   : > { %v1537_v60 = vld [vmem:[%s7478_s17 + $0x2918] sm:$0xff]  ;;  %6760 = vmatpush.msrb.mxu3 %v1737_v50 }
 0xa50   : > { %v1605_v33 = vld [vmem:[%s7478_s17 + $0x2b38] sm:$0xff]  ;;  %6702 = vmatpush.msrb.mxu0 %v1537_v60 }
 0xa51   : > { %v1665_v26 = vld [vmem:[%s7478_s17 + $0x2d18] sm:$0xff]  ;;  %6721 = vmatpush.msrb.mxu1 %v1605_v33 }
 0xa52   : > { %v1733_v28 = vld [vmem:[%s7478_s17 + $0x2f38] sm:$0xff]  ;;  %6742 = vmatpush.msrb.mxu2 %v1665_v26 }
 0xa53   : > { %v1533_v6 = vld [vmem:[%s7478_s17 + $0x28f8] sm:$0xff]  ;;  %6761 = vmatpush.msrb.mxu3 %v1733_v28 }
 0xa54   : > { %v1601_v44 = vld [vmem:[%s7478_s17 + $0x2b18] sm:$0xff]  ;;  %6703 = vmatpush.msrb.mxu0 %v1533_v6 }
 0xa55   : > { %v1661_v2 = vld [vmem:[%s7478_s17 + $0x2cf8] sm:$0xff]  ;;  %6722 = vmatpush.msrb.mxu1 %v1601_v44 }
 0xa56   : > { %v1729_v45 = vld [vmem:[%s7478_s17 + $0x2f18] sm:$0xff]  ;;  %6743 = vmatpush.msrb.mxu2 %v1661_v2 }
 0xa57   : > { %v1529_v30 = vld [vmem:[%s7478_s17 + $0x28d8] sm:$0xff]  ;;  %6762 = vmatpush.msrb.mxu3 %v1729_v45 }
 0xa58   : > { %v1597_v31 = vld [vmem:[%s7478_s17 + $0x2af8] sm:$0xff]  ;;  %6704 = vmatpush.msrb.mxu0 %v1529_v30 }
 0xa59   : > { %v1657_v55 = vld [vmem:[%s7478_s17 + $0x2cd8] sm:$0xff]  ;;  %6723 = vmatpush.msrb.mxu1 %v1597_v31 }
 0xa5a   : > { %v1725_v22 = vld [vmem:[%s7478_s17 + $0x2ef8] sm:$0xff]  ;;  %6744 = vmatpush.msrb.mxu2 %v1657_v55 }
 0xa5b   : > { %v1525_v13 = vld [vmem:[%s7478_s17 + $0x28b8] sm:$0xff]  ;;  %6763 = vmatpush.msrb.mxu3 %v1725_v22 }
 0xa5c   : > { %v1593_v56 = vld [vmem:[%s7478_s17 + $0x2ad8] sm:$0xff]  ;;  %6705 = vmatpush.msrb.mxu0 %v1525_v13 }
 0xa5d   : > { %v1653_v46 = vld [vmem:[%s7478_s17 + $0x2cb8] sm:$0xff]  ;;  %6724 = vmatpush.msrb.mxu1 %v1593_v56 }
 0xa5e   : > { %v1721_v54 = vld [vmem:[%s7478_s17 + $0x2ed8] sm:$0xff]  ;;  %6745 = vmatpush.msrb.mxu2 %v1653_v46 }
 0xa5f   : > { %v1521_v8 = vld [vmem:[%s7478_s17 + $0x2898] sm:$0xff]  ;;  %6764 = vmatpush.msrb.mxu3 %v1721_v54 }
 0xa60   : > { %v1589_v9 = vld [vmem:[%s7478_s17 + $0x2ab8] sm:$0xff]  ;;  %6706 = vmatpush.msrb.mxu0 %v1521_v8 }
 0xa61   : > { %v1649_v40 = vld [vmem:[%s7478_s17 + $0x2c98] sm:$0xff]  ;;  %6725 = vmatpush.msrb.mxu1 %v1589_v9 }
 0xa62   : > { %v1717_v41 = vld [vmem:[%s7478_s17 + $0x2eb8] sm:$0xff]  ;;  %6746 = vmatpush.msrb.mxu2 %v1649_v40 }
 0xa63   : > { %v1517_v23 = vld [vmem:[%s7478_s17 + $0x2878] sm:$0xff]  ;;  %6765 = vmatpush.msrb.mxu3 %v1717_v41 }
 0xa64   : > { %v1585_v32 = vld [vmem:[%s7478_s17 + $0x2a98] sm:$0xff]  ;;  %6707 = vmatpush.msrb.mxu0 %v1517_v23 }
 0xa65   : > { %v1645_v14 = vld [vmem:[%s7478_s17 + $0x2c78] sm:$0xff]  ;;  %6726 = vmatpush.msrb.mxu1 %v1585_v32 }
 0xa66   : > { %v1713_v15 = vld [vmem:[%s7478_s17 + $0x2e98] sm:$0xff]  ;;  %6747 = vmatpush.msrb.mxu2 %v1645_v14 }
 0xa67   : > { %v1513_v27 = vld [vmem:[%s7478_s17 + $0x2858] sm:$0xff]  ;;  %6766 = vmatpush.msrb.mxu3 %v1713_v15 }
 0xa68   : > { %v1581_v3 = vld [vmem:[%s7478_s17 + $0x2a78] sm:$0xff]  ;;  %6708 = vmatpush.msrb.mxu0 %v1513_v27 }
 0xa69   : > { %v1641_v42 = vld [vmem:[%s7478_s17 + $0x2c58] sm:$0xff]  ;;  %6727 = vmatpush.msrb.mxu1 %v1581_v3 }
 0xa6a   : > { %v1709_v49 = vld [vmem:[%s7478_s17 + $0x2e78] sm:$0xff]  ;;  %6748 = vmatpush.msrb.mxu2 %v1641_v42 }
 0xa6b   : > { %v1509_v59 = vld [vmem:[%s7478_s17 + $0x2838] sm:$0xff]  ;;  %6767 = vmatpush.msrb.mxu3 %v1709_v49 }
 0xa6c   : > { %v1577_v34 = vld [vmem:[%s7478_s17 + $0x2a58] sm:$0xff]  ;;  %6709 = vmatpush.msrb.mxu0 %v1509_v59 }
 0xa6d   : > { %v1637_v20 = vld [vmem:[%s7478_s17 + $0x2c38] sm:$0xff]  ;;  %6728 = vmatpush.msrb.mxu1 %v1577_v34 }
 0xa6e   : > { %v1705_v4 = vld [vmem:[%s7478_s17 + $0x2e58] sm:$0xff]  ;;  %6749 = vmatpush.msrb.mxu2 %v1637_v20 }
 0xa6f   : > { %v1505_v29 = vld [vmem:[%s7478_s17 + $0x2818] sm:$0xff]  ;;  %6768 = vmatpush.msrb.mxu3 %v1705_v4 }
 0xa70   : > { %v1573_v43 = vld [vmem:[%s7478_s17 + $0x2a38] sm:$0xff]  ;;  %6710 = vmatpush.msrb.mxu0 %v1505_v29 }
 0xa71   : > { %v1633_v5 = vld [vmem:[%s7478_s17 + $0x2c18] sm:$0xff]  ;;  %6729 = vmatpush.msrb.mxu1 %v1573_v43  ;;  %6711 = vmatmul.f32.vlgmr.msrb.gmra.mxu0 %v7948_v37 }
 0xa72   : > { %v1701_v50 = vld [vmem:[%s7478_s17 + $0x2e38] sm:$0xff]  ;;  %6750 = vmatpush.msrb.mxu2 %v1633_v5 }
 0xa73   : > { %v1821_v60 = vld [vmem:[%s7478_s17 + $0x31f8] sm:$0xff]  ;;  %6769 = vmatpush.msrb.mxu3 %v1701_v50  ;;  %6751 = vmatmul.f32.vlgmr.msrb.gmra.mxu2 %v7950_v38 }
 0xa74   : > { %v1949_v33 = vld [vmem:[%s7478_s17 + $0x35f8] sm:$0xff]  ;;  %6775 = vmatpush.msra.mxu0 %v1821_v60 }
 0xa75   : > { %v1569_v26 = vld [vmem:[%s7478_s17 + $0x2a18] sm:$0xff]  ;;  %6815 = vmatpush.msra.mxu2 %v1949_v33 }
 0xa76   : > { %v1697_v28 = vld [vmem:[%s7478_s17 + $0x2e18] sm:$0xff]  ;;  %6730 = vmatpush.msrb.mxu1 %v1569_v26 }
 0xa77   : > { %v1817_v6 = vld [vmem:[%s7478_s17 + $0x31d8] sm:$0xff]  ;;  %6770 = vmatpush.msrb.mxu3 %v1697_v28  ;;  %6731 = vmatmul.f32.vlgmr.msrb.gmra.mxu1 %v7958_v51 }
 0xa78   : > { %v1885_v44 = vld [vmem:[%s7478_s17 + $0x33f8] sm:$0xff]  ;;  %6771 = vmatmul.f32.vlgmr.msrb.gmra.mxu3 %v7960_v52  ;;  %6776 = vmatpush.msra.mxu0 %v1817_v6 }
 0xa79   : > { %v1945_v2 = vld [vmem:[%s7478_s17 + $0x35d8] sm:$0xff]  ;;  %6795 = vmatpush.msra.mxu1 %v1885_v44 }
 0xa7a   : > { %v2013_v45 = vld [vmem:[%s7478_s17 + $0x37f8] sm:$0xff]  ;;  %6816 = vmatpush.msra.mxu2 %v1945_v2 }
 0xa7b   : > { %v1813_v37 = vld [vmem:[%s7478_s17 + $0x31b8] sm:$0xff]  ;;  %6835 = vmatpush.msra.mxu3 %v2013_v45 }
 0xa7c   : > { %v1881_v38 = vld [vmem:[%s7478_s17 + $0x33d8] sm:$0xff]  ;;  %6777 = vmatpush.msra.mxu0 %v1813_v37 }
 0xa7d   : > { %v1941_v30 = vld [vmem:[%s7478_s17 + $0x35b8] sm:$0xff]  ;;  %6796 = vmatpush.msra.mxu1 %v1881_v38 }
 0xa7e   : > { %v2009_v31 = vld [vmem:[%s7478_s17 + $0x37d8] sm:$0xff]  ;;  %6817 = vmatpush.msra.mxu2 %v1941_v30 }
 0xa7f   : > { %v1809_v55 = vld [vmem:[%s7478_s17 + $0x3198] sm:$0xff]  ;;  %6836 = vmatpush.msra.mxu3 %v2009_v31 }
 0xa80   : > { %v1877_v22 = vld [vmem:[%s7478_s17 + $0x33b8] sm:$0xff]  ;;  %6778 = vmatpush.msra.mxu0 %v1809_v55 }
 0xa81   : > { %v1937_v51 = vld [vmem:[%s7478_s17 + $0x3598] sm:$0xff]  ;;  %6797 = vmatpush.msra.mxu1 %v1877_v22 }
 0xa82   : > { %v2005_v52 = vld [vmem:[%s7478_s17 + $0x37b8] sm:$0xff]  ;;  %6818 = vmatpush.msra.mxu2 %v1937_v51 }
 0xa83   : > { %v1805_v13 = vld [vmem:[%s7478_s17 + $0x3178] sm:$0xff]  ;;  %6837 = vmatpush.msra.mxu3 %v2005_v52 }
 0xa84   : > { %v1873_v56 = vld [vmem:[%s7478_s17 + $0x3398] sm:$0xff]  ;;  %6779 = vmatpush.msra.mxu0 %v1805_v13 }
 0xa85   : > { %v1933_v46 = vld [vmem:[%s7478_s17 + $0x3578] sm:$0xff]  ;;  %6798 = vmatpush.msra.mxu1 %v1873_v56 }
 0xa86   : > { %v2001_v54 = vld [vmem:[%s7478_s17 + $0x3798] sm:$0xff]  ;;  %6819 = vmatpush.msra.mxu2 %v1933_v46 }
 0xa87   : > { %v1801_v8 = vld [vmem:[%s7478_s17 + $0x3158] sm:$0xff]  ;;  %6838 = vmatpush.msra.mxu3 %v2001_v54 }
 0xa88   : > { %v1869_v9 = vld [vmem:[%s7478_s17 + $0x3378] sm:$0xff]  ;;  %6780 = vmatpush.msra.mxu0 %v1801_v8 }
 0xa89   : > { %v1929_v40 = vld [vmem:[%s7478_s17 + $0x3558] sm:$0xff]  ;;  %6799 = vmatpush.msra.mxu1 %v1869_v9 }
 0xa8a   : > { %v1997_v41 = vld [vmem:[%s7478_s17 + $0x3778] sm:$0xff]  ;;  %6820 = vmatpush.msra.mxu2 %v1929_v40 }
 0xa8b   : > { %v1797_v23 = vld [vmem:[%s7478_s17 + $0x3138] sm:$0xff]  ;;  %6839 = vmatpush.msra.mxu3 %v1997_v41 }
 0xa8c   : > { %v1865_v32 = vld [vmem:[%s7478_s17 + $0x3358] sm:$0xff]  ;;  %6781 = vmatpush.msra.mxu0 %v1797_v23 }
 0xa8d   : > { %v1925_v14 = vld [vmem:[%s7478_s17 + $0x3538] sm:$0xff]  ;;  %6800 = vmatpush.msra.mxu1 %v1865_v32 }
 0xa8e   : > { %v1993_v15 = vld [vmem:[%s7478_s17 + $0x3758] sm:$0xff]  ;;  %6821 = vmatpush.msra.mxu2 %v1925_v14 }
 0xa8f   : > { %v1793_v27 = vld [vmem:[%s7478_s17 + $0x3118] sm:$0xff]  ;;  %6840 = vmatpush.msra.mxu3 %v1993_v15 }
 0xa90   : > { %v1861_v3 = vld [vmem:[%s7478_s17 + $0x3338] sm:$0xff]  ;;  %6782 = vmatpush.msra.mxu0 %v1793_v27 }
 0xa91   : > { %v1921_v42 = vld [vmem:[%s7478_s17 + $0x3518] sm:$0xff]  ;;  %6801 = vmatpush.msra.mxu1 %v1861_v3 }
 0xa92   : > { %v1989_v49 = vld [vmem:[%s7478_s17 + $0x3738] sm:$0xff]  ;;  %6822 = vmatpush.msra.mxu2 %v1921_v42 }
 0xa93   : > { %v1789_v59 = vld [vmem:[%s7478_s17 + $0x30f8] sm:$0xff]  ;;  %6841 = vmatpush.msra.mxu3 %v1989_v49 }
 0xa94   : > { %v1857_v34 = vld [vmem:[%s7478_s17 + $0x3318] sm:$0xff]  ;;  %6783 = vmatpush.msra.mxu0 %v1789_v59 }
 0xa95   : > { %v1917_v20 = vld [vmem:[%s7478_s17 + $0x34f8] sm:$0xff]  ;;  %6802 = vmatpush.msra.mxu1 %v1857_v34 }
 0xa96   : > { %v1985_v4 = vld [vmem:[%s7478_s17 + $0x3718] sm:$0xff]  ;;  %6823 = vmatpush.msra.mxu2 %v1917_v20 }
 0xa97   : > { %v1785_v29 = vld [vmem:[%s7478_s17 + $0x30d8] sm:$0xff]  ;;  %6842 = vmatpush.msra.mxu3 %v1985_v4 }
 0xa98   : > { %v1853_v43 = vld [vmem:[%s7478_s17 + $0x32f8] sm:$0xff]  ;;  %6784 = vmatpush.msra.mxu0 %v1785_v29 }
 0xa99   : > { %v1913_v5 = vld [vmem:[%s7478_s17 + $0x34d8] sm:$0xff]  ;;  %6803 = vmatpush.msra.mxu1 %v1853_v43 }
 0xa9a   : > { %v1981_v50 = vld [vmem:[%s7478_s17 + $0x36f8] sm:$0xff]  ;;  %6824 = vmatpush.msra.mxu2 %v1913_v5 }
 0xa9b   : > { %v1781_v60 = vld [vmem:[%s7478_s17 + $0x30b8] sm:$0xff]  ;;  %6843 = vmatpush.msra.mxu3 %v1981_v50 }
 0xa9c   : > { %v1849_v33 = vld [vmem:[%s7478_s17 + $0x32d8] sm:$0xff]  ;;  %6785 = vmatpush.msra.mxu0 %v1781_v60 }
 0xa9d   : > { %v1909_v26 = vld [vmem:[%s7478_s17 + $0x34b8] sm:$0xff]  ;;  %6804 = vmatpush.msra.mxu1 %v1849_v33 }
 0xa9e   : > { %v1977_v28 = vld [vmem:[%s7478_s17 + $0x36d8] sm:$0xff]  ;;  %6825 = vmatpush.msra.mxu2 %v1909_v26 }
 0xa9f   : > { %v1777_v6 = vld [vmem:[%s7478_s17 + $0x3098] sm:$0xff]  ;;  %6844 = vmatpush.msra.mxu3 %v1977_v28 }
 0xaa0   : > { %v1845_v44 = vld [vmem:[%s7478_s17 + $0x32b8] sm:$0xff]  ;;  %6786 = vmatpush.msra.mxu0 %v1777_v6 }
 0xaa1   : > { %v1905_v2 = vld [vmem:[%s7478_s17 + $0x3498] sm:$0xff]  ;;  %6805 = vmatpush.msra.mxu1 %v1845_v44 }
 0xaa2   : > { %v1973_v45 = vld [vmem:[%s7478_s17 + $0x36b8] sm:$0xff]  ;;  %6826 = vmatpush.msra.mxu2 %v1905_v2 }
 0xaa3   : > { %v1773_v37 = vld [vmem:[%s7478_s17 + $0x3078] sm:$0xff]  ;;  %6845 = vmatpush.msra.mxu3 %v1973_v45 }
 0xaa4   : > { %v1841_v38 = vld [vmem:[%s7478_s17 + $0x3298] sm:$0xff]  ;;  %6787 = vmatpush.msra.mxu0 %v1773_v37 }
 0xaa5   : > { %v1901_v30 = vld [vmem:[%s7478_s17 + $0x3478] sm:$0xff]  ;;  %6806 = vmatpush.msra.mxu1 %v1841_v38 }
 0xaa6   : > { %v1969_v31 = vld [vmem:[%s7478_s17 + $0x3698] sm:$0xff]  ;;  %6827 = vmatpush.msra.mxu2 %v1901_v30 }
 0xaa7   : > { %v1769_v55 = vld [vmem:[%s7478_s17 + $0x3058] sm:$0xff]  ;;  %6846 = vmatpush.msra.mxu3 %v1969_v31 }
 0xaa8   : > { %v1837_v22 = vld [vmem:[%s7478_s17 + $0x3278] sm:$0xff]  ;;  %6788 = vmatpush.msra.mxu0 %v1769_v55 }
 0xaa9   : > { %v1897_v51 = vld [vmem:[%s7478_s17 + $0x3458] sm:$0xff]  ;;  %6807 = vmatpush.msra.mxu1 %v1837_v22 }
 0xaaa   : > { %v1965_v52 = vld [vmem:[%s7478_s17 + $0x3678] sm:$0xff]  ;;  %6828 = vmatpush.msra.mxu2 %v1897_v51 }
 0xaab   : > { %v1765_v13 = vld [vmem:[%s7478_s17 + $0x3038] sm:$0xff]  ;;  %6847 = vmatpush.msra.mxu3 %v1965_v52 }
 0xaac   : > { %v1833_v56 = vld [vmem:[%s7478_s17 + $0x3258] sm:$0xff]  ;;  %6789 = vmatpush.msra.mxu0 %v1765_v13 }
 0xaad   : > { %v1893_v46 = vld [vmem:[%s7478_s17 + $0x3438] sm:$0xff]  ;;  %6808 = vmatpush.msra.mxu1 %v1833_v56 }
 0xaae   : > { %v1961_v54 = vld [vmem:[%s7478_s17 + $0x3658] sm:$0xff]  ;;  %6829 = vmatpush.msra.mxu2 %v1893_v46 }
 0xaaf   : > { %v1761_v8 = vld [vmem:[%s7478_s17 + $0x3018] sm:$0xff]  ;;  %6848 = vmatpush.msra.mxu3 %v1961_v54 }
 0xab0   : > { %v1829_v9 = vld [vmem:[%s7478_s17 + $0x3238] sm:$0xff]  ;;  %6790 = vmatpush.msra.mxu0 %v1761_v8 }
 0xab1   : > { %v1889_v40 = vld [vmem:[%s7478_s17 + $0x3418] sm:$0xff]  ;;  %6809 = vmatpush.msra.mxu1 %v1829_v9  ;;  %6791 = vmatmul.f32.vlgmr.msra.gmra.mxu0 %v8025_v18 }
 0xab2   : > { %v1957_v41 = vld [vmem:[%s7478_s17 + $0x3638] sm:$0xff]  ;;  %6830 = vmatpush.msra.mxu2 %v1889_v40 }
 0xab3   : > { %v2077_v23 = vld [vmem:[%s7478_s17 + $0x39f8] sm:$0xff]  ;;  %6849 = vmatpush.msra.mxu3 %v1957_v41  ;;  %6831 = vmatmul.f32.vlgmr.msra.gmra.mxu2 %v8027_v19 }
 0xab4   : > { %v2205_v32 = vld [vmem:[%s7478_s17 + $0x3df8] sm:$0xff]  ;;  %6855 = vmatpush.msrb.mxu0 %v2077_v23 }
 0xab5   : > { %v1825_v14 = vld [vmem:[%s7478_s17 + $0x3218] sm:$0xff]  ;;  %6895 = vmatpush.msrb.mxu2 %v2205_v32 }
 0xab6   : > { %v1953_v15 = vld [vmem:[%s7478_s17 + $0x3618] sm:$0xff]  ;;  %6810 = vmatpush.msra.mxu1 %v1825_v14 }
 0xab7   : > { %v2073_v27 = vld [vmem:[%s7478_s17 + $0x39d8] sm:$0xff]  ;;  %6850 = vmatpush.msra.mxu3 %v1953_v15  ;;  %6811 = vmatmul.f32.vlgmr.msra.gmra.mxu1 %v8035_v24 }
 0xab8   : > { %v2141_v3 = vld [vmem:[%s7478_s17 + $0x3bf8] sm:$0xff]  ;;  %6851 = vmatmul.f32.vlgmr.msra.gmra.mxu3 %v8037_v25  ;;  %6856 = vmatpush.msrb.mxu0 %v2073_v27 }
 0xab9   : > { %v2201_v42 = vld [vmem:[%s7478_s17 + $0x3dd8] sm:$0xff]  ;;  %6875 = vmatpush.msrb.mxu1 %v2141_v3 }
 0xaba   : > { %v2269_v49 = vld [vmem:[%s7478_s17 + $0x3ff8] sm:$0xff]  ;;  %6896 = vmatpush.msrb.mxu2 %v2201_v42 }
 0xabb   : > { %v2069_v18 = vld [vmem:[%s7478_s17 + $0x39b8] sm:$0xff]  ;;  %6915 = vmatpush.msrb.mxu3 %v2269_v49 }
 0xabc   : > { %v2137_v19 = vld [vmem:[%s7478_s17 + $0x3bd8] sm:$0xff]  ;;  %6857 = vmatpush.msrb.mxu0 %v2069_v18 }
 0xabd   : > { %v2197_v59 = vld [vmem:[%s7478_s17 + $0x3db8] sm:$0xff]  ;;  %6876 = vmatpush.msrb.mxu1 %v2137_v19 }
 0xabe   : > { %v2265_v34 = vld [vmem:[%s7478_s17 + $0x3fd8] sm:$0xff]  ;;  %6897 = vmatpush.msrb.mxu2 %v2197_v59 }
 0xabf   : > { %v2065_v20 = vld [vmem:[%s7478_s17 + $0x3998] sm:$0xff]  ;;  %6916 = vmatpush.msrb.mxu3 %v2265_v34 }
 0xac0   : > { %v2133_v4 = vld [vmem:[%s7478_s17 + $0x3bb8] sm:$0xff]  ;;  %6858 = vmatpush.msrb.mxu0 %v2065_v20 }
 0xac1   : > { %v2193_v24 = vld [vmem:[%s7478_s17 + $0x3d98] sm:$0xff]  ;;  %6877 = vmatpush.msrb.mxu1 %v2133_v4 }
 0xac2   : > { %v2261_v25 = vld [vmem:[%s7478_s17 + $0x3fb8] sm:$0xff]  ;;  %6898 = vmatpush.msrb.mxu2 %v2193_v24 }
 0xac3   : > { %v2061_v29 = vld [vmem:[%s7478_s17 + $0x3978] sm:$0xff]  ;;  %6917 = vmatpush.msrb.mxu3 %v2261_v25 }
 0xac4   : > { %v2129_v43 = vld [vmem:[%s7478_s17 + $0x3b98] sm:$0xff]  ;;  %6859 = vmatpush.msrb.mxu0 %v2061_v29 }
 0xac5   : > { %v2189_v5 = vld [vmem:[%s7478_s17 + $0x3d78] sm:$0xff]  ;;  %6878 = vmatpush.msrb.mxu1 %v2129_v43 }
 0xac6   : > { %v2257_v50 = vld [vmem:[%s7478_s17 + $0x3f98] sm:$0xff]  ;;  %6899 = vmatpush.msrb.mxu2 %v2189_v5 }
 0xac7   : > { %v2057_v60 = vld [vmem:[%s7478_s17 + $0x3958] sm:$0xff]  ;;  %6918 = vmatpush.msrb.mxu3 %v2257_v50 }
 0xac8   : > { %v2125_v33 = vld [vmem:[%s7478_s17 + $0x3b78] sm:$0xff]  ;;  %6860 = vmatpush.msrb.mxu0 %v2057_v60 }
 0xac9   : > { %v2185_v26 = vld [vmem:[%s7478_s17 + $0x3d58] sm:$0xff]  ;;  %6879 = vmatpush.msrb.mxu1 %v2125_v33 }
 0xaca   : > { %v2253_v28 = vld [vmem:[%s7478_s17 + $0x3f78] sm:$0xff]  ;;  %6900 = vmatpush.msrb.mxu2 %v2185_v26 }
 0xacb   : > { %v2053_v6 = vld [vmem:[%s7478_s17 + $0x3938] sm:$0xff]  ;;  %6919 = vmatpush.msrb.mxu3 %v2253_v28 }
 0xacc   : > { %v2121_v44 = vld [vmem:[%s7478_s17 + $0x3b58] sm:$0xff]  ;;  %6861 = vmatpush.msrb.mxu0 %v2053_v6 }
 0xacd   : > { %v2181_v2 = vld [vmem:[%s7478_s17 + $0x3d38] sm:$0xff]  ;;  %6880 = vmatpush.msrb.mxu1 %v2121_v44 }
 0xace   : > { %v2249_v45 = vld [vmem:[%s7478_s17 + $0x3f58] sm:$0xff]  ;;  %6901 = vmatpush.msrb.mxu2 %v2181_v2 }
 0xacf   : > { %v2049_v37 = vld [vmem:[%s7478_s17 + $0x3918] sm:$0xff]  ;;  %6920 = vmatpush.msrb.mxu3 %v2249_v45 }
 0xad0   : > { %v2117_v38 = vld [vmem:[%s7478_s17 + $0x3b38] sm:$0xff]  ;;  %6862 = vmatpush.msrb.mxu0 %v2049_v37 }
 0xad1   : > { %v2177_v30 = vld [vmem:[%s7478_s17 + $0x3d18] sm:$0xff]  ;;  %6881 = vmatpush.msrb.mxu1 %v2117_v38 }
 0xad2   : > { %v2245_v31 = vld [vmem:[%s7478_s17 + $0x3f38] sm:$0xff]  ;;  %6902 = vmatpush.msrb.mxu2 %v2177_v30 }
 0xad3   : > { %v2045_v55 = vld [vmem:[%s7478_s17 + $0x38f8] sm:$0xff]  ;;  %6921 = vmatpush.msrb.mxu3 %v2245_v31 }
 0xad4   : > { %v2113_v22 = vld [vmem:[%s7478_s17 + $0x3b18] sm:$0xff]  ;;  %6863 = vmatpush.msrb.mxu0 %v2045_v55 }
 0xad5   : > { %v2173_v51 = vld [vmem:[%s7478_s17 + $0x3cf8] sm:$0xff]  ;;  %6882 = vmatpush.msrb.mxu1 %v2113_v22 }
 0xad6   : > { %v2241_v52 = vld [vmem:[%s7478_s17 + $0x3f18] sm:$0xff]  ;;  %6903 = vmatpush.msrb.mxu2 %v2173_v51 }
 0xad7   : > { %v2041_v13 = vld [vmem:[%s7478_s17 + $0x38d8] sm:$0xff]  ;;  %6922 = vmatpush.msrb.mxu3 %v2241_v52 }
 0xad8   : > { %v2109_v56 = vld [vmem:[%s7478_s17 + $0x3af8] sm:$0xff]  ;;  %6864 = vmatpush.msrb.mxu0 %v2041_v13 }
 0xad9   : > { %v2169_v46 = vld [vmem:[%s7478_s17 + $0x3cd8] sm:$0xff]  ;;  %6883 = vmatpush.msrb.mxu1 %v2109_v56 }
 0xada   : > { %v2237_v54 = vld [vmem:[%s7478_s17 + $0x3ef8] sm:$0xff]  ;;  %6904 = vmatpush.msrb.mxu2 %v2169_v46 }
 0xadb   : > { %v2037_v8 = vld [vmem:[%s7478_s17 + $0x38b8] sm:$0xff]  ;;  %6923 = vmatpush.msrb.mxu3 %v2237_v54 }
 0xadc   : > { %v2105_v9 = vld [vmem:[%s7478_s17 + $0x3ad8] sm:$0xff]  ;;  %6865 = vmatpush.msrb.mxu0 %v2037_v8 }
 0xadd   : > { %v2165_v40 = vld [vmem:[%s7478_s17 + $0x3cb8] sm:$0xff]  ;;  %6884 = vmatpush.msrb.mxu1 %v2105_v9 }
 0xade   : > { %v2233_v41 = vld [vmem:[%s7478_s17 + $0x3ed8] sm:$0xff]  ;;  %6905 = vmatpush.msrb.mxu2 %v2165_v40 }
 0xadf   : > { %v2033_v23 = vld [vmem:[%s7478_s17 + $0x3898] sm:$0xff]  ;;  %6924 = vmatpush.msrb.mxu3 %v2233_v41 }
 0xae0   : > { %v2101_v32 = vld [vmem:[%s7478_s17 + $0x3ab8] sm:$0xff]  ;;  %6866 = vmatpush.msrb.mxu0 %v2033_v23 }
 0xae1   : > { %v2161_v14 = vld [vmem:[%s7478_s17 + $0x3c98] sm:$0xff]  ;;  %6885 = vmatpush.msrb.mxu1 %v2101_v32 }
 0xae2   : > { %v2229_v15 = vld [vmem:[%s7478_s17 + $0x3eb8] sm:$0xff]  ;;  %6906 = vmatpush.msrb.mxu2 %v2161_v14 }
 0xae3   : > { %v2029_v27 = vld [vmem:[%s7478_s17 + $0x3878] sm:$0xff]  ;;  %6925 = vmatpush.msrb.mxu3 %v2229_v15 }
 0xae4   : > { %v2097_v3 = vld [vmem:[%s7478_s17 + $0x3a98] sm:$0xff]  ;;  %6867 = vmatpush.msrb.mxu0 %v2029_v27 }
 0xae5   : > { %v2157_v42 = vld [vmem:[%s7478_s17 + $0x3c78] sm:$0xff]  ;;  %6886 = vmatpush.msrb.mxu1 %v2097_v3 }
 0xae6   : > { %v2225_v49 = vld [vmem:[%s7478_s17 + $0x3e98] sm:$0xff]  ;;  %6907 = vmatpush.msrb.mxu2 %v2157_v42 }
 0xae7   : > { %v2025_v18 = vld [vmem:[%s7478_s17 + $0x3858] sm:$0xff]  ;;  %6926 = vmatpush.msrb.mxu3 %v2225_v49 }
 0xae8   : > { %v2093_v19 = vld [vmem:[%s7478_s17 + $0x3a78] sm:$0xff]  ;;  %6868 = vmatpush.msrb.mxu0 %v2025_v18 }
 0xae9   : > { %v2153_v59 = vld [vmem:[%s7478_s17 + $0x3c58] sm:$0xff]  ;;  %6887 = vmatpush.msrb.mxu1 %v2093_v19 }
 0xaea   : > { %v2221_v34 = vld [vmem:[%s7478_s17 + $0x3e78] sm:$0xff]  ;;  %6908 = vmatpush.msrb.mxu2 %v2153_v59 }
 0xaeb   : > { %v2021_v20 = vld [vmem:[%s7478_s17 + $0x3838] sm:$0xff]  ;;  %6927 = vmatpush.msrb.mxu3 %v2221_v34 }
 0xaec   : > { %v2089_v4 = vld [vmem:[%s7478_s17 + $0x3a58] sm:$0xff]  ;;  %6869 = vmatpush.msrb.mxu0 %v2021_v20 }
 0xaed   : > { %v2149_v24 = vld [vmem:[%s7478_s17 + $0x3c38] sm:$0xff]  ;;  %6888 = vmatpush.msrb.mxu1 %v2089_v4 }
 0xaee   : > { %v2217_v25 = vld [vmem:[%s7478_s17 + $0x3e58] sm:$0xff]  ;;  %6909 = vmatpush.msrb.mxu2 %v2149_v24 }
 0xaef   : > { %v2017_v29 = vld [vmem:[%s7478_s17 + $0x3818] sm:$0xff]  ;;  %6928 = vmatpush.msrb.mxu3 %v2217_v25 }
 0xaf0   : > { %v2085_v43 = vld [vmem:[%s7478_s17 + $0x3a38] sm:$0xff]  ;;  %6870 = vmatpush.msrb.mxu0 %v2017_v29 }
 0xaf1   : > { %v2145_v5 = vld [vmem:[%s7478_s17 + $0x3c18] sm:$0xff]  ;;  %6889 = vmatpush.msrb.mxu1 %v2085_v43  ;;  %6871 = vmatmul.f32.vlgmr.msrb.gmra.mxu0 %v8102_v7 }
 0xaf2   : > { %v2213_v50 = vld [vmem:[%s7478_s17 + $0x3e38] sm:$0xff]  ;;  %6910 = vmatpush.msrb.mxu2 %v2145_v5 }
 0xaf3   : > { %v2333_v60 = vld [vmem:[%s7478_s17 + $0x41f8] sm:$0xff]  ;;  %6929 = vmatpush.msrb.mxu3 %v2213_v50  ;;  %6911 = vmatmul.f32.vlgmr.msrb.gmra.mxu2 %v8104_v10 }
 0xaf4   : > { %v2461_v33 = vld [vmem:[%s7478_s17 + $0x45f8] sm:$0xff]  ;;  %6935 = vmatpush.msra.mxu0 %v2333_v60 }
 0xaf5   : > { %v2081_v26 = vld [vmem:[%s7478_s17 + $0x3a18] sm:$0xff]  ;;  %6975 = vmatpush.msra.mxu2 %v2461_v33 }
 0xaf6   : > { %v2209_v28 = vld [vmem:[%s7478_s17 + $0x3e18] sm:$0xff]  ;;  %6890 = vmatpush.msrb.mxu1 %v2081_v26 }
 0xaf7   : > { %v2329_v6 = vld [vmem:[%s7478_s17 + $0x41d8] sm:$0xff]  ;;  %6930 = vmatpush.msrb.mxu3 %v2209_v28  ;;  %6891 = vmatmul.f32.vlgmr.msrb.gmra.mxu1 %v8110_v17 }
 0xaf8   : > { %v2397_v44 = vld [vmem:[%s7478_s17 + $0x43f8] sm:$0xff]  ;;  %6931 = vmatmul.f32.vlgmr.msrb.gmra.mxu3 %v8115_v21  ;;  %6936 = vmatpush.msra.mxu0 %v2329_v6 }
 0xaf9   : > { %v2457_v2 = vld [vmem:[%s7478_s17 + $0x45d8] sm:$0xff]  ;;  %6955 = vmatpush.msra.mxu1 %v2397_v44 }
 0xafa   : > { %v2525_v45 = vld [vmem:[%s7478_s17 + $0x47f8] sm:$0xff]  ;;  %6976 = vmatpush.msra.mxu2 %v2457_v2 }
 0xafb   : > { %v2325_v7 = vld [vmem:[%s7478_s17 + $0x41b8] sm:$0xff]  ;;  %6995 = vmatpush.msra.mxu3 %v2525_v45 }
 0xafc   : > { %v2393_v10 = vld [vmem:[%s7478_s17 + $0x43d8] sm:$0xff]  ;;  %6937 = vmatpush.msra.mxu0 %v2325_v7 }
 0xafd   : > { %v2453_v37 = vld [vmem:[%s7478_s17 + $0x45b8] sm:$0xff]  ;;  %6956 = vmatpush.msra.mxu1 %v2393_v10 }
 0xafe   : > { %v2521_v38 = vld [vmem:[%s7478_s17 + $0x47d8] sm:$0xff]  ;;  %6977 = vmatpush.msra.mxu2 %v2453_v37 }
 0xaff   : > { %v2321_v30 = vld [vmem:[%s7478_s17 + $0x4198] sm:$0xff]  ;;  %6996 = vmatpush.msra.mxu3 %v2521_v38 }
 0xb00   : > { %v2389_v31 = vld [vmem:[%s7478_s17 + $0x43b8] sm:$0xff]  ;;  %6938 = vmatpush.msra.mxu0 %v2321_v30 }
 0xb01   : > { %v2449_v17 = vld [vmem:[%s7478_s17 + $0x4598] sm:$0xff]  ;;  %6957 = vmatpush.msra.mxu1 %v2389_v31 }
 0xb02   : > { %v2517_v21 = vld [vmem:[%s7478_s17 + $0x47b8] sm:$0xff]  ;;  %6978 = vmatpush.msra.mxu2 %v2449_v17 }
 0xb03   : > { %v2317_v55 = vld [vmem:[%s7478_s17 + $0x4178] sm:$0xff]  ;;  %6997 = vmatpush.msra.mxu3 %v2517_v21 }
 0xb04   : > { %v2385_v22 = vld [vmem:[%s7478_s17 + $0x4398] sm:$0xff]  ;;  %6939 = vmatpush.msra.mxu0 %v2317_v55 }
 0xb05   : > { %v2445_v51 = vld [vmem:[%s7478_s17 + $0x4578] sm:$0xff]  ;;  %6958 = vmatpush.msra.mxu1 %v2385_v22 }
 0xb06   : > { %v2513_v52 = vld [vmem:[%s7478_s17 + $0x4798] sm:$0xff]  ;;  %6979 = vmatpush.msra.mxu2 %v2445_v51 }
 0xb07   : > { %v2313_v13 = vld [vmem:[%s7478_s17 + $0x4158] sm:$0xff]  ;;  %6998 = vmatpush.msra.mxu3 %v2513_v52 }
 0xb08   : > { %v2381_v56 = vld [vmem:[%s7478_s17 + $0x4378] sm:$0xff]  ;;  %6940 = vmatpush.msra.mxu0 %v2313_v13 }
 0xb09   : > { %v2441_v46 = vld [vmem:[%s7478_s17 + $0x4558] sm:$0xff]  ;;  %6959 = vmatpush.msra.mxu1 %v2381_v56 }
 0xb0a   : > { %v2509_v54 = vld [vmem:[%s7478_s17 + $0x4778] sm:$0xff]  ;;  %6980 = vmatpush.msra.mxu2 %v2441_v46 }
 0xb0b   : > { %v2309_v8 = vld [vmem:[%s7478_s17 + $0x4138] sm:$0xff]  ;;  %6999 = vmatpush.msra.mxu3 %v2509_v54 }
 0xb0c   : > { %v2377_v9 = vld [vmem:[%s7478_s17 + $0x4358] sm:$0xff]  ;;  %6941 = vmatpush.msra.mxu0 %v2309_v8 }
 0xb0d   : > { %v2437_v40 = vld [vmem:[%s7478_s17 + $0x4538] sm:$0xff]  ;;  %6960 = vmatpush.msra.mxu1 %v2377_v9 }
 0xb0e   : > { %v2505_v41 = vld [vmem:[%s7478_s17 + $0x4758] sm:$0xff]  ;;  %6981 = vmatpush.msra.mxu2 %v2437_v40 }
 0xb0f   : > { %v2305_v23 = vld [vmem:[%s7478_s17 + $0x4118] sm:$0xff]  ;;  %7000 = vmatpush.msra.mxu3 %v2505_v41 }
 0xb10   : > { %v2373_v32 = vld [vmem:[%s7478_s17 + $0x4338] sm:$0xff]  ;;  %6942 = vmatpush.msra.mxu0 %v2305_v23 }
 0xb11   : > { %v2433_v14 = vld [vmem:[%s7478_s17 + $0x4518] sm:$0xff]  ;;  %6961 = vmatpush.msra.mxu1 %v2373_v32 }
 0xb12   : > { %v2501_v15 = vld [vmem:[%s7478_s17 + $0x4738] sm:$0xff]  ;;  %6982 = vmatpush.msra.mxu2 %v2433_v14 }
 0xb13   : > { %v2301_v27 = vld [vmem:[%s7478_s17 + $0x40f8] sm:$0xff]  ;;  %7001 = vmatpush.msra.mxu3 %v2501_v15 }
 0xb14   : > { %v2369_v3 = vld [vmem:[%s7478_s17 + $0x4318] sm:$0xff]  ;;  %6943 = vmatpush.msra.mxu0 %v2301_v27 }
 0xb15   : > { %v2429_v42 = vld [vmem:[%s7478_s17 + $0x44f8] sm:$0xff]  ;;  %6962 = vmatpush.msra.mxu1 %v2369_v3 }
 0xb16   : > { %v2497_v49 = vld [vmem:[%s7478_s17 + $0x4718] sm:$0xff]  ;;  %6983 = vmatpush.msra.mxu2 %v2429_v42 }
 0xb17   : > { %v2297_v18 = vld [vmem:[%s7478_s17 + $0x40d8] sm:$0xff]  ;;  %7002 = vmatpush.msra.mxu3 %v2497_v49 }
 0xb18   : > { %v2365_v19 = vld [vmem:[%s7478_s17 + $0x42f8] sm:$0xff]  ;;  %6944 = vmatpush.msra.mxu0 %v2297_v18 }
 0xb19   : > { %v2425_v59 = vld [vmem:[%s7478_s17 + $0x44d8] sm:$0xff]  ;;  %6963 = vmatpush.msra.mxu1 %v2365_v19 }
 0xb1a   : > { %v2493_v34 = vld [vmem:[%s7478_s17 + $0x46f8] sm:$0xff]  ;;  %6984 = vmatpush.msra.mxu2 %v2425_v59 }
 0xb1b   : > { %v2293_v20 = vld [vmem:[%s7478_s17 + $0x40b8] sm:$0xff]  ;;  %7003 = vmatpush.msra.mxu3 %v2493_v34 }
 0xb1c   : > { %v2361_v4 = vld [vmem:[%s7478_s17 + $0x42d8] sm:$0xff]  ;;  %6945 = vmatpush.msra.mxu0 %v2293_v20 }
 0xb1d   : > { %v2421_v24 = vld [vmem:[%s7478_s17 + $0x44b8] sm:$0xff]  ;;  %6964 = vmatpush.msra.mxu1 %v2361_v4 }
 0xb1e   : > { %v2489_v25 = vld [vmem:[%s7478_s17 + $0x46d8] sm:$0xff]  ;;  %6985 = vmatpush.msra.mxu2 %v2421_v24 }
 0xb1f   : > { %v2289_v29 = vld [vmem:[%s7478_s17 + $0x4098] sm:$0xff]  ;;  %7004 = vmatpush.msra.mxu3 %v2489_v25 }
 0xb20   : > { %v2357_v43 = vld [vmem:[%s7478_s17 + $0x42b8] sm:$0xff]  ;;  %6946 = vmatpush.msra.mxu0 %v2289_v29 }
 0xb21   : > { %v2417_v5 = vld [vmem:[%s7478_s17 + $0x4498] sm:$0xff]  ;;  %6965 = vmatpush.msra.mxu1 %v2357_v43 }
 0xb22   : > { %v2485_v50 = vld [vmem:[%s7478_s17 + $0x46b8] sm:$0xff]  ;;  %6986 = vmatpush.msra.mxu2 %v2417_v5 }
 0xb23   : > { %v2285_v60 = vld [vmem:[%s7478_s17 + $0x4078] sm:$0xff]  ;;  %7005 = vmatpush.msra.mxu3 %v2485_v50 }
 0xb24   : > { %v2353_v33 = vld [vmem:[%s7478_s17 + $0x4298] sm:$0xff]  ;;  %6947 = vmatpush.msra.mxu0 %v2285_v60 }
 0xb25   : > { %v2413_v26 = vld [vmem:[%s7478_s17 + $0x4478] sm:$0xff]  ;;  %6966 = vmatpush.msra.mxu1 %v2353_v33 }
 0xb26   : > { %v2481_v28 = vld [vmem:[%s7478_s17 + $0x4698] sm:$0xff]  ;;  %6987 = vmatpush.msra.mxu2 %v2413_v26 }
 0xb27   : > { %v2281_v6 = vld [vmem:[%s7478_s17 + $0x4058] sm:$0xff]  ;;  %7006 = vmatpush.msra.mxu3 %v2481_v28 }
 0xb28   : > { %v2349_v44 = vld [vmem:[%s7478_s17 + $0x4278] sm:$0xff]  ;;  %6948 = vmatpush.msra.mxu0 %v2281_v6 }
 0xb29   : > { %v2409_v2 = vld [vmem:[%s7478_s17 + $0x4458] sm:$0xff]  ;;  %6967 = vmatpush.msra.mxu1 %v2349_v44 }
 0xb2a   : > { %v2477_v45 = vld [vmem:[%s7478_s17 + $0x4678] sm:$0xff]  ;;  %6988 = vmatpush.msra.mxu2 %v2409_v2 }
 0xb2b   : > { %v2277_v7 = vld [vmem:[%s7478_s17 + $0x4038] sm:$0xff]  ;;  %7007 = vmatpush.msra.mxu3 %v2477_v45 }
 0xb2c   : > { %v2345_v10 = vld [vmem:[%s7478_s17 + $0x4258] sm:$0xff]  ;;  %6949 = vmatpush.msra.mxu0 %v2277_v7 }
 0xb2d   : > { %v2405_v37 = vld [vmem:[%s7478_s17 + $0x4438] sm:$0xff]  ;;  %6968 = vmatpush.msra.mxu1 %v2345_v10 }
 0xb2e   : > { %v2473_v38 = vld [vmem:[%s7478_s17 + $0x4658] sm:$0xff]  ;;  %6989 = vmatpush.msra.mxu2 %v2405_v37 }
 0xb2f   : > { %v2273_v30 = vld [vmem:[%s7478_s17 + $0x4018] sm:$0xff]  ;;  %7008 = vmatpush.msra.mxu3 %v2473_v38 }
 0xb30   : > { %v2341_v31 = vld [vmem:[%s7478_s17 + $0x4238] sm:$0xff]  ;;  %6950 = vmatpush.msra.mxu0 %v2273_v30 }
 0xb31   : > { %v2401_v17 = vld [vmem:[%s7478_s17 + $0x4418] sm:$0xff]  ;;  %6969 = vmatpush.msra.mxu1 %v2341_v31  ;;  %6951 = vmatmul.f32.vlgmr.msra.gmra.mxu0 %v8127_v36 }
 0xb32   : > { %v2469_v21 = vld [vmem:[%s7478_s17 + $0x4638] sm:$0xff]  ;;  %6990 = vmatpush.msra.mxu2 %v2401_v17 }
 0xb33   : > { %v2589_v55 = vld [vmem:[%s7478_s17 + $0x49f8] sm:$0xff]  ;;  %7009 = vmatpush.msra.mxu3 %v2469_v21  ;;  %6991 = vmatmul.f32.vlgmr.msra.gmra.mxu2 %v8129_v39 }
 0xb34   : > { %v2717_v22 = vld [vmem:[%s7478_s17 + $0x4df8] sm:$0xff]  ;;  %7015 = vmatpush.msrb.mxu0 %v2589_v55 }
 0xb35   : > { %v2337_v51 = vld [vmem:[%s7478_s17 + $0x4218] sm:$0xff]  ;;  %7055 = vmatpush.msrb.mxu2 %v2717_v22 }
 0xb36   : > { %v2465_v52 = vld [vmem:[%s7478_s17 + $0x4618] sm:$0xff]  ;;  %6970 = vmatpush.msra.mxu1 %v2337_v51 }
 0xb37   : > { %v2585_v13 = vld [vmem:[%s7478_s17 + $0x49d8] sm:$0xff]  ;;  %7010 = vmatpush.msra.mxu3 %v2465_v52  ;;  %6971 = vmatmul.f32.vlgmr.msra.gmra.mxu1 %v8131_v47 }
 0xb38   : > { %v2653_v56 = vld [vmem:[%s7478_s17 + $0x4bf8] sm:$0xff]  ;;  %7011 = vmatmul.f32.vlgmr.msra.gmra.mxu3 %v8133_v48  ;;  %7016 = vmatpush.msrb.mxu0 %v2585_v13 }
 0xb39   : > { %v2713_v46 = vld [vmem:[%s7478_s17 + $0x4dd8] sm:$0xff]  ;;  %7035 = vmatpush.msrb.mxu1 %v2653_v56 }
 0xb3a   : > { %v2781_v54 = vld [vmem:[%s7478_s17 + $0x4ff8] sm:$0xff]  ;;  %7056 = vmatpush.msrb.mxu2 %v2713_v46 }
 0xb3b   : > { %v2581_v36 = vld [vmem:[%s7478_s17 + $0x49b8] sm:$0xff]  ;;  %7075 = vmatpush.msrb.mxu3 %v2781_v54 }
 0xb3c   : > { %v2649_v39 = vld [vmem:[%s7478_s17 + $0x4bd8] sm:$0xff]  ;;  %7017 = vmatpush.msrb.mxu0 %v2581_v36 }
 0xb3d   : > { %v2709_v8 = vld [vmem:[%s7478_s17 + $0x4db8] sm:$0xff]  ;;  %7036 = vmatpush.msrb.mxu1 %v2649_v39 }
 0xb3e   : > { %v2777_v9 = vld [vmem:[%s7478_s17 + $0x4fd8] sm:$0xff]  ;;  %7057 = vmatpush.msrb.mxu2 %v2709_v8 }
 0xb3f   : > { %v2577_v40 = vld [vmem:[%s7478_s17 + $0x4998] sm:$0xff]  ;;  %7076 = vmatpush.msrb.mxu3 %v2777_v9 }
 0xb40   : > { %v2645_v41 = vld [vmem:[%s7478_s17 + $0x4bb8] sm:$0xff]  ;;  %7018 = vmatpush.msrb.mxu0 %v2577_v40 }
 0xb41   : > { %v2705_v47 = vld [vmem:[%s7478_s17 + $0x4d98] sm:$0xff]  ;;  %7037 = vmatpush.msrb.mxu1 %v2645_v41 }
 0xb42   : > { %v2773_v48 = vld [vmem:[%s7478_s17 + $0x4fb8] sm:$0xff]  ;;  %7058 = vmatpush.msrb.mxu2 %v2705_v47 }
 0xb43   : > { %v2573_v23 = vld [vmem:[%s7478_s17 + $0x4978] sm:$0xff]  ;;  %7077 = vmatpush.msrb.mxu3 %v2773_v48 }
 0xb44   : > { %v2641_v32 = vld [vmem:[%s7478_s17 + $0x4b98] sm:$0xff]  ;;  %7019 = vmatpush.msrb.mxu0 %v2573_v23 }
 0xb45   : > { %v2701_v14 = vld [vmem:[%s7478_s17 + $0x4d78] sm:$0xff]  ;;  %7038 = vmatpush.msrb.mxu1 %v2641_v32 }
 0xb46   : > { %v2769_v15 = vld [vmem:[%s7478_s17 + $0x4f98] sm:$0xff]  ;;  %7059 = vmatpush.msrb.mxu2 %v2701_v14 }
 0xb47   : > { %v2569_v27 = vld [vmem:[%s7478_s17 + $0x4958] sm:$0xff]  ;;  %7078 = vmatpush.msrb.mxu3 %v2769_v15 }
 0xb48   : > { %v2637_v3 = vld [vmem:[%s7478_s17 + $0x4b78] sm:$0xff]  ;;  %7020 = vmatpush.msrb.mxu0 %v2569_v27 }
 0xb49   : > { %v2697_v42 = vld [vmem:[%s7478_s17 + $0x4d58] sm:$0xff]  ;;  %7039 = vmatpush.msrb.mxu1 %v2637_v3 }
 0xb4a   : > { %v2765_v49 = vld [vmem:[%s7478_s17 + $0x4f78] sm:$0xff]  ;;  %7060 = vmatpush.msrb.mxu2 %v2697_v42 }
 0xb4b   : > { %v2565_v18 = vld [vmem:[%s7478_s17 + $0x4938] sm:$0xff]  ;;  %7079 = vmatpush.msrb.mxu3 %v2765_v49 }
 0xb4c   : > { %v2633_v19 = vld [vmem:[%s7478_s17 + $0x4b58] sm:$0xff]  ;;  %7021 = vmatpush.msrb.mxu0 %v2565_v18 }
 0xb4d   : > { %v2693_v59 = vld [vmem:[%s7478_s17 + $0x4d38] sm:$0xff]  ;;  %7040 = vmatpush.msrb.mxu1 %v2633_v19 }
 0xb4e   : > { %v2761_v34 = vld [vmem:[%s7478_s17 + $0x4f58] sm:$0xff]  ;;  %7061 = vmatpush.msrb.mxu2 %v2693_v59 }
 0xb4f   : > { %v2561_v20 = vld [vmem:[%s7478_s17 + $0x4918] sm:$0xff]  ;;  %7080 = vmatpush.msrb.mxu3 %v2761_v34 }
 0xb50   : > { %v2629_v4 = vld [vmem:[%s7478_s17 + $0x4b38] sm:$0xff]  ;;  %7022 = vmatpush.msrb.mxu0 %v2561_v20 }
 0xb51   : > { %v2689_v24 = vld [vmem:[%s7478_s17 + $0x4d18] sm:$0xff]  ;;  %7041 = vmatpush.msrb.mxu1 %v2629_v4 }
 0xb52   : > { %v2757_v25 = vld [vmem:[%s7478_s17 + $0x4f38] sm:$0xff]  ;;  %7062 = vmatpush.msrb.mxu2 %v2689_v24 }
 0xb53   : > { %v2557_v29 = vld [vmem:[%s7478_s17 + $0x48f8] sm:$0xff]  ;;  %7081 = vmatpush.msrb.mxu3 %v2757_v25 }
 0xb54   : > { %v2625_v43 = vld [vmem:[%s7478_s17 + $0x4b18] sm:$0xff]  ;;  %7023 = vmatpush.msrb.mxu0 %v2557_v29 }
 0xb55   : > { %v2685_v5 = vld [vmem:[%s7478_s17 + $0x4cf8] sm:$0xff]  ;;  %7042 = vmatpush.msrb.mxu1 %v2625_v43 }
 0xb56   : > { %v2753_v50 = vld [vmem:[%s7478_s17 + $0x4f18] sm:$0xff]  ;;  %7063 = vmatpush.msrb.mxu2 %v2685_v5 }
 0xb57   : > { %v2553_v60 = vld [vmem:[%s7478_s17 + $0x48d8] sm:$0xff]  ;;  %7082 = vmatpush.msrb.mxu3 %v2753_v50 }
 0xb58   : > { %v2621_v33 = vld [vmem:[%s7478_s17 + $0x4af8] sm:$0xff]  ;;  %7024 = vmatpush.msrb.mxu0 %v2553_v60 }
 0xb59   : > { %v2681_v26 = vld [vmem:[%s7478_s17 + $0x4cd8] sm:$0xff]  ;;  %7043 = vmatpush.msrb.mxu1 %v2621_v33 }
 0xb5a   : > { %v2749_v28 = vld [vmem:[%s7478_s17 + $0x4ef8] sm:$0xff]  ;;  %7064 = vmatpush.msrb.mxu2 %v2681_v26 }
 0xb5b   : > { %v2549_v6 = vld [vmem:[%s7478_s17 + $0x48b8] sm:$0xff]  ;;  %7083 = vmatpush.msrb.mxu3 %v2749_v28 }
 0xb5c   : > { %v2617_v44 = vld [vmem:[%s7478_s17 + $0x4ad8] sm:$0xff]  ;;  %7025 = vmatpush.msrb.mxu0 %v2549_v6 }
 0xb5d   : > { %v2677_v2 = vld [vmem:[%s7478_s17 + $0x4cb8] sm:$0xff]  ;;  %7044 = vmatpush.msrb.mxu1 %v2617_v44 }
 0xb5e   : > { %v2745_v45 = vld [vmem:[%s7478_s17 + $0x4ed8] sm:$0xff]  ;;  %7065 = vmatpush.msrb.mxu2 %v2677_v2 }
 0xb5f   : > { %v2545_v7 = vld [vmem:[%s7478_s17 + $0x4898] sm:$0xff]  ;;  %7084 = vmatpush.msrb.mxu3 %v2745_v45 }
 0xb60   : > { %v2613_v10 = vld [vmem:[%s7478_s17 + $0x4ab8] sm:$0xff]  ;;  %7026 = vmatpush.msrb.mxu0 %v2545_v7 }
 0xb61   : > { %v2673_v37 = vld [vmem:[%s7478_s17 + $0x4c98] sm:$0xff]  ;;  %7045 = vmatpush.msrb.mxu1 %v2613_v10 }
 0xb62   : > { %v2741_v38 = vld [vmem:[%s7478_s17 + $0x4eb8] sm:$0xff]  ;;  %7066 = vmatpush.msrb.mxu2 %v2673_v37 }
 0xb63   : > { %v2541_v30 = vld [vmem:[%s7478_s17 + $0x4878] sm:$0xff]  ;;  %7085 = vmatpush.msrb.mxu3 %v2741_v38 }
 0xb64   : > { %v2609_v31 = vld [vmem:[%s7478_s17 + $0x4a98] sm:$0xff]  ;;  %7027 = vmatpush.msrb.mxu0 %v2541_v30 }
 0xb65   : > { %v2669_v17 = vld [vmem:[%s7478_s17 + $0x4c78] sm:$0xff]  ;;  %7046 = vmatpush.msrb.mxu1 %v2609_v31 }
 0xb66   : > { %v2737_v21 = vld [vmem:[%s7478_s17 + $0x4e98] sm:$0xff]  ;;  %7067 = vmatpush.msrb.mxu2 %v2669_v17 }
 0xb67   : > { %v2537_v55 = vld [vmem:[%s7478_s17 + $0x4858] sm:$0xff]  ;;  %7086 = vmatpush.msrb.mxu3 %v2737_v21 }
 0xb68   : > { %v2605_v22 = vld [vmem:[%s7478_s17 + $0x4a78] sm:$0xff]  ;;  %7028 = vmatpush.msrb.mxu0 %v2537_v55 }
 0xb69   : > { %v2665_v51 = vld [vmem:[%s7478_s17 + $0x4c58] sm:$0xff]  ;;  %7047 = vmatpush.msrb.mxu1 %v2605_v22 }
 0xb6a   : > { %v2733_v52 = vld [vmem:[%s7478_s17 + $0x4e78] sm:$0xff]  ;;  %7068 = vmatpush.msrb.mxu2 %v2665_v51 }
 0xb6b   : > { %v2533_v13 = vld [vmem:[%s7478_s17 + $0x4838] sm:$0xff]  ;;  %7087 = vmatpush.msrb.mxu3 %v2733_v52 }
 0xb6c   : > { %v2601_v56 = vld [vmem:[%s7478_s17 + $0x4a58] sm:$0xff]  ;;  %7029 = vmatpush.msrb.mxu0 %v2533_v13 }
 0xb6d   : > { %v2661_v46 = vld [vmem:[%s7478_s17 + $0x4c38] sm:$0xff]  ;;  %7048 = vmatpush.msrb.mxu1 %v2601_v56 }
 0xb6e   : > { %v2729_v54 = vld [vmem:[%s7478_s17 + $0x4e58] sm:$0xff]  ;;  %7069 = vmatpush.msrb.mxu2 %v2661_v46 }
 0xb6f   : > { %v2529_v36 = vld [vmem:[%s7478_s17 + $0x4818] sm:$0xff]  ;;  %7088 = vmatpush.msrb.mxu3 %v2729_v54 }
 0xb70   : > { %v2597_v39 = vld [vmem:[%s7478_s17 + $0x4a38] sm:$0xff]  ;;  %7030 = vmatpush.msrb.mxu0 %v2529_v36 }
 0xb71   : > { %v2657_v8 = vld [vmem:[%s7478_s17 + $0x4c18] sm:$0xff]  ;;  %7049 = vmatpush.msrb.mxu1 %v2597_v39  ;;  %7031 = vmatmul.f32.vlgmr.msrb.gmra.mxu0 %v8205_v62 }
 0xb72   : > { %v2725_v9 = vld [vmem:[%s7478_s17 + $0x4e38] sm:$0xff]  ;;  %7070 = vmatpush.msrb.mxu2 %v2657_v8 }
 0xb73   : > { %v2845_v40 = vld [vmem:[%s7478_s17 + $0x51f8] sm:$0xff]  ;;  %7089 = vmatpush.msrb.mxu3 %v2725_v9  ;;  %7071 = vmatmul.f32.vlgmr.msrb.gmra.mxu2 %v8207_v63 }
 0xb74   : > { %v2973_v41 = vld [vmem:[%s7478_s17 + $0x55f8] sm:$0xff]  ;;  %7095 = vmatpush.msra.mxu0 %v2845_v40 }
 0xb75   : > { %v2593_v47 = vld [vmem:[%s7478_s17 + $0x4a18] sm:$0xff]  ;;  %7135 = vmatpush.msra.mxu2 %v2973_v41 }
 0xb76   : > { %v2721_v48 = vld [vmem:[%s7478_s17 + $0x4e18] sm:$0xff]  ;;  %7050 = vmatpush.msrb.mxu1 %v2593_v47 }
 0xb77   : > { %v2841_v23 = vld [vmem:[%s7478_s17 + $0x51d8] sm:$0xff]  ;;  %7090 = vmatpush.msrb.mxu3 %v2721_v48  ;;  %7051 = vmatmul.f32.vlgmr.msrb.gmra.mxu1 %v8209_v0 }
 0xb78   : > { %v2909_v32 = vld [vmem:[%s7478_s17 + $0x53f8] sm:$0xff]  ;;  %7091 = vmatmul.f32.vlgmr.msrb.gmra.mxu3 %v8211_v1  ;;  %7096 = vmatpush.msra.mxu0 %v2841_v23 }
 0xb79   : > { %v2969_v14 = vld [vmem:[%s7478_s17 + $0x55d8] sm:$0xff]  ;;  %7115 = vmatpush.msra.mxu1 %v2909_v32 }
 0xb7a   : > { %v3037_v15 = vld [vmem:[%s7478_s17 + $0x57f8] sm:$0xff]  ;;  %7136 = vmatpush.msra.mxu2 %v2969_v14 }
 0xb7b   : > { %v2837_v62 = vld [vmem:[%s7478_s17 + $0x51b8] sm:$0xff]  ;;  %7155 = vmatpush.msra.mxu3 %v3037_v15 }
 0xb7c   : > { %v2905_v63 = vld [vmem:[%s7478_s17 + $0x53d8] sm:$0xff]  ;;  %7097 = vmatpush.msra.mxu0 %v2837_v62 }
 0xb7d   : > { %v2965_v27 = vld [vmem:[%s7478_s17 + $0x55b8] sm:$0xff]  ;;  %7116 = vmatpush.msra.mxu1 %v2905_v63 }
 0xb7e   : > { %v3033_v3 = vld [vmem:[%s7478_s17 + $0x57d8] sm:$0xff]  ;;  %7137 = vmatpush.msra.mxu2 %v2965_v27 }
 0xb7f   : > { %v2833_v42 = vld [vmem:[%s7478_s17 + $0x5198] sm:$0xff]  ;;  %7156 = vmatpush.msra.mxu3 %v3033_v3 }
 0xb80   : > { %v2901_v49 = vld [vmem:[%s7478_s17 + $0x53b8] sm:$0xff]  ;;  %7098 = vmatpush.msra.mxu0 %v2833_v42  ;;  %v7406_v42 = vld.sshfl [vmem:[#allocation1] sm:$0xff pattern:$0x73625140] }
 0xb81   : > { %v2961_v0 = vld [vmem:[%s7478_s17 + $0x5598] sm:$0xff]  ;;  %7117 = vmatpush.msra.mxu1 %v2901_v49  ;;  %v7407_v49 = vld.sshfl [vmem:[#allocation1 + $0x10] sm:$0xff pattern:$0x73625140] }
 0xb82   : > { %v3029_v1 = vld [vmem:[%s7478_s17 + $0x57b8] sm:$0xff]  ;;  %7138 = vmatpush.msra.mxu2 %v2961_v0 }
 0xb83   : > { %v2829_v18 = vld [vmem:[%s7478_s17 + $0x5178] sm:$0xff]  ;;  %7157 = vmatpush.msra.mxu3 %v3029_v1 }
 0xb84   : > { %v2897_v19 = vld [vmem:[%s7478_s17 + $0x5398] sm:$0xff]  ;;  %7099 = vmatpush.msra.mxu0 %v2829_v18 }
 0xb85   : > { %v2957_v59 = vld [vmem:[%s7478_s17 + $0x5578] sm:$0xff]  ;;  %7118 = vmatpush.msra.mxu1 %v2897_v19 }
 0xb86   : > { %v3025_v34 = vld [vmem:[%s7478_s17 + $0x5798] sm:$0xff]  ;;  %7139 = vmatpush.msra.mxu2 %v2957_v59  ;;  %v7408_v59 = vld.sshfl [vmem:[#allocation1 + $0x8] sm:$0xff pattern:$0x73625140] }
 0xb87   : > { %v2825_v20 = vld [vmem:[%s7478_s17 + $0x5158] sm:$0xff]  ;;  %7158 = vmatpush.msra.mxu3 %v3025_v34 }
 0xb88   : > { %v2893_v4 = vld [vmem:[%s7478_s17 + $0x5378] sm:$0xff]  ;;  %7100 = vmatpush.msra.mxu0 %v2825_v20 }
 0xb89   : > { %v2953_v24 = vld [vmem:[%s7478_s17 + $0x5558] sm:$0xff]  ;;  %7119 = vmatpush.msra.mxu1 %v2893_v4 }
 0xb8a   : > { %v3021_v25 = vld [vmem:[%s7478_s17 + $0x5778] sm:$0xff]  ;;  %7140 = vmatpush.msra.mxu2 %v2953_v24 }
 0xb8b   : > { %v2821_v29 = vld [vmem:[%s7478_s17 + $0x5138] sm:$0xff]  ;;  %7159 = vmatpush.msra.mxu3 %v3021_v25 }
 0xb8c   : > { %v2889_v43 = vld [vmem:[%s7478_s17 + $0x5358] sm:$0xff]  ;;  %7101 = vmatpush.msra.mxu0 %v2821_v29 }
 0xb8d   : > { %v2949_v5 = vld [vmem:[%s7478_s17 + $0x5538] sm:$0xff]  ;;  %7120 = vmatpush.msra.mxu1 %v2889_v43 }
 0xb8e   : > { %v3017_v50 = vld [vmem:[%s7478_s17 + $0x5758] sm:$0xff]  ;;  %7141 = vmatpush.msra.mxu2 %v2949_v5 }
 0xb8f   : > { %v2817_v60 = vld [vmem:[%s7478_s17 + $0x5118] sm:$0xff]  ;;  %7160 = vmatpush.msra.mxu3 %v3017_v50 }
 0xb90   : > { %v2885_v33 = vld [vmem:[%s7478_s17 + $0x5338] sm:$0xff]  ;;  %7102 = vmatpush.msra.mxu0 %v2817_v60 }
 0xb91   : > { %v2945_v26 = vld [vmem:[%s7478_s17 + $0x5518] sm:$0xff]  ;;  %7121 = vmatpush.msra.mxu1 %v2885_v33 }
 0xb92   : > { %v3013_v28 = vld [vmem:[%s7478_s17 + $0x5738] sm:$0xff]  ;;  %7142 = vmatpush.msra.mxu2 %v2945_v26 }
 0xb93   : > { %v2813_v6 = vld [vmem:[%s7478_s17 + $0x50f8] sm:$0xff]  ;;  %7161 = vmatpush.msra.mxu3 %v3013_v28 }
 0xb94   : > { %v2881_v44 = vld [vmem:[%s7478_s17 + $0x5318] sm:$0xff]  ;;  %7103 = vmatpush.msra.mxu0 %v2813_v6 }
 0xb95   : > { %v2941_v2 = vld [vmem:[%s7478_s17 + $0x54f8] sm:$0xff]  ;;  %7122 = vmatpush.msra.mxu1 %v2881_v44 }
 0xb96   : > { %v3009_v45 = vld [vmem:[%s7478_s17 + $0x5718] sm:$0xff]  ;;  %7143 = vmatpush.msra.mxu2 %v2941_v2 }
 0xb97   : > { %v2809_v7 = vld [vmem:[%s7478_s17 + $0x50d8] sm:$0xff]  ;;  %7162 = vmatpush.msra.mxu3 %v3009_v45 }
 0xb98   : > { %v2877_v10 = vld [vmem:[%s7478_s17 + $0x52f8] sm:$0xff]  ;;  %7104 = vmatpush.msra.mxu0 %v2809_v7 }
 0xb99   : > { %v2937_v37 = vld [vmem:[%s7478_s17 + $0x54d8] sm:$0xff]  ;;  %7123 = vmatpush.msra.mxu1 %v2877_v10 }
 0xb9a   : > { %v3005_v38 = vld [vmem:[%s7478_s17 + $0x56f8] sm:$0xff]  ;;  %7144 = vmatpush.msra.mxu2 %v2937_v37 }
 0xb9b   : > { %v2805_v30 = vld [vmem:[%s7478_s17 + $0x50b8] sm:$0xff]  ;;  %7163 = vmatpush.msra.mxu3 %v3005_v38 }
 0xb9c   : > { %v2873_v31 = vld [vmem:[%s7478_s17 + $0x52d8] sm:$0xff]  ;;  %7105 = vmatpush.msra.mxu0 %v2805_v30 }
 0xb9d   : > { %v2933_v17 = vld [vmem:[%s7478_s17 + $0x54b8] sm:$0xff]  ;;  %7124 = vmatpush.msra.mxu1 %v2873_v31 }
 0xb9e   : > { %v3001_v21 = vld [vmem:[%s7478_s17 + $0x56d8] sm:$0xff]  ;;  %7145 = vmatpush.msra.mxu2 %v2933_v17 }
 0xb9f   : > { %v2801_v55 = vld [vmem:[%s7478_s17 + $0x5098] sm:$0xff]  ;;  %7164 = vmatpush.msra.mxu3 %v3001_v21 }
 0xba0   : > { %v2869_v22 = vld [vmem:[%s7478_s17 + $0x52b8] sm:$0xff]  ;;  %7106 = vmatpush.msra.mxu0 %v2801_v55 }
 0xba1   : > { %v2929_v51 = vld [vmem:[%s7478_s17 + $0x5498] sm:$0xff]  ;;  %7125 = vmatpush.msra.mxu1 %v2869_v22 }
 0xba2   : > { %v2997_v52 = vld [vmem:[%s7478_s17 + $0x56b8] sm:$0xff]  ;;  %7146 = vmatpush.msra.mxu2 %v2929_v51 }
 0xba3   : > { %v2797_v13 = vld [vmem:[%s7478_s17 + $0x5078] sm:$0xff]  ;;  %7165 = vmatpush.msra.mxu3 %v2997_v52 }
 0xba4   : > { %v2865_v56 = vld [vmem:[%s7478_s17 + $0x5298] sm:$0xff]  ;;  %7107 = vmatpush.msra.mxu0 %v2797_v13 }
 0xba5   : > { %v2925_v46 = vld [vmem:[%s7478_s17 + $0x5478] sm:$0xff]  ;;  %7126 = vmatpush.msra.mxu1 %v2865_v56 }
 0xba6   : > { %v2993_v54 = vld [vmem:[%s7478_s17 + $0x5698] sm:$0xff]  ;;  %7147 = vmatpush.msra.mxu2 %v2925_v46 }
 0xba7   : > { %v2793_v36 = vld [vmem:[%s7478_s17 + $0x5058] sm:$0xff]  ;;  %7166 = vmatpush.msra.mxu3 %v2993_v54 }
 0xba8   : > { %v2861_v39 = vld [vmem:[%s7478_s17 + $0x5278] sm:$0xff]  ;;  %7108 = vmatpush.msra.mxu0 %v2793_v36 }
 0xba9   : > { %v2921_v8 = vld [vmem:[%s7478_s17 + $0x5458] sm:$0xff]  ;;  %7127 = vmatpush.msra.mxu1 %v2861_v39 }
 0xbaa   : > { %v2989_v9 = vld [vmem:[%s7478_s17 + $0x5678] sm:$0xff]  ;;  %7148 = vmatpush.msra.mxu2 %v2921_v8  ;;  %v4413_v8 = vadd.f32 %v9497_v61, %v9489_v57 }
 0xbab   : > { %v2789_v40 = vld [vmem:[%s7478_s17 + $0x5038] sm:$0xff]  ;;  %7167 = vmatpush.msra.mxu3 %v2989_v9 }
 0xbac   : > { %v2857_v41 = vld [vmem:[%s7478_s17 + $0x5258] sm:$0xff]  ;;  %7109 = vmatpush.msra.mxu0 %v2789_v40 }
 0xbad   : > { %v2917_v47 = vld [vmem:[%s7478_s17 + $0x5438] sm:$0xff]  ;;  %7128 = vmatpush.msra.mxu1 %v2857_v41 }
 0xbae   : > { %v2985_v48 = vld [vmem:[%s7478_s17 + $0x5658] sm:$0xff]  ;;  %7149 = vmatpush.msra.mxu2 %v2917_v47 }
 0xbaf   : > { %v2785_v23 = vld [vmem:[%s7478_s17 + $0x5018] sm:$0xff]  ;;  %7168 = vmatpush.msra.mxu3 %v2985_v48 }
 0xbb0   : > { %v2853_v32 = vld [vmem:[%s7478_s17 + $0x5238] sm:$0xff]  ;;  %7110 = vmatpush.msra.mxu0 %v2785_v23 }
 0xbb1   : > { %v2913_v14 = vld [vmem:[%s7478_s17 + $0x5418] sm:$0xff]  ;;  %7129 = vmatpush.msra.mxu1 %v2853_v32  ;;  %7111 = vmatmul.f32.vlgmr.msra.gmra.mxu0 %v7406_v42  ;;  %v6332_v32 = vpop.f32.mrf.mxu1 }
 0xbb2   : > { %v2981_v15 = vld [vmem:[%s7478_s17 + $0x5638] sm:$0xff]  ;;  %7150 = vmatpush.msra.mxu2 %v2913_v14  ;;  %v4433_v14 = vadd.f32 %v9501_v53, %v4413_v8 }
 0xbb3   : > { %v3101_v62 = vld [vmem:[%s7478_s17 + $0x59f8] sm:$0xff]  ;;  %7169 = vmatpush.msra.mxu3 %v2981_v15  ;;  %7151 = vmatmul.f32.vlgmr.msra.gmra.mxu2 %v7407_v49 }
 0xbb4   : > { %v3229_v63 = vld [vmem:[%s7478_s17 + $0x5df8] sm:$0xff]  ;;  %7175 = vmatpush.msrb.mxu0 %v3101_v62 }
 0xbb5   : > { %v2849_v27 = vld [vmem:[%s7478_s17 + $0x5218] sm:$0xff]  ;;  %7215 = vmatpush.msrb.mxu2 %v3229_v63  ;;  %v3453_v63 = vadd.f32 %v9207_v11, %v9201_v58  ;;  %v4453_v11 = vadd.f32 %v9507_v35, %v4433_v14  ;;  %v11268_v35 = vld [vmem:[#allocation47_spill] sm:$0xff]  ;;  %v11280_v14 = vld [vmem:[#allocation53_spill] sm:$0xff] }
 0xbb6   : > { %v2977_v3 = vld [vmem:[%s7478_s17 + $0x5618] sm:$0xff]  ;;  %7130 = vmatpush.msra.mxu1 %v2849_v27  ;;  %v6312_v27 = vpop.f32.mrf.mxu0 }
 0xbb7   : > { %v3097_v0 = vld [vmem:[%s7478_s17 + $0x59d8] sm:$0xff]  ;;  %7170 = vmatpush.msra.mxu3 %v2977_v3  ;;  %7131 = vmatmul.f32.vlgmr.msra.gmra.mxu1 %v7408_v59  ;;  %v6333_v49 = vadd.f32 %v6332_v32, %v6312_v27 }
 0xbb8   : > { %v3165_v1 = vld [vmem:[%s7478_s17 + $0x5bf8] sm:$0xff]  ;;  %7176 = vmatpush.msrb.mxu0 %v3097_v0 }
 0xbb9   : > { %v3225_v18 = vld [vmem:[%s7478_s17 + $0x5dd8] sm:$0xff]  ;;  %7195 = vmatpush.msrb.mxu1 %v3165_v1  ;;  %v6352_v1 = vpop.f32.mrf.mxu2 }
 0xbba   : > { %v3293_v19 = vld [vmem:[%s7478_s17 + $0x5ff8] sm:$0xff]  ;;  %7216 = vmatpush.msrb.mxu2 %v3225_v18 }
 0xbbb   : > { %v7409_v34 = vld.sshfl [vmem:[#allocation1 + $0x18] sm:$0xff pattern:$0x73625140]  ;;  %7235 = vmatpush.msrb.mxu3 %v3293_v19 }
 0xbbc   : > { %7171 = vmatmul.f32.vlgmr.msra.gmra.mxu3 %v7409_v34  ;;  %v3093_v20 = vld [vmem:[%s7478_s17 + $0x59b8] sm:$0xff]  ;;  %v3473_v34 = vadd.f32 %v9211_v16, %v3453_v63 }
 0xbbd   : > { %v3161_v4 = vld [vmem:[%s7478_s17 + $0x5bd8] sm:$0xff]  ;;  %7177 = vmatpush.msrb.mxu0 %v3093_v20 }
 0xbbe   : > { %v3221_v24 = vld [vmem:[%s7478_s17 + $0x5db8] sm:$0xff]  ;;  %7196 = vmatpush.msrb.mxu1 %v3161_v4 }
 0xbbf   : > { %v3289_v25 = vld [vmem:[%s7478_s17 + $0x5fd8] sm:$0xff]  ;;  %7217 = vmatpush.msrb.mxu2 %v3221_v24  ;;  %v6353_v24 = vadd.f32 %v6352_v1, %v6333_v49  ;;  %v11282_v49 = vld [vmem:[#allocation54_spill] sm:$0xff]  ;;  %v11283_v1 = vld [vmem:[#allocation9_spill] sm:$0xff] }
 0xbc0   : > { %v3089_v29 = vld [vmem:[%s7478_s17 + $0x5998] sm:$0xff]  ;;  %7236 = vmatpush.msrb.mxu3 %v3289_v25 }
 0xbc1   : > { %v3157_v43 = vld [vmem:[%s7478_s17 + $0x5bb8] sm:$0xff]  ;;  %7178 = vmatpush.msrb.mxu0 %v3089_v29 }
 0xbc2   : > { %v3217_v5 = vld [vmem:[%s7478_s17 + $0x5d98] sm:$0xff]  ;;  %7197 = vmatpush.msrb.mxu1 %v3157_v43  ;;  %v6372_v43 = vpop.f32.mrf.mxu3 }
 0xbc3   : > { %v3285_v50 = vld [vmem:[%s7478_s17 + $0x5fb8] sm:$0xff]  ;;  %7218 = vmatpush.msrb.mxu2 %v3217_v5  ;;  %v4473_v5 = vadd.f32 %v11268_v35, %v4453_v11 }
 0xbc4   : > { %v3085_v60 = vld [vmem:[%s7478_s17 + $0x5978] sm:$0xff]  ;;  %7237 = vmatpush.msrb.mxu3 %v3285_v50 }
 0xbc5   : > { %v3153_v33 = vld [vmem:[%s7478_s17 + $0x5b98] sm:$0xff]  ;;  %7179 = vmatpush.msrb.mxu0 %v3085_v60  ;;  %v11269_v60 = vld [vmem:[#allocation2_spill] sm:$0xff] }
 0xbc6   : > { %v3213_v26 = vld [vmem:[%s7478_s17 + $0x5d78] sm:$0xff]  ;;  %7198 = vmatpush.msrb.mxu1 %v3153_v33  ;;  %v3493_v33 = vadd.f32 %v11269_v60, %v3473_v34  ;;  %v11285_v34 = vld [vmem:[#allocation10_spill] sm:$0xff] }
 0xbc7   : > { %v3281_v28 = vld [vmem:[%s7478_s17 + $0x5f98] sm:$0xff]  ;;  %7219 = vmatpush.msrb.mxu2 %v3213_v26  ;;  %v6373_v26 = vadd.f32 %v6372_v43, %v6353_v24  ;;  %v11287_v43 = vld [vmem:[#allocation11_spill] sm:$0xff] }
 0xbc8   : > { %v3081_v6 = vld [vmem:[%s7478_s17 + $0x5958] sm:$0xff]  ;;  %7238 = vmatpush.msrb.mxu3 %v3281_v28  ;;  %v7410_v28 = vld.sshfl [vmem:[#allocation1 + $0x20] sm:$0xff pattern:$0x73625140] }
 0xbc9   : > { %v3149_v44 = vld [vmem:[%s7478_s17 + $0x5b78] sm:$0xff]  ;;  %7180 = vmatpush.msrb.mxu0 %v3081_v6  ;;  %v7411_v6 = vld.sshfl [vmem:[#allocation1 + $0x30] sm:$0xff pattern:$0x73625140] }
 0xbca   : > { %v3209_v2 = vld [vmem:[%s7478_s17 + $0x5d58] sm:$0xff]  ;;  %7199 = vmatpush.msrb.mxu1 %v3149_v44  ;;  %v6392_v44 = vpop.f32.mrf.mxu0 }
 0xbcb   : > { %v3277_v45 = vld [vmem:[%s7478_s17 + $0x5f78] sm:$0xff]  ;;  %7220 = vmatpush.msrb.mxu2 %v3209_v2 }
 0xbcc   : > { %v3077_v7 = vld [vmem:[%s7478_s17 + $0x5938] sm:$0xff]  ;;  %7239 = vmatpush.msrb.mxu3 %v3277_v45 }
 0xbcd   : > { %v3145_v10 = vld [vmem:[%s7478_s17 + $0x5b58] sm:$0xff]  ;;  %7181 = vmatpush.msrb.mxu0 %v3077_v7  ;;  %v7412_v7 = vld.sshfl [vmem:[#allocation1 + $0x28] sm:$0xff pattern:$0x73625140] }
 0xbce   : > { %v3205_v37 = vld [vmem:[%s7478_s17 + $0x5d38] sm:$0xff]  ;;  %7200 = vmatpush.msrb.mxu1 %v3145_v10 }
 0xbcf   : > { %v3273_v38 = vld [vmem:[%s7478_s17 + $0x5f58] sm:$0xff]  ;;  %7221 = vmatpush.msrb.mxu2 %v3205_v37  ;;  %v11271_v37 = vld [vmem:[#allocation3_spill] sm:$0xff] }
 0xbd0   : > { %v3073_v30 = vld [vmem:[%s7478_s17 + $0x5918] sm:$0xff]  ;;  %7240 = vmatpush.msrb.mxu3 %v3273_v38  ;;  %v3513_v38 = vadd.f32 %v11271_v37, %v3493_v33 }
 0xbd1   : > { %v3141_v31 = vld [vmem:[%s7478_s17 + $0x5b38] sm:$0xff]  ;;  %7182 = vmatpush.msrb.mxu0 %v3073_v30  ;;  %v6393_v30 = vadd.f32 %v6392_v44, %v6373_v26 }
 0xbd2   : > { %v3201_v17 = vld [vmem:[%s7478_s17 + $0x5d18] sm:$0xff]  ;;  %7201 = vmatpush.msrb.mxu1 %v3141_v31  ;;  %v6412_v31 = vpop.f32.mrf.mxu1 }
 0xbd3   : > { %v3269_v21 = vld [vmem:[%s7478_s17 + $0x5f38] sm:$0xff]  ;;  %7222 = vmatpush.msrb.mxu2 %v3201_v17  ;;  %v11272_v17 = vld [vmem:[#allocation49_spill] sm:$0xff] }
 0xbd4   : > { %v3069_v55 = vld [vmem:[%s7478_s17 + $0x58f8] sm:$0xff]  ;;  %7241 = vmatpush.msrb.mxu3 %v3269_v21 }
 0xbd5   : > { %v3137_v22 = vld [vmem:[%s7478_s17 + $0x5b18] sm:$0xff]  ;;  %7183 = vmatpush.msrb.mxu0 %v3069_v55 }
 0xbd6   : > { %v3197_v51 = vld [vmem:[%s7478_s17 + $0x5cf8] sm:$0xff]  ;;  %7202 = vmatpush.msrb.mxu1 %v3137_v22 }
 0xbd7   : > { %v3265_v52 = vld [vmem:[%s7478_s17 + $0x5f18] sm:$0xff]  ;;  %7223 = vmatpush.msrb.mxu2 %v3197_v51  ;;  %v6413_v51 = vadd.f32 %v6412_v31, %v6393_v30  ;;  %v11293_v31 = vld [vmem:[#allocation14_spill] sm:$0xff] }
 0xbd8   : > { %v3065_v13 = vld [vmem:[%s7478_s17 + $0x58d8] sm:$0xff]  ;;  %7242 = vmatpush.msrb.mxu3 %v3265_v52  ;;  %v6432_v52 = vpop.f32.mrf.mxu2 }
 0xbd9   : > { %v3133_v56 = vld [vmem:[%s7478_s17 + $0x5af8] sm:$0xff]  ;;  %7184 = vmatpush.msrb.mxu0 %v3065_v13  ;;  %v11274_v13 = vld [vmem:[#allocation50_spill] sm:$0xff]  ;;  %v6433_v8 = vadd.f32 %v6432_v52, %v6413_v51  ;;  %v11295_v52 = vld [vmem:[#allocation15_spill] sm:$0xff] }
 0xbda   : > { %v3193_v46 = vld [vmem:[%s7478_s17 + $0x5cd8] sm:$0xff]  ;;  %7203 = vmatpush.msrb.mxu1 %v3133_v56  ;;  %v6492_v63 = vpop.f32.mrf.mxu1 }
 0xbdb   : > { %v3261_v54 = vld [vmem:[%s7478_s17 + $0x5ef8] sm:$0xff]  ;;  %7224 = vmatpush.msrb.mxu2 %v3193_v46  ;;  %v11275_v46 = vld [vmem:[#allocation5_spill] sm:$0xff] }
 0xbdc   : > { %v3061_v36 = vld [vmem:[%s7478_s17 + $0x58b8] sm:$0xff]  ;;  %7243 = vmatpush.msrb.mxu3 %v3261_v54 }
 0xbdd   : > { %v3129_v39 = vld [vmem:[%s7478_s17 + $0x5ad8] sm:$0xff]  ;;  %7185 = vmatpush.msrb.mxu0 %v3061_v36  ;;  %v11276_v36 = vld [vmem:[#allocation51_spill] sm:$0xff] }
 0xbde   : > { %v3189_v9 = vld [vmem:[%s7478_s17 + $0x5cb8] sm:$0xff]  ;;  %7204 = vmatpush.msrb.mxu1 %v3129_v39 }
 0xbdf   : > { %v3257_v40 = vld [vmem:[%s7478_s17 + $0x5ed8] sm:$0xff]  ;;  %7225 = vmatpush.msrb.mxu2 %v3189_v9  ;;  %v6452_v9 = vpop.f32.mrf.mxu3 }
 0xbe0   : > { %v3057_v41 = vld [vmem:[%s7478_s17 + $0x5898] sm:$0xff]  ;;  %7244 = vmatpush.msrb.mxu3 %v3257_v40  ;;  %v11277_v40 = vld [vmem:[#allocation6_spill] sm:$0xff]  ;;  %v6453_v32 = vadd.f32 %v6452_v9, %v6433_v8 }
 0xbe1   : > { %v3125_v47 = vld [vmem:[%s7478_s17 + $0x5ab8] sm:$0xff]  ;;  %7186 = vmatpush.msrb.mxu0 %v3057_v41 }
 0xbe2   : > { %v3185_v48 = vld [vmem:[%s7478_s17 + $0x5c98] sm:$0xff]  ;;  %7205 = vmatpush.msrb.mxu1 %v3125_v47  ;;  %v6472_v47 = vpop.f32.mrf.mxu0  ;;  %v6572_v60 = vpop.f32.mrf.mxu1 }
 0xbe3   : > { %v3253_v23 = vld [vmem:[%s7478_s17 + $0x5eb8] sm:$0xff]  ;;  %7226 = vmatpush.msrb.mxu2 %v3185_v48 }
 0xbe4   : > { %v3053_v61 = vld [vmem:[%s7478_s17 + $0x5878] sm:$0xff]  ;;  %7245 = vmatpush.msrb.mxu3 %v3253_v23 }
 0xbe5   : > { %v3121_v57 = vld [vmem:[%s7478_s17 + $0x5a98] sm:$0xff]  ;;  %7187 = vmatpush.msrb.mxu0 %v3053_v61  ;;  %v11279_v61 = vld [vmem:[#allocation7_spill] sm:$0xff] }
 0xbe6   : > { %v3181_v15 = vld [vmem:[%s7478_s17 + $0x5c78] sm:$0xff]  ;;  %7206 = vmatpush.msrb.mxu1 %v3121_v57 }
 0xbe7   : > { %v3249_v62 = vld [vmem:[%s7478_s17 + $0x5e98] sm:$0xff]  ;;  %7227 = vmatpush.msrb.mxu2 %v3181_v15 }
 0xbe8   : > { %v3049_v3 = vld [vmem:[%s7478_s17 + $0x5858] sm:$0xff]  ;;  %7246 = vmatpush.msrb.mxu3 %v3249_v62  ;;  %v6473_v62 = vadd.f32 %v6472_v47, %v6453_v32  ;;  %v11300_v32 = vld [vmem:[#allocation63_spill] sm:$0xff] }
 0xbe9   : > { %v3117_v42 = vld [vmem:[%s7478_s17 + $0x5a78] sm:$0xff]  ;;  %7188 = vmatpush.msrb.mxu0 %v3049_v3 }
 0xbea   : > { %v3177_v53 = vld [vmem:[%s7478_s17 + $0x5c58] sm:$0xff]  ;;  %7207 = vmatpush.msrb.mxu1 %v3117_v42  ;;  %v6512_v42 = vpop.f32.mrf.mxu2 }
 0xbeb   : > { %v3245_v0 = vld [vmem:[%s7478_s17 + $0x5e78] sm:$0xff]  ;;  %7228 = vmatpush.msrb.mxu2 %v3177_v53 }
 0xbec   : > { %v3045_v18 = vld [vmem:[%s7478_s17 + $0x5838] sm:$0xff]  ;;  %7247 = vmatpush.msrb.mxu3 %v3245_v0  ;;  %v6493_v0 = vadd.f32 %v6492_v63, %v6473_v62 }
 0xbed   : > { %v3113_v58 = vld [vmem:[%s7478_s17 + $0x5a58] sm:$0xff]  ;;  %7189 = vmatpush.msrb.mxu0 %v3045_v18 }
 0xbee   : > { %v3173_v19 = vld [vmem:[%s7478_s17 + $0x5c38] sm:$0xff]  ;;  %7208 = vmatpush.msrb.mxu1 %v3113_v58  ;;  %v11284_v58 = vld [vmem:[#allocation55_spill] sm:$0xff] }
 0xbef   : > { %v3241_v59 = vld [vmem:[%s7478_s17 + $0x5e58] sm:$0xff]  ;;  %7229 = vmatpush.msrb.mxu2 %v3173_v19  ;;  %v6513_v19 = vadd.f32 %v6512_v42, %v6493_v0  ;;  %v11304_v0 = vld [vmem:[#allocation65_spill] sm:$0xff] }
 0xbf0   : > { %v3041_v20 = vld [vmem:[%s7478_s17 + $0x5818] sm:$0xff]  ;;  %7248 = vmatpush.msrb.mxu3 %v3241_v59  ;;  %v6532_v59 = vpop.f32.mrf.mxu3 }
 0xbf1   : > { %v3109_v4 = vld [vmem:[%s7478_s17 + $0x5a38] sm:$0xff]  ;;  %7190 = vmatpush.msrb.mxu0 %v3041_v20 }
 0xbf2   : > { %v3169_v25 = vld [vmem:[%s7478_s17 + $0x5c18] sm:$0xff]  ;;  %7209 = vmatpush.msrb.mxu1 %v3109_v4  ;;  %7191 = vmatmul.f32.vlgmr.msrb.gmra.mxu0 %v7410_v28  ;;  %v6552_v4 = vpop.f32.mrf.mxu0  ;;  %v6592_v28 = vpop.f32.mrf.mxu2 }
 0xbf3   : > { %v3237_v29 = vld [vmem:[%s7478_s17 + $0x5e38] sm:$0xff]  ;;  %7230 = vmatpush.msrb.mxu2 %v3169_v25 }
 0xbf4   : > { %v3105_v50 = vld [vmem:[%s7478_s17 + $0x5a18] sm:$0xff]  ;;  %7249 = vmatpush.msrb.mxu3 %v3237_v29  ;;  %7231 = vmatmul.f32.vlgmr.msrb.gmra.mxu2 %v7411_v6  ;;  %v6533_v29 = vadd.f32 %v6532_v59, %v6513_v19  ;;  %v11290_v6 = vld [vmem:[#allocation58_spill] sm:$0xff] }
 0xbf5   : > { %v3233_v16 = vld [vmem:[%s7478_s17 + $0x5e18] sm:$0xff]  ;;  %7210 = vmatpush.msrb.mxu1 %v3105_v50 }
 0xbf6   : > { %7250 = vmatpush.msrb.mxu3 %v3233_v16  ;;  %v11270_v2 = vld [vmem:[#allocation48_spill] sm:$0xff]  ;;  %7211 = vmatmul.f32.vlgmr.msrb.gmra.mxu1 %v7412_v7  ;;  %v6553_v16 = vadd.f32 %v6552_v4, %v6533_v29  ;;  %v11308_v29 = vld [vmem:[#allocation67_spill] sm:$0xff] }
 0xbf7   : > { %v4493_v45 = vadd.f32 %v11270_v2, %v4473_v5  ;;  %v7413_v10 = vld.sshfl [vmem:[#allocation1 + $0x38] sm:$0xff pattern:$0x73625140]  ;;  %v11288_v5 = vld [vmem:[#allocation57_spill] sm:$0xff] }
 0xbf8   : > { %7251 = vmatmul.f32.vlgmr.msrb.gmra.mxu3 %v7413_v10  ;;  %v11273_v55 = vld [vmem:[#allocation4_spill] sm:$0xff]  ;;  %v6573_v2 = vadd.f32 %v6572_v60, %v6553_v16  ;;  %v11292_v10 = vld [vmem:[#allocation59_spill] sm:$0xff]  ;;  %v6612_v30 = vpop.f32.mrf.mxu3 }
 0xbf9   : > { %v4513_v21 = vadd.f32 %v11272_v17, %v4493_v45  ;;  %v3533_v22 = vadd.f32 %v11273_v55, %v3513_v38  ;;  %v11278_v48 = vld [vmem:[#allocation52_spill] sm:$0xff]  ;;  %v11291_v45 = vld [vmem:[#allocation13_spill] sm:$0xff] }
 0xbfa   : > { %v11281_v27 = vld [vmem:[#allocation8_spill] sm:$0xff]  ;;  %v6593_v38 = vadd.f32 %v6592_v28, %v6573_v2  ;;  %v6672_v9 = vpop.f32.mrf.mxu2  ;;  %v11312_v2 = vld [vmem:[#allocation69_spill] sm:$0xff] }
 0xbfb   : > { %v4533_v56 = vadd.f32 %v11274_v13, %v4513_v21  ;;  %v3553_v54 = vadd.f32 %v11275_v46, %v3533_v22  ;;  %v11286_v24 = vld [vmem:[#allocation56_spill] sm:$0xff]  ;;  %v6632_v21 = vpop.f32.mrf.mxu0 }
 0xbfc   : > { %v11289_v33 = vld [vmem:[#allocation12_spill] sm:$0xff]  ;;  %v6613_v51 = vadd.f32 %v6612_v30, %v6593_v38 }
 0xbfd   : > { %v4553_v39 = vadd.f32 %v11276_v36, %v4533_v56  ;;  %v3573_v41 = vadd.f32 %v11277_v40, %v3553_v54  ;;  %v11294_v55 = vld [vmem:[#allocation60_spill] sm:$0xff]  ;;  %v11296_v56 = vld [vmem:[#allocation61_spill] sm:$0xff]  ;;  %v6652_v36 = vpop.f32.mrf.mxu1  ;;  %v11298_v40 = vld [vmem:[#allocation62_spill] sm:$0xff] }
 0xbfe   : > { %v6633_v54 = vadd.f32 %v6632_v21, %v6613_v51  ;;  %v11316_v51 = vld [vmem:[#allocation71_spill] sm:$0xff] }
 0xbff   : > { %v4573_v23 = vadd.f32 %v11278_v48, %v4553_v39  ;;  %v3593_v57 = vadd.f32 %v11279_v61, %v3573_v41  ;;  %v11297_v39 = vld [vmem:[#allocation16_spill] sm:$0xff]  ;;  %v11299_v48 = vld [vmem:[#allocation17_spill] sm:$0xff] }
 0xc00   : > { %v6653_v47 = vadd.f32 %v6652_v36, %v6633_v54 }
 0xc01   : > { %v4593_v15 = vadd.f32 %v11280_v14, %v4573_v23  ;;  %v3613_v3 = vadd.f32 %v11281_v27, %v3593_v57  ;;  %v6692_v14 = vpop.f32.mrf.mxu3  ;;  %v11302_v27 = vld [vmem:[#allocation64_spill] sm:$0xff] }
 0xc02   : > { %v6673_v57 = vadd.f32 %v6672_v9, %v6653_v47  ;;  %v6752_v59 = vpop.f32.mrf.mxu2  ;;  %v11320_v47 = vld [vmem:[#allocation73_spill] sm:$0xff] }
 0xc03   : > { %v4613_v53 = vadd.f32 %v11282_v49, %v4593_v15  ;;  %v3633_v18 = vadd.f32 %v11283_v1, %v3613_v3  ;;  %v11301_v15 = vld [vmem:[#allocation18_spill] sm:$0xff]  ;;  %v6712_v63 = vpop.f32.mrf.mxu0  ;;  %v11303_v49 = vld [vmem:[#allocation19_spill] sm:$0xff] }
 0xc04   : > { %v6693_v42 = vadd.f32 %v6692_v14, %v6673_v57 }
 0xc05   : > { %v4633_v11 = vadd.f32 %v11284_v58, %v4613_v53  ;;  %v3653_v20 = vadd.f32 %v11285_v34, %v3633_v18  ;;  %v6732_v58 = vpop.f32.mrf.mxu1  ;;  %v11306_v34 = vld [vmem:[#allocation66_spill] sm:$0xff] }
 0xc06   : > { %v6713_v18 = vadd.f32 %v6712_v63, %v6693_v42  ;;  %v11324_v42 = vld [vmem:[#allocation75_spill] sm:$0xff] }
 0xc07   : > { %v4653_v25 = vadd.f32 %v11286_v24, %v4633_v11  ;;  %v3673_v35 = vadd.f32 %v11287_v43, %v3653_v20  ;;  %v11305_v11 = vld [vmem:[#allocation20_spill] sm:$0xff]  ;;  %v11307_v24 = vld [vmem:[#allocation21_spill] sm:$0xff] }
 0xc08   : > { %v6733_v4 = vadd.f32 %v6732_v58, %v6713_v18 }
 0xc09   : > { %v4673_v50 = vadd.f32 %v11288_v5, %v4653_v25  ;;  %v3693_v26 = vadd.f32 %v11289_v33, %v3673_v35  ;;  %v6772_v5 = vpop.f32.mrf.mxu3  ;;  %v11310_v33 = vld [vmem:[#allocation68_spill] sm:$0xff] }
 0xc0a   : > { %v6753_v35 = vadd.f32 %v6752_v59, %v6733_v4  ;;  %v6832_v30 = vpop.f32.mrf.mxu2  ;;  %v11328_v4 = vld [vmem:[#allocation77_spill] sm:$0xff] }
 0xc0b   : > { %v4693_v44 = vadd.f32 %v11290_v6, %v4673_v50  ;;  %v3713_v7 = vadd.f32 %v11291_v45, %v3693_v26  ;;  %v11309_v50 = vld [vmem:[#allocation22_spill] sm:$0xff]  ;;  %v6792_v60 = vpop.f32.mrf.mxu0  ;;  %v11311_v6 = vld [vmem:[#allocation23_spill] sm:$0xff] }
 0xc0c   : > { %v6773_v28 = vadd.f32 %v6772_v5, %v6753_v35 }
 0xc0d   : > { %v4713_v37 = vadd.f32 %v11292_v10, %v4693_v44  ;;  %v3733_v17 = vadd.f32 %v11293_v31, %v3713_v7  ;;  %v6812_v10 = vpop.f32.mrf.mxu1  ;;  %v11314_v31 = vld [vmem:[#allocation70_spill] sm:$0xff] }
 0xc0e   : > { %v6793_v7 = vadd.f32 %v6792_v60, %v6773_v28  ;;  %v11332_v28 = vld [vmem:[#allocation79_spill] sm:$0xff] }
 0xc0f   : > { %v4733_v22 = vadd.f32 %v11294_v55, %v4713_v37  ;;  %v3753_v13 = vadd.f32 %v11295_v52, %v3733_v17  ;;  %v11313_v37 = vld [vmem:[#allocation24_spill] sm:$0xff]  ;;  %v11315_v55 = vld [vmem:[#allocation25_spill] sm:$0xff] }
 0xc10   : > { %v6813_v21 = vadd.f32 %v6812_v10, %v6793_v7  ;;  %v11335_v10 = vld [vmem:[#allocation34_spill] sm:$0xff] }
 0xc11   : > { %v4753_v46 = vadd.f32 %v11296_v56, %v4733_v22  ;;  %v3773_v8 = vadd.f32 %v11297_v39, %v3753_v13  ;;  %v6852_v56 = vpop.f32.mrf.mxu3  ;;  %v11318_v39 = vld [vmem:[#allocation72_spill] sm:$0xff] }
 0xc12   : > { %v6833_v13 = vadd.f32 %v6832_v30, %v6813_v21  ;;  %v6912_v14 = vpop.f32.mrf.mxu2  ;;  %v11337_v21 = vld [vmem:[#allocation35_spill] sm:$0xff] }
 0xc13   : > { %v4773_v41 = vadd.f32 %v11298_v40, %v4753_v46  ;;  %v3793_v23 = vadd.f32 %v11299_v48, %v3773_v8  ;;  %v11317_v46 = vld [vmem:[#allocation26_spill] sm:$0xff]  ;;  %v6872_v36 = vpop.f32.mrf.mxu0  ;;  %v11319_v40 = vld [vmem:[#allocation27_spill] sm:$0xff] }
 0xc14   : > { %v6853_v9 = vadd.f32 %v6852_v56, %v6833_v13 }
 0xc15   : > { %v4793_v61 = vadd.f32 %v11300_v32, %v4773_v41  ;;  %v3813_v62 = vadd.f32 %v11301_v15, %v3793_v23  ;;  %v6892_v32 = vpop.f32.mrf.mxu1  ;;  %v11322_v15 = vld [vmem:[#allocation74_spill] sm:$0xff] }
 0xc16   : > { %v6873_v23 = vadd.f32 %v6872_v36, %v6853_v9  ;;  %v11340_v36 = vld [vmem:[#allocation82_spill] sm:$0xff]  ;;  %v11341_v9 = vld [vmem:[#allocation37_spill] sm:$0xff] }
 0xc17   : > { %v4813_v3 = vadd.f32 %v11302_v27, %v4793_v61  ;;  %v3833_v53 = vadd.f32 %v11303_v49, %v3813_v62  ;;  %v11321_v61 = vld [vmem:[#allocation28_spill] sm:$0xff]  ;;  %v11323_v27 = vld [vmem:[#allocation29_spill] sm:$0xff] }
 0xc18   : > { %v6893_v63 = vadd.f32 %v6892_v32, %v6873_v23 }
 0xc19   : > { %v4833_v1 = vadd.f32 %v11304_v0, %v4813_v3  ;;  %v3853_v19 = vadd.f32 %v11305_v11, %v3833_v53  ;;  %v6932_v0 = vpop.f32.mrf.mxu3  ;;  %v11326_v11 = vld [vmem:[#allocation76_spill] sm:$0xff] }
 0xc1a   : > { %v6913_v53 = vadd.f32 %v6912_v14, %v6893_v63  ;;  %v6992_v5 = vpop.f32.mrf.mxu2  ;;  %v11344_v14 = vld [vmem:[#allocation84_spill] sm:$0xff]  ;;  %v11345_v63 = vld [vmem:[#allocation39_spill] sm:$0xff] }
 0xc1b   : > { %v4853_v20 = vadd.f32 %v11306_v34, %v4833_v1  ;;  %v3873_v25 = vadd.f32 %v11307_v24, %v3853_v19  ;;  %v11325_v1 = vld [vmem:[#allocation30_spill] sm:$0xff]  ;;  %v6952_v58 = vpop.f32.mrf.mxu0  ;;  %v11327_v34 = vld [vmem:[#allocation31_spill] sm:$0xff] }
 0xc1c   : > { %v6933_v59 = vadd.f32 %v6932_v0, %v6913_v53 }
 0xc1d   : > { %v4873_v43 = vadd.f32 %v11308_v29, %v4853_v20  ;;  %v3893_v16 = vadd.f32 %v11309_v50, %v3873_v25  ;;  %v6972_v29 = vpop.f32.mrf.mxu1  ;;  %v11330_v50 = vld [vmem:[#allocation78_spill] sm:$0xff] }
 0xc1e   : > { %v6953_v25 = vadd.f32 %v6952_v58, %v6933_v59  ;;  %v11348_v58 = vld [vmem:[#allocation86_spill] sm:$0xff]  ;;  %v11349_v59 = vld [vmem:[#allocation41_spill] sm:$0xff] }
 0xc1f   : > { %v4893_v26 = vadd.f32 %v11310_v33, %v4873_v43  ;;  %v3913_v44 = vadd.f32 %v11311_v6, %v3893_v16  ;;  %v11329_v43 = vld [vmem:[#allocation32_spill] sm:$0xff]  ;;  %v11331_v33 = vld [vmem:[#allocation33_spill] sm:$0xff] }
 0xc20   : > { %v6973_v60 = vadd.f32 %v6972_v29, %v6953_v25  ;;  %v11351_v29 = vld [vmem:[#allocation42_spill] sm:$0xff] }
 0xc21   : > { %v4913_v45 = vadd.f32 %v11312_v2, %v4893_v26  ;;  %v3933_v38 = vadd.f32 %v11313_v37, %v3913_v44  ;;  %v7012_v2 = vpop.f32.mrf.mxu3 }
 0xc22   : > { %v6993_v44 = vadd.f32 %v6992_v5, %v6973_v60  ;;  %v7072_v56 = vpop.f32.mrf.mxu2  ;;  %v11353_v60 = vld [vmem:[#allocation43_spill] sm:$0xff] }
 0xc23   : > { %v4933_v17 = vadd.f32 %v11314_v31, %v4913_v45  ;;  %v3953_v22 = vadd.f32 %v11315_v55, %v3933_v38  ;;  %v7032_v45 = vpop.f32.mrf.mxu0  ;;  %v11336_v38 = vld [vmem:[#allocation80_spill] sm:$0xff] }
 0xc24   : > { %v7013_v31 = vadd.f32 %v7012_v2, %v6993_v44  ;;  %v11355_v2 = vld [vmem:[#allocation44_spill] sm:$0xff] }
 0xc25   : > { %v4953_v52 = vadd.f32 %v11316_v51, %v4933_v17  ;;  %v3973_v54 = vadd.f32 %v11317_v46, %v3953_v22  ;;  %v7438_v17 = vmov 0.0   ;;  %v11338_v22 = vld [vmem:[#allocation81_spill] sm:$0xff]  ;;  %v7052_v13 = vpop.f32.mrf.mxu1  ;;  %v11339_v46 = vld [vmem:[#allocation36_spill] sm:$0xff] }
 0xc26   : > { %208 = vst.msk [vmem:[%s11124_s27] sm:$0xff] %vm11128_vm6, %v7438_v17 }
 0xc27   : > { %v4973_v8 = vadd.f32 %v11318_v39, %v4953_v52  ;;  %v3993_v41 = vadd.f32 %v11319_v40, %v3973_v54  ;;  %v7033_v52 = vadd.f32 %v7032_v45, %v7013_v31  ;;  %v11357_v31 = vld [vmem:[#allocation45_spill] sm:$0xff] }
 0xc29   : > { %v4993_v48 = vadd.f32 %v11320_v47, %v4973_v8  ;;  %v4013_v57 = vadd.f32 %v11321_v61, %v3993_v41  ;;  %v7053_v8 = vadd.f32 %v7052_v13, %v7033_v52  ;;  %v11342_v41 = vld [vmem:[#allocation83_spill] sm:$0xff]  ;;  %v7092_v23 = vpop.f32.mrf.mxu3  ;;  %v11343_v61 = vld [vmem:[#allocation38_spill] sm:$0xff] }
 0xc2a   : > { %v11358_v52 = vld [vmem:[#allocation46_spill] sm:$0xff] }
 0xc2b   : > { %v5013_v62 = vadd.f32 %v11322_v15, %v4993_v48  ;;  %v4033_v3 = vadd.f32 %v11323_v27, %v4013_v57  ;;  %v7073_v48 = vadd.f32 %v7072_v56, %v7053_v8  ;;  %v7260_v56 = vrot.slane %v10507_v12, 4 }
 0xc2d   : > { %v5033_v49 = vadd.f32 %v11324_v42, %v5013_v62  ;;  %v4053_v18 = vadd.f32 %v11325_v1, %v4033_v3  ;;  %v7093_v62 = vadd.f32 %v7092_v23, %v7073_v48  ;;  %v11346_v3 = vld [vmem:[#allocation85_spill] sm:$0xff]  ;;  %v11347_v1 = vld [vmem:[#allocation40_spill] sm:$0xff] }
 0xc2e   : > { %v7112_v32 = vpop.f32.mrf.mxu0 }
 0xc2f   : > { %v5053_v19 = vadd.f32 %v11326_v11, %v5033_v49  ;;  %v4073_v20 = vadd.f32 %v11327_v34, %v4053_v18  ;;  %v7113_v49 = vadd.f32 %v7112_v32, %v7093_v62 }
 0xc31   : > { %v5073_v24 = vadd.f32 %v11328_v4, %v5053_v19  ;;  %v4093_v35 = vadd.f32 %v11329_v43, %v4073_v20  ;;  %v11350_v20 = vld [vmem:[#allocation87_spill] sm:$0xff] }
 0xc33   : > { %v5093_v16 = vadd.f32 %v11330_v50, %v5073_v24  ;;  %v4113_v26 = vadd.f32 %v11331_v33, %v4093_v35  ;;  %v11352_v35 = vld [vmem:[#allocation88_spill] sm:$0xff] }
 0xc34   : > { %v7132_v53 = vpop.f32.mrf.mxu1 }
 0xc35   : > { %v5113_v6 = vadd.f32 %v11332_v28, %v5093_v16  ;;  %v4133_v37 = vadd.f32 %v11335_v10, %v4113_v26  ;;  %v7133_v19 = vadd.f32 %v7132_v53, %v7113_v49  ;;  %v11354_v26 = vld [vmem:[#allocation89_spill] sm:$0xff]  ;;  %v11356_v10 = vld [vmem:[#allocation90_spill] sm:$0xff] }
 0xc36   : > { %v7152_v0 = vpop.f32.mrf.mxu2 }
 0xc37   : > { %v5133_v30 = vadd.f32 %v11336_v38, %v5113_v6  ;;  %v4153_v55 = vadd.f32 %v11337_v21, %v4133_v37  ;;  %v7153_v24 = vadd.f32 %v7152_v0, %v7133_v19 }
 0xc39   : > { %v5153_v51 = vadd.f32 %v11338_v22, %v5133_v30  ;;  %v4173_v54 = vadd.f32 %v11339_v46, %v4153_v55 }
 0xc3b   : > { %v5173_v39 = vadd.f32 %v11340_v36, %v5153_v51  ;;  %v4193_v40 = vadd.f32 %v11341_v9, %v4173_v54  ;;  %v209_v54 = vld [vmem:[%s11124_s27] sm:$0xff] }
 0xc3d   : > { %v5193_v47 = vadd.f32 %v11342_v41, %v5173_v39  ;;  %v4213_v57 = vadd.f32 %v11343_v61, %v4193_v40 }
 0xc3f   : > { %v5213_v15 = vadd.f32 %v11344_v14, %v5193_v47  ;;  %v4233_v27 = vadd.f32 %v11345_v63, %v4213_v57  ;;  %v7172_v25 = vpop.f32.mrf.mxu3 }
 0xc40   : > { %v7173_v50 = vadd.f32 %v7172_v25, %v7153_v24 }
 0xc41   : > { %v5233_v42 = vadd.f32 %v11346_v3, %v5213_v15  ;;  %v4253_v18 = vadd.f32 %v11347_v1, %v4233_v27 }
 0xc43   : > { %v5253_v11 = vadd.f32 %v11348_v58, %v5233_v42  ;;  %v4273_v34 = vadd.f32 %v11349_v59, %v4253_v18 }
 0xc45   : > { %v5273_v4 = vadd.f32 %v11350_v20, %v5253_v11  ;;  %v4293_v43 = vadd.f32 %v11351_v29, %v4273_v34 }
 0xc47   : > { %v5293_v5 = vadd.f32 %v11352_v35, %v5273_v4  ;;  %v4313_v33 = vadd.f32 %v11353_v60, %v4293_v43 }
 0xc49   : > { %v5313_v28 = vadd.f32 %v11354_v26, %v5293_v5  ;;  %v4333_v45 = vadd.f32 %v11355_v2, %v4313_v33 }
 0xc4b   : > { %v5333_v37 = vadd.f32 %v11356_v10, %v5313_v28  ;;  %v4353_v17 = vadd.f32 %v11357_v31, %v4333_v45 }
 0xc4d   : > { %v7259_v22 = vrot.slane %v5333_v37, 6  ;;  %v4373_v13 = vadd.f32 %v11358_v52, %v4353_v17 }
 0xc4f   : > { %v7263_v36 = vsel %vm201_vm0, %v4373_v13, %v7259_v22 }
 0xc6f   : > { %v7192_v16 = vpop.f32.mrf.mxu0 }
 0xc70   : > { %v7193_v6 = vadd.f32 %v7192_v16, %v7173_v50 }
 0xc73   : > { %v7212_v44 = vpop.f32.mrf.mxu1 }
 0xc74   : > { %v7213_v38 = vadd.f32 %v7212_v44, %v7193_v6 }
 0xc77   : > { %v7232_v30 = vpop.f32.mrf.mxu2 }
 0xc78   : > { %v7233_v21 = vadd.f32 %v7232_v30, %v7213_v38 }
 0xc7b   : > { %v7252_v55 = vpop.f32.mrf.mxu3 }
 0xc7c   : > { %v7253_v51 = vadd.f32 %v7252_v55, %v7233_v21 }
 0xc7e   : > { %v7261_v46 = vrot.slane %v7253_v51, 2 }
 0xc80   : > { %v7265_v39 = vsel %vm204_vm3, %v7260_v56, %v7261_v46 }
 0xc81   : > { %v7267_v8 = vsel %vm7266_vm7, %v7263_v36, %v7265_v39 }
 0xc82   : > { %v7269_v9 = vadd.f32 %v7267_v8, %v209_v54 }
 0xc84   : > { %7275 = vst.msk [vmem:[%s11124_s27] sm:$0xff] %vm11128_vm6, %v7269_v9 }
 0xc85 PF: > { %s12_s11 = sadd.s32 1, %s7436_s11   ;;  %s11359_s9 = smov %s7432_s10 }
 0xc86   : > { %p9_p7 = scmp.ge.s32.totalorder %s12_s11, 4   ;;  %s11360_s10 = smov %s11362_s12 }
 0xc88   :  { %11 = sbr.rel (!%p9_p7) target bundleno = 2 (0x2), region = 66 }

</bundles_post_ra>
